<compile_context>
chip_gen: v7x
topology: tpu7x:2x2x1
jax: 0.10.0
libtpu: 0.0.40
codegen_flags: <defaults>
</compile_context>

<pallas_src>
import functools
import math

import jax
import jax.numpy as jnp
from jax.experimental import pallas as pl
from jax.experimental.pallas import tpu as pltpu


_VMEM_LIMIT_BYTES = 32 * 1024 * 1024


def _cparams():
    return pltpu.CompilerParams(
        dimension_semantics=("parallel",),
        vmem_limit_bytes=_VMEM_LIMIT_BYTES,
    )


def _round_up(x, m):
    return ((x + m - 1) // m) * m


def _whole(a):
    """Full-array block with a constant index_map (1-D grid)."""
    nd = a.ndim
    return pl.BlockSpec(a.shape, lambda n, _nd=nd: (0,) * _nd)


# ----------------------------------------------------------------------------
# Kernels
# ----------------------------------------------------------------------------
def _mm_kernel(x_ref, w_ref, b_ref, o_ref, *, relu6):
    """Tiled 1x1 conv: bf16 matmul (f32 accum) + bias (+ ReLU6)."""
    y = jnp.dot(x_ref[...], w_ref[...], preferred_element_type=jnp.float32)
    y = y + b_ref[...]
    if relu6:
        y = jnp.clip(y, 0.0, 6.0)
    o_ref[...] = y.astype(o_ref.dtype)


def _head_kernel(xph_ref, w_ref, b_ref, o_ref, *, Ho, Wo):
    """Head 3x3 conv, stride 2, pad 1: 9 taps fused from a phase-split input.

    xph_ref: (4, Ho+1, Wo+1, Cin) bf16 with xph[2*ph+pw, a, b] = padded[2a+ph, 2b+pw]
    w_ref:   (3, 3, Cin, Cout) bf16 (BN scale folded in);  b_ref: (1, Cout) f32
    o_ref:   (Ho*Wo, Cout) bf16
    """
    Cin = xph_ref.shape[-1]
    acc = jnp.zeros(o_ref.shape, jnp.float32)
    for kh in range(3):
        for kw in range(3):
            p = (kh % 2) * 2 + (kw % 2)
            win = xph_ref[p, kh // 2:kh // 2 + Ho, kw // 2:kw // 2 + Wo, :]
            acc = acc + jnp.dot(win.reshape(Ho * Wo, Cin), w_ref[kh, kw],
                                preferred_element_type=jnp.float32)
    o_ref[...] = jnp.clip(acc + b_ref[...], 0.0, 6.0).astype(o_ref.dtype)


def _dw_s2_project_kernel(xph_ref, wd_ref, bd_ref, wp_ref, bp_ref, o_ref, *, Ho, Wo):
    """Fused depthwise 3x3 / stride 2 + ReLU6 + project 1x1 + bias.

    xph_ref: (4, Ho+1, Wo+1, Chid) bf16 phase-split padded expanded activation
    wd_ref:  (9, 1, Chid) f32;  bd_ref: (1, Chid) f32
    wp_ref:  (Chid, Cout) bf16; bp_ref: (1, Cout) f32
    o_ref:   (Ho*Wo, Cout) bf16
    """
    Chid = xph_ref.shape[-1]
    acc = jnp.zeros((Ho, Wo, Chid), jnp.float32)
    for kh in range(3):
        for kw in range(3):
            p = (kh % 2) * 2 + (kw % 2)
            win = xph_ref[p, kh // 2:kh // 2 + Ho, kw // 2:kw // 2 + Wo, :]
            acc = acc + win.astype(jnp.float32) * wd_ref[kh * 3 + kw]
    dwo = jnp.clip(acc + bd_ref[...], 0.0, 6.0)                 # (Ho, Wo, Chid)
    out = jnp.dot(dwo.reshape(Ho * Wo, Chid).astype(jnp.bfloat16), wp_ref[...],
                  preferred_element_type=jnp.float32) + bp_ref[...]
    o_ref[...] = out.astype(o_ref.dtype)


def _fused_block_kernel(*refs, H, W, Chid, use_res, has_expand):
    """Fused stride-1 inverted residual: expand -> dw3x3 -> project (+residual).

    The expanded hidden activation only ever lives in VMEM scratch.
      x_ref:   (H*W, Cin) bf16        o_ref: (H*W, Cout) bf16
      hid_ref: (H+2, W+2, Chid) f32 scratch (zero-padded depthwise input)
    """
    if has_expand:
        (x_ref, we_ref, be_ref, wd_ref, bd_ref, wp_ref, bp_ref,
         o_ref, hid_ref) = refs
    else:
        (x_ref, wd_ref, bd_ref, wp_ref, bp_ref, o_ref, hid_ref) = refs

    x2d = x_ref[...]                                            # (H*W, Cin) bf16

    # --- expand 1x1 + bias + ReLU6 (hidden stays on-chip) ---
    if has_expand:
        h = jnp.dot(x2d, we_ref[...], preferred_element_type=jnp.float32)
        h = jnp.clip(h + be_ref[...], 0.0, 6.0)                 # (H*W, Chid) f32
    else:
        h = x2d.astype(jnp.float32)

    # --- depthwise 3x3, stride 1, pad 1: zero-padded scratch + 9 shifted MACs ---
    hid_ref[...] = jnp.zeros_like(hid_ref)
    hid_ref[1:H + 1, 1:W + 1, :] = h.reshape(H, W, Chid)
    acc = jnp.zeros((H, W, Chid), jnp.float32)
    for kh in range(3):
        for kw in range(3):
            acc = acc + hid_ref[kh:kh + H, kw:kw + W, :] * wd_ref[kh * 3 + kw]
    dwo = jnp.clip(acc + bd_ref[...], 0.0, 6.0)                 # (H, W, Chid)

    # --- project 1x1 + bias (+ residual): one MXU matmul over all pixels ---
    out = jnp.dot(dwo.reshape(H * W, Chid).astype(jnp.bfloat16), wp_ref[...],
                  preferred_element_type=jnp.float32) + bp_ref[...]
    if use_res:
        out = out + x2d.astype(jnp.float32)
    o_ref[...] = out.astype(o_ref.dtype)


# ----------------------------------------------------------------------------
# pallas_call wrappers
# ----------------------------------------------------------------------------
def _matmul_bias_act(x2d, w, b, *, relu6):
    """bf16 matmul + bias (+ReLU6), tiled over the pixel dim M ("parallel")."""
    M, K = x2d.shape
    Cout = w.shape[1]
    TM = min(512, _round_up(M, 8))
    Mp = _round_up(M, TM)
    if Mp != M:
        x2d = jnp.pad(x2d, ((0, Mp - M), (0, 0)))
    out = pl.pallas_call(
        functools.partial(_mm_kernel, relu6=relu6),
        out_shape=jax.ShapeDtypeStruct((Mp, Cout), jnp.bfloat16),
        grid=(Mp // TM,),
        in_specs=[pl.BlockSpec((TM, K), lambda i: (i, 0)),
                  pl.BlockSpec((K, Cout), lambda i: (0, 0)),
                  pl.BlockSpec((1, Cout), lambda i: (0, 0))],
        out_specs=pl.BlockSpec((TM, Cout), lambda i: (i, 0)),
        compiler_params=_cparams(),
    )(x2d, w, b)
    return out[:M] if Mp != M else out


def _pad_and_phase_split(x, Ho, Wo):
    """(N,H,W,C) -> (N,4,Ho+1,Wo+1,C); phase p=2*ph+pw, out[:,p,a,b]=padded[:,2a+ph,2b+pw]."""
    N, H, W, C = x.shape
    Hp, Wp = 2 * (Ho + 1), 2 * (Wo + 1)
    xp = jnp.pad(x, ((0, 0), (1, Hp - H - 1), (1, Wp - W - 1), (0, 0)))
    xph = xp.reshape(N, Ho + 1, 2, Wo + 1, 2, C)
    xph = jnp.transpose(xph, (0, 2, 4, 1, 3, 5))
    return xph.reshape(N, 4, Ho + 1, Wo + 1, C)


def _head_conv(x, head_params):
    """3x3 conv, stride 2, pad 1, folded BN + ReLU6.  x: (N,H,W,Cin) bf16."""
    w, b = head_params
    N, H, W, Cin = x.shape
    Ho = (H - 1) // 2 + 1
    Wo = (W - 1) // 2 + 1
    Cout = w.shape[-1]
    xph = _pad_and_phase_split(x, Ho, Wo)
    out = pl.pallas_call(
        functools.partial(_head_kernel, Ho=Ho, Wo=Wo),
        out_shape=jax.ShapeDtypeStruct((N, Ho * Wo, Cout), jnp.bfloat16),
        grid=(N,),
        in_specs=[pl.BlockSpec((None, 4, Ho + 1, Wo + 1, Cin),
                               lambda n: (n, 0, 0, 0, 0)),
                  _whole(w), _whole(b)],
        out_specs=pl.BlockSpec((None, Ho * Wo, Cout), lambda n: (n, 0, 0)),
        compiler_params=_cparams(),
    )(xph, w, b)
    return out.reshape(N, Ho, Wo, Cout)


def _dw_s2_project(x, wd, bd, wp, bp):
    """Fused depthwise 3x3 / s2 + ReLU6 + project 1x1.  x: (N,H,W,Chid) bf16."""
    N, H, W, Chid = x.shape
    Ho = (H - 1) // 2 + 1
    Wo = (W - 1) // 2 + 1
    Cout = wp.shape[1]
    xph = _pad_and_phase_split(x, Ho, Wo)
    out = pl.pallas_call(
        functools.partial(_dw_s2_project_kernel, Ho=Ho, Wo=Wo),
        out_shape=jax.ShapeDtypeStruct((N, Ho * Wo, Cout), jnp.bfloat16),
        grid=(N,),
        in_specs=[pl.BlockSpec((None, 4, Ho + 1, Wo + 1, Chid),
                               lambda n: (n, 0, 0, 0, 0)),
                  _whole(wd), _whole(bd), _whole(wp), _whole(bp)],
        out_specs=pl.BlockSpec((None, Ho * Wo, Cout), lambda n: (n, 0, 0)),
        compiler_params=_cparams(),
    )(xph, wd, bd, wp, bp)
    return out.reshape(N, Ho, Wo, Cout)


def _fused_block(x, blk):
    """One fused pallas_call per image for a stride-1 inverted-residual block."""
    N, H, W, Cin = x.shape
    has_expand = "expand" in blk
    wd, bd = blk["dw"]
    wp_w, wp_b = blk["project"]
    Chid = wd.shape[-1]
    Cout = wp_w.shape[1]

    x_flat = x.reshape(N, H * W, Cin)
    inputs = [x_flat]
    in_specs = [pl.BlockSpec((None, H * W, Cin), lambda n: (n, 0, 0))]
    if has_expand:
        we, be = blk["expand"]
        inputs += [we, be]
        in_specs += [_whole(we), _whole(be)]
    inputs += [wd, bd, wp_w, wp_b]
    in_specs += [_whole(wd), _whole(bd), _whole(wp_w), _whole(wp_b)]

    out = pl.pallas_call(
        functools.partial(_fused_block_kernel, H=H, W=W, Chid=Chid,
                          use_res=blk["use_res"], has_expand=has_expand),
        out_shape=jax.ShapeDtypeStruct((N, H * W, Cout), jnp.bfloat16),
        grid=(N,),
        in_specs=in_specs,
        out_specs=pl.BlockSpec((None, H * W, Cout), lambda n: (n, 0, 0)),
        scratch_shapes=[pltpu.VMEM((H + 2, W + 2, Chid), jnp.float32)],
        compiler_params=_cparams(),
    )(*inputs)
    return out.reshape(N, H, W, Cout)


def _inverted_residual(x, blk):
    if blk["stride"] == 1:
        return _fused_block(x, blk)
    # stride-2 block (never has a residual): expand -> fused dw/s2 + project.
    N, H, W, Cin = x.shape
    h = x
    if "expand" in blk:
        we, be = blk["expand"]
        Chid = we.shape[1]
        h = _matmul_bias_act(h.reshape(N * H * W, Cin), we, be, relu6=True)
        h = h.reshape(N, H, W, Chid)
    wd, bd = blk["dw"]
    wp_w, wp_b = blk["project"]
    return _dw_s2_project(h, wd, bd, wp_w, wp_b)


# ----------------------------------------------------------------------------
# MobileNetV2 feature extractor (head + inverted_0..inverted_4)
# ----------------------------------------------------------------------------
_HEAD_CHANNELS = 32
_INVERTED_SETTINGS = [
    # (expand_ratio t, out_channels c, num_blocks n, first_stride s)
    (1, 16, 1, 1),   # inverted_0  -> low_feat
    (6, 24, 2, 2),   # inverted_1  -> mid_feat
    (6, 32, 3, 2),   # inverted_2
    (6, 64, 4, 2),   # inverted_3
    (6, 96, 3, 1),   # inverted_4  -> high_feat
]


def init_params(in_channels, key):
    """Deterministic synthetic weights with eval-mode BN folded in (bf16 weights)."""
    cnt = [0]

    def nk():
        cnt[0] += 1
        return jax.random.fold_in(key, cnt[0])

    def conv_w(shape, fan_in):
        return jax.random.normal(nk(), shape, jnp.float32) / math.sqrt(fan_in)

    def bn(c):
        scale = 1.0 + 0.1 * jax.random.normal(nk(), (1, c), jnp.float32)
        bias = 0.05 * jax.random.normal(nk(), (1, c), jnp.float32)
        return scale, bias

    def pw(cin, cout):  # 1x1 conv + folded BN -> (bf16 weight, f32 bias)
        w = conv_w((cin, cout), cin)
        s, b = bn(cout)
        return (w * s).astype(jnp.bfloat16), b

    def dw(c):          # depthwise 3x3 + folded BN -> ((9,1,c) f32 weight, f32 bias)
        w = conv_w((3, 3, c), 9.0)
        s, b = bn(c)
        return (w * s.reshape(1, 1, c)).reshape(9, 1, c), b

    params = {}
    w = conv_w((3, 3, in_channels, _HEAD_CHANNELS), 9 * in_channels)
    s, b = bn(_HEAD_CHANNELS)
    params["head"] = ((w * s.reshape(1, 1, 1, -1)).astype(jnp.bfloat16), b)

    stages = []
    cin = _HEAD_CHANNELS
    for t, c, n, s0 in _INVERTED_SETTINGS:
        blocks = []
        for i in range(n):
            stride = s0 if i == 0 else 1
            hidden = cin * t
            blk = {"stride": stride, "use_res": (stride == 1 and cin == c)}
            if t != 1:
                blk["expand"] = pw(cin, hidden)
            blk["dw"] = dw(hidden)
            blk["project"] = pw(hidden, c)
            blocks.append(blk)
            cin = c
        stages.append(blocks)
    params["stages"] = stages
    return params


def mobilenet_feat_forward(params, x_nchw):
    """Mirrors mobilenet_feat.forward: returns (low_feat, mid_feat, high_feat), NCHW f32."""
    x = jnp.transpose(x_nchw, (0, 2, 3, 1)).astype(jnp.bfloat16)   # NCHW -> NHWC bf16
    x = _head_conv(x, params["head"])                              # backbone.head
    feats = []
    for blocks in params["stages"]:                                # inverted_0 .. inverted_4
        for blk in blocks:
            x = _inverted_residual(x, blk)
        feats.append(x)
    low, mid, high = feats[0], feats[1], feats[4]
    to_nchw = lambda t: jnp.transpose(t.astype(jnp.float32), (0, 3, 1, 2))
    return to_nchw(low), to_nchw(mid), to_nchw(high)


if __name__ == "__main__":
    key = jax.random.PRNGKey(0)
    in_channels = 4
    params = init_params(in_channels, jax.random.fold_in(key, 1))
    x = jax.random.normal(jax.random.fold_in(key, 2), (2, in_channels, 16, 16), jnp.float32)

    fwd = jax.jit(lambda inp: mobilenet_feat_forward(params, inp))
    low, mid, high = fwd(x)
    jax.block_until_ready((low, mid, high))

    assert low.shape == (2, 16, 8, 8), low.shape
    assert mid.shape == (2, 24, 4, 4), mid.shape
    assert high.shape == (2, 96, 1, 1), high.shape
    print("KERNEL_OK")
</pallas_src>

<mosaic_0001>
module attributes {stable_mosaic.version = 11 : i64} {
  func.func @_head_kernel(%arg0: i32, %arg1: memref<1x4x9x9x4xbf16, #tpu.memory_space<vmem>>, %arg2: memref<3x3x4x32xbf16, #tpu.memory_space<vmem>>, %arg3: memref<1x32xf32, #tpu.memory_space<vmem>>, %arg4: memref<1x64x32xbf16, #tpu.memory_space<vmem>>) attributes {dimension_semantics = [#tpu.dimension_semantics<parallel>], iteration_bounds = array<i64: 2>, scalar_prefetch = 0 : i64, scratch_operands = 0 : i64, tpu.core_type = #tpu.core_type<tc>, window_params = [{transform_indices = @transform_0, window_bounds = array<i64: 1, 4, 9, 9, 4>}, {pipeline_mode = #tpu.pipeline_mode<synchronous>, transform_indices = @transform_1, window_bounds = array<i64: 3, 3, 4, 32>}, {pipeline_mode = #tpu.pipeline_mode<synchronous>, transform_indices = @transform_2, window_bounds = array<i64: 1, 32>}, {transform_indices = @transform_3, window_bounds = array<i64: 1, 64, 32>}]} {
    %cst = arith.constant 0.000000e+00 : f32
    %0 = vector.broadcast %cst : f32 to vector<64x32xf32>
    %c0 = arith.constant 0 : index
    %c0_0 = arith.constant 0 : index
    %c0_1 = arith.constant 0 : index
    %c0_2 = arith.constant 0 : index
    %c0_3 = arith.constant 0 : index
    %1 = vector.load %arg1[%c0, %c0_0, %c0_1, %c0_2, %c0_3] : memref<1x4x9x9x4xbf16, #tpu.memory_space<vmem>>, vector<1x1x8x8x4xbf16>
    %2 = vector.shape_cast %1 : vector<1x1x8x8x4xbf16> to vector<8x8x4xbf16>
    %3 = vector.shape_cast %2 : vector<8x8x4xbf16> to vector<64x4xbf16>
    %c0_4 = arith.constant 0 : index
    %c0_5 = arith.constant 0 : index
    %c0_6 = arith.constant 0 : index
    %c0_7 = arith.constant 0 : index
    %4 = vector.load %arg2[%c0_4, %c0_5, %c0_6, %c0_7] : memref<3x3x4x32xbf16, #tpu.memory_space<vmem>>, vector<1x1x4x32xbf16>
    %5 = vector.shape_cast %4 : vector<1x1x4x32xbf16> to vector<4x32xbf16>
    %cst_8 = arith.constant dense<0.000000e+00> : vector<64x32xf32>
    %6 = tpu.matmul %3, %5, %cst_8 {dimension_numbers = #tpu.dot_dimension_numbers<[1], [0], [0], [1], [0, 0, 1, 1], [], []>} : vector<64x4xbf16>, vector<4x32xbf16>, vector<64x32xf32> -> vector<64x32xf32>
    %7 = arith.addf %0, %6 : vector<64x32xf32>
    %c0_9 = arith.constant 0 : index
    %c1 = arith.constant 1 : index
    %c0_10 = arith.constant 0 : index
    %c0_11 = arith.constant 0 : index
    %c0_12 = arith.constant 0 : index
    %8 = vector.load %arg1[%c0_9, %c1, %c0_10, %c0_11, %c0_12] : memref<1x4x9x9x4xbf16, #tpu.memory_space<vmem>>, vector<1x1x8x8x4xbf16>
    %9 = vector.shape_cast %8 : vector<1x1x8x8x4xbf16> to vector<8x8x4xbf16>
    %10 = vector.shape_cast %9 : vector<8x8x4xbf16> to vector<64x4xbf16>
    %c0_13 = arith.constant 0 : index
    %c1_14 = arith.constant 1 : index
    %c0_15 = arith.constant 0 : index
    %c0_16 = arith.constant 0 : index
    %11 = vector.load %arg2[%c0_13, %c1_14, %c0_15, %c0_16] : memref<3x3x4x32xbf16, #tpu.memory_space<vmem>>, vector<1x1x4x32xbf16>
    %12 = vector.shape_cast %11 : vector<1x1x4x32xbf16> to vector<4x32xbf16>
    %cst_17 = arith.constant dense<0.000000e+00> : vector<64x32xf32>
    %13 = tpu.matmul %10, %12, %cst_17 {dimension_numbers = #tpu.dot_dimension_numbers<[1], [0], [0], [1], [0, 0, 1, 1], [], []>} : vector<64x4xbf16>, vector<4x32xbf16>, vector<64x32xf32> -> vector<64x32xf32>
    %14 = arith.addf %7, %13 : vector<64x32xf32>
    %c0_18 = arith.constant 0 : index
    %c0_19 = arith.constant 0 : index
    %c0_20 = arith.constant 0 : index
    %c1_21 = arith.constant 1 : index
    %c0_22 = arith.constant 0 : index
    %15 = vector.load %arg1[%c0_18, %c0_19, %c0_20, %c1_21, %c0_22] : memref<1x4x9x9x4xbf16, #tpu.memory_space<vmem>>, vector<1x1x8x8x4xbf16>
    %16 = vector.shape_cast %15 : vector<1x1x8x8x4xbf16> to vector<8x8x4xbf16>
    %17 = vector.shape_cast %16 : vector<8x8x4xbf16> to vector<64x4xbf16>
    %c0_23 = arith.constant 0 : index
    %c2 = arith.constant 2 : index
    %c0_24 = arith.constant 0 : index
    %c0_25 = arith.constant 0 : index
    %18 = vector.load %arg2[%c0_23, %c2, %c0_24, %c0_25] : memref<3x3x4x32xbf16, #tpu.memory_space<vmem>>, vector<1x1x4x32xbf16>
    %19 = vector.shape_cast %18 : vector<1x1x4x32xbf16> to vector<4x32xbf16>
    %cst_26 = arith.constant dense<0.000000e+00> : vector<64x32xf32>
    %20 = tpu.matmul %17, %19, %cst_26 {dimension_numbers = #tpu.dot_dimension_numbers<[1], [0], [0], [1], [0, 0, 1, 1], [], []>} : vector<64x4xbf16>, vector<4x32xbf16>, vector<64x32xf32> -> vector<64x32xf32>
    %21 = arith.addf %14, %20 : vector<64x32xf32>
    %c0_27 = arith.constant 0 : index
    %c2_28 = arith.constant 2 : index
    %c0_29 = arith.constant 0 : index
    %c0_30 = arith.constant 0 : index
    %c0_31 = arith.constant 0 : index
    %22 = vector.load %arg1[%c0_27, %c2_28, %c0_29, %c0_30, %c0_31] : memref<1x4x9x9x4xbf16, #tpu.memory_space<vmem>>, vector<1x1x8x8x4xbf16>
    %23 = vector.shape_cast %22 : vector<1x1x8x8x4xbf16> to vector<8x8x4xbf16>
    %24 = vector.shape_cast %23 : vector<8x8x4xbf16> to vector<64x4xbf16>
    %c1_32 = arith.constant 1 : index
    %c0_33 = arith.constant 0 : index
    %c0_34 = arith.constant 0 : index
    %c0_35 = arith.constant 0 : index
    %25 = vector.load %arg2[%c1_32, %c0_33, %c0_34, %c0_35] : memref<3x3x4x32xbf16, #tpu.memory_space<vmem>>, vector<1x1x4x32xbf16>
    %26 = vector.shape_cast %25 : vector<1x1x4x32xbf16> to vector<4x32xbf16>
    %cst_36 = arith.constant dense<0.000000e+00> : vector<64x32xf32>
    %27 = tpu.matmul %24, %26, %cst_36 {dimension_numbers = #tpu.dot_dimension_numbers<[1], [0], [0], [1], [0, 0, 1, 1], [], []>} : vector<64x4xbf16>, vector<4x32xbf16>, vector<64x32xf32> -> vector<64x32xf32>
    %28 = arith.addf %21, %27 : vector<64x32xf32>
    %c0_37 = arith.constant 0 : index
    %c3 = arith.constant 3 : index
    %c0_38 = arith.constant 0 : index
    %c0_39 = arith.constant 0 : index
    %c0_40 = arith.constant 0 : index
    %29 = vector.load %arg1[%c0_37, %c3, %c0_38, %c0_39, %c0_40] : memref<1x4x9x9x4xbf16, #tpu.memory_space<vmem>>, vector<1x1x8x8x4xbf16>
    %30 = vector.shape_cast %29 : vector<1x1x8x8x4xbf16> to vector<8x8x4xbf16>
    %31 = vector.shape_cast %30 : vector<8x8x4xbf16> to vector<64x4xbf16>
    %c1_41 = arith.constant 1 : index
    %c1_42 = arith.constant 1 : index
    %c0_43 = arith.constant 0 : index
    %c0_44 = arith.constant 0 : index
    %32 = vector.load %arg2[%c1_41, %c1_42, %c0_43, %c0_44] : memref<3x3x4x32xbf16, #tpu.memory_space<vmem>>, vector<1x1x4x32xbf16>
    %33 = vector.shape_cast %32 : vector<1x1x4x32xbf16> to vector<4x32xbf16>
    %cst_45 = arith.constant dense<0.000000e+00> : vector<64x32xf32>
    %34 = tpu.matmul %31, %33, %cst_45 {dimension_numbers = #tpu.dot_dimension_numbers<[1], [0], [0], [1], [0, 0, 1, 1], [], []>} : vector<64x4xbf16>, vector<4x32xbf16>, vector<64x32xf32> -> vector<64x32xf32>
    %35 = arith.addf %28, %34 : vector<64x32xf32>
    %c0_46 = arith.constant 0 : index
    %c2_47 = arith.constant 2 : index
    %c0_48 = arith.constant 0 : index
    %c1_49 = arith.constant 1 : index
    %c0_50 = arith.constant 0 : index
    %36 = vector.load %arg1[%c0_46, %c2_47, %c0_48, %c1_49, %c0_50] : memref<1x4x9x9x4xbf16, #tpu.memory_space<vmem>>, vector<1x1x8x8x4xbf16>
    %37 = vector.shape_cast %36 : vector<1x1x8x8x4xbf16> to vector<8x8x4xbf16>
    %38 = vector.shape_cast %37 : vector<8x8x4xbf16> to vector<64x4xbf16>
    %c1_51 = arith.constant 1 : index
    %c2_52 = arith.constant 2 : index
    %c0_53 = arith.constant 0 : index
    %c0_54 = arith.constant 0 : index
    %39 = vector.load %arg2[%c1_51, %c2_52, %c0_53, %c0_54] : memref<3x3x4x32xbf16, #tpu.memory_space<vmem>>, vector<1x1x4x32xbf16>
    %40 = vector.shape_cast %39 : vector<1x1x4x32xbf16> to vector<4x32xbf16>
    %cst_55 = arith.constant dense<0.000000e+00> : vector<64x32xf32>
    %41 = tpu.matmul %38, %40, %cst_55 {dimension_numbers = #tpu.dot_dimension_numbers<[1], [0], [0], [1], [0, 0, 1, 1], [], []>} : vector<64x4xbf16>, vector<4x32xbf16>, vector<64x32xf32> -> vector<64x32xf32>
    %42 = arith.addf %35, %41 : vector<64x32xf32>
    %c0_56 = arith.constant 0 : index
    %c0_57 = arith.constant 0 : index
    %c1_58 = arith.constant 1 : index
    %c0_59 = arith.constant 0 : index
    %c0_60 = arith.constant 0 : index
    %43 = vector.load %arg1[%c0_56, %c0_57, %c1_58, %c0_59, %c0_60] : memref<1x4x9x9x4xbf16, #tpu.memory_space<vmem>>, vector<1x1x8x8x4xbf16>
    %44 = vector.shape_cast %43 : vector<1x1x8x8x4xbf16> to vector<8x8x4xbf16>
    %45 = vector.shape_cast %44 : vector<8x8x4xbf16> to vector<64x4xbf16>
    %c2_61 = arith.constant 2 : index
    %c0_62 = arith.constant 0 : index
    %c0_63 = arith.constant 0 : index
    %c0_64 = arith.constant 0 : index
    %46 = vector.load %arg2[%c2_61, %c0_62, %c0_63, %c0_64] : memref<3x3x4x32xbf16, #tpu.memory_space<vmem>>, vector<1x1x4x32xbf16>
    %47 = vector.shape_cast %46 : vector<1x1x4x32xbf16> to vector<4x32xbf16>
    %cst_65 = arith.constant dense<0.000000e+00> : vector<64x32xf32>
    %48 = tpu.matmul %45, %47, %cst_65 {dimension_numbers = #tpu.dot_dimension_numbers<[1], [0], [0], [1], [0, 0, 1, 1], [], []>} : vector<64x4xbf16>, vector<4x32xbf16>, vector<64x32xf32> -> vector<64x32xf32>
    %49 = arith.addf %42, %48 : vector<64x32xf32>
    %c0_66 = arith.constant 0 : index
    %c1_67 = arith.constant 1 : index
    %c1_68 = arith.constant 1 : index
    %c0_69 = arith.constant 0 : index
    %c0_70 = arith.constant 0 : index
    %50 = vector.load %arg1[%c0_66, %c1_67, %c1_68, %c0_69, %c0_70] : memref<1x4x9x9x4xbf16, #tpu.memory_space<vmem>>, vector<1x1x8x8x4xbf16>
    %51 = vector.shape_cast %50 : vector<1x1x8x8x4xbf16> to vector<8x8x4xbf16>
    %52 = vector.shape_cast %51 : vector<8x8x4xbf16> to vector<64x4xbf16>
    %c2_71 = arith.constant 2 : index
    %c1_72 = arith.constant 1 : index
    %c0_73 = arith.constant 0 : index
    %c0_74 = arith.constant 0 : index
    %53 = vector.load %arg2[%c2_71, %c1_72, %c0_73, %c0_74] : memref<3x3x4x32xbf16, #tpu.memory_space<vmem>>, vector<1x1x4x32xbf16>
    %54 = vector.shape_cast %53 : vector<1x1x4x32xbf16> to vector<4x32xbf16>
    %cst_75 = arith.constant dense<0.000000e+00> : vector<64x32xf32>
    %55 = tpu.matmul %52, %54, %cst_75 {dimension_numbers = #tpu.dot_dimension_numbers<[1], [0], [0], [1], [0, 0, 1, 1], [], []>} : vector<64x4xbf16>, vector<4x32xbf16>, vector<64x32xf32> -> vector<64x32xf32>
    %56 = arith.addf %49, %55 : vector<64x32xf32>
    %c0_76 = arith.constant 0 : index
    %c0_77 = arith.constant 0 : index
    %c1_78 = arith.constant 1 : index
    %c1_79 = arith.constant 1 : index
    %c0_80 = arith.constant 0 : index
    %57 = vector.load %arg1[%c0_76, %c0_77, %c1_78, %c1_79, %c0_80] : memref<1x4x9x9x4xbf16, #tpu.memory_space<vmem>>, vector<1x1x8x8x4xbf16>
    %58 = vector.shape_cast %57 : vector<1x1x8x8x4xbf16> to vector<8x8x4xbf16>
    %59 = vector.shape_cast %58 : vector<8x8x4xbf16> to vector<64x4xbf16>
    %c2_81 = arith.constant 2 : index
    %c2_82 = arith.constant 2 : index
    %c0_83 = arith.constant 0 : index
    %c0_84 = arith.constant 0 : index
    %60 = vector.load %arg2[%c2_81, %c2_82, %c0_83, %c0_84] : memref<3x3x4x32xbf16, #tpu.memory_space<vmem>>, vector<1x1x4x32xbf16>
    %61 = vector.shape_cast %60 : vector<1x1x4x32xbf16> to vector<4x32xbf16>
    %cst_85 = arith.constant dense<0.000000e+00> : vector<64x32xf32>
    %62 = tpu.matmul %59, %61, %cst_85 {dimension_numbers = #tpu.dot_dimension_numbers<[1], [0], [0], [1], [0, 0, 1, 1], [], []>} : vector<64x4xbf16>, vector<4x32xbf16>, vector<64x32xf32> -> vector<64x32xf32>
    %63 = arith.addf %56, %62 : vector<64x32xf32>
    %c0_86 = arith.constant 0 : index
    %c0_87 = arith.constant 0 : index
    %64 = vector.load %arg3[%c0_86, %c0_87] : memref<1x32xf32, #tpu.memory_space<vmem>>, vector<1x32xf32>
    %65 = vector.broadcast %64 : vector<1x32xf32> to vector<64x32xf32>
    %66 = arith.addf %63, %65 : vector<64x32xf32>
    %cst_88 = arith.constant 0.000000e+00 : f32
    %cst_89 = arith.constant 6.000000e+00 : f32
    %67 = vector.broadcast %cst_88 : f32 to vector<64x32xf32>
    %68 = arith.maximumf %67, %66 : vector<64x32xf32>
    %69 = vector.broadcast %cst_89 : f32 to vector<64x32xf32>
    %70 = arith.minimumf %69, %68 : vector<64x32xf32>
    %71 = arith.truncf %70 : vector<64x32xf32> to vector<64x32xbf16>
    %c0_90 = arith.constant 0 : index
    %c0_91 = arith.constant 0 : index
    %c0_92 = arith.constant 0 : index
    %72 = vector.load %arg4[%c0_90, %c0_91, %c0_92] : memref<1x64x32xbf16, #tpu.memory_space<vmem>>, vector<1x64x32xbf16>
    %73 = vector.shape_cast %72 : vector<1x64x32xbf16> to vector<64x32xbf16>
    %74 = vector.shape_cast %71 : vector<64x32xbf16> to vector<1x64x32xbf16>
    tpu.vector_store %arg4[%c0_90, %c0_91, %c0_92], %74 {strides = array<i32>} : memref<1x64x32xbf16, #tpu.memory_space<vmem>>, vector<1x64x32xbf16>,
    return
  }
  func.func @transform_0(%arg0: i32) -> (i32, i32, i32, i32, i32) {
    %c0_i32 = arith.constant 0 : i32
    %c0_i32_0 = arith.constant 0 : i32
    %c0_i32_1 = arith.constant 0 : i32
    %c0_i32_2 = arith.constant 0 : i32
    %c0_i32_3 = arith.constant 0 : i32
    return %arg0, %c0_i32, %c0_i32_0, %c0_i32_1, %c0_i32_2 : i32, i32, i32, i32, i32
  }
  func.func @transform_1(%arg0: i32) -> (i32, i32, i32, i32) {
    %c0_i32 = arith.constant 0 : i32
    %c0_i32_0 = arith.constant 0 : i32
    %c0_i32_1 = arith.constant 0 : i32
    %c0_i32_2 = arith.constant 0 : i32
    %c0_i32_3 = arith.constant 0 : i32
    return %c0_i32, %c0_i32_0, %c0_i32_1, %c0_i32_2 : i32, i32, i32, i32
  }
  func.func @transform_2(%arg0: i32) -> (i32, i32) {
    %c0_i32 = arith.constant 0 : i32
    %c0_i32_0 = arith.constant 0 : i32
    %c0_i32_1 = arith.constant 0 : i32
    return %c0_i32, %c0_i32_0 : i32, i32
  }
  func.func @transform_3(%arg0: i32) -> (i32, i32, i32) {
    %c0_i32 = arith.constant 0 : i32
    %c0_i32_0 = arith.constant 0 : i32
    %c0_i32_1 = arith.constant 0 : i32
    return %arg0, %c0_i32, %c0_i32_0 : i32, i32, i32
  }
}

module attributes {stable_mosaic.version = 11 : i64} {
  func.func @_fused_block_kernel(%arg0: i32, %arg1: memref<1x64x32xbf16, #tpu.memory_space<vmem>>, %arg2: memref<9x1x32xf32, #tpu.memory_space<vmem>>, %arg3: memref<1x32xf32, #tpu.memory_space<vmem>>, %arg4: memref<32x16xbf16, #tpu.memory_space<vmem>>, %arg5: memref<1x16xf32, #tpu.memory_space<vmem>>, %arg6: memref<1x64x16xbf16, #tpu.memory_space<vmem>>, %arg7: memref<10x10x32xf32, #tpu.memory_space<vmem>>) attributes {dimension_semantics = [#tpu.dimension_semantics<parallel>], iteration_bounds = array<i64: 2>, scalar_prefetch = 0 : i64, scratch_operands = 1 : i64, tpu.core_type = #tpu.core_type<tc>, window_params = [{transform_indices = @transform_0, window_bounds = array<i64: 1, 64, 32>}, {pipeline_mode = #tpu.pipeline_mode<synchronous>, transform_indices = @transform_1, window_bounds = array<i64: 9, 1, 32>}, {pipeline_mode = #tpu.pipeline_mode<synchronous>, transform_indices = @transform_2, window_bounds = array<i64: 1, 32>}, {pipeline_mode = #tpu.pipeline_mode<synchronous>, transform_indices = @transform_3, window_bounds = array<i64: 32, 16>}, {pipeline_mode = #tpu.pipeline_mode<synchronous>, transform_indices = @transform_4, window_bounds = array<i64: 1, 16>}, {transform_indices = @transform_5, window_bounds = array<i64: 1, 64, 16>}]} {
    %c0 = arith.constant 0 : index
    %c0_0 = arith.constant 0 : index
    %c0_1 = arith.constant 0 : index
    %0 = vector.load %arg1[%c0, %c0_0, %c0_1] : memref<1x64x32xbf16, #tpu.memory_space<vmem>>, vector<1x64x32xbf16>
    %1 = vector.shape_cast %0 : vector<1x64x32xbf16> to vector<64x32xbf16>
    %2 = arith.extf %1 : vector<64x32xbf16> to vector<64x32xf32>
    %cst = arith.constant 0.000000e+00 : f32
    %3 = vector.broadcast %cst : f32 to vector<10x10x32xf32>
    %c0_2 = arith.constant 0 : index
    %c0_3 = arith.constant 0 : index
    %c0_4 = arith.constant 0 : index
    %4 = vector.load %arg7[%c0_2, %c0_3, %c0_4] : memref<10x10x32xf32, #tpu.memory_space<vmem>>, vector<10x10x32xf32>
    tpu.vector_store %arg7[%c0_2, %c0_3, %c0_4], %3 {strides = array<i32>} : memref<10x10x32xf32, #tpu.memory_space<vmem>>, vector<10x10x32xf32>,
    %5 = vector.shape_cast %2 : vector<64x32xf32> to vector<8x8x32xf32>
    %c1 = arith.constant 1 : index
    %c1_5 = arith.constant 1 : index
    %c0_6 = arith.constant 0 : index
    %6 = vector.load %arg7[%c1, %c1_5, %c0_6] : memref<10x10x32xf32, #tpu.memory_space<vmem>>, vector<8x8x32xf32>
    tpu.vector_store %arg7[%c1, %c1_5, %c0_6], %5 {strides = array<i32>} : memref<10x10x32xf32, #tpu.memory_space<vmem>>, vector<8x8x32xf32>,
    %cst_7 = arith.constant 0.000000e+00 : f32
    %7 = vector.broadcast %cst_7 : f32 to vector<8x8x32xf32>
    %c0_8 = arith.constant 0 : index
    %c0_9 = arith.constant 0 : index
    %c0_10 = arith.constant 0 : index
    %8 = vector.load %arg7[%c0_8, %c0_9, %c0_10] : memref<10x10x32xf32, #tpu.memory_space<vmem>>, vector<8x8x32xf32>
    %c0_11 = arith.constant 0 : index
    %c0_12 = arith.constant 0 : index
    %c0_13 = arith.constant 0 : index
    %9 = vector.load %arg2[%c0_11, %c0_12, %c0_13] : memref<9x1x32xf32, #tpu.memory_space<vmem>>, vector<1x1x32xf32>
    %10 = vector.shape_cast %9 : vector<1x1x32xf32> to vector<1x32xf32>
    %11 = vector.shape_cast %10 : vector<1x32xf32> to vector<1x1x32xf32>
    %12 = vector.broadcast %11 : vector<1x1x32xf32> to vector<8x8x32xf32>
    %13 = arith.mulf %8, %12 : vector<8x8x32xf32>
    %14 = arith.addf %7, %13 : vector<8x8x32xf32>
    %c0_14 = arith.constant 0 : index
    %c1_15 = arith.constant 1 : index
    %c0_16 = arith.constant 0 : index
    %15 = vector.load %arg7[%c0_14, %c1_15, %c0_16] : memref<10x10x32xf32, #tpu.memory_space<vmem>>, vector<8x8x32xf32>
    %c1_17 = arith.constant 1 : index
    %c0_18 = arith.constant 0 : index
    %c0_19 = arith.constant 0 : index
    %16 = vector.load %arg2[%c1_17, %c0_18, %c0_19] : memref<9x1x32xf32, #tpu.memory_space<vmem>>, vector<1x1x32xf32>
    %17 = vector.shape_cast %16 : vector<1x1x32xf32> to vector<1x32xf32>
    %18 = vector.shape_cast %17 : vector<1x32xf32> to vector<1x1x32xf32>
    %19 = vector.broadcast %18 : vector<1x1x32xf32> to vector<8x8x32xf32>
    %20 = arith.mulf %15, %19 : vector<8x8x32xf32>
    %21 = arith.addf %14, %20 : vector<8x8x32xf32>
    %c0_20 = arith.constant 0 : index
    %c2 = arith.constant 2 : index
    %c0_21 = arith.constant 0 : index
    %22 = vector.load %arg7[%c0_20, %c2, %c0_21] : memref<10x10x32xf32, #tpu.memory_space<vmem>>, vector<8x8x32xf32>
    %c2_22 = arith.constant 2 : index
    %c0_23 = arith.constant 0 : index
    %c0_24 = arith.constant 0 : index
    %23 = vector.load %arg2[%c2_22, %c0_23, %c0_24] : memref<9x1x32xf32, #tpu.memory_space<vmem>>, vector<1x1x32xf32>
    %24 = vector.shape_cast %23 : vector<1x1x32xf32> to vector<1x32xf32>
    %25 = vector.shape_cast %24 : vector<1x32xf32> to vector<1x1x32xf32>
    %26 = vector.broadcast %25 : vector<1x1x32xf32> to vector<8x8x32xf32>
    %27 = arith.mulf %22, %26 : vector<8x8x32xf32>
    %28 = arith.addf %21, %27 : vector<8x8x32xf32>
    %c1_25 = arith.constant 1 : index
    %c0_26 = arith.constant 0 : index
    %c0_27 = arith.constant 0 : index
    %29 = vector.load %arg7[%c1_25, %c0_26, %c0_27] : memref<10x10x32xf32, #tpu.memory_space<vmem>>, vector<8x8x32xf32>
    %c3 = arith.constant 3 : index
    %c0_28 = arith.constant 0 : index
    %c0_29 = arith.constant 0 : index
    %30 = vector.load %arg2[%c3, %c0_28, %c0_29] : memref<9x1x32xf32, #tpu.memory_space<vmem>>, vector<1x1x32xf32>
    %31 = vector.shape_cast %30 : vector<1x1x32xf32> to vector<1x32xf32>
    %32 = vector.shape_cast %31 : vector<1x32xf32> to vector<1x1x32xf32>
    %33 = vector.broadcast %32 : vector<1x1x32xf32> to vector<8x8x32xf32>
    %34 = arith.mulf %29, %33 : vector<8x8x32xf32>
    %35 = arith.addf %28, %34 : vector<8x8x32xf32>
    %c1_30 = arith.constant 1 : index
    %c1_31 = arith.constant 1 : index
    %c0_32 = arith.constant 0 : index
    %36 = vector.load %arg7[%c1_30, %c1_31, %c0_32] : memref<10x10x32xf32, #tpu.memory_space<vmem>>, vector<8x8x32xf32>
    %c4 = arith.constant 4 : index
    %c0_33 = arith.constant 0 : index
    %c0_34 = arith.constant 0 : index
    %37 = vector.load %arg2[%c4, %c0_33, %c0_34] : memref<9x1x32xf32, #tpu.memory_space<vmem>>, vector<1x1x32xf32>
    %38 = vector.shape_cast %37 : vector<1x1x32xf32> to vector<1x32xf32>
    %39 = vector.shape_cast %38 : vector<1x32xf32> to vector<1x1x32xf32>
    %40 = vector.broadcast %39 : vector<1x1x32xf32> to vector<8x8x32xf32>
    %41 = arith.mulf %36, %40 : vector<8x8x32xf32>
    %42 = arith.addf %35, %41 : vector<8x8x32xf32>
    %c1_35 = arith.constant 1 : index
    %c2_36 = arith.constant 2 : index
    %c0_37 = arith.constant 0 : index
    %43 = vector.load %arg7[%c1_35, %c2_36, %c0_37] : memref<10x10x32xf32, #tpu.memory_space<vmem>>, vector<8x8x32xf32>
    %c5 = arith.constant 5 : index
    %c0_38 = arith.constant 0 : index
    %c0_39 = arith.constant 0 : index
    %44 = vector.load %arg2[%c5, %c0_38, %c0_39] : memref<9x1x32xf32, #tpu.memory_space<vmem>>, vector<1x1x32xf32>
    %45 = vector.shape_cast %44 : vector<1x1x32xf32> to vector<1x32xf32>
    %46 = vector.shape_cast %45 : vector<1x32xf32> to vector<1x1x32xf32>
    %47 = vector.broadcast %46 : vector<1x1x32xf32> to vector<8x8x32xf32>
    %48 = arith.mulf %43, %47 : vector<8x8x32xf32>
    %49 = arith.addf %42, %48 : vector<8x8x32xf32>
    %c2_40 = arith.constant 2 : index
    %c0_41 = arith.constant 0 : index
    %c0_42 = arith.constant 0 : index
    %50 = vector.load %arg7[%c2_40, %c0_41, %c0_42] : memref<10x10x32xf32, #tpu.memory_space<vmem>>, vector<8x8x32xf32>
    %c6 = arith.constant 6 : index
    %c0_43 = arith.constant 0 : index
    %c0_44 = arith.constant 0 : index
    %51 = vector.load %arg2[%c6, %c0_43, %c0_44] : memref<9x1x32xf32, #tpu.memory_space<vmem>>, vector<1x1x32xf32>
    %52 = vector.shape_cast %51 : vector<1x1x32xf32> to vector<1x32xf32>
    %53 = vector.shape_cast %52 : vector<1x32xf32> to vector<1x1x32xf32>
    %54 = vector.broadcast %53 : vector<1x1x32xf32> to vector<8x8x32xf32>
    %55 = arith.mulf %50, %54 : vector<8x8x32xf32>
    %56 = arith.addf %49, %55 : vector<8x8x32xf32>
    %c2_45 = arith.constant 2 : index
    %c1_46 = arith.constant 1 : index
    %c0_47 = arith.constant 0 : index
    %57 = vector.load %arg7[%c2_45, %c1_46, %c0_47] : memref<10x10x32xf32, #tpu.memory_space<vmem>>, vector<8x8x32xf32>
    %c7 = arith.constant 7 : index
    %c0_48 = arith.constant 0 : index
    %c0_49 = arith.constant 0 : index
    %58 = vector.load %arg2[%c7, %c0_48, %c0_49] : memref<9x1x32xf32, #tpu.memory_space<vmem>>, vector<1x1x32xf32>
    %59 = vector.shape_cast %58 : vector<1x1x32xf32> to vector<1x32xf32>
    %60 = vector.shape_cast %59 : vector<1x32xf32> to vector<1x1x32xf32>
    %61 = vector.broadcast %60 : vector<1x1x32xf32> to vector<8x8x32xf32>
    %62 = arith.mulf %57, %61 : vector<8x8x32xf32>
    %63 = arith.addf %56, %62 : vector<8x8x32xf32>
    %c2_50 = arith.constant 2 : index
    %c2_51 = arith.constant 2 : index
    %c0_52 = arith.constant 0 : index
    %64 = vector.load %arg7[%c2_50, %c2_51, %c0_52] : memref<10x10x32xf32, #tpu.memory_space<vmem>>, vector<8x8x32xf32>
    %c8 = arith.constant 8 : index
    %c0_53 = arith.constant 0 : index
    %c0_54 = arith.constant 0 : index
    %65 = vector.load %arg2[%c8, %c0_53, %c0_54] : memref<9x1x32xf32, #tpu.memory_space<vmem>>, vector<1x1x32xf32>
    %66 = vector.shape_cast %65 : vector<1x1x32xf32> to vector<1x32xf32>
    %67 = vector.shape_cast %66 : vector<1x32xf32> to vector<1x1x32xf32>
    %68 = vector.broadcast %67 : vector<1x1x32xf32> to vector<8x8x32xf32>
    %69 = arith.mulf %64, %68 : vector<8x8x32xf32>
    %70 = arith.addf %63, %69 : vector<8x8x32xf32>
    %c0_55 = arith.constant 0 : index
    %c0_56 = arith.constant 0 : index
    %71 = vector.load %arg3[%c0_55, %c0_56] : memref<1x32xf32, #tpu.memory_space<vmem>>, vector<1x32xf32>
    %72 = vector.shape_cast %71 : vector<1x32xf32> to vector<1x1x32xf32>
    %73 = vector.broadcast %72 : vector<1x1x32xf32> to vector<8x8x32xf32>
    %74 = arith.addf %70, %73 : vector<8x8x32xf32>
    %cst_57 = arith.constant 0.000000e+00 : f32
    %cst_58 = arith.constant 6.000000e+00 : f32
    %75 = vector.broadcast %cst_57 : f32 to vector<8x8x32xf32>
    %76 = arith.maximumf %75, %74 : vector<8x8x32xf32>
    %77 = vector.broadcast %cst_58 : f32 to vector<8x8x32xf32>
    %78 = arith.minimumf %77, %76 : vector<8x8x32xf32>
    %79 = vector.shape_cast %78 : vector<8x8x32xf32> to vector<64x32xf32>
    %80 = arith.truncf %79 : vector<64x32xf32> to vector<64x32xbf16>
    %c0_59 = arith.constant 0 : index
    %c0_60 = arith.constant 0 : index
    %81 = vector.load %arg4[%c0_59, %c0_60] : memref<32x16xbf16, #tpu.memory_space<vmem>>, vector<32x16xbf16>
    %cst_61 = arith.constant dense<0.000000e+00> : vector<64x16xf32>
    %82 = tpu.matmul %80, %81, %cst_61 {dimension_numbers = #tpu.dot_dimension_numbers<[1], [0], [0], [1], [0, 0, 1, 1], [], []>} : vector<64x32xbf16>, vector<32x16xbf16>, vector<64x16xf32> -> vector<64x16xf32>
    %c0_62 = arith.constant 0 : index
    %c0_63 = arith.constant 0 : index
    %83 = vector.load %arg5[%c0_62, %c0_63] : memref<1x16xf32, #tpu.memory_space<vmem>>, vector<1x16xf32>
    %84 = vector.broadcast %83 : vector<1x16xf32> to vector<64x16xf32>
    %85 = arith.addf %82, %84 : vector<64x16xf32>
    %86 = arith.truncf %85 : vector<64x16xf32> to vector<64x16xbf16>
    %c0_64 = arith.constant 0 : index
    %c0_65 = arith.constant 0 : index
    %c0_66 = arith.constant 0 : index
    %87 = vector.load %arg6[%c0_64, %c0_65, %c0_66] : memref<1x64x16xbf16, #tpu.memory_space<vmem>>, vector<1x64x16xbf16>
    %88 = vector.shape_cast %87 : vector<1x64x16xbf16> to vector<64x16xbf16>
    %89 = vector.shape_cast %86 : vector<64x16xbf16> to vector<1x64x16xbf16>
    tpu.vector_store %arg6[%c0_64, %c0_65, %c0_66], %89 {strides = array<i32>} : memref<1x64x16xbf16, #tpu.memory_space<vmem>>, vector<1x64x16xbf16>,
    return
  }
  func.func @transform_0(%arg0: i32) -> (i32, i32, i32) {
    %c0_i32 = arith.constant 0 : i32
    %c0_i32_0 = arith.constant 0 : i32
    %c0_i32_1 = arith.constant 0 : i32
    return %arg0, %c0_i32, %c0_i32_0 : i32, i32, i32
  }
  func.func @transform_1(%arg0: i32) -> (i32, i32, i32) {
    %c0_i32 = arith.constant 0 : i32
    %c0_i32_0 = arith.constant 0 : i32
    %c0_i32_1 = arith.constant 0 : i32
    %c0_i32_2 = arith.constant 0 : i32
    return %c0_i32, %c0_i32_0, %c0_i32_1 : i32, i32, i32
  }
  func.func @transform_2(%arg0: i32) -> (i32, i32) {
    %c0_i32 = arith.constant 0 : i32
    %c0_i32_0 = arith.constant 0 : i32
    %c0_i32_1 = arith.constant 0 : i32
    return %c0_i32, %c0_i32_0 : i32, i32
  }
  func.func @transform_3(%arg0: i32) -> (i32, i32) {
    %c0_i32 = arith.constant 0 : i32
    %c0_i32_0 = arith.constant 0 : i32
    %c0_i32_1 = arith.constant 0 : i32
    return %c0_i32, %c0_i32_0 : i32, i32
  }
  func.func @transform_4(%arg0: i32) -> (i32, i32) {
    %c0_i32 = arith.constant 0 : i32
    %c0_i32_0 = arith.constant 0 : i32
    %c0_i32_1 = arith.constant 0 : i32
    return %c0_i32, %c0_i32_0 : i32, i32
  }
  func.func @transform_5(%arg0: i32) -> (i32, i32, i32) {
    %c0_i32 = arith.constant 0 : i32
    %c0_i32_0 = arith.constant 0 : i32
    %c0_i32_1 = arith.constant 0 : i32
    return %arg0, %c0_i32, %c0_i32_0 : i32, i32, i32
  }
}

module attributes {stable_mosaic.version = 11 : i64} {
  func.func @_mm_kernel(%arg0: i32, %arg1: memref<128x16xbf16, #tpu.memory_space<vmem>>, %arg2: memref<16x96xbf16, #tpu.memory_space<vmem>>, %arg3: memref<1x96xf32, #tpu.memory_space<vmem>>, %arg4: memref<128x96xbf16, #tpu.memory_space<vmem>>) attributes {dimension_semantics = [#tpu.dimension_semantics<parallel>], iteration_bounds = array<i64: 1>, scalar_prefetch = 0 : i64, scratch_operands = 0 : i64, tpu.core_type = #tpu.core_type<tc>, window_params = [{transform_indices = @transform_0, window_bounds = array<i64: 128, 16>}, {pipeline_mode = #tpu.pipeline_mode<synchronous>, transform_indices = @transform_1, window_bounds = array<i64: 16, 96>}, {pipeline_mode = #tpu.pipeline_mode<synchronous>, transform_indices = @transform_2, window_bounds = array<i64: 1, 96>}, {transform_indices = @transform_3, window_bounds = array<i64: 128, 96>}]} {
    %c0 = arith.constant 0 : index
    %c0_0 = arith.constant 0 : index
    %0 = vector.load %arg1[%c0, %c0_0] : memref<128x16xbf16, #tpu.memory_space<vmem>>, vector<128x16xbf16>
    %c0_1 = arith.constant 0 : index
    %c0_2 = arith.constant 0 : index
    %1 = vector.load %arg2[%c0_1, %c0_2] : memref<16x96xbf16, #tpu.memory_space<vmem>>, vector<16x96xbf16>
    %cst = arith.constant dense<0.000000e+00> : vector<128x96xf32>
    %2 = tpu.matmul %0, %1, %cst {dimension_numbers = #tpu.dot_dimension_numbers<[1], [0], [0], [1], [0, 0, 1, 1], [], []>} : vector<128x16xbf16>, vector<16x96xbf16>, vector<128x96xf32> -> vector<128x96xf32>
    %c0_3 = arith.constant 0 : index
    %c0_4 = arith.constant 0 : index
    %3 = vector.load %arg3[%c0_3, %c0_4] : memref<1x96xf32, #tpu.memory_space<vmem>>, vector<1x96xf32>
    %4 = vector.broadcast %3 : vector<1x96xf32> to vector<128x96xf32>
    %5 = arith.addf %2, %4 : vector<128x96xf32>
    %cst_5 = arith.constant 0.000000e+00 : f32
    %cst_6 = arith.constant 6.000000e+00 : f32
    %6 = vector.broadcast %cst_5 : f32 to vector<128x96xf32>
    %7 = arith.maximumf %6, %5 : vector<128x96xf32>
    %8 = vector.broadcast %cst_6 : f32 to vector<128x96xf32>
    %9 = arith.minimumf %8, %7 : vector<128x96xf32>
    %10 = arith.truncf %9 : vector<128x96xf32> to vector<128x96xbf16>
    %c0_7 = arith.constant 0 : index
    %c0_8 = arith.constant 0 : index
    %11 = vector.load %arg4[%c0_7, %c0_8] : memref<128x96xbf16, #tpu.memory_space<vmem>>, vector<128x96xbf16>
    tpu.vector_store %arg4[%c0_7, %c0_8], %10 {strides = array<i32>} : memref<128x96xbf16, #tpu.memory_space<vmem>>, vector<128x96xbf16>,
    return
  }
  func.func @transform_0(%arg0: i32) -> (i32, i32) {
    %c0_i32 = arith.constant 0 : i32
    %c0_i32_0 = arith.constant 0 : i32
    return %arg0, %c0_i32 : i32, i32
  }
  func.func @transform_1(%arg0: i32) -> (i32, i32) {
    %c0_i32 = arith.constant 0 : i32
    %c0_i32_0 = arith.constant 0 : i32
    %c0_i32_1 = arith.constant 0 : i32
    return %c0_i32, %c0_i32_0 : i32, i32
  }
  func.func @transform_2(%arg0: i32) -> (i32, i32) {
    %c0_i32 = arith.constant 0 : i32
    %c0_i32_0 = arith.constant 0 : i32
    %c0_i32_1 = arith.constant 0 : i32
    return %c0_i32, %c0_i32_0 : i32, i32
  }
  func.func @transform_3(%arg0: i32) -> (i32, i32) {
    %c0_i32 = arith.constant 0 : i32
    %c0_i32_0 = arith.constant 0 : i32
    return %arg0, %c0_i32 : i32, i32
  }
}

module attributes {stable_mosaic.version = 11 : i64} {
  func.func @_fused_block_kernel(%arg0: i32, %arg1: memref<1x16x24xbf16, #tpu.memory_space<vmem>>, %arg2: memref<24x144xbf16, #tpu.memory_space<vmem>>, %arg3: memref<1x144xf32, #tpu.memory_space<vmem>>, %arg4: memref<9x1x144xf32, #tpu.memory_space<vmem>>, %arg5: memref<1x144xf32, #tpu.memory_space<vmem>>, %arg6: memref<144x24xbf16, #tpu.memory_space<vmem>>, %arg7: memref<1x24xf32, #tpu.memory_space<vmem>>, %arg8: memref<1x16x24xbf16, #tpu.memory_space<vmem>>, %arg9: memref<6x6x144xf32, #tpu.memory_space<vmem>>) attributes {dimension_semantics = [#tpu.dimension_semantics<parallel>], iteration_bounds = array<i64: 2>, scalar_prefetch = 0 : i64, scratch_operands = 1 : i64, tpu.core_type = #tpu.core_type<tc>, window_params = [{transform_indices = @transform_0, window_bounds = array<i64: 1, 16, 24>}, {pipeline_mode = #tpu.pipeline_mode<synchronous>, transform_indices = @transform_1, window_bounds = array<i64: 24, 144>}, {pipeline_mode = #tpu.pipeline_mode<synchronous>, transform_indices = @transform_2, window_bounds = array<i64: 1, 144>}, {pipeline_mode = #tpu.pipeline_mode<synchronous>, transform_indices = @transform_3, window_bounds = array<i64: 9, 1, 144>}, {pipeline_mode = #tpu.pipeline_mode<synchronous>, transform_indices = @transform_4, window_bounds = array<i64: 1, 144>}, {pipeline_mode = #tpu.pipeline_mode<synchronous>, transform_indices = @transform_5, window_bounds = array<i64: 144, 24>}, {pipeline_mode = #tpu.pipeline_mode<synchronous>, transform_indices = @transform_6, window_bounds = array<i64: 1, 24>}, {transform_indices = @transform_7, window_bounds = array<i64: 1, 16, 24>}]} {
    %c0 = arith.constant 0 : index
    %c0_0 = arith.constant 0 : index
    %c0_1 = arith.constant 0 : index
    %0 = vector.load %arg1[%c0, %c0_0, %c0_1] : memref<1x16x24xbf16, #tpu.memory_space<vmem>>, vector<1x16x24xbf16>
    %1 = vector.shape_cast %0 : vector<1x16x24xbf16> to vector<16x24xbf16>
    %c0_2 = arith.constant 0 : index
    %c0_3 = arith.constant 0 : index
    %2 = vector.load %arg2[%c0_2, %c0_3] : memref<24x144xbf16, #tpu.memory_space<vmem>>, vector<24x144xbf16>
    %cst = arith.constant dense<0.000000e+00> : vector<16x144xf32>
    %3 = tpu.matmul %1, %2, %cst {dimension_numbers = #tpu.dot_dimension_numbers<[1], [0], [0], [1], [0, 0, 1, 1], [], []>} : vector<16x24xbf16>, vector<24x144xbf16>, vector<16x144xf32> -> vector<16x144xf32>
    %c0_4 = arith.constant 0 : index
    %c0_5 = arith.constant 0 : index
    %4 = vector.load %arg3[%c0_4, %c0_5] : memref<1x144xf32, #tpu.memory_space<vmem>>, vector<1x144xf32>
    %5 = vector.broadcast %4 : vector<1x144xf32> to vector<16x144xf32>
    %6 = arith.addf %3, %5 : vector<16x144xf32>
    %cst_6 = arith.constant 0.000000e+00 : f32
    %cst_7 = arith.constant 6.000000e+00 : f32
    %7 = vector.broadcast %cst_6 : f32 to vector<16x144xf32>
    %8 = arith.maximumf %7, %6 : vector<16x144xf32>
    %9 = vector.broadcast %cst_7 : f32 to vector<16x144xf32>
    %10 = arith.minimumf %9, %8 : vector<16x144xf32>
    %cst_8 = arith.constant 0.000000e+00 : f32
    %11 = vector.broadcast %cst_8 : f32 to vector<6x6x144xf32>
    %c0_9 = arith.constant 0 : index
    %c0_10 = arith.constant 0 : index
    %c0_11 = arith.constant 0 : index
    %12 = vector.load %arg9[%c0_9, %c0_10, %c0_11] : memref<6x6x144xf32, #tpu.memory_space<vmem>>, vector<6x6x144xf32>
    tpu.vector_store %arg9[%c0_9, %c0_10, %c0_11], %11 {strides = array<i32>} : memref<6x6x144xf32, #tpu.memory_space<vmem>>, vector<6x6x144xf32>,
    %13 = vector.shape_cast %10 : vector<16x144xf32> to vector<4x4x144xf32>
    %c1 = arith.constant 1 : index
    %c1_12 = arith.constant 1 : index
    %c0_13 = arith.constant 0 : index
    %14 = vector.load %arg9[%c1, %c1_12, %c0_13] : memref<6x6x144xf32, #tpu.memory_space<vmem>>, vector<4x4x144xf32>
    tpu.vector_store %arg9[%c1, %c1_12, %c0_13], %13 {strides = array<i32>} : memref<6x6x144xf32, #tpu.memory_space<vmem>>, vector<4x4x144xf32>,
    %cst_14 = arith.constant 0.000000e+00 : f32
    %15 = vector.broadcast %cst_14 : f32 to vector<4x4x144xf32>
    %c0_15 = arith.constant 0 : index
    %c0_16 = arith.constant 0 : index
    %c0_17 = arith.constant 0 : index
    %16 = vector.load %arg9[%c0_15, %c0_16, %c0_17] : memref<6x6x144xf32, #tpu.memory_space<vmem>>, vector<4x4x144xf32>
    %c0_18 = arith.constant 0 : index
    %c0_19 = arith.constant 0 : index
    %c0_20 = arith.constant 0 : index
    %17 = vector.load %arg4[%c0_18, %c0_19, %c0_20] : memref<9x1x144xf32, #tpu.memory_space<vmem>>, vector<1x1x144xf32>
    %18 = vector.shape_cast %17 : vector<1x1x144xf32> to vector<1x144xf32>
    %19 = vector.shape_cast %18 : vector<1x144xf32> to vector<1x1x144xf32>
    %20 = vector.broadcast %19 : vector<1x1x144xf32> to vector<4x4x144xf32>
    %21 = arith.mulf %16, %20 : vector<4x4x144xf32>
    %22 = arith.addf %15, %21 : vector<4x4x144xf32>
    %c0_21 = arith.constant 0 : index
    %c1_22 = arith.constant 1 : index
    %c0_23 = arith.constant 0 : index
    %23 = vector.load %arg9[%c0_21, %c1_22, %c0_23] : memref<6x6x144xf32, #tpu.memory_space<vmem>>, vector<4x4x144xf32>
    %c1_24 = arith.constant 1 : index
    %c0_25 = arith.constant 0 : index
    %c0_26 = arith.constant 0 : index
    %24 = vector.load %arg4[%c1_24, %c0_25, %c0_26] : memref<9x1x144xf32, #tpu.memory_space<vmem>>, vector<1x1x144xf32>
    %25 = vector.shape_cast %24 : vector<1x1x144xf32> to vector<1x144xf32>
    %26 = vector.shape_cast %25 : vector<1x144xf32> to vector<1x1x144xf32>
    %27 = vector.broadcast %26 : vector<1x1x144xf32> to vector<4x4x144xf32>
    %28 = arith.mulf %23, %27 : vector<4x4x144xf32>
    %29 = arith.addf %22, %28 : vector<4x4x144xf32>
    %c0_27 = arith.constant 0 : index
    %c2 = arith.constant 2 : index
    %c0_28 = arith.constant 0 : index
    %30 = vector.load %arg9[%c0_27, %c2, %c0_28] : memref<6x6x144xf32, #tpu.memory_space<vmem>>, vector<4x4x144xf32>
    %c2_29 = arith.constant 2 : index
    %c0_30 = arith.constant 0 : index
    %c0_31 = arith.constant 0 : index
    %31 = vector.load %arg4[%c2_29, %c0_30, %c0_31] : memref<9x1x144xf32, #tpu.memory_space<vmem>>, vector<1x1x144xf32>
    %32 = vector.shape_cast %31 : vector<1x1x144xf32> to vector<1x144xf32>
    %33 = vector.shape_cast %32 : vector<1x144xf32> to vector<1x1x144xf32>
    %34 = vector.broadcast %33 : vector<1x1x144xf32> to vector<4x4x144xf32>
    %35 = arith.mulf %30, %34 : vector<4x4x144xf32>
    %36 = arith.addf %29, %35 : vector<4x4x144xf32>
    %c1_32 = arith.constant 1 : index
    %c0_33 = arith.constant 0 : index
    %c0_34 = arith.constant 0 : index
    %37 = vector.load %arg9[%c1_32, %c0_33, %c0_34] : memref<6x6x144xf32, #tpu.memory_space<vmem>>, vector<4x4x144xf32>
    %c3 = arith.constant 3 : index
    %c0_35 = arith.constant 0 : index
    %c0_36 = arith.constant 0 : index
    %38 = vector.load %arg4[%c3, %c0_35, %c0_36] : memref<9x1x144xf32, #tpu.memory_space<vmem>>, vector<1x1x144xf32>
    %39 = vector.shape_cast %38 : vector<1x1x144xf32> to vector<1x144xf32>
    %40 = vector.shape_cast %39 : vector<1x144xf32> to vector<1x1x144xf32>
    %41 = vector.broadcast %40 : vector<1x1x144xf32> to vector<4x4x144xf32>
    %42 = arith.mulf %37, %41 : vector<4x4x144xf32>
    %43 = arith.addf %36, %42 : vector<4x4x144xf32>
    %c1_37 = arith.constant 1 : index
    %c1_38 = arith.constant 1 : index
    %c0_39 = arith.constant 0 : index
    %44 = vector.load %arg9[%c1_37, %c1_38, %c0_39] : memref<6x6x144xf32, #tpu.memory_space<vmem>>, vector<4x4x144xf32>
    %c4 = arith.constant 4 : index
    %c0_40 = arith.constant 0 : index
    %c0_41 = arith.constant 0 : index
    %45 = vector.load %arg4[%c4, %c0_40, %c0_41] : memref<9x1x144xf32, #tpu.memory_space<vmem>>, vector<1x1x144xf32>
    %46 = vector.shape_cast %45 : vector<1x1x144xf32> to vector<1x144xf32>
    %47 = vector.shape_cast %46 : vector<1x144xf32> to vector<1x1x144xf32>
    %48 = vector.broadcast %47 : vector<1x1x144xf32> to vector<4x4x144xf32>
    %49 = arith.mulf %44, %48 : vector<4x4x144xf32>
    %50 = arith.addf %43, %49 : vector<4x4x144xf32>
    %c1_42 = arith.constant 1 : index
    %c2_43 = arith.constant 2 : index
    %c0_44 = arith.constant 0 : index
    %51 = vector.load %arg9[%c1_42, %c2_43, %c0_44] : memref<6x6x144xf32, #tpu.memory_space<vmem>>, vector<4x4x144xf32>
    %c5 = arith.constant 5 : index
    %c0_45 = arith.constant 0 : index
    %c0_46 = arith.constant 0 : index
    %52 = vector.load %arg4[%c5, %c0_45, %c0_46] : memref<9x1x144xf32, #tpu.memory_space<vmem>>, vector<1x1x144xf32>
    %53 = vector.shape_cast %52 : vector<1x1x144xf32> to vector<1x144xf32>
    %54 = vector.shape_cast %53 : vector<1x144xf32> to vector<1x1x144xf32>
    %55 = vector.broadcast %54 : vector<1x1x144xf32> to vector<4x4x144xf32>
    %56 = arith.mulf %51, %55 : vector<4x4x144xf32>
    %57 = arith.addf %50, %56 : vector<4x4x144xf32>
    %c2_47 = arith.constant 2 : index
    %c0_48 = arith.constant 0 : index
    %c0_49 = arith.constant 0 : index
    %58 = vector.load %arg9[%c2_47, %c0_48, %c0_49] : memref<6x6x144xf32, #tpu.memory_space<vmem>>, vector<4x4x144xf32>
    %c6 = arith.constant 6 : index
    %c0_50 = arith.constant 0 : index
    %c0_51 = arith.constant 0 : index
    %59 = vector.load %arg4[%c6, %c0_50, %c0_51] : memref<9x1x144xf32, #tpu.memory_space<vmem>>, vector<1x1x144xf32>
    %60 = vector.shape_cast %59 : vector<1x1x144xf32> to vector<1x144xf32>
    %61 = vector.shape_cast %60 : vector<1x144xf32> to vector<1x1x144xf32>
    %62 = vector.broadcast %61 : vector<1x1x144xf32> to vector<4x4x144xf32>
    %63 = arith.mulf %58, %62 : vector<4x4x144xf32>
    %64 = arith.addf %57, %63 : vector<4x4x144xf32>
    %c2_52 = arith.constant 2 : index
    %c1_53 = arith.constant 1 : index
    %c0_54 = arith.constant 0 : index
    %65 = vector.load %arg9[%c2_52, %c1_53, %c0_54] : memref<6x6x144xf32, #tpu.memory_space<vmem>>, vector<4x4x144xf32>
    %c7 = arith.constant 7 : index
    %c0_55 = arith.constant 0 : index
    %c0_56 = arith.constant 0 : index
    %66 = vector.load %arg4[%c7, %c0_55, %c0_56] : memref<9x1x144xf32, #tpu.memory_space<vmem>>, vector<1x1x144xf32>
    %67 = vector.shape_cast %66 : vector<1x1x144xf32> to vector<1x144xf32>
    %68 = vector.shape_cast %67 : vector<1x144xf32> to vector<1x1x144xf32>
    %69 = vector.broadcast %68 : vector<1x1x144xf32> to vector<4x4x144xf32>
    %70 = arith.mulf %65, %69 : vector<4x4x144xf32>
    %71 = arith.addf %64, %70 : vector<4x4x144xf32>
    %c2_57 = arith.constant 2 : index
    %c2_58 = arith.constant 2 : index
    %c0_59 = arith.constant 0 : index
    %72 = vector.load %arg9[%c2_57, %c2_58, %c0_59] : memref<6x6x144xf32, #tpu.memory_space<vmem>>, vector<4x4x144xf32>
    %c8 = arith.constant 8 : index
    %c0_60 = arith.constant 0 : index
    %c0_61 = arith.constant 0 : index
    %73 = vector.load %arg4[%c8, %c0_60, %c0_61] : memref<9x1x144xf32, #tpu.memory_space<vmem>>, vector<1x1x144xf32>
    %74 = vector.shape_cast %73 : vector<1x1x144xf32> to vector<1x144xf32>
    %75 = vector.shape_cast %74 : vector<1x144xf32> to vector<1x1x144xf32>
    %76 = vector.broadcast %75 : vector<1x1x144xf32> to vector<4x4x144xf32>
    %77 = arith.mulf %72, %76 : vector<4x4x144xf32>
    %78 = arith.addf %71, %77 : vector<4x4x144xf32>
    %c0_62 = arith.constant 0 : index
    %c0_63 = arith.constant 0 : index
    %79 = vector.load %arg5[%c0_62, %c0_63] : memref<1x144xf32, #tpu.memory_space<vmem>>, vector<1x144xf32>
    %80 = vector.shape_cast %79 : vector<1x144xf32> to vector<1x1x144xf32>
    %81 = vector.broadcast %80 : vector<1x1x144xf32> to vector<4x4x144xf32>
    %82 = arith.addf %78, %81 : vector<4x4x144xf32>
    %cst_64 = arith.constant 0.000000e+00 : f32
    %cst_65 = arith.constant 6.000000e+00 : f32
    %83 = vector.broadcast %cst_64 : f32 to vector<4x4x144xf32>
    %84 = arith.maximumf %83, %82 : vector<4x4x144xf32>
    %85 = vector.broadcast %cst_65 : f32 to vector<4x4x144xf32>
    %86 = arith.minimumf %85, %84 : vector<4x4x144xf32>
    %87 = vector.shape_cast %86 : vector<4x4x144xf32> to vector<16x144xf32>
    %88 = arith.truncf %87 : vector<16x144xf32> to vector<16x144xbf16>
    %c0_66 = arith.constant 0 : index
    %c0_67 = arith.constant 0 : index
    %89 = vector.load %arg6[%c0_66, %c0_67] : memref<144x24xbf16, #tpu.memory_space<vmem>>, vector<144x24xbf16>
    %cst_68 = arith.constant dense<0.000000e+00> : vector<16x24xf32>
    %90 = tpu.matmul %88, %89, %cst_68 {dimension_numbers = #tpu.dot_dimension_numbers<[1], [0], [0], [1], [0, 0, 1, 1], [], []>} : vector<16x144xbf16>, vector<144x24xbf16>, vector<16x24xf32> -> vector<16x24xf32>
    %c0_69 = arith.constant 0 : index
    %c0_70 = arith.constant 0 : index
    %91 = vector.load %arg7[%c0_69, %c0_70] : memref<1x24xf32, #tpu.memory_space<vmem>>, vector<1x24xf32>
    %92 = vector.broadcast %91 : vector<1x24xf32> to vector<16x24xf32>
    %93 = arith.addf %90, %92 : vector<16x24xf32>
    %94 = arith.extf %1 : vector<16x24xbf16> to vector<16x24xf32>
    %95 = arith.addf %93, %94 : vector<16x24xf32>
    %96 = arith.truncf %95 : vector<16x24xf32> to vector<16x24xbf16>
    %c0_71 = arith.constant 0 : index
    %c0_72 = arith.constant 0 : index
    %c0_73 = arith.constant 0 : index
    %97 = vector.load %arg8[%c0_71, %c0_72, %c0_73] : memref<1x16x24xbf16, #tpu.memory_space<vmem>>, vector<1x16x24xbf16>
    %98 = vector.shape_cast %97 : vector<1x16x24xbf16> to vector<16x24xbf16>
    %99 = vector.shape_cast %96 : vector<16x24xbf16> to vector<1x16x24xbf16>
    tpu.vector_store %arg8[%c0_71, %c0_72, %c0_73], %99 {strides = array<i32>} : memref<1x16x24xbf16, #tpu.memory_space<vmem>>, vector<1x16x24xbf16>,
    return
  }
  func.func @transform_0(%arg0: i32) -> (i32, i32, i32) {
    %c0_i32 = arith.constant 0 : i32
    %c0_i32_0 = arith.constant 0 : i32
    %c0_i32_1 = arith.constant 0 : i32
    return %arg0, %c0_i32, %c0_i32_0 : i32, i32, i32
  }
  func.func @transform_1(%arg0: i32) -> (i32, i32) {
    %c0_i32 = arith.constant 0 : i32
    %c0_i32_0 = arith.constant 0 : i32
    %c0_i32_1 = arith.constant 0 : i32
    return %c0_i32, %c0_i32_0 : i32, i32
  }
  func.func @transform_2(%arg0: i32) -> (i32, i32) {
    %c0_i32 = arith.constant 0 : i32
    %c0_i32_0 = arith.constant 0 : i32
    %c0_i32_1 = arith.constant 0 : i32
    return %c0_i32, %c0_i32_0 : i32, i32
  }
  func.func @transform_3(%arg0: i32) -> (i32, i32, i32) {
    %c0_i32 = arith.constant 0 : i32
    %c0_i32_0 = arith.constant 0 : i32
    %c0_i32_1 = arith.constant 0 : i32
    %c0_i32_2 = arith.constant 0 : i32
    return %c0_i32, %c0_i32_0, %c0_i32_1 : i32, i32, i32
  }
  func.func @transform_4(%arg0: i32) -> (i32, i32) {
    %c0_i32 = arith.constant 0 : i32
    %c0_i32_0 = arith.constant 0 : i32
    %c0_i32_1 = arith.constant 0 : i32
    return %c0_i32, %c0_i32_0 : i32, i32
  }
  func.func @transform_5(%arg0: i32) -> (i32, i32) {
    %c0_i32 = arith.constant 0 : i32
    %c0_i32_0 = arith.constant 0 : i32
    %c0_i32_1 = arith.constant 0 : i32
    return %c0_i32, %c0_i32_0 : i32, i32
  }
  func.func @transform_6(%arg0: i32) -> (i32, i32) {
    %c0_i32 = arith.constant 0 : i32
    %c0_i32_0 = arith.constant 0 : i32
    %c0_i32_1 = arith.constant 0 : i32
    return %c0_i32, %c0_i32_0 : i32, i32
  }
  func.func @transform_7(%arg0: i32) -> (i32, i32, i32) {
    %c0_i32 = arith.constant 0 : i32
    %c0_i32_0 = arith.constant 0 : i32
    %c0_i32_1 = arith.constant 0 : i32
    return %arg0, %c0_i32, %c0_i32_0 : i32, i32, i32
  }
}

module attributes {stable_mosaic.version = 11 : i64} {
  func.func @_mm_kernel(%arg0: i32, %arg1: memref<32x24xbf16, #tpu.memory_space<vmem>>, %arg2: memref<24x144xbf16, #tpu.memory_space<vmem>>, %arg3: memref<1x144xf32, #tpu.memory_space<vmem>>, %arg4: memref<32x144xbf16, #tpu.memory_space<vmem>>) attributes {dimension_semantics = [#tpu.dimension_semantics<parallel>], iteration_bounds = array<i64: 1>, scalar_prefetch = 0 : i64, scratch_operands = 0 : i64, tpu.core_type = #tpu.core_type<tc>, window_params = [{transform_indices = @transform_0, window_bounds = array<i64: 32, 24>}, {pipeline_mode = #tpu.pipeline_mode<synchronous>, transform_indices = @transform_1, window_bounds = array<i64: 24, 144>}, {pipeline_mode = #tpu.pipeline_mode<synchronous>, transform_indices = @transform_2, window_bounds = array<i64: 1, 144>}, {transform_indices = @transform_3, window_bounds = array<i64: 32, 144>}]} {
    %c0 = arith.constant 0 : index
    %c0_0 = arith.constant 0 : index
    %0 = vector.load %arg1[%c0, %c0_0] : memref<32x24xbf16, #tpu.memory_space<vmem>>, vector<32x24xbf16>
    %c0_1 = arith.constant 0 : index
    %c0_2 = arith.constant 0 : index
    %1 = vector.load %arg2[%c0_1, %c0_2] : memref<24x144xbf16, #tpu.memory_space<vmem>>, vector<24x144xbf16>
    %cst = arith.constant dense<0.000000e+00> : vector<32x144xf32>
    %2 = tpu.matmul %0, %1, %cst {dimension_numbers = #tpu.dot_dimension_numbers<[1], [0], [0], [1], [0, 0, 1, 1], [], []>} : vector<32x24xbf16>, vector<24x144xbf16>, vector<32x144xf32> -> vector<32x144xf32>
    %c0_3 = arith.constant 0 : index
    %c0_4 = arith.constant 0 : index
    %3 = vector.load %arg3[%c0_3, %c0_4] : memref<1x144xf32, #tpu.memory_space<vmem>>, vector<1x144xf32>
    %4 = vector.broadcast %3 : vector<1x144xf32> to vector<32x144xf32>
    %5 = arith.addf %2, %4 : vector<32x144xf32>
    %cst_5 = arith.constant 0.000000e+00 : f32
    %cst_6 = arith.constant 6.000000e+00 : f32
    %6 = vector.broadcast %cst_5 : f32 to vector<32x144xf32>
    %7 = arith.maximumf %6, %5 : vector<32x144xf32>
    %8 = vector.broadcast %cst_6 : f32 to vector<32x144xf32>
    %9 = arith.minimumf %8, %7 : vector<32x144xf32>
    %10 = arith.truncf %9 : vector<32x144xf32> to vector<32x144xbf16>
    %c0_7 = arith.constant 0 : index
    %c0_8 = arith.constant 0 : index
    %11 = vector.load %arg4[%c0_7, %c0_8] : memref<32x144xbf16, #tpu.memory_space<vmem>>, vector<32x144xbf16>
    tpu.vector_store %arg4[%c0_7, %c0_8], %10 {strides = array<i32>} : memref<32x144xbf16, #tpu.memory_space<vmem>>, vector<32x144xbf16>,
    return
  }
  func.func @transform_0(%arg0: i32) -> (i32, i32) {
    %c0_i32 = arith.constant 0 : i32
    %c0_i32_0 = arith.constant 0 : i32
    return %arg0, %c0_i32 : i32, i32
  }
  func.func @transform_1(%arg0: i32) -> (i32, i32) {
    %c0_i32 = arith.constant 0 : i32
    %c0_i32_0 = arith.constant 0 : i32
    %c0_i32_1 = arith.constant 0 : i32
    return %c0_i32, %c0_i32_0 : i32, i32
  }
  func.func @transform_2(%arg0: i32) -> (i32, i32) {
    %c0_i32 = arith.constant 0 : i32
    %c0_i32_0 = arith.constant 0 : i32
    %c0_i32_1 = arith.constant 0 : i32
    return %c0_i32, %c0_i32_0 : i32, i32
  }
  func.func @transform_3(%arg0: i32) -> (i32, i32) {
    %c0_i32 = arith.constant 0 : i32
    %c0_i32_0 = arith.constant 0 : i32
    return %arg0, %c0_i32 : i32, i32
  }
}

module attributes {stable_mosaic.version = 11 : i64} {
  func.func @_dw_s2_project_kernel(%arg0: i32, %arg1: memref<1x4x5x5x96xbf16, #tpu.memory_space<vmem>>, %arg2: memref<9x1x96xf32, #tpu.memory_space<vmem>>, %arg3: memref<1x96xf32, #tpu.memory_space<vmem>>, %arg4: memref<96x24xbf16, #tpu.memory_space<vmem>>, %arg5: memref<1x24xf32, #tpu.memory_space<vmem>>, %arg6: memref<1x16x24xbf16, #tpu.memory_space<vmem>>) attributes {dimension_semantics = [#tpu.dimension_semantics<parallel>], iteration_bounds = array<i64: 2>, scalar_prefetch = 0 : i64, scratch_operands = 0 : i64, tpu.core_type = #tpu.core_type<tc>, window_params = [{transform_indices = @transform_0, window_bounds = array<i64: 1, 4, 5, 5, 96>}, {pipeline_mode = #tpu.pipeline_mode<synchronous>, transform_indices = @transform_1, window_bounds = array<i64: 9, 1, 96>}, {pipeline_mode = #tpu.pipeline_mode<synchronous>, transform_indices = @transform_2, window_bounds = array<i64: 1, 96>}, {pipeline_mode = #tpu.pipeline_mode<synchronous>, transform_indices = @transform_3, window_bounds = array<i64: 96, 24>}, {pipeline_mode = #tpu.pipeline_mode<synchronous>, transform_indices = @transform_4, window_bounds = array<i64: 1, 24>}, {transform_indices = @transform_5, window_bounds = array<i64: 1, 16, 24>}]} {
    %cst = arith.constant 0.000000e+00 : f32
    %0 = vector.broadcast %cst : f32 to vector<4x4x96xf32>
    %c0 = arith.constant 0 : index
    %c0_0 = arith.constant 0 : index
    %c0_1 = arith.constant 0 : index
    %c0_2 = arith.constant 0 : index
    %c0_3 = arith.constant 0 : index
    %1 = vector.load %arg1[%c0, %c0_0, %c0_1, %c0_2, %c0_3] : memref<1x4x5x5x96xbf16, #tpu.memory_space<vmem>>, vector<1x1x4x4x96xbf16>
    %2 = vector.shape_cast %1 : vector<1x1x4x4x96xbf16> to vector<4x4x96xbf16>
    %3 = arith.extf %2 : vector<4x4x96xbf16> to vector<4x4x96xf32>
    %c0_4 = arith.constant 0 : index
    %c0_5 = arith.constant 0 : index
    %c0_6 = arith.constant 0 : index
    %4 = vector.load %arg2[%c0_4, %c0_5, %c0_6] : memref<9x1x96xf32, #tpu.memory_space<vmem>>, vector<1x1x96xf32>
    %5 = vector.shape_cast %4 : vector<1x1x96xf32> to vector<1x96xf32>
    %6 = vector.shape_cast %5 : vector<1x96xf32> to vector<1x1x96xf32>
    %7 = vector.broadcast %6 : vector<1x1x96xf32> to vector<4x4x96xf32>
    %8 = arith.mulf %3, %7 : vector<4x4x96xf32>
    %9 = arith.addf %0, %8 : vector<4x4x96xf32>
    %c0_7 = arith.constant 0 : index
    %c1 = arith.constant 1 : index
    %c0_8 = arith.constant 0 : index
    %c0_9 = arith.constant 0 : index
    %c0_10 = arith.constant 0 : index
    %10 = vector.load %arg1[%c0_7, %c1, %c0_8, %c0_9, %c0_10] : memref<1x4x5x5x96xbf16, #tpu.memory_space<vmem>>, vector<1x1x4x4x96xbf16>
    %11 = vector.shape_cast %10 : vector<1x1x4x4x96xbf16> to vector<4x4x96xbf16>
    %12 = arith.extf %11 : vector<4x4x96xbf16> to vector<4x4x96xf32>
    %c1_11 = arith.constant 1 : index
    %c0_12 = arith.constant 0 : index
    %c0_13 = arith.constant 0 : index
    %13 = vector.load %arg2[%c1_11, %c0_12, %c0_13] : memref<9x1x96xf32, #tpu.memory_space<vmem>>, vector<1x1x96xf32>
    %14 = vector.shape_cast %13 : vector<1x1x96xf32> to vector<1x96xf32>
    %15 = vector.shape_cast %14 : vector<1x96xf32> to vector<1x1x96xf32>
    %16 = vector.broadcast %15 : vector<1x1x96xf32> to vector<4x4x96xf32>
    %17 = arith.mulf %12, %16 : vector<4x4x96xf32>
    %18 = arith.addf %9, %17 : vector<4x4x96xf32>
    %c0_14 = arith.constant 0 : index
    %c0_15 = arith.constant 0 : index
    %c0_16 = arith.constant 0 : index
    %c1_17 = arith.constant 1 : index
    %c0_18 = arith.constant 0 : index
    %19 = vector.load %arg1[%c0_14, %c0_15, %c0_16, %c1_17, %c0_18] : memref<1x4x5x5x96xbf16, #tpu.memory_space<vmem>>, vector<1x1x4x4x96xbf16>
    %20 = vector.shape_cast %19 : vector<1x1x4x4x96xbf16> to vector<4x4x96xbf16>
    %21 = arith.extf %20 : vector<4x4x96xbf16> to vector<4x4x96xf32>
    %c2 = arith.constant 2 : index
    %c0_19 = arith.constant 0 : index
    %c0_20 = arith.constant 0 : index
    %22 = vector.load %arg2[%c2, %c0_19, %c0_20] : memref<9x1x96xf32, #tpu.memory_space<vmem>>, vector<1x1x96xf32>
    %23 = vector.shape_cast %22 : vector<1x1x96xf32> to vector<1x96xf32>
    %24 = vector.shape_cast %23 : vector<1x96xf32> to vector<1x1x96xf32>
    %25 = vector.broadcast %24 : vector<1x1x96xf32> to vector<4x4x96xf32>
    %26 = arith.mulf %21, %25 : vector<4x4x96xf32>
    %27 = arith.addf %18, %26 : vector<4x4x96xf32>
    %c0_21 = arith.constant 0 : index
    %c2_22 = arith.constant 2 : index
    %c0_23 = arith.constant 0 : index
    %c0_24 = arith.constant 0 : index
    %c0_25 = arith.constant 0 : index
    %28 = vector.load %arg1[%c0_21, %c2_22, %c0_23, %c0_24, %c0_25] : memref<1x4x5x5x96xbf16, #tpu.memory_space<vmem>>, vector<1x1x4x4x96xbf16>
    %29 = vector.shape_cast %28 : vector<1x1x4x4x96xbf16> to vector<4x4x96xbf16>
    %30 = arith.extf %29 : vector<4x4x96xbf16> to vector<4x4x96xf32>
    %c3 = arith.constant 3 : index
    %c0_26 = arith.constant 0 : index
    %c0_27 = arith.constant 0 : index
    %31 = vector.load %arg2[%c3, %c0_26, %c0_27] : memref<9x1x96xf32, #tpu.memory_space<vmem>>, vector<1x1x96xf32>
    %32 = vector.shape_cast %31 : vector<1x1x96xf32> to vector<1x96xf32>
    %33 = vector.shape_cast %32 : vector<1x96xf32> to vector<1x1x96xf32>
    %34 = vector.broadcast %33 : vector<1x1x96xf32> to vector<4x4x96xf32>
    %35 = arith.mulf %30, %34 : vector<4x4x96xf32>
    %36 = arith.addf %27, %35 : vector<4x4x96xf32>
    %c0_28 = arith.constant 0 : index
    %c3_29 = arith.constant 3 : index
    %c0_30 = arith.constant 0 : index
    %c0_31 = arith.constant 0 : index
    %c0_32 = arith.constant 0 : index
    %37 = vector.load %arg1[%c0_28, %c3_29, %c0_30, %c0_31, %c0_32] : memref<1x4x5x5x96xbf16, #tpu.memory_space<vmem>>, vector<1x1x4x4x96xbf16>
    %38 = vector.shape_cast %37 : vector<1x1x4x4x96xbf16> to vector<4x4x96xbf16>
    %39 = arith.extf %38 : vector<4x4x96xbf16> to vector<4x4x96xf32>
    %c4 = arith.constant 4 : index
    %c0_33 = arith.constant 0 : index
    %c0_34 = arith.constant 0 : index
    %40 = vector.load %arg2[%c4, %c0_33, %c0_34] : memref<9x1x96xf32, #tpu.memory_space<vmem>>, vector<1x1x96xf32>
    %41 = vector.shape_cast %40 : vector<1x1x96xf32> to vector<1x96xf32>
    %42 = vector.shape_cast %41 : vector<1x96xf32> to vector<1x1x96xf32>
    %43 = vector.broadcast %42 : vector<1x1x96xf32> to vector<4x4x96xf32>
    %44 = arith.mulf %39, %43 : vector<4x4x96xf32>
    %45 = arith.addf %36, %44 : vector<4x4x96xf32>
    %c0_35 = arith.constant 0 : index
    %c2_36 = arith.constant 2 : index
    %c0_37 = arith.constant 0 : index
    %c1_38 = arith.constant 1 : index
    %c0_39 = arith.constant 0 : index
    %46 = vector.load %arg1[%c0_35, %c2_36, %c0_37, %c1_38, %c0_39] : memref<1x4x5x5x96xbf16, #tpu.memory_space<vmem>>, vector<1x1x4x4x96xbf16>
    %47 = vector.shape_cast %46 : vector<1x1x4x4x96xbf16> to vector<4x4x96xbf16>
    %48 = arith.extf %47 : vector<4x4x96xbf16> to vector<4x4x96xf32>
    %c5 = arith.constant 5 : index
    %c0_40 = arith.constant 0 : index
    %c0_41 = arith.constant 0 : index
    %49 = vector.load %arg2[%c5, %c0_40, %c0_41] : memref<9x1x96xf32, #tpu.memory_space<vmem>>, vector<1x1x96xf32>
    %50 = vector.shape_cast %49 : vector<1x1x96xf32> to vector<1x96xf32>
    %51 = vector.shape_cast %50 : vector<1x96xf32> to vector<1x1x96xf32>
    %52 = vector.broadcast %51 : vector<1x1x96xf32> to vector<4x4x96xf32>
    %53 = arith.mulf %48, %52 : vector<4x4x96xf32>
    %54 = arith.addf %45, %53 : vector<4x4x96xf32>
    %c0_42 = arith.constant 0 : index
    %c0_43 = arith.constant 0 : index
    %c1_44 = arith.constant 1 : index
    %c0_45 = arith.constant 0 : index
    %c0_46 = arith.constant 0 : index
    %55 = vector.load %arg1[%c0_42, %c0_43, %c1_44, %c0_45, %c0_46] : memref<1x4x5x5x96xbf16, #tpu.memory_space<vmem>>, vector<1x1x4x4x96xbf16>
    %56 = vector.shape_cast %55 : vector<1x1x4x4x96xbf16> to vector<4x4x96xbf16>
    %57 = arith.extf %56 : vector<4x4x96xbf16> to vector<4x4x96xf32>
    %c6 = arith.constant 6 : index
    %c0_47 = arith.constant 0 : index
    %c0_48 = arith.constant 0 : index
    %58 = vector.load %arg2[%c6, %c0_47, %c0_48] : memref<9x1x96xf32, #tpu.memory_space<vmem>>, vector<1x1x96xf32>
    %59 = vector.shape_cast %58 : vector<1x1x96xf32> to vector<1x96xf32>
    %60 = vector.shape_cast %59 : vector<1x96xf32> to vector<1x1x96xf32>
    %61 = vector.broadcast %60 : vector<1x1x96xf32> to vector<4x4x96xf32>
    %62 = arith.mulf %57, %61 : vector<4x4x96xf32>
    %63 = arith.addf %54, %62 : vector<4x4x96xf32>
    %c0_49 = arith.constant 0 : index
    %c1_50 = arith.constant 1 : index
    %c1_51 = arith.constant 1 : index
    %c0_52 = arith.constant 0 : index
    %c0_53 = arith.constant 0 : index
    %64 = vector.load %arg1[%c0_49, %c1_50, %c1_51, %c0_52, %c0_53] : memref<1x4x5x5x96xbf16, #tpu.memory_space<vmem>>, vector<1x1x4x4x96xbf16>
    %65 = vector.shape_cast %64 : vector<1x1x4x4x96xbf16> to vector<4x4x96xbf16>
    %66 = arith.extf %65 : vector<4x4x96xbf16> to vector<4x4x96xf32>
    %c7 = arith.constant 7 : index
    %c0_54 = arith.constant 0 : index
    %c0_55 = arith.constant 0 : index
    %67 = vector.load %arg2[%c7, %c0_54, %c0_55] : memref<9x1x96xf32, #tpu.memory_space<vmem>>, vector<1x1x96xf32>
    %68 = vector.shape_cast %67 : vector<1x1x96xf32> to vector<1x96xf32>
    %69 = vector.shape_cast %68 : vector<1x96xf32> to vector<1x1x96xf32>
    %70 = vector.broadcast %69 : vector<1x1x96xf32> to vector<4x4x96xf32>
    %71 = arith.mulf %66, %70 : vector<4x4x96xf32>
    %72 = arith.addf %63, %71 : vector<4x4x96xf32>
    %c0_56 = arith.constant 0 : index
    %c0_57 = arith.constant 0 : index
    %c1_58 = arith.constant 1 : index
    %c1_59 = arith.constant 1 : index
    %c0_60 = arith.constant 0 : index
    %73 = vector.load %arg1[%c0_56, %c0_57, %c1_58, %c1_59, %c0_60] : memref<1x4x5x5x96xbf16, #tpu.memory_space<vmem>>, vector<1x1x4x4x96xbf16>
    %74 = vector.shape_cast %73 : vector<1x1x4x4x96xbf16> to vector<4x4x96xbf16>
    %75 = arith.extf %74 : vector<4x4x96xbf16> to vector<4x4x96xf32>
    %c8 = arith.constant 8 : index
    %c0_61 = arith.constant 0 : index
    %c0_62 = arith.constant 0 : index
    %76 = vector.load %arg2[%c8, %c0_61, %c0_62] : memref<9x1x96xf32, #tpu.memory_space<vmem>>, vector<1x1x96xf32>
    %77 = vector.shape_cast %76 : vector<1x1x96xf32> to vector<1x96xf32>
    %78 = vector.shape_cast %77 : vector<1x96xf32> to vector<1x1x96xf32>
    %79 = vector.broadcast %78 : vector<1x1x96xf32> to vector<4x4x96xf32>
    %80 = arith.mulf %75, %79 : vector<4x4x96xf32>
    %81 = arith.addf %72, %80 : vector<4x4x96xf32>
    %c0_63 = arith.constant 0 : index
    %c0_64 = arith.constant 0 : index
    %82 = vector.load %arg3[%c0_63, %c0_64] : memref<1x96xf32, #tpu.memory_space<vmem>>, vector<1x96xf32>
    %83 = vector.shape_cast %82 : vector<1x96xf32> to vector<1x1x96xf32>
    %84 = vector.broadcast %83 : vector<1x1x96xf32> to vector<4x4x96xf32>
    %85 = arith.addf %81, %84 : vector<4x4x96xf32>
    %cst_65 = arith.constant 0.000000e+00 : f32
    %cst_66 = arith.constant 6.000000e+00 : f32
    %86 = vector.broadcast %cst_65 : f32 to vector<4x4x96xf32>
    %87 = arith.maximumf %86, %85 : vector<4x4x96xf32>
    %88 = vector.broadcast %cst_66 : f32 to vector<4x4x96xf32>
    %89 = arith.minimumf %88, %87 : vector<4x4x96xf32>
    %90 = vector.shape_cast %89 : vector<4x4x96xf32> to vector<16x96xf32>
    %91 = arith.truncf %90 : vector<16x96xf32> to vector<16x96xbf16>
    %c0_67 = arith.constant 0 : index
    %c0_68 = arith.constant 0 : index
    %92 = vector.load %arg4[%c0_67, %c0_68] : memref<96x24xbf16, #tpu.memory_space<vmem>>, vector<96x24xbf16>
    %cst_69 = arith.constant dense<0.000000e+00> : vector<16x24xf32>
    %93 = tpu.matmul %91, %92, %cst_69 {dimension_numbers = #tpu.dot_dimension_numbers<[1], [0], [0], [1], [0, 0, 1, 1], [], []>} : vector<16x96xbf16>, vector<96x24xbf16>, vector<16x24xf32> -> vector<16x24xf32>
    %c0_70 = arith.constant 0 : index
    %c0_71 = arith.constant 0 : index
    %94 = vector.load %arg5[%c0_70, %c0_71] : memref<1x24xf32, #tpu.memory_space<vmem>>, vector<1x24xf32>
    %95 = vector.broadcast %94 : vector<1x24xf32> to vector<16x24xf32>
    %96 = arith.addf %93, %95 : vector<16x24xf32>
    %97 = arith.truncf %96 : vector<16x24xf32> to vector<16x24xbf16>
    %c0_72 = arith.constant 0 : index
    %c0_73 = arith.constant 0 : index
    %c0_74 = arith.constant 0 : index
    %98 = vector.load %arg6[%c0_72, %c0_73, %c0_74] : memref<1x16x24xbf16, #tpu.memory_space<vmem>>, vector<1x16x24xbf16>
    %99 = vector.shape_cast %98 : vector<1x16x24xbf16> to vector<16x24xbf16>
    %100 = vector.shape_cast %97 : vector<16x24xbf16> to vector<1x16x24xbf16>
    tpu.vector_store %arg6[%c0_72, %c0_73, %c0_74], %100 {strides = array<i32>} : memref<1x16x24xbf16, #tpu.memory_space<vmem>>, vector<1x16x24xbf16>,
    return
  }
  func.func @transform_0(%arg0: i32) -> (i32, i32, i32, i32, i32) {
    %c0_i32 = arith.constant 0 : i32
    %c0_i32_0 = arith.constant 0 : i32
    %c0_i32_1 = arith.constant 0 : i32
    %c0_i32_2 = arith.constant 0 : i32
    %c0_i32_3 = arith.constant 0 : i32
    return %arg0, %c0_i32, %c0_i32_0, %c0_i32_1, %c0_i32_2 : i32, i32, i32, i32, i32
  }
  func.func @transform_1(%arg0: i32) -> (i32, i32, i32) {
    %c0_i32 = arith.constant 0 : i32
    %c0_i32_0 = arith.constant 0 : i32
    %c0_i32_1 = arith.constant 0 : i32
    %c0_i32_2 = arith.constant 0 : i32
    return %c0_i32, %c0_i32_0, %c0_i32_1 : i32, i32, i32
  }
  func.func @transform_2(%arg0: i32) -> (i32, i32) {
    %c0_i32 = arith.constant 0 : i32
    %c0_i32_0 = arith.constant 0 : i32
    %c0_i32_1 = arith.constant 0 : i32
    return %c0_i32, %c0_i32_0 : i32, i32
  }
  func.func @transform_3(%arg0: i32) -> (i32, i32) {
    %c0_i32 = arith.constant 0 : i32
    %c0_i32_0 = arith.constant 0 : i32
    %c0_i32_1 = arith.constant 0 : i32
    return %c0_i32, %c0_i32_0 : i32, i32
  }
  func.func @transform_4(%arg0: i32) -> (i32, i32) {
    %c0_i32 = arith.constant 0 : i32
    %c0_i32_0 = arith.constant 0 : i32
    %c0_i32_1 = arith.constant 0 : i32
    return %c0_i32, %c0_i32_0 : i32, i32
  }
  func.func @transform_5(%arg0: i32) -> (i32, i32, i32) {
    %c0_i32 = arith.constant 0 : i32
    %c0_i32_0 = arith.constant 0 : i32
    %c0_i32_1 = arith.constant 0 : i32
    return %arg0, %c0_i32, %c0_i32_0 : i32, i32, i32
  }
}

module attributes {stable_mosaic.version = 11 : i64} {
  func.func @_dw_s2_project_kernel(%arg0: i32, %arg1: memref<1x4x3x3x144xbf16, #tpu.memory_space<vmem>>, %arg2: memref<9x1x144xf32, #tpu.memory_space<vmem>>, %arg3: memref<1x144xf32, #tpu.memory_space<vmem>>, %arg4: memref<144x32xbf16, #tpu.memory_space<vmem>>, %arg5: memref<1x32xf32, #tpu.memory_space<vmem>>, %arg6: memref<1x4x32xbf16, #tpu.memory_space<vmem>>) attributes {dimension_semantics = [#tpu.dimension_semantics<parallel>], iteration_bounds = array<i64: 2>, scalar_prefetch = 0 : i64, scratch_operands = 0 : i64, tpu.core_type = #tpu.core_type<tc>, window_params = [{transform_indices = @transform_0, window_bounds = array<i64: 1, 4, 3, 3, 144>}, {pipeline_mode = #tpu.pipeline_mode<synchronous>, transform_indices = @transform_1, window_bounds = array<i64: 9, 1, 144>}, {pipeline_mode = #tpu.pipeline_mode<synchronous>, transform_indices = @transform_2, window_bounds = array<i64: 1, 144>}, {pipeline_mode = #tpu.pipeline_mode<synchronous>, transform_indices = @transform_3, window_bounds = array<i64: 144, 32>}, {pipeline_mode = #tpu.pipeline_mode<synchronous>, transform_indices = @transform_4, window_bounds = array<i64: 1, 32>}, {transform_indices = @transform_5, window_bounds = array<i64: 1, 4, 32>}]} {
    %cst = arith.constant 0.000000e+00 : f32
    %0 = vector.broadcast %cst : f32 to vector<2x2x144xf32>
    %c0 = arith.constant 0 : index
    %c0_0 = arith.constant 0 : index
    %c0_1 = arith.constant 0 : index
    %c0_2 = arith.constant 0 : index
    %c0_3 = arith.constant 0 : index
    %1 = vector.load %arg1[%c0, %c0_0, %c0_1, %c0_2, %c0_3] : memref<1x4x3x3x144xbf16, #tpu.memory_space<vmem>>, vector<1x1x2x2x144xbf16>
    %2 = vector.shape_cast %1 : vector<1x1x2x2x144xbf16> to vector<2x2x144xbf16>
    %3 = arith.extf %2 : vector<2x2x144xbf16> to vector<2x2x144xf32>
    %c0_4 = arith.constant 0 : index
    %c0_5 = arith.constant 0 : index
    %c0_6 = arith.constant 0 : index
    %4 = vector.load %arg2[%c0_4, %c0_5, %c0_6] : memref<9x1x144xf32, #tpu.memory_space<vmem>>, vector<1x1x144xf32>
    %5 = vector.shape_cast %4 : vector<1x1x144xf32> to vector<1x144xf32>
    %6 = vector.shape_cast %5 : vector<1x144xf32> to vector<1x1x144xf32>
    %7 = vector.broadcast %6 : vector<1x1x144xf32> to vector<2x2x144xf32>
    %8 = arith.mulf %3, %7 : vector<2x2x144xf32>
    %9 = arith.addf %0, %8 : vector<2x2x144xf32>
    %c0_7 = arith.constant 0 : index
    %c1 = arith.constant 1 : index
    %c0_8 = arith.constant 0 : index
    %c0_9 = arith.constant 0 : index
    %c0_10 = arith.constant 0 : index
    %10 = vector.load %arg1[%c0_7, %c1, %c0_8, %c0_9, %c0_10] : memref<1x4x3x3x144xbf16, #tpu.memory_space<vmem>>, vector<1x1x2x2x144xbf16>
    %11 = vector.shape_cast %10 : vector<1x1x2x2x144xbf16> to vector<2x2x144xbf16>
    %12 = arith.extf %11 : vector<2x2x144xbf16> to vector<2x2x144xf32>
    %c1_11 = arith.constant 1 : index
    %c0_12 = arith.constant 0 : index
    %c0_13 = arith.constant 0 : index
    %13 = vector.load %arg2[%c1_11, %c0_12, %c0_13] : memref<9x1x144xf32, #tpu.memory_space<vmem>>, vector<1x1x144xf32>
    %14 = vector.shape_cast %13 : vector<1x1x144xf32> to vector<1x144xf32>
    %15 = vector.shape_cast %14 : vector<1x144xf32> to vector<1x1x144xf32>
    %16 = vector.broadcast %15 : vector<1x1x144xf32> to vector<2x2x144xf32>
    %17 = arith.mulf %12, %16 : vector<2x2x144xf32>
    %18 = arith.addf %9, %17 : vector<2x2x144xf32>
    %c0_14 = arith.constant 0 : index
    %c0_15 = arith.constant 0 : index
    %c0_16 = arith.constant 0 : index
    %c1_17 = arith.constant 1 : index
    %c0_18 = arith.constant 0 : index
    %19 = vector.load %arg1[%c0_14, %c0_15, %c0_16, %c1_17, %c0_18] : memref<1x4x3x3x144xbf16, #tpu.memory_space<vmem>>, vector<1x1x2x2x144xbf16>
    %20 = vector.shape_cast %19 : vector<1x1x2x2x144xbf16> to vector<2x2x144xbf16>
    %21 = arith.extf %20 : vector<2x2x144xbf16> to vector<2x2x144xf32>
    %c2 = arith.constant 2 : index
    %c0_19 = arith.constant 0 : index
    %c0_20 = arith.constant 0 : index
    %22 = vector.load %arg2[%c2, %c0_19, %c0_20] : memref<9x1x144xf32, #tpu.memory_space<vmem>>, vector<1x1x144xf32>
    %23 = vector.shape_cast %22 : vector<1x1x144xf32> to vector<1x144xf32>
    %24 = vector.shape_cast %23 : vector<1x144xf32> to vector<1x1x144xf32>
    %25 = vector.broadcast %24 : vector<1x1x144xf32> to vector<2x2x144xf32>
    %26 = arith.mulf %21, %25 : vector<2x2x144xf32>
    %27 = arith.addf %18, %26 : vector<2x2x144xf32>
    %c0_21 = arith.constant 0 : index
    %c2_22 = arith.constant 2 : index
    %c0_23 = arith.constant 0 : index
    %c0_24 = arith.constant 0 : index
    %c0_25 = arith.constant 0 : index
    %28 = vector.load %arg1[%c0_21, %c2_22, %c0_23, %c0_24, %c0_25] : memref<1x4x3x3x144xbf16, #tpu.memory_space<vmem>>, vector<1x1x2x2x144xbf16>
    %29 = vector.shape_cast %28 : vector<1x1x2x2x144xbf16> to vector<2x2x144xbf16>
    %30 = arith.extf %29 : vector<2x2x144xbf16> to vector<2x2x144xf32>
    %c3 = arith.constant 3 : index
    %c0_26 = arith.constant 0 : index
    %c0_27 = arith.constant 0 : index
    %31 = vector.load %arg2[%c3, %c0_26, %c0_27] : memref<9x1x144xf32, #tpu.memory_space<vmem>>, vector<1x1x144xf32>
    %32 = vector.shape_cast %31 : vector<1x1x144xf32> to vector<1x144xf32>
    %33 = vector.shape_cast %32 : vector<1x144xf32> to vector<1x1x144xf32>
    %34 = vector.broadcast %33 : vector<1x1x144xf32> to vector<2x2x144xf32>
    %35 = arith.mulf %30, %34 : vector<2x2x144xf32>
    %36 = arith.addf %27, %35 : vector<2x2x144xf32>
    %c0_28 = arith.constant 0 : index
    %c3_29 = arith.constant 3 : index
    %c0_30 = arith.constant 0 : index
    %c0_31 = arith.constant 0 : index
    %c0_32 = arith.constant 0 : index
    %37 = vector.load %arg1[%c0_28, %c3_29, %c0_30, %c0_31, %c0_32] : memref<1x4x3x3x144xbf16, #tpu.memory_space<vmem>>, vector<1x1x2x2x144xbf16>
    %38 = vector.shape_cast %37 : vector<1x1x2x2x144xbf16> to vector<2x2x144xbf16>
    %39 = arith.extf %38 : vector<2x2x144xbf16> to vector<2x2x144xf32>
    %c4 = arith.constant 4 : index
    %c0_33 = arith.constant 0 : index
    %c0_34 = arith.constant 0 : index
    %40 = vector.load %arg2[%c4, %c0_33, %c0_34] : memref<9x1x144xf32, #tpu.memory_space<vmem>>, vector<1x1x144xf32>
    %41 = vector.shape_cast %40 : vector<1x1x144xf32> to vector<1x144xf32>
    %42 = vector.shape_cast %41 : vector<1x144xf32> to vector<1x1x144xf32>
    %43 = vector.broadcast %42 : vector<1x1x144xf32> to vector<2x2x144xf32>
    %44 = arith.mulf %39, %43 : vector<2x2x144xf32>
    %45 = arith.addf %36, %44 : vector<2x2x144xf32>
    %c0_35 = arith.constant 0 : index
    %c2_36 = arith.constant 2 : index
    %c0_37 = arith.constant 0 : index
    %c1_38 = arith.constant 1 : index
    %c0_39 = arith.constant 0 : index
    %46 = vector.load %arg1[%c0_35, %c2_36, %c0_37, %c1_38, %c0_39] : memref<1x4x3x3x144xbf16, #tpu.memory_space<vmem>>, vector<1x1x2x2x144xbf16>
    %47 = vector.shape_cast %46 : vector<1x1x2x2x144xbf16> to vector<2x2x144xbf16>
    %48 = arith.extf %47 : vector<2x2x144xbf16> to vector<2x2x144xf32>
    %c5 = arith.constant 5 : index
    %c0_40 = arith.constant 0 : index
    %c0_41 = arith.constant 0 : index
    %49 = vector.load %arg2[%c5, %c0_40, %c0_41] : memref<9x1x144xf32, #tpu.memory_space<vmem>>, vector<1x1x144xf32>
    %50 = vector.shape_cast %49 : vector<1x1x144xf32> to vector<1x144xf32>
    %51 = vector.shape_cast %50 : vector<1x144xf32> to vector<1x1x144xf32>
    %52 = vector.broadcast %51 : vector<1x1x144xf32> to vector<2x2x144xf32>
    %53 = arith.mulf %48, %52 : vector<2x2x144xf32>
    %54 = arith.addf %45, %53 : vector<2x2x144xf32>
    %c0_42 = arith.constant 0 : index
    %c0_43 = arith.constant 0 : index
    %c1_44 = arith.constant 1 : index
    %c0_45 = arith.constant 0 : index
    %c0_46 = arith.constant 0 : index
    %55 = vector.load %arg1[%c0_42, %c0_43, %c1_44, %c0_45, %c0_46] : memref<1x4x3x3x144xbf16, #tpu.memory_space<vmem>>, vector<1x1x2x2x144xbf16>
    %56 = vector.shape_cast %55 : vector<1x1x2x2x144xbf16> to vector<2x2x144xbf16>
    %57 = arith.extf %56 : vector<2x2x144xbf16> to vector<2x2x144xf32>
    %c6 = arith.constant 6 : index
    %c0_47 = arith.constant 0 : index
    %c0_48 = arith.constant 0 : index
    %58 = vector.load %arg2[%c6, %c0_47, %c0_48] : memref<9x1x144xf32, #tpu.memory_space<vmem>>, vector<1x1x144xf32>
    %59 = vector.shape_cast %58 : vector<1x1x144xf32> to vector<1x144xf32>
    %60 = vector.shape_cast %59 : vector<1x144xf32> to vector<1x1x144xf32>
    %61 = vector.broadcast %60 : vector<1x1x144xf32> to vector<2x2x144xf32>
    %62 = arith.mulf %57, %61 : vector<2x2x144xf32>
    %63 = arith.addf %54, %62 : vector<2x2x144xf32>
    %c0_49 = arith.constant 0 : index
    %c1_50 = arith.constant 1 : index
    %c1_51 = arith.constant 1 : index
    %c0_52 = arith.constant 0 : index
    %c0_53 = arith.constant 0 : index
    %64 = vector.load %arg1[%c0_49, %c1_50, %c1_51, %c0_52, %c0_53] : memref<1x4x3x3x144xbf16, #tpu.memory_space<vmem>>, vector<1x1x2x2x144xbf16>
    %65 = vector.shape_cast %64 : vector<1x1x2x2x144xbf16> to vector<2x2x144xbf16>
    %66 = arith.extf %65 : vector<2x2x144xbf16> to vector<2x2x144xf32>
    %c7 = arith.constant 7 : index
    %c0_54 = arith.constant 0 : index
    %c0_55 = arith.constant 0 : index
    %67 = vector.load %arg2[%c7, %c0_54, %c0_55] : memref<9x1x144xf32, #tpu.memory_space<vmem>>, vector<1x1x144xf32>
    %68 = vector.shape_cast %67 : vector<1x1x144xf32> to vector<1x144xf32>
    %69 = vector.shape_cast %68 : vector<1x144xf32> to vector<1x1x144xf32>
    %70 = vector.broadcast %69 : vector<1x1x144xf32> to vector<2x2x144xf32>
    %71 = arith.mulf %66, %70 : vector<2x2x144xf32>
    %72 = arith.addf %63, %71 : vector<2x2x144xf32>
    %c0_56 = arith.constant 0 : index
    %c0_57 = arith.constant 0 : index
    %c1_58 = arith.constant 1 : index
    %c1_59 = arith.constant 1 : index
    %c0_60 = arith.constant 0 : index
    %73 = vector.load %arg1[%c0_56, %c0_57, %c1_58, %c1_59, %c0_60] : memref<1x4x3x3x144xbf16, #tpu.memory_space<vmem>>, vector<1x1x2x2x144xbf16>
    %74 = vector.shape_cast %73 : vector<1x1x2x2x144xbf16> to vector<2x2x144xbf16>
    %75 = arith.extf %74 : vector<2x2x144xbf16> to vector<2x2x144xf32>
    %c8 = arith.constant 8 : index
    %c0_61 = arith.constant 0 : index
    %c0_62 = arith.constant 0 : index
    %76 = vector.load %arg2[%c8, %c0_61, %c0_62] : memref<9x1x144xf32, #tpu.memory_space<vmem>>, vector<1x1x144xf32>
    %77 = vector.shape_cast %76 : vector<1x1x144xf32> to vector<1x144xf32>
    %78 = vector.shape_cast %77 : vector<1x144xf32> to vector<1x1x144xf32>
    %79 = vector.broadcast %78 : vector<1x1x144xf32> to vector<2x2x144xf32>
    %80 = arith.mulf %75, %79 : vector<2x2x144xf32>
    %81 = arith.addf %72, %80 : vector<2x2x144xf32>
    %c0_63 = arith.constant 0 : index
    %c0_64 = arith.constant 0 : index
    %82 = vector.load %arg3[%c0_63, %c0_64] : memref<1x144xf32, #tpu.memory_space<vmem>>, vector<1x144xf32>
    %83 = vector.shape_cast %82 : vector<1x144xf32> to vector<1x1x144xf32>
    %84 = vector.broadcast %83 : vector<1x1x144xf32> to vector<2x2x144xf32>
    %85 = arith.addf %81, %84 : vector<2x2x144xf32>
    %cst_65 = arith.constant 0.000000e+00 : f32
    %cst_66 = arith.constant 6.000000e+00 : f32
    %86 = vector.broadcast %cst_65 : f32 to vector<2x2x144xf32>
    %87 = arith.maximumf %86, %85 : vector<2x2x144xf32>
    %88 = vector.broadcast %cst_66 : f32 to vector<2x2x144xf32>
    %89 = arith.minimumf %88, %87 : vector<2x2x144xf32>
    %90 = vector.shape_cast %89 : vector<2x2x144xf32> to vector<4x144xf32>
    %91 = arith.truncf %90 : vector<4x144xf32> to vector<4x144xbf16>
    %c0_67 = arith.constant 0 : index
    %c0_68 = arith.constant 0 : index
    %92 = vector.load %arg4[%c0_67, %c0_68] : memref<144x32xbf16, #tpu.memory_space<vmem>>, vector<144x32xbf16>
    %cst_69 = arith.constant dense<0.000000e+00> : vector<4x32xf32>
    %93 = tpu.matmul %91, %92, %cst_69 {dimension_numbers = #tpu.dot_dimension_numbers<[1], [0], [0], [1], [0, 0, 1, 1], [], []>} : vector<4x144xbf16>, vector<144x32xbf16>, vector<4x32xf32> -> vector<4x32xf32>
    %c0_70 = arith.constant 0 : index
    %c0_71 = arith.constant 0 : index
    %94 = vector.load %arg5[%c0_70, %c0_71] : memref<1x32xf32, #tpu.memory_space<vmem>>, vector<1x32xf32>
    %95 = vector.broadcast %94 : vector<1x32xf32> to vector<4x32xf32>
    %96 = arith.addf %93, %95 : vector<4x32xf32>
    %97 = arith.truncf %96 : vector<4x32xf32> to vector<4x32xbf16>
    %c0_72 = arith.constant 0 : index
    %c0_73 = arith.constant 0 : index
    %c0_74 = arith.constant 0 : index
    %98 = vector.load %arg6[%c0_72, %c0_73, %c0_74] : memref<1x4x32xbf16, #tpu.memory_space<vmem>>, vector<1x4x32xbf16>
    %99 = vector.shape_cast %98 : vector<1x4x32xbf16> to vector<4x32xbf16>
    %100 = vector.shape_cast %97 : vector<4x32xbf16> to vector<1x4x32xbf16>
    tpu.vector_store %arg6[%c0_72, %c0_73, %c0_74], %100 {strides = array<i32>} : memref<1x4x32xbf16, #tpu.memory_space<vmem>>, vector<1x4x32xbf16>,
    return
  }
  func.func @transform_0(%arg0: i32) -> (i32, i32, i32, i32, i32) {
    %c0_i32 = arith.constant 0 : i32
    %c0_i32_0 = arith.constant 0 : i32
    %c0_i32_1 = arith.constant 0 : i32
    %c0_i32_2 = arith.constant 0 : i32
    %c0_i32_3 = arith.constant 0 : i32
    return %arg0, %c0_i32, %c0_i32_0, %c0_i32_1, %c0_i32_2 : i32, i32, i32, i32, i32
  }
  func.func @transform_1(%arg0: i32) -> (i32, i32, i32) {
    %c0_i32 = arith.constant 0 : i32
    %c0_i32_0 = arith.constant 0 : i32
    %c0_i32_1 = arith.constant 0 : i32
    %c0_i32_2 = arith.constant 0 : i32
    return %c0_i32, %c0_i32_0, %c0_i32_1 : i32, i32, i32
  }
  func.func @transform_2(%arg0: i32) -> (i32, i32) {
    %c0_i32 = arith.constant 0 : i32
    %c0_i32_0 = arith.constant 0 : i32
    %c0_i32_1 = arith.constant 0 : i32
    return %c0_i32, %c0_i32_0 : i32, i32
  }
  func.func @transform_3(%arg0: i32) -> (i32, i32) {
    %c0_i32 = arith.constant 0 : i32
    %c0_i32_0 = arith.constant 0 : i32
    %c0_i32_1 = arith.constant 0 : i32
    return %c0_i32, %c0_i32_0 : i32, i32
  }
  func.func @transform_4(%arg0: i32) -> (i32, i32) {
    %c0_i32 = arith.constant 0 : i32
    %c0_i32_0 = arith.constant 0 : i32
    %c0_i32_1 = arith.constant 0 : i32
    return %c0_i32, %c0_i32_0 : i32, i32
  }
  func.func @transform_5(%arg0: i32) -> (i32, i32, i32) {
    %c0_i32 = arith.constant 0 : i32
    %c0_i32_0 = arith.constant 0 : i32
    %c0_i32_1 = arith.constant 0 : i32
    return %arg0, %c0_i32, %c0_i32_0 : i32, i32, i32
  }
}

module attributes {stable_mosaic.version = 11 : i64} {
  func.func @_fused_block_kernel(%arg0: i32, %arg1: memref<1x4x32xbf16, #tpu.memory_space<vmem>>, %arg2: memref<32x192xbf16, #tpu.memory_space<vmem>>, %arg3: memref<1x192xf32, #tpu.memory_space<vmem>>, %arg4: memref<9x1x192xf32, #tpu.memory_space<vmem>>, %arg5: memref<1x192xf32, #tpu.memory_space<vmem>>, %arg6: memref<192x32xbf16, #tpu.memory_space<vmem>>, %arg7: memref<1x32xf32, #tpu.memory_space<vmem>>, %arg8: memref<1x4x32xbf16, #tpu.memory_space<vmem>>, %arg9: memref<4x4x192xf32, #tpu.memory_space<vmem>>) attributes {dimension_semantics = [#tpu.dimension_semantics<parallel>], iteration_bounds = array<i64: 2>, scalar_prefetch = 0 : i64, scratch_operands = 1 : i64, tpu.core_type = #tpu.core_type<tc>, window_params = [{transform_indices = @transform_0, window_bounds = array<i64: 1, 4, 32>}, {pipeline_mode = #tpu.pipeline_mode<synchronous>, transform_indices = @transform_1, window_bounds = array<i64: 32, 192>}, {pipeline_mode = #tpu.pipeline_mode<synchronous>, transform_indices = @transform_2, window_bounds = array<i64: 1, 192>}, {pipeline_mode = #tpu.pipeline_mode<synchronous>, transform_indices = @transform_3, window_bounds = array<i64: 9, 1, 192>}, {pipeline_mode = #tpu.pipeline_mode<synchronous>, transform_indices = @transform_4, window_bounds = array<i64: 1, 192>}, {pipeline_mode = #tpu.pipeline_mode<synchronous>, transform_indices = @transform_5, window_bounds = array<i64: 192, 32>}, {pipeline_mode = #tpu.pipeline_mode<synchronous>, transform_indices = @transform_6, window_bounds = array<i64: 1, 32>}, {transform_indices = @transform_7, window_bounds = array<i64: 1, 4, 32>}]} {
    %c0 = arith.constant 0 : index
    %c0_0 = arith.constant 0 : index
    %c0_1 = arith.constant 0 : index
    %0 = vector.load %arg1[%c0, %c0_0, %c0_1] : memref<1x4x32xbf16, #tpu.memory_space<vmem>>, vector<1x4x32xbf16>
    %1 = vector.shape_cast %0 : vector<1x4x32xbf16> to vector<4x32xbf16>
    %c0_2 = arith.constant 0 : index
    %c0_3 = arith.constant 0 : index
    %2 = vector.load %arg2[%c0_2, %c0_3] : memref<32x192xbf16, #tpu.memory_space<vmem>>, vector<32x192xbf16>
    %cst = arith.constant dense<0.000000e+00> : vector<4x192xf32>
    %3 = tpu.matmul %1, %2, %cst {dimension_numbers = #tpu.dot_dimension_numbers<[1], [0], [0], [1], [0, 0, 1, 1], [], []>} : vector<4x32xbf16>, vector<32x192xbf16>, vector<4x192xf32> -> vector<4x192xf32>
    %c0_4 = arith.constant 0 : index
    %c0_5 = arith.constant 0 : index
    %4 = vector.load %arg3[%c0_4, %c0_5] : memref<1x192xf32, #tpu.memory_space<vmem>>, vector<1x192xf32>
    %5 = vector.broadcast %4 : vector<1x192xf32> to vector<4x192xf32>
    %6 = arith.addf %3, %5 : vector<4x192xf32>
    %cst_6 = arith.constant 0.000000e+00 : f32
    %cst_7 = arith.constant 6.000000e+00 : f32
    %7 = vector.broadcast %cst_6 : f32 to vector<4x192xf32>
    %8 = arith.maximumf %7, %6 : vector<4x192xf32>
    %9 = vector.broadcast %cst_7 : f32 to vector<4x192xf32>
    %10 = arith.minimumf %9, %8 : vector<4x192xf32>
    %cst_8 = arith.constant 0.000000e+00 : f32
    %11 = vector.broadcast %cst_8 : f32 to vector<4x4x192xf32>
    %c0_9 = arith.constant 0 : index
    %c0_10 = arith.constant 0 : index
    %c0_11 = arith.constant 0 : index
    %12 = vector.load %arg9[%c0_9, %c0_10, %c0_11] : memref<4x4x192xf32, #tpu.memory_space<vmem>>, vector<4x4x192xf32>
    tpu.vector_store %arg9[%c0_9, %c0_10, %c0_11], %11 {strides = array<i32>} : memref<4x4x192xf32, #tpu.memory_space<vmem>>, vector<4x4x192xf32>,
    %13 = vector.shape_cast %10 : vector<4x192xf32> to vector<2x2x192xf32>
    %c1 = arith.constant 1 : index
    %c1_12 = arith.constant 1 : index
    %c0_13 = arith.constant 0 : index
    %14 = vector.load %arg9[%c1, %c1_12, %c0_13] : memref<4x4x192xf32, #tpu.memory_space<vmem>>, vector<2x2x192xf32>
    tpu.vector_store %arg9[%c1, %c1_12, %c0_13], %13 {strides = array<i32>} : memref<4x4x192xf32, #tpu.memory_space<vmem>>, vector<2x2x192xf32>,
    %cst_14 = arith.constant 0.000000e+00 : f32
    %15 = vector.broadcast %cst_14 : f32 to vector<2x2x192xf32>
    %c0_15 = arith.constant 0 : index
    %c0_16 = arith.constant 0 : index
    %c0_17 = arith.constant 0 : index
    %16 = vector.load %arg9[%c0_15, %c0_16, %c0_17] : memref<4x4x192xf32, #tpu.memory_space<vmem>>, vector<2x2x192xf32>
    %c0_18 = arith.constant 0 : index
    %c0_19 = arith.constant 0 : index
    %c0_20 = arith.constant 0 : index
    %17 = vector.load %arg4[%c0_18, %c0_19, %c0_20] : memref<9x1x192xf32, #tpu.memory_space<vmem>>, vector<1x1x192xf32>
    %18 = vector.shape_cast %17 : vector<1x1x192xf32> to vector<1x192xf32>
    %19 = vector.shape_cast %18 : vector<1x192xf32> to vector<1x1x192xf32>
    %20 = vector.broadcast %19 : vector<1x1x192xf32> to vector<2x2x192xf32>
    %21 = arith.mulf %16, %20 : vector<2x2x192xf32>
    %22 = arith.addf %15, %21 : vector<2x2x192xf32>
    %c0_21 = arith.constant 0 : index
    %c1_22 = arith.constant 1 : index
    %c0_23 = arith.constant 0 : index
    %23 = vector.load %arg9[%c0_21, %c1_22, %c0_23] : memref<4x4x192xf32, #tpu.memory_space<vmem>>, vector<2x2x192xf32>
    %c1_24 = arith.constant 1 : index
    %c0_25 = arith.constant 0 : index
    %c0_26 = arith.constant 0 : index
    %24 = vector.load %arg4[%c1_24, %c0_25, %c0_26] : memref<9x1x192xf32, #tpu.memory_space<vmem>>, vector<1x1x192xf32>
    %25 = vector.shape_cast %24 : vector<1x1x192xf32> to vector<1x192xf32>
    %26 = vector.shape_cast %25 : vector<1x192xf32> to vector<1x1x192xf32>
    %27 = vector.broadcast %26 : vector<1x1x192xf32> to vector<2x2x192xf32>
    %28 = arith.mulf %23, %27 : vector<2x2x192xf32>
    %29 = arith.addf %22, %28 : vector<2x2x192xf32>
    %c0_27 = arith.constant 0 : index
    %c2 = arith.constant 2 : index
    %c0_28 = arith.constant 0 : index
    %30 = vector.load %arg9[%c0_27, %c2, %c0_28] : memref<4x4x192xf32, #tpu.memory_space<vmem>>, vector<2x2x192xf32>
    %c2_29 = arith.constant 2 : index
    %c0_30 = arith.constant 0 : index
    %c0_31 = arith.constant 0 : index
    %31 = vector.load %arg4[%c2_29, %c0_30, %c0_31] : memref<9x1x192xf32, #tpu.memory_space<vmem>>, vector<1x1x192xf32>
    %32 = vector.shape_cast %31 : vector<1x1x192xf32> to vector<1x192xf32>
    %33 = vector.shape_cast %32 : vector<1x192xf32> to vector<1x1x192xf32>
    %34 = vector.broadcast %33 : vector<1x1x192xf32> to vector<2x2x192xf32>
    %35 = arith.mulf %30, %34 : vector<2x2x192xf32>
    %36 = arith.addf %29, %35 : vector<2x2x192xf32>
    %c1_32 = arith.constant 1 : index
    %c0_33 = arith.constant 0 : index
    %c0_34 = arith.constant 0 : index
    %37 = vector.load %arg9[%c1_32, %c0_33, %c0_34] : memref<4x4x192xf32, #tpu.memory_space<vmem>>, vector<2x2x192xf32>
    %c3 = arith.constant 3 : index
    %c0_35 = arith.constant 0 : index
    %c0_36 = arith.constant 0 : index
    %38 = vector.load %arg4[%c3, %c0_35, %c0_36] : memref<9x1x192xf32, #tpu.memory_space<vmem>>, vector<1x1x192xf32>
    %39 = vector.shape_cast %38 : vector<1x1x192xf32> to vector<1x192xf32>
    %40 = vector.shape_cast %39 : vector<1x192xf32> to vector<1x1x192xf32>
    %41 = vector.broadcast %40 : vector<1x1x192xf32> to vector<2x2x192xf32>
    %42 = arith.mulf %37, %41 : vector<2x2x192xf32>
    %43 = arith.addf %36, %42 : vector<2x2x192xf32>
    %c1_37 = arith.constant 1 : index
    %c1_38 = arith.constant 1 : index
    %c0_39 = arith.constant 0 : index
    %44 = vector.load %arg9[%c1_37, %c1_38, %c0_39] : memref<4x4x192xf32, #tpu.memory_space<vmem>>, vector<2x2x192xf32>
    %c4 = arith.constant 4 : index
    %c0_40 = arith.constant 0 : index
    %c0_41 = arith.constant 0 : index
    %45 = vector.load %arg4[%c4, %c0_40, %c0_41] : memref<9x1x192xf32, #tpu.memory_space<vmem>>, vector<1x1x192xf32>
    %46 = vector.shape_cast %45 : vector<1x1x192xf32> to vector<1x192xf32>
    %47 = vector.shape_cast %46 : vector<1x192xf32> to vector<1x1x192xf32>
    %48 = vector.broadcast %47 : vector<1x1x192xf32> to vector<2x2x192xf32>
    %49 = arith.mulf %44, %48 : vector<2x2x192xf32>
    %50 = arith.addf %43, %49 : vector<2x2x192xf32>
    %c1_42 = arith.constant 1 : index
    %c2_43 = arith.constant 2 : index
    %c0_44 = arith.constant 0 : index
    %51 = vector.load %arg9[%c1_42, %c2_43, %c0_44] : memref<4x4x192xf32, #tpu.memory_space<vmem>>, vector<2x2x192xf32>
    %c5 = arith.constant 5 : index
    %c0_45 = arith.constant 0 : index
    %c0_46 = arith.constant 0 : index
    %52 = vector.load %arg4[%c5, %c0_45, %c0_46] : memref<9x1x192xf32, #tpu.memory_space<vmem>>, vector<1x1x192xf32>
    %53 = vector.shape_cast %52 : vector<1x1x192xf32> to vector<1x192xf32>
    %54 = vector.shape_cast %53 : vector<1x192xf32> to vector<1x1x192xf32>
    %55 = vector.broadcast %54 : vector<1x1x192xf32> to vector<2x2x192xf32>
    %56 = arith.mulf %51, %55 : vector<2x2x192xf32>
    %57 = arith.addf %50, %56 : vector<2x2x192xf32>
    %c2_47 = arith.constant 2 : index
    %c0_48 = arith.constant 0 : index
    %c0_49 = arith.constant 0 : index
    %58 = vector.load %arg9[%c2_47, %c0_48, %c0_49] : memref<4x4x192xf32, #tpu.memory_space<vmem>>, vector<2x2x192xf32>
    %c6 = arith.constant 6 : index
    %c0_50 = arith.constant 0 : index
    %c0_51 = arith.constant 0 : index
    %59 = vector.load %arg4[%c6, %c0_50, %c0_51] : memref<9x1x192xf32, #tpu.memory_space<vmem>>, vector<1x1x192xf32>
    %60 = vector.shape_cast %59 : vector<1x1x192xf32> to vector<1x192xf32>
    %61 = vector.shape_cast %60 : vector<1x192xf32> to vector<1x1x192xf32>
    %62 = vector.broadcast %61 : vector<1x1x192xf32> to vector<2x2x192xf32>
    %63 = arith.mulf %58, %62 : vector<2x2x192xf32>
    %64 = arith.addf %57, %63 : vector<2x2x192xf32>
    %c2_52 = arith.constant 2 : index
    %c1_53 = arith.constant 1 : index
    %c0_54 = arith.constant 0 : index
    %65 = vector.load %arg9[%c2_52, %c1_53, %c0_54] : memref<4x4x192xf32, #tpu.memory_space<vmem>>, vector<2x2x192xf32>
    %c7 = arith.constant 7 : index
    %c0_55 = arith.constant 0 : index
    %c0_56 = arith.constant 0 : index
    %66 = vector.load %arg4[%c7, %c0_55, %c0_56] : memref<9x1x192xf32, #tpu.memory_space<vmem>>, vector<1x1x192xf32>
    %67 = vector.shape_cast %66 : vector<1x1x192xf32> to vector<1x192xf32>
    %68 = vector.shape_cast %67 : vector<1x192xf32> to vector<1x1x192xf32>
    %69 = vector.broadcast %68 : vector<1x1x192xf32> to vector<2x2x192xf32>
    %70 = arith.mulf %65, %69 : vector<2x2x192xf32>
    %71 = arith.addf %64, %70 : vector<2x2x192xf32>
    %c2_57 = arith.constant 2 : index
    %c2_58 = arith.constant 2 : index
    %c0_59 = arith.constant 0 : index
    %72 = vector.load %arg9[%c2_57, %c2_58, %c0_59] : memref<4x4x192xf32, #tpu.memory_space<vmem>>, vector<2x2x192xf32>
    %c8 = arith.constant 8 : index
    %c0_60 = arith.constant 0 : index
    %c0_61 = arith.constant 0 : index
    %73 = vector.load %arg4[%c8, %c0_60, %c0_61] : memref<9x1x192xf32, #tpu.memory_space<vmem>>, vector<1x1x192xf32>
    %74 = vector.shape_cast %73 : vector<1x1x192xf32> to vector<1x192xf32>
    %75 = vector.shape_cast %74 : vector<1x192xf32> to vector<1x1x192xf32>
    %76 = vector.broadcast %75 : vector<1x1x192xf32> to vector<2x2x192xf32>
    %77 = arith.mulf %72, %76 : vector<2x2x192xf32>
    %78 = arith.addf %71, %77 : vector<2x2x192xf32>
    %c0_62 = arith.constant 0 : index
    %c0_63 = arith.constant 0 : index
    %79 = vector.load %arg5[%c0_62, %c0_63] : memref<1x192xf32, #tpu.memory_space<vmem>>, vector<1x192xf32>
    %80 = vector.shape_cast %79 : vector<1x192xf32> to vector<1x1x192xf32>
    %81 = vector.broadcast %80 : vector<1x1x192xf32> to vector<2x2x192xf32>
    %82 = arith.addf %78, %81 : vector<2x2x192xf32>
    %cst_64 = arith.constant 0.000000e+00 : f32
    %cst_65 = arith.constant 6.000000e+00 : f32
    %83 = vector.broadcast %cst_64 : f32 to vector<2x2x192xf32>
    %84 = arith.maximumf %83, %82 : vector<2x2x192xf32>
    %85 = vector.broadcast %cst_65 : f32 to vector<2x2x192xf32>
    %86 = arith.minimumf %85, %84 : vector<2x2x192xf32>
    %87 = vector.shape_cast %86 : vector<2x2x192xf32> to vector<4x192xf32>
    %88 = arith.truncf %87 : vector<4x192xf32> to vector<4x192xbf16>
    %c0_66 = arith.constant 0 : index
    %c0_67 = arith.constant 0 : index
    %89 = vector.load %arg6[%c0_66, %c0_67] : memref<192x32xbf16, #tpu.memory_space<vmem>>, vector<192x32xbf16>
    %cst_68 = arith.constant dense<0.000000e+00> : vector<4x32xf32>
    %90 = tpu.matmul %88, %89, %cst_68 {dimension_numbers = #tpu.dot_dimension_numbers<[1], [0], [0], [1], [0, 0, 1, 1], [], []>} : vector<4x192xbf16>, vector<192x32xbf16>, vector<4x32xf32> -> vector<4x32xf32>
    %c0_69 = arith.constant 0 : index
    %c0_70 = arith.constant 0 : index
    %91 = vector.load %arg7[%c0_69, %c0_70] : memref<1x32xf32, #tpu.memory_space<vmem>>, vector<1x32xf32>
    %92 = vector.broadcast %91 : vector<1x32xf32> to vector<4x32xf32>
    %93 = arith.addf %90, %92 : vector<4x32xf32>
    %94 = arith.extf %1 : vector<4x32xbf16> to vector<4x32xf32>
    %95 = arith.addf %93, %94 : vector<4x32xf32>
    %96 = arith.truncf %95 : vector<4x32xf32> to vector<4x32xbf16>
    %c0_71 = arith.constant 0 : index
    %c0_72 = arith.constant 0 : index
    %c0_73 = arith.constant 0 : index
    %97 = vector.load %arg8[%c0_71, %c0_72, %c0_73] : memref<1x4x32xbf16, #tpu.memory_space<vmem>>, vector<1x4x32xbf16>
    %98 = vector.shape_cast %97 : vector<1x4x32xbf16> to vector<4x32xbf16>
    %99 = vector.shape_cast %96 : vector<4x32xbf16> to vector<1x4x32xbf16>
    tpu.vector_store %arg8[%c0_71, %c0_72, %c0_73], %99 {strides = array<i32>} : memref<1x4x32xbf16, #tpu.memory_space<vmem>>, vector<1x4x32xbf16>,
    return
  }
  func.func @transform_0(%arg0: i32) -> (i32, i32, i32) {
    %c0_i32 = arith.constant 0 : i32
    %c0_i32_0 = arith.constant 0 : i32
    %c0_i32_1 = arith.constant 0 : i32
    return %arg0, %c0_i32, %c0_i32_0 : i32, i32, i32
  }
  func.func @transform_1(%arg0: i32) -> (i32, i32) {
    %c0_i32 = arith.constant 0 : i32
    %c0_i32_0 = arith.constant 0 : i32
    %c0_i32_1 = arith.constant 0 : i32
    return %c0_i32, %c0_i32_0 : i32, i32
  }
  func.func @transform_2(%arg0: i32) -> (i32, i32) {
    %c0_i32 = arith.constant 0 : i32
    %c0_i32_0 = arith.constant 0 : i32
    %c0_i32_1 = arith.constant 0 : i32
    return %c0_i32, %c0_i32_0 : i32, i32
  }
  func.func @transform_3(%arg0: i32) -> (i32, i32, i32) {
    %c0_i32 = arith.constant 0 : i32
    %c0_i32_0 = arith.constant 0 : i32
    %c0_i32_1 = arith.constant 0 : i32
    %c0_i32_2 = arith.constant 0 : i32
    return %c0_i32, %c0_i32_0, %c0_i32_1 : i32, i32, i32
  }
  func.func @transform_4(%arg0: i32) -> (i32, i32) {
    %c0_i32 = arith.constant 0 : i32
    %c0_i32_0 = arith.constant 0 : i32
    %c0_i32_1 = arith.constant 0 : i32
    return %c0_i32, %c0_i32_0 : i32, i32
  }
  func.func @transform_5(%arg0: i32) -> (i32, i32) {
    %c0_i32 = arith.constant 0 : i32
    %c0_i32_0 = arith.constant 0 : i32
    %c0_i32_1 = arith.constant 0 : i32
    return %c0_i32, %c0_i32_0 : i32, i32
  }
  func.func @transform_6(%arg0: i32) -> (i32, i32) {
    %c0_i32 = arith.constant 0 : i32
    %c0_i32_0 = arith.constant 0 : i32
    %c0_i32_1 = arith.constant 0 : i32
    return %c0_i32, %c0_i32_0 : i32, i32
  }
  func.func @transform_7(%arg0: i32) -> (i32, i32, i32) {
    %c0_i32 = arith.constant 0 : i32
    %c0_i32_0 = arith.constant 0 : i32
    %c0_i32_1 = arith.constant 0 : i32
    return %arg0, %c0_i32, %c0_i32_0 : i32, i32, i32
  }
}

module attributes {stable_mosaic.version = 11 : i64} {
  func.func @_mm_kernel(%arg0: i32, %arg1: memref<8x32xbf16, #tpu.memory_space<vmem>>, %arg2: memref<32x192xbf16, #tpu.memory_space<vmem>>, %arg3: memref<1x192xf32, #tpu.memory_space<vmem>>, %arg4: memref<8x192xbf16, #tpu.memory_space<vmem>>) attributes {dimension_semantics = [#tpu.dimension_semantics<parallel>], iteration_bounds = array<i64: 1>, scalar_prefetch = 0 : i64, scratch_operands = 0 : i64, tpu.core_type = #tpu.core_type<tc>, window_params = [{transform_indices = @transform_0, window_bounds = array<i64: 8, 32>}, {pipeline_mode = #tpu.pipeline_mode<synchronous>, transform_indices = @transform_1, window_bounds = array<i64: 32, 192>}, {pipeline_mode = #tpu.pipeline_mode<synchronous>, transform_indices = @transform_2, window_bounds = array<i64: 1, 192>}, {transform_indices = @transform_3, window_bounds = array<i64: 8, 192>}]} {
    %c0 = arith.constant 0 : index
    %c0_0 = arith.constant 0 : index
    %0 = vector.load %arg1[%c0, %c0_0] : memref<8x32xbf16, #tpu.memory_space<vmem>>, vector<8x32xbf16>
    %c0_1 = arith.constant 0 : index
    %c0_2 = arith.constant 0 : index
    %1 = vector.load %arg2[%c0_1, %c0_2] : memref<32x192xbf16, #tpu.memory_space<vmem>>, vector<32x192xbf16>
    %cst = arith.constant dense<0.000000e+00> : vector<8x192xf32>
    %2 = tpu.matmul %0, %1, %cst {dimension_numbers = #tpu.dot_dimension_numbers<[1], [0], [0], [1], [0, 0, 1, 1], [], []>} : vector<8x32xbf16>, vector<32x192xbf16>, vector<8x192xf32> -> vector<8x192xf32>
    %c0_3 = arith.constant 0 : index
    %c0_4 = arith.constant 0 : index
    %3 = vector.load %arg3[%c0_3, %c0_4] : memref<1x192xf32, #tpu.memory_space<vmem>>, vector<1x192xf32>
    %4 = vector.broadcast %3 : vector<1x192xf32> to vector<8x192xf32>
    %5 = arith.addf %2, %4 : vector<8x192xf32>
    %cst_5 = arith.constant 0.000000e+00 : f32
    %cst_6 = arith.constant 6.000000e+00 : f32
    %6 = vector.broadcast %cst_5 : f32 to vector<8x192xf32>
    %7 = arith.maximumf %6, %5 : vector<8x192xf32>
    %8 = vector.broadcast %cst_6 : f32 to vector<8x192xf32>
    %9 = arith.minimumf %8, %7 : vector<8x192xf32>
    %10 = arith.truncf %9 : vector<8x192xf32> to vector<8x192xbf16>
    %c0_7 = arith.constant 0 : index
    %c0_8 = arith.constant 0 : index
    %11 = vector.load %arg4[%c0_7, %c0_8] : memref<8x192xbf16, #tpu.memory_space<vmem>>, vector<8x192xbf16>
    tpu.vector_store %arg4[%c0_7, %c0_8], %10 {strides = array<i32>} : memref<8x192xbf16, #tpu.memory_space<vmem>>, vector<8x192xbf16>,
    return
  }
  func.func @transform_0(%arg0: i32) -> (i32, i32) {
    %c0_i32 = arith.constant 0 : i32
    %c0_i32_0 = arith.constant 0 : i32
    return %arg0, %c0_i32 : i32, i32
  }
  func.func @transform_1(%arg0: i32) -> (i32, i32) {
    %c0_i32 = arith.constant 0 : i32
    %c0_i32_0 = arith.constant 0 : i32
    %c0_i32_1 = arith.constant 0 : i32
    return %c0_i32, %c0_i32_0 : i32, i32
  }
  func.func @transform_2(%arg0: i32) -> (i32, i32) {
    %c0_i32 = arith.constant 0 : i32
    %c0_i32_0 = arith.constant 0 : i32
    %c0_i32_1 = arith.constant 0 : i32
    return %c0_i32, %c0_i32_0 : i32, i32
  }
  func.func @transform_3(%arg0: i32) -> (i32, i32) {
    %c0_i32 = arith.constant 0 : i32
    %c0_i32_0 = arith.constant 0 : i32
    return %arg0, %c0_i32 : i32, i32
  }
}

module attributes {stable_mosaic.version = 11 : i64} {
  func.func @_dw_s2_project_kernel(%arg0: i32, %arg1: memref<1x4x2x2x192xbf16, #tpu.memory_space<vmem>>, %arg2: memref<9x1x192xf32, #tpu.memory_space<vmem>>, %arg3: memref<1x192xf32, #tpu.memory_space<vmem>>, %arg4: memref<192x64xbf16, #tpu.memory_space<vmem>>, %arg5: memref<1x64xf32, #tpu.memory_space<vmem>>, %arg6: memref<1x1x64xbf16, #tpu.memory_space<vmem>>) attributes {dimension_semantics = [#tpu.dimension_semantics<parallel>], iteration_bounds = array<i64: 2>, scalar_prefetch = 0 : i64, scratch_operands = 0 : i64, tpu.core_type = #tpu.core_type<tc>, window_params = [{transform_indices = @transform_0, window_bounds = array<i64: 1, 4, 2, 2, 192>}, {pipeline_mode = #tpu.pipeline_mode<synchronous>, transform_indices = @transform_1, window_bounds = array<i64: 9, 1, 192>}, {pipeline_mode = #tpu.pipeline_mode<synchronous>, transform_indices = @transform_2, window_bounds = array<i64: 1, 192>}, {pipeline_mode = #tpu.pipeline_mode<synchronous>, transform_indices = @transform_3, window_bounds = array<i64: 192, 64>}, {pipeline_mode = #tpu.pipeline_mode<synchronous>, transform_indices = @transform_4, window_bounds = array<i64: 1, 64>}, {transform_indices = @transform_5, window_bounds = array<i64: 1, 1, 64>}]} {
    %cst = arith.constant 0.000000e+00 : f32
    %0 = vector.broadcast %cst : f32 to vector<1x1x192xf32>
    %c0 = arith.constant 0 : index
    %c0_0 = arith.constant 0 : index
    %c0_1 = arith.constant 0 : index
    %c0_2 = arith.constant 0 : index
    %c0_3 = arith.constant 0 : index
    %1 = vector.load %arg1[%c0, %c0_0, %c0_1, %c0_2, %c0_3] : memref<1x4x2x2x192xbf16, #tpu.memory_space<vmem>>, vector<1x1x1x1x192xbf16>
    %2 = vector.shape_cast %1 : vector<1x1x1x1x192xbf16> to vector<1x1x192xbf16>
    %3 = arith.extf %2 : vector<1x1x192xbf16> to vector<1x1x192xf32>
    %c0_4 = arith.constant 0 : index
    %c0_5 = arith.constant 0 : index
    %c0_6 = arith.constant 0 : index
    %4 = vector.load %arg2[%c0_4, %c0_5, %c0_6] : memref<9x1x192xf32, #tpu.memory_space<vmem>>, vector<1x1x192xf32>
    %5 = vector.shape_cast %4 : vector<1x1x192xf32> to vector<1x192xf32>
    %6 = vector.shape_cast %5 : vector<1x192xf32> to vector<1x1x192xf32>
    %7 = arith.mulf %3, %6 : vector<1x1x192xf32>
    %8 = arith.addf %0, %7 : vector<1x1x192xf32>
    %c0_7 = arith.constant 0 : index
    %c1 = arith.constant 1 : index
    %c0_8 = arith.constant 0 : index
    %c0_9 = arith.constant 0 : index
    %c0_10 = arith.constant 0 : index
    %9 = vector.load %arg1[%c0_7, %c1, %c0_8, %c0_9, %c0_10] : memref<1x4x2x2x192xbf16, #tpu.memory_space<vmem>>, vector<1x1x1x1x192xbf16>
    %10 = vector.shape_cast %9 : vector<1x1x1x1x192xbf16> to vector<1x1x192xbf16>
    %11 = arith.extf %10 : vector<1x1x192xbf16> to vector<1x1x192xf32>
    %c1_11 = arith.constant 1 : index
    %c0_12 = arith.constant 0 : index
    %c0_13 = arith.constant 0 : index
    %12 = vector.load %arg2[%c1_11, %c0_12, %c0_13] : memref<9x1x192xf32, #tpu.memory_space<vmem>>, vector<1x1x192xf32>
    %13 = vector.shape_cast %12 : vector<1x1x192xf32> to vector<1x192xf32>
    %14 = vector.shape_cast %13 : vector<1x192xf32> to vector<1x1x192xf32>
    %15 = arith.mulf %11, %14 : vector<1x1x192xf32>
    %16 = arith.addf %8, %15 : vector<1x1x192xf32>
    %c0_14 = arith.constant 0 : index
    %c0_15 = arith.constant 0 : index
    %c0_16 = arith.constant 0 : index
    %c1_17 = arith.constant 1 : index
    %c0_18 = arith.constant 0 : index
    %17 = vector.load %arg1[%c0_14, %c0_15, %c0_16, %c1_17, %c0_18] : memref<1x4x2x2x192xbf16, #tpu.memory_space<vmem>>, vector<1x1x1x1x192xbf16>
    %18 = vector.shape_cast %17 : vector<1x1x1x1x192xbf16> to vector<1x1x192xbf16>
    %19 = arith.extf %18 : vector<1x1x192xbf16> to vector<1x1x192xf32>
    %c2 = arith.constant 2 : index
    %c0_19 = arith.constant 0 : index
    %c0_20 = arith.constant 0 : index
    %20 = vector.load %arg2[%c2, %c0_19, %c0_20] : memref<9x1x192xf32, #tpu.memory_space<vmem>>, vector<1x1x192xf32>
    %21 = vector.shape_cast %20 : vector<1x1x192xf32> to vector<1x192xf32>
    %22 = vector.shape_cast %21 : vector<1x192xf32> to vector<1x1x192xf32>
    %23 = arith.mulf %19, %22 : vector<1x1x192xf32>
    %24 = arith.addf %16, %23 : vector<1x1x192xf32>
    %c0_21 = arith.constant 0 : index
    %c2_22 = arith.constant 2 : index
    %c0_23 = arith.constant 0 : index
    %c0_24 = arith.constant 0 : index
    %c0_25 = arith.constant 0 : index
    %25 = vector.load %arg1[%c0_21, %c2_22, %c0_23, %c0_24, %c0_25] : memref<1x4x2x2x192xbf16, #tpu.memory_space<vmem>>, vector<1x1x1x1x192xbf16>
    %26 = vector.shape_cast %25 : vector<1x1x1x1x192xbf16> to vector<1x1x192xbf16>
    %27 = arith.extf %26 : vector<1x1x192xbf16> to vector<1x1x192xf32>
    %c3 = arith.constant 3 : index
    %c0_26 = arith.constant 0 : index
    %c0_27 = arith.constant 0 : index
    %28 = vector.load %arg2[%c3, %c0_26, %c0_27] : memref<9x1x192xf32, #tpu.memory_space<vmem>>, vector<1x1x192xf32>
    %29 = vector.shape_cast %28 : vector<1x1x192xf32> to vector<1x192xf32>
    %30 = vector.shape_cast %29 : vector<1x192xf32> to vector<1x1x192xf32>
    %31 = arith.mulf %27, %30 : vector<1x1x192xf32>
    %32 = arith.addf %24, %31 : vector<1x1x192xf32>
    %c0_28 = arith.constant 0 : index
    %c3_29 = arith.constant 3 : index
    %c0_30 = arith.constant 0 : index
    %c0_31 = arith.constant 0 : index
    %c0_32 = arith.constant 0 : index
    %33 = vector.load %arg1[%c0_28, %c3_29, %c0_30, %c0_31, %c0_32] : memref<1x4x2x2x192xbf16, #tpu.memory_space<vmem>>, vector<1x1x1x1x192xbf16>
    %34 = vector.shape_cast %33 : vector<1x1x1x1x192xbf16> to vector<1x1x192xbf16>
    %35 = arith.extf %34 : vector<1x1x192xbf16> to vector<1x1x192xf32>
    %c4 = arith.constant 4 : index
    %c0_33 = arith.constant 0 : index
    %c0_34 = arith.constant 0 : index
    %36 = vector.load %arg2[%c4, %c0_33, %c0_34] : memref<9x1x192xf32, #tpu.memory_space<vmem>>, vector<1x1x192xf32>
    %37 = vector.shape_cast %36 : vector<1x1x192xf32> to vector<1x192xf32>
    %38 = vector.shape_cast %37 : vector<1x192xf32> to vector<1x1x192xf32>
    %39 = arith.mulf %35, %38 : vector<1x1x192xf32>
    %40 = arith.addf %32, %39 : vector<1x1x192xf32>
    %c0_35 = arith.constant 0 : index
    %c2_36 = arith.constant 2 : index
    %c0_37 = arith.constant 0 : index
    %c1_38 = arith.constant 1 : index
    %c0_39 = arith.constant 0 : index
    %41 = vector.load %arg1[%c0_35, %c2_36, %c0_37, %c1_38, %c0_39] : memref<1x4x2x2x192xbf16, #tpu.memory_space<vmem>>, vector<1x1x1x1x192xbf16>
    %42 = vector.shape_cast %41 : vector<1x1x1x1x192xbf16> to vector<1x1x192xbf16>
    %43 = arith.extf %42 : vector<1x1x192xbf16> to vector<1x1x192xf32>
    %c5 = arith.constant 5 : index
    %c0_40 = arith.constant 0 : index
    %c0_41 = arith.constant 0 : index
    %44 = vector.load %arg2[%c5, %c0_40, %c0_41] : memref<9x1x192xf32, #tpu.memory_space<vmem>>, vector<1x1x192xf32>
    %45 = vector.shape_cast %44 : vector<1x1x192xf32> to vector<1x192xf32>
    %46 = vector.shape_cast %45 : vector<1x192xf32> to vector<1x1x192xf32>
    %47 = arith.mulf %43, %46 : vector<1x1x192xf32>
    %48 = arith.addf %40, %47 : vector<1x1x192xf32>
    %c0_42 = arith.constant 0 : index
    %c0_43 = arith.constant 0 : index
    %c1_44 = arith.constant 1 : index
    %c0_45 = arith.constant 0 : index
    %c0_46 = arith.constant 0 : index
    %49 = vector.load %arg1[%c0_42, %c0_43, %c1_44, %c0_45, %c0_46] : memref<1x4x2x2x192xbf16, #tpu.memory_space<vmem>>, vector<1x1x1x1x192xbf16>
    %50 = vector.shape_cast %49 : vector<1x1x1x1x192xbf16> to vector<1x1x192xbf16>
    %51 = arith.extf %50 : vector<1x1x192xbf16> to vector<1x1x192xf32>
    %c6 = arith.constant 6 : index
    %c0_47 = arith.constant 0 : index
    %c0_48 = arith.constant 0 : index
    %52 = vector.load %arg2[%c6, %c0_47, %c0_48] : memref<9x1x192xf32, #tpu.memory_space<vmem>>, vector<1x1x192xf32>
    %53 = vector.shape_cast %52 : vector<1x1x192xf32> to vector<1x192xf32>
    %54 = vector.shape_cast %53 : vector<1x192xf32> to vector<1x1x192xf32>
    %55 = arith.mulf %51, %54 : vector<1x1x192xf32>
    %56 = arith.addf %48, %55 : vector<1x1x192xf32>
    %c0_49 = arith.constant 0 : index
    %c1_50 = arith.constant 1 : index
    %c1_51 = arith.constant 1 : index
    %c0_52 = arith.constant 0 : index
    %c0_53 = arith.constant 0 : index
    %57 = vector.load %arg1[%c0_49, %c1_50, %c1_51, %c0_52, %c0_53] : memref<1x4x2x2x192xbf16, #tpu.memory_space<vmem>>, vector<1x1x1x1x192xbf16>
    %58 = vector.shape_cast %57 : vector<1x1x1x1x192xbf16> to vector<1x1x192xbf16>
    %59 = arith.extf %58 : vector<1x1x192xbf16> to vector<1x1x192xf32>
    %c7 = arith.constant 7 : index
    %c0_54 = arith.constant 0 : index
    %c0_55 = arith.constant 0 : index
    %60 = vector.load %arg2[%c7, %c0_54, %c0_55] : memref<9x1x192xf32, #tpu.memory_space<vmem>>, vector<1x1x192xf32>
    %61 = vector.shape_cast %60 : vector<1x1x192xf32> to vector<1x192xf32>
    %62 = vector.shape_cast %61 : vector<1x192xf32> to vector<1x1x192xf32>
    %63 = arith.mulf %59, %62 : vector<1x1x192xf32>
    %64 = arith.addf %56, %63 : vector<1x1x192xf32>
    %c0_56 = arith.constant 0 : index
    %c0_57 = arith.constant 0 : index
    %c1_58 = arith.constant 1 : index
    %c1_59 = arith.constant 1 : index
    %c0_60 = arith.constant 0 : index
    %65 = vector.load %arg1[%c0_56, %c0_57, %c1_58, %c1_59, %c0_60] : memref<1x4x2x2x192xbf16, #tpu.memory_space<vmem>>, vector<1x1x1x1x192xbf16>
    %66 = vector.shape_cast %65 : vector<1x1x1x1x192xbf16> to vector<1x1x192xbf16>
    %67 = arith.extf %66 : vector<1x1x192xbf16> to vector<1x1x192xf32>
    %c8 = arith.constant 8 : index
    %c0_61 = arith.constant 0 : index
    %c0_62 = arith.constant 0 : index
    %68 = vector.load %arg2[%c8, %c0_61, %c0_62] : memref<9x1x192xf32, #tpu.memory_space<vmem>>, vector<1x1x192xf32>
    %69 = vector.shape_cast %68 : vector<1x1x192xf32> to vector<1x192xf32>
    %70 = vector.shape_cast %69 : vector<1x192xf32> to vector<1x1x192xf32>
    %71 = arith.mulf %67, %70 : vector<1x1x192xf32>
    %72 = arith.addf %64, %71 : vector<1x1x192xf32>
    %c0_63 = arith.constant 0 : index
    %c0_64 = arith.constant 0 : index
    %73 = vector.load %arg3[%c0_63, %c0_64] : memref<1x192xf32, #tpu.memory_space<vmem>>, vector<1x192xf32>
    %74 = vector.shape_cast %73 : vector<1x192xf32> to vector<1x1x192xf32>
    %75 = arith.addf %72, %74 : vector<1x1x192xf32>
    %cst_65 = arith.constant 0.000000e+00 : f32
    %cst_66 = arith.constant 6.000000e+00 : f32
    %76 = vector.broadcast %cst_65 : f32 to vector<1x1x192xf32>
    %77 = arith.maximumf %76, %75 : vector<1x1x192xf32>
    %78 = vector.broadcast %cst_66 : f32 to vector<1x1x192xf32>
    %79 = arith.minimumf %78, %77 : vector<1x1x192xf32>
    %80 = vector.shape_cast %79 : vector<1x1x192xf32> to vector<1x192xf32>
    %81 = arith.truncf %80 : vector<1x192xf32> to vector<1x192xbf16>
    %c0_67 = arith.constant 0 : index
    %c0_68 = arith.constant 0 : index
    %82 = vector.load %arg4[%c0_67, %c0_68] : memref<192x64xbf16, #tpu.memory_space<vmem>>, vector<192x64xbf16>
    %cst_69 = arith.constant dense<0.000000e+00> : vector<1x64xf32>
    %83 = tpu.matmul %81, %82, %cst_69 {dimension_numbers = #tpu.dot_dimension_numbers<[1], [0], [0], [1], [0, 0, 1, 1], [], []>} : vector<1x192xbf16>, vector<192x64xbf16>, vector<1x64xf32> -> vector<1x64xf32>
    %c0_70 = arith.constant 0 : index
    %c0_71 = arith.constant 0 : index
    %84 = vector.load %arg5[%c0_70, %c0_71] : memref<1x64xf32, #tpu.memory_space<vmem>>, vector<1x64xf32>
    %85 = arith.addf %83, %84 : vector<1x64xf32>
    %86 = arith.truncf %85 : vector<1x64xf32> to vector<1x64xbf16>
    %c0_72 = arith.constant 0 : index
    %c0_73 = arith.constant 0 : index
    %c0_74 = arith.constant 0 : index
    %87 = vector.load %arg6[%c0_72, %c0_73, %c0_74] : memref<1x1x64xbf16, #tpu.memory_space<vmem>>, vector<1x1x64xbf16>
    %88 = vector.shape_cast %87 : vector<1x1x64xbf16> to vector<1x64xbf16>
    %89 = vector.shape_cast %86 : vector<1x64xbf16> to vector<1x1x64xbf16>
    tpu.vector_store %arg6[%c0_72, %c0_73, %c0_74], %89 {strides = array<i32>} : memref<1x1x64xbf16, #tpu.memory_space<vmem>>, vector<1x1x64xbf16>,
    return
  }
  func.func @transform_0(%arg0: i32) -> (i32, i32, i32, i32, i32) {
    %c0_i32 = arith.constant 0 : i32
    %c0_i32_0 = arith.constant 0 : i32
    %c0_i32_1 = arith.constant 0 : i32
    %c0_i32_2 = arith.constant 0 : i32
    %c0_i32_3 = arith.constant 0 : i32
    return %arg0, %c0_i32, %c0_i32_0, %c0_i32_1, %c0_i32_2 : i32, i32, i32, i32, i32
  }
  func.func @transform_1(%arg0: i32) -> (i32, i32, i32) {
    %c0_i32 = arith.constant 0 : i32
    %c0_i32_0 = arith.constant 0 : i32
    %c0_i32_1 = arith.constant 0 : i32
    %c0_i32_2 = arith.constant 0 : i32
    return %c0_i32, %c0_i32_0, %c0_i32_1 : i32, i32, i32
  }
  func.func @transform_2(%arg0: i32) -> (i32, i32) {
    %c0_i32 = arith.constant 0 : i32
    %c0_i32_0 = arith.constant 0 : i32
    %c0_i32_1 = arith.constant 0 : i32
    return %c0_i32, %c0_i32_0 : i32, i32
  }
  func.func @transform_3(%arg0: i32) -> (i32, i32) {
    %c0_i32 = arith.constant 0 : i32
    %c0_i32_0 = arith.constant 0 : i32
    %c0_i32_1 = arith.constant 0 : i32
    return %c0_i32, %c0_i32_0 : i32, i32
  }
  func.func @transform_4(%arg0: i32) -> (i32, i32) {
    %c0_i32 = arith.constant 0 : i32
    %c0_i32_0 = arith.constant 0 : i32
    %c0_i32_1 = arith.constant 0 : i32
    return %c0_i32, %c0_i32_0 : i32, i32
  }
  func.func @transform_5(%arg0: i32) -> (i32, i32, i32) {
    %c0_i32 = arith.constant 0 : i32
    %c0_i32_0 = arith.constant 0 : i32
    %c0_i32_1 = arith.constant 0 : i32
    return %arg0, %c0_i32, %c0_i32_0 : i32, i32, i32
  }
}

module attributes {stable_mosaic.version = 11 : i64} {
  func.func @_fused_block_kernel(%arg0: i32, %arg1: memref<1x1x64xbf16, #tpu.memory_space<vmem>>, %arg2: memref<64x384xbf16, #tpu.memory_space<vmem>>, %arg3: memref<1x384xf32, #tpu.memory_space<vmem>>, %arg4: memref<9x1x384xf32, #tpu.memory_space<vmem>>, %arg5: memref<1x384xf32, #tpu.memory_space<vmem>>, %arg6: memref<384x64xbf16, #tpu.memory_space<vmem>>, %arg7: memref<1x64xf32, #tpu.memory_space<vmem>>, %arg8: memref<1x1x64xbf16, #tpu.memory_space<vmem>>, %arg9: memref<3x3x384xf32, #tpu.memory_space<vmem>>) attributes {dimension_semantics = [#tpu.dimension_semantics<parallel>], iteration_bounds = array<i64: 2>, scalar_prefetch = 0 : i64, scratch_operands = 1 : i64, tpu.core_type = #tpu.core_type<tc>, window_params = [{transform_indices = @transform_0, window_bounds = array<i64: 1, 1, 64>}, {pipeline_mode = #tpu.pipeline_mode<synchronous>, transform_indices = @transform_1, window_bounds = array<i64: 64, 384>}, {pipeline_mode = #tpu.pipeline_mode<synchronous>, transform_indices = @transform_2, window_bounds = array<i64: 1, 384>}, {pipeline_mode = #tpu.pipeline_mode<synchronous>, transform_indices = @transform_3, window_bounds = array<i64: 9, 1, 384>}, {pipeline_mode = #tpu.pipeline_mode<synchronous>, transform_indices = @transform_4, window_bounds = array<i64: 1, 384>}, {pipeline_mode = #tpu.pipeline_mode<synchronous>, transform_indices = @transform_5, window_bounds = array<i64: 384, 64>}, {pipeline_mode = #tpu.pipeline_mode<synchronous>, transform_indices = @transform_6, window_bounds = array<i64: 1, 64>}, {transform_indices = @transform_7, window_bounds = array<i64: 1, 1, 64>}]} {
    %c0 = arith.constant 0 : index
    %c0_0 = arith.constant 0 : index
    %c0_1 = arith.constant 0 : index
    %0 = vector.load %arg1[%c0, %c0_0, %c0_1] : memref<1x1x64xbf16, #tpu.memory_space<vmem>>, vector<1x1x64xbf16>
    %1 = vector.shape_cast %0 : vector<1x1x64xbf16> to vector<1x64xbf16>
    %c0_2 = arith.constant 0 : index
    %c0_3 = arith.constant 0 : index
    %2 = vector.load %arg2[%c0_2, %c0_3] : memref<64x384xbf16, #tpu.memory_space<vmem>>, vector<64x384xbf16>
    %cst = arith.constant dense<0.000000e+00> : vector<1x384xf32>
    %3 = tpu.matmul %1, %2, %cst {dimension_numbers = #tpu.dot_dimension_numbers<[1], [0], [0], [1], [0, 0, 1, 1], [], []>} : vector<1x64xbf16>, vector<64x384xbf16>, vector<1x384xf32> -> vector<1x384xf32>
    %c0_4 = arith.constant 0 : index
    %c0_5 = arith.constant 0 : index
    %4 = vector.load %arg3[%c0_4, %c0_5] : memref<1x384xf32, #tpu.memory_space<vmem>>, vector<1x384xf32>
    %5 = arith.addf %3, %4 : vector<1x384xf32>
    %cst_6 = arith.constant 0.000000e+00 : f32
    %cst_7 = arith.constant 6.000000e+00 : f32
    %6 = vector.broadcast %cst_6 : f32 to vector<1x384xf32>
    %7 = arith.maximumf %6, %5 : vector<1x384xf32>
    %8 = vector.broadcast %cst_7 : f32 to vector<1x384xf32>
    %9 = arith.minimumf %8, %7 : vector<1x384xf32>
    %cst_8 = arith.constant 0.000000e+00 : f32
    %10 = vector.broadcast %cst_8 : f32 to vector<3x3x384xf32>
    %c0_9 = arith.constant 0 : index
    %c0_10 = arith.constant 0 : index
    %c0_11 = arith.constant 0 : index
    %11 = vector.load %arg9[%c0_9, %c0_10, %c0_11] : memref<3x3x384xf32, #tpu.memory_space<vmem>>, vector<3x3x384xf32>
    tpu.vector_store %arg9[%c0_9, %c0_10, %c0_11], %10 {strides = array<i32>} : memref<3x3x384xf32, #tpu.memory_space<vmem>>, vector<3x3x384xf32>,
    %12 = vector.shape_cast %9 : vector<1x384xf32> to vector<1x1x384xf32>
    %c1 = arith.constant 1 : index
    %c1_12 = arith.constant 1 : index
    %c0_13 = arith.constant 0 : index
    %13 = vector.load %arg9[%c1, %c1_12, %c0_13] : memref<3x3x384xf32, #tpu.memory_space<vmem>>, vector<1x1x384xf32>
    tpu.vector_store %arg9[%c1, %c1_12, %c0_13], %12 {strides = array<i32>} : memref<3x3x384xf32, #tpu.memory_space<vmem>>, vector<1x1x384xf32>,
    %cst_14 = arith.constant 0.000000e+00 : f32
    %14 = vector.broadcast %cst_14 : f32 to vector<1x1x384xf32>
    %c0_15 = arith.constant 0 : index
    %c0_16 = arith.constant 0 : index
    %c0_17 = arith.constant 0 : index
    %15 = vector.load %arg9[%c0_15, %c0_16, %c0_17] : memref<3x3x384xf32, #tpu.memory_space<vmem>>, vector<1x1x384xf32>
    %c0_18 = arith.constant 0 : index
    %c0_19 = arith.constant 0 : index
    %c0_20 = arith.constant 0 : index
    %16 = vector.load %arg4[%c0_18, %c0_19, %c0_20] : memref<9x1x384xf32, #tpu.memory_space<vmem>>, vector<1x1x384xf32>
    %17 = vector.shape_cast %16 : vector<1x1x384xf32> to vector<1x384xf32>
    %18 = vector.shape_cast %17 : vector<1x384xf32> to vector<1x1x384xf32>
    %19 = arith.mulf %15, %18 : vector<1x1x384xf32>
    %20 = arith.addf %14, %19 : vector<1x1x384xf32>
    %c0_21 = arith.constant 0 : index
    %c1_22 = arith.constant 1 : index
    %c0_23 = arith.constant 0 : index
    %21 = vector.load %arg9[%c0_21, %c1_22, %c0_23] : memref<3x3x384xf32, #tpu.memory_space<vmem>>, vector<1x1x384xf32>
    %c1_24 = arith.constant 1 : index
    %c0_25 = arith.constant 0 : index
    %c0_26 = arith.constant 0 : index
    %22 = vector.load %arg4[%c1_24, %c0_25, %c0_26] : memref<9x1x384xf32, #tpu.memory_space<vmem>>, vector<1x1x384xf32>
    %23 = vector.shape_cast %22 : vector<1x1x384xf32> to vector<1x384xf32>
    %24 = vector.shape_cast %23 : vector<1x384xf32> to vector<1x1x384xf32>
    %25 = arith.mulf %21, %24 : vector<1x1x384xf32>
    %26 = arith.addf %20, %25 : vector<1x1x384xf32>
    %c0_27 = arith.constant 0 : index
    %c2 = arith.constant 2 : index
    %c0_28 = arith.constant 0 : index
    %27 = vector.load %arg9[%c0_27, %c2, %c0_28] : memref<3x3x384xf32, #tpu.memory_space<vmem>>, vector<1x1x384xf32>
    %c2_29 = arith.constant 2 : index
    %c0_30 = arith.constant 0 : index
    %c0_31 = arith.constant 0 : index
    %28 = vector.load %arg4[%c2_29, %c0_30, %c0_31] : memref<9x1x384xf32, #tpu.memory_space<vmem>>, vector<1x1x384xf32>
    %29 = vector.shape_cast %28 : vector<1x1x384xf32> to vector<1x384xf32>
    %30 = vector.shape_cast %29 : vector<1x384xf32> to vector<1x1x384xf32>
    %31 = arith.mulf %27, %30 : vector<1x1x384xf32>
    %32 = arith.addf %26, %31 : vector<1x1x384xf32>
    %c1_32 = arith.constant 1 : index
    %c0_33 = arith.constant 0 : index
    %c0_34 = arith.constant 0 : index
    %33 = vector.load %arg9[%c1_32, %c0_33, %c0_34] : memref<3x3x384xf32, #tpu.memory_space<vmem>>, vector<1x1x384xf32>
    %c3 = arith.constant 3 : index
    %c0_35 = arith.constant 0 : index
    %c0_36 = arith.constant 0 : index
    %34 = vector.load %arg4[%c3, %c0_35, %c0_36] : memref<9x1x384xf32, #tpu.memory_space<vmem>>, vector<1x1x384xf32>
    %35 = vector.shape_cast %34 : vector<1x1x384xf32> to vector<1x384xf32>
    %36 = vector.shape_cast %35 : vector<1x384xf32> to vector<1x1x384xf32>
    %37 = arith.mulf %33, %36 : vector<1x1x384xf32>
    %38 = arith.addf %32, %37 : vector<1x1x384xf32>
    %c1_37 = arith.constant 1 : index
    %c1_38 = arith.constant 1 : index
    %c0_39 = arith.constant 0 : index
    %39 = vector.load %arg9[%c1_37, %c1_38, %c0_39] : memref<3x3x384xf32, #tpu.memory_space<vmem>>, vector<1x1x384xf32>
    %c4 = arith.constant 4 : index
    %c0_40 = arith.constant 0 : index
    %c0_41 = arith.constant 0 : index
    %40 = vector.load %arg4[%c4, %c0_40, %c0_41] : memref<9x1x384xf32, #tpu.memory_space<vmem>>, vector<1x1x384xf32>
    %41 = vector.shape_cast %40 : vector<1x1x384xf32> to vector<1x384xf32>
    %42 = vector.shape_cast %41 : vector<1x384xf32> to vector<1x1x384xf32>
    %43 = arith.mulf %39, %42 : vector<1x1x384xf32>
    %44 = arith.addf %38, %43 : vector<1x1x384xf32>
    %c1_42 = arith.constant 1 : index
    %c2_43 = arith.constant 2 : index
    %c0_44 = arith.constant 0 : index
    %45 = vector.load %arg9[%c1_42, %c2_43, %c0_44] : memref<3x3x384xf32, #tpu.memory_space<vmem>>, vector<1x1x384xf32>
    %c5 = arith.constant 5 : index
    %c0_45 = arith.constant 0 : index
    %c0_46 = arith.constant 0 : index
    %46 = vector.load %arg4[%c5, %c0_45, %c0_46] : memref<9x1x384xf32, #tpu.memory_space<vmem>>, vector<1x1x384xf32>
    %47 = vector.shape_cast %46 : vector<1x1x384xf32> to vector<1x384xf32>
    %48 = vector.shape_cast %47 : vector<1x384xf32> to vector<1x1x384xf32>
    %49 = arith.mulf %45, %48 : vector<1x1x384xf32>
    %50 = arith.addf %44, %49 : vector<1x1x384xf32>
    %c2_47 = arith.constant 2 : index
    %c0_48 = arith.constant 0 : index
    %c0_49 = arith.constant 0 : index
    %51 = vector.load %arg9[%c2_47, %c0_48, %c0_49] : memref<3x3x384xf32, #tpu.memory_space<vmem>>, vector<1x1x384xf32>
    %c6 = arith.constant 6 : index
    %c0_50 = arith.constant 0 : index
    %c0_51 = arith.constant 0 : index
    %52 = vector.load %arg4[%c6, %c0_50, %c0_51] : memref<9x1x384xf32, #tpu.memory_space<vmem>>, vector<1x1x384xf32>
    %53 = vector.shape_cast %52 : vector<1x1x384xf32> to vector<1x384xf32>
    %54 = vector.shape_cast %53 : vector<1x384xf32> to vector<1x1x384xf32>
    %55 = arith.mulf %51, %54 : vector<1x1x384xf32>
    %56 = arith.addf %50, %55 : vector<1x1x384xf32>
    %c2_52 = arith.constant 2 : index
    %c1_53 = arith.constant 1 : index
    %c0_54 = arith.constant 0 : index
    %57 = vector.load %arg9[%c2_52, %c1_53, %c0_54] : memref<3x3x384xf32, #tpu.memory_space<vmem>>, vector<1x1x384xf32>
    %c7 = arith.constant 7 : index
    %c0_55 = arith.constant 0 : index
    %c0_56 = arith.constant 0 : index
    %58 = vector.load %arg4[%c7, %c0_55, %c0_56] : memref<9x1x384xf32, #tpu.memory_space<vmem>>, vector<1x1x384xf32>
    %59 = vector.shape_cast %58 : vector<1x1x384xf32> to vector<1x384xf32>
    %60 = vector.shape_cast %59 : vector<1x384xf32> to vector<1x1x384xf32>
    %61 = arith.mulf %57, %60 : vector<1x1x384xf32>
    %62 = arith.addf %56, %61 : vector<1x1x384xf32>
    %c2_57 = arith.constant 2 : index
    %c2_58 = arith.constant 2 : index
    %c0_59 = arith.constant 0 : index
    %63 = vector.load %arg9[%c2_57, %c2_58, %c0_59] : memref<3x3x384xf32, #tpu.memory_space<vmem>>, vector<1x1x384xf32>
    %c8 = arith.constant 8 : index
    %c0_60 = arith.constant 0 : index
    %c0_61 = arith.constant 0 : index
    %64 = vector.load %arg4[%c8, %c0_60, %c0_61] : memref<9x1x384xf32, #tpu.memory_space<vmem>>, vector<1x1x384xf32>
    %65 = vector.shape_cast %64 : vector<1x1x384xf32> to vector<1x384xf32>
    %66 = vector.shape_cast %65 : vector<1x384xf32> to vector<1x1x384xf32>
    %67 = arith.mulf %63, %66 : vector<1x1x384xf32>
    %68 = arith.addf %62, %67 : vector<1x1x384xf32>
    %c0_62 = arith.constant 0 : index
    %c0_63 = arith.constant 0 : index
    %69 = vector.load %arg5[%c0_62, %c0_63] : memref<1x384xf32, #tpu.memory_space<vmem>>, vector<1x384xf32>
    %70 = vector.shape_cast %69 : vector<1x384xf32> to vector<1x1x384xf32>
    %71 = arith.addf %68, %70 : vector<1x1x384xf32>
    %cst_64 = arith.constant 0.000000e+00 : f32
    %cst_65 = arith.constant 6.000000e+00 : f32
    %72 = vector.broadcast %cst_64 : f32 to vector<1x1x384xf32>
    %73 = arith.maximumf %72, %71 : vector<1x1x384xf32>
    %74 = vector.broadcast %cst_65 : f32 to vector<1x1x384xf32>
    %75 = arith.minimumf %74, %73 : vector<1x1x384xf32>
    %76 = vector.shape_cast %75 : vector<1x1x384xf32> to vector<1x384xf32>
    %77 = arith.truncf %76 : vector<1x384xf32> to vector<1x384xbf16>
    %c0_66 = arith.constant 0 : index
    %c0_67 = arith.constant 0 : index
    %78 = vector.load %arg6[%c0_66, %c0_67] : memref<384x64xbf16, #tpu.memory_space<vmem>>, vector<384x64xbf16>
    %cst_68 = arith.constant dense<0.000000e+00> : vector<1x64xf32>
    %79 = tpu.matmul %77, %78, %cst_68 {dimension_numbers = #tpu.dot_dimension_numbers<[1], [0], [0], [1], [0, 0, 1, 1], [], []>} : vector<1x384xbf16>, vector<384x64xbf16>, vector<1x64xf32> -> vector<1x64xf32>
    %c0_69 = arith.constant 0 : index
    %c0_70 = arith.constant 0 : index
    %80 = vector.load %arg7[%c0_69, %c0_70] : memref<1x64xf32, #tpu.memory_space<vmem>>, vector<1x64xf32>
    %81 = arith.addf %79, %80 : vector<1x64xf32>
    %82 = arith.extf %1 : vector<1x64xbf16> to vector<1x64xf32>
    %83 = arith.addf %81, %82 : vector<1x64xf32>
    %84 = arith.truncf %83 : vector<1x64xf32> to vector<1x64xbf16>
    %c0_71 = arith.constant 0 : index
    %c0_72 = arith.constant 0 : index
    %c0_73 = arith.constant 0 : index
    %85 = vector.load %arg8[%c0_71, %c0_72, %c0_73] : memref<1x1x64xbf16, #tpu.memory_space<vmem>>, vector<1x1x64xbf16>
    %86 = vector.shape_cast %85 : vector<1x1x64xbf16> to vector<1x64xbf16>
    %87 = vector.shape_cast %84 : vector<1x64xbf16> to vector<1x1x64xbf16>
    tpu.vector_store %arg8[%c0_71, %c0_72, %c0_73], %87 {strides = array<i32>} : memref<1x1x64xbf16, #tpu.memory_space<vmem>>, vector<1x1x64xbf16>,
    return
  }
  func.func @transform_0(%arg0: i32) -> (i32, i32, i32) {
    %c0_i32 = arith.constant 0 : i32
    %c0_i32_0 = arith.constant 0 : i32
    %c0_i32_1 = arith.constant 0 : i32
    return %arg0, %c0_i32, %c0_i32_0 : i32, i32, i32
  }
  func.func @transform_1(%arg0: i32) -> (i32, i32) {
    %c0_i32 = arith.constant 0 : i32
    %c0_i32_0 = arith.constant 0 : i32
    %c0_i32_1 = arith.constant 0 : i32
    return %c0_i32, %c0_i32_0 : i32, i32
  }
  func.func @transform_2(%arg0: i32) -> (i32, i32) {
    %c0_i32 = arith.constant 0 : i32
    %c0_i32_0 = arith.constant 0 : i32
    %c0_i32_1 = arith.constant 0 : i32
    return %c0_i32, %c0_i32_0 : i32, i32
  }
  func.func @transform_3(%arg0: i32) -> (i32, i32, i32) {
    %c0_i32 = arith.constant 0 : i32
    %c0_i32_0 = arith.constant 0 : i32
    %c0_i32_1 = arith.constant 0 : i32
    %c0_i32_2 = arith.constant 0 : i32
    return %c0_i32, %c0_i32_0, %c0_i32_1 : i32, i32, i32
  }
  func.func @transform_4(%arg0: i32) -> (i32, i32) {
    %c0_i32 = arith.constant 0 : i32
    %c0_i32_0 = arith.constant 0 : i32
    %c0_i32_1 = arith.constant 0 : i32
    return %c0_i32, %c0_i32_0 : i32, i32
  }
  func.func @transform_5(%arg0: i32) -> (i32, i32) {
    %c0_i32 = arith.constant 0 : i32
    %c0_i32_0 = arith.constant 0 : i32
    %c0_i32_1 = arith.constant 0 : i32
    return %c0_i32, %c0_i32_0 : i32, i32
  }
  func.func @transform_6(%arg0: i32) -> (i32, i32) {
    %c0_i32 = arith.constant 0 : i32
    %c0_i32_0 = arith.constant 0 : i32
    %c0_i32_1 = arith.constant 0 : i32
    return %c0_i32, %c0_i32_0 : i32, i32
  }
  func.func @transform_7(%arg0: i32) -> (i32, i32, i32) {
    %c0_i32 = arith.constant 0 : i32
    %c0_i32_0 = arith.constant 0 : i32
    %c0_i32_1 = arith.constant 0 : i32
    return %arg0, %c0_i32, %c0_i32_0 : i32, i32, i32
  }
}

module attributes {stable_mosaic.version = 11 : i64} {
  func.func @_fused_block_kernel(%arg0: i32, %arg1: memref<1x1x64xbf16, #tpu.memory_space<vmem>>, %arg2: memref<64x384xbf16, #tpu.memory_space<vmem>>, %arg3: memref<1x384xf32, #tpu.memory_space<vmem>>, %arg4: memref<9x1x384xf32, #tpu.memory_space<vmem>>, %arg5: memref<1x384xf32, #tpu.memory_space<vmem>>, %arg6: memref<384x96xbf16, #tpu.memory_space<vmem>>, %arg7: memref<1x96xf32, #tpu.memory_space<vmem>>, %arg8: memref<1x1x96xbf16, #tpu.memory_space<vmem>>, %arg9: memref<3x3x384xf32, #tpu.memory_space<vmem>>) attributes {dimension_semantics = [#tpu.dimension_semantics<parallel>], iteration_bounds = array<i64: 2>, scalar_prefetch = 0 : i64, scratch_operands = 1 : i64, tpu.core_type = #tpu.core_type<tc>, window_params = [{transform_indices = @transform_0, window_bounds = array<i64: 1, 1, 64>}, {pipeline_mode = #tpu.pipeline_mode<synchronous>, transform_indices = @transform_1, window_bounds = array<i64: 64, 384>}, {pipeline_mode = #tpu.pipeline_mode<synchronous>, transform_indices = @transform_2, window_bounds = array<i64: 1, 384>}, {pipeline_mode = #tpu.pipeline_mode<synchronous>, transform_indices = @transform_3, window_bounds = array<i64: 9, 1, 384>}, {pipeline_mode = #tpu.pipeline_mode<synchronous>, transform_indices = @transform_4, window_bounds = array<i64: 1, 384>}, {pipeline_mode = #tpu.pipeline_mode<synchronous>, transform_indices = @transform_5, window_bounds = array<i64: 384, 96>}, {pipeline_mode = #tpu.pipeline_mode<synchronous>, transform_indices = @transform_6, window_bounds = array<i64: 1, 96>}, {transform_indices = @transform_7, window_bounds = array<i64: 1, 1, 96>}]} {
    %c0 = arith.constant 0 : index
    %c0_0 = arith.constant 0 : index
    %c0_1 = arith.constant 0 : index
    %0 = vector.load %arg1[%c0, %c0_0, %c0_1] : memref<1x1x64xbf16, #tpu.memory_space<vmem>>, vector<1x1x64xbf16>
    %1 = vector.shape_cast %0 : vector<1x1x64xbf16> to vector<1x64xbf16>
    %c0_2 = arith.constant 0 : index
    %c0_3 = arith.constant 0 : index
    %2 = vector.load %arg2[%c0_2, %c0_3] : memref<64x384xbf16, #tpu.memory_space<vmem>>, vector<64x384xbf16>
    %cst = arith.constant dense<0.000000e+00> : vector<1x384xf32>
    %3 = tpu.matmul %1, %2, %cst {dimension_numbers = #tpu.dot_dimension_numbers<[1], [0], [0], [1], [0, 0, 1, 1], [], []>} : vector<1x64xbf16>, vector<64x384xbf16>, vector<1x384xf32> -> vector<1x384xf32>
    %c0_4 = arith.constant 0 : index
    %c0_5 = arith.constant 0 : index
    %4 = vector.load %arg3[%c0_4, %c0_5] : memref<1x384xf32, #tpu.memory_space<vmem>>, vector<1x384xf32>
    %5 = arith.addf %3, %4 : vector<1x384xf32>
    %cst_6 = arith.constant 0.000000e+00 : f32
    %cst_7 = arith.constant 6.000000e+00 : f32
    %6 = vector.broadcast %cst_6 : f32 to vector<1x384xf32>
    %7 = arith.maximumf %6, %5 : vector<1x384xf32>
    %8 = vector.broadcast %cst_7 : f32 to vector<1x384xf32>
    %9 = arith.minimumf %8, %7 : vector<1x384xf32>
    %cst_8 = arith.constant 0.000000e+00 : f32
    %10 = vector.broadcast %cst_8 : f32 to vector<3x3x384xf32>
    %c0_9 = arith.constant 0 : index
    %c0_10 = arith.constant 0 : index
    %c0_11 = arith.constant 0 : index
    %11 = vector.load %arg9[%c0_9, %c0_10, %c0_11] : memref<3x3x384xf32, #tpu.memory_space<vmem>>, vector<3x3x384xf32>
    tpu.vector_store %arg9[%c0_9, %c0_10, %c0_11], %10 {strides = array<i32>} : memref<3x3x384xf32, #tpu.memory_space<vmem>>, vector<3x3x384xf32>,
    %12 = vector.shape_cast %9 : vector<1x384xf32> to vector<1x1x384xf32>
    %c1 = arith.constant 1 : index
    %c1_12 = arith.constant 1 : index
    %c0_13 = arith.constant 0 : index
    %13 = vector.load %arg9[%c1, %c1_12, %c0_13] : memref<3x3x384xf32, #tpu.memory_space<vmem>>, vector<1x1x384xf32>
    tpu.vector_store %arg9[%c1, %c1_12, %c0_13], %12 {strides = array<i32>} : memref<3x3x384xf32, #tpu.memory_space<vmem>>, vector<1x1x384xf32>,
    %cst_14 = arith.constant 0.000000e+00 : f32
    %14 = vector.broadcast %cst_14 : f32 to vector<1x1x384xf32>
    %c0_15 = arith.constant 0 : index
    %c0_16 = arith.constant 0 : index
    %c0_17 = arith.constant 0 : index
    %15 = vector.load %arg9[%c0_15, %c0_16, %c0_17] : memref<3x3x384xf32, #tpu.memory_space<vmem>>, vector<1x1x384xf32>
    %c0_18 = arith.constant 0 : index
    %c0_19 = arith.constant 0 : index
    %c0_20 = arith.constant 0 : index
    %16 = vector.load %arg4[%c0_18, %c0_19, %c0_20] : memref<9x1x384xf32, #tpu.memory_space<vmem>>, vector<1x1x384xf32>
    %17 = vector.shape_cast %16 : vector<1x1x384xf32> to vector<1x384xf32>
    %18 = vector.shape_cast %17 : vector<1x384xf32> to vector<1x1x384xf32>
    %19 = arith.mulf %15, %18 : vector<1x1x384xf32>
    %20 = arith.addf %14, %19 : vector<1x1x384xf32>
    %c0_21 = arith.constant 0 : index
    %c1_22 = arith.constant 1 : index
    %c0_23 = arith.constant 0 : index
    %21 = vector.load %arg9[%c0_21, %c1_22, %c0_23] : memref<3x3x384xf32, #tpu.memory_space<vmem>>, vector<1x1x384xf32>
    %c1_24 = arith.constant 1 : index
    %c0_25 = arith.constant 0 : index
    %c0_26 = arith.constant 0 : index
    %22 = vector.load %arg4[%c1_24, %c0_25, %c0_26] : memref<9x1x384xf32, #tpu.memory_space<vmem>>, vector<1x1x384xf32>
    %23 = vector.shape_cast %22 : vector<1x1x384xf32> to vector<1x384xf32>
    %24 = vector.shape_cast %23 : vector<1x384xf32> to vector<1x1x384xf32>
    %25 = arith.mulf %21, %24 : vector<1x1x384xf32>
    %26 = arith.addf %20, %25 : vector<1x1x384xf32>
    %c0_27 = arith.constant 0 : index
    %c2 = arith.constant 2 : index
    %c0_28 = arith.constant 0 : index
    %27 = vector.load %arg9[%c0_27, %c2, %c0_28] : memref<3x3x384xf32, #tpu.memory_space<vmem>>, vector<1x1x384xf32>
    %c2_29 = arith.constant 2 : index
    %c0_30 = arith.constant 0 : index
    %c0_31 = arith.constant 0 : index
    %28 = vector.load %arg4[%c2_29, %c0_30, %c0_31] : memref<9x1x384xf32, #tpu.memory_space<vmem>>, vector<1x1x384xf32>
    %29 = vector.shape_cast %28 : vector<1x1x384xf32> to vector<1x384xf32>
    %30 = vector.shape_cast %29 : vector<1x384xf32> to vector<1x1x384xf32>
    %31 = arith.mulf %27, %30 : vector<1x1x384xf32>
    %32 = arith.addf %26, %31 : vector<1x1x384xf32>
    %c1_32 = arith.constant 1 : index
    %c0_33 = arith.constant 0 : index
    %c0_34 = arith.constant 0 : index
    %33 = vector.load %arg9[%c1_32, %c0_33, %c0_34] : memref<3x3x384xf32, #tpu.memory_space<vmem>>, vector<1x1x384xf32>
    %c3 = arith.constant 3 : index
    %c0_35 = arith.constant 0 : index
    %c0_36 = arith.constant 0 : index
    %34 = vector.load %arg4[%c3, %c0_35, %c0_36] : memref<9x1x384xf32, #tpu.memory_space<vmem>>, vector<1x1x384xf32>
    %35 = vector.shape_cast %34 : vector<1x1x384xf32> to vector<1x384xf32>
    %36 = vector.shape_cast %35 : vector<1x384xf32> to vector<1x1x384xf32>
    %37 = arith.mulf %33, %36 : vector<1x1x384xf32>
    %38 = arith.addf %32, %37 : vector<1x1x384xf32>
    %c1_37 = arith.constant 1 : index
    %c1_38 = arith.constant 1 : index
    %c0_39 = arith.constant 0 : index
    %39 = vector.load %arg9[%c1_37, %c1_38, %c0_39] : memref<3x3x384xf32, #tpu.memory_space<vmem>>, vector<1x1x384xf32>
    %c4 = arith.constant 4 : index
    %c0_40 = arith.constant 0 : index
    %c0_41 = arith.constant 0 : index
    %40 = vector.load %arg4[%c4, %c0_40, %c0_41] : memref<9x1x384xf32, #tpu.memory_space<vmem>>, vector<1x1x384xf32>
    %41 = vector.shape_cast %40 : vector<1x1x384xf32> to vector<1x384xf32>
    %42 = vector.shape_cast %41 : vector<1x384xf32> to vector<1x1x384xf32>
    %43 = arith.mulf %39, %42 : vector<1x1x384xf32>
    %44 = arith.addf %38, %43 : vector<1x1x384xf32>
    %c1_42 = arith.constant 1 : index
    %c2_43 = arith.constant 2 : index
    %c0_44 = arith.constant 0 : index
    %45 = vector.load %arg9[%c1_42, %c2_43, %c0_44] : memref<3x3x384xf32, #tpu.memory_space<vmem>>, vector<1x1x384xf32>
    %c5 = arith.constant 5 : index
    %c0_45 = arith.constant 0 : index
    %c0_46 = arith.constant 0 : index
    %46 = vector.load %arg4[%c5, %c0_45, %c0_46] : memref<9x1x384xf32, #tpu.memory_space<vmem>>, vector<1x1x384xf32>
    %47 = vector.shape_cast %46 : vector<1x1x384xf32> to vector<1x384xf32>
    %48 = vector.shape_cast %47 : vector<1x384xf32> to vector<1x1x384xf32>
    %49 = arith.mulf %45, %48 : vector<1x1x384xf32>
    %50 = arith.addf %44, %49 : vector<1x1x384xf32>
    %c2_47 = arith.constant 2 : index
    %c0_48 = arith.constant 0 : index
    %c0_49 = arith.constant 0 : index
    %51 = vector.load %arg9[%c2_47, %c0_48, %c0_49] : memref<3x3x384xf32, #tpu.memory_space<vmem>>, vector<1x1x384xf32>
    %c6 = arith.constant 6 : index
    %c0_50 = arith.constant 0 : index
    %c0_51 = arith.constant 0 : index
    %52 = vector.load %arg4[%c6, %c0_50, %c0_51] : memref<9x1x384xf32, #tpu.memory_space<vmem>>, vector<1x1x384xf32>
    %53 = vector.shape_cast %52 : vector<1x1x384xf32> to vector<1x384xf32>
    %54 = vector.shape_cast %53 : vector<1x384xf32> to vector<1x1x384xf32>
    %55 = arith.mulf %51, %54 : vector<1x1x384xf32>
    %56 = arith.addf %50, %55 : vector<1x1x384xf32>
    %c2_52 = arith.constant 2 : index
    %c1_53 = arith.constant 1 : index
    %c0_54 = arith.constant 0 : index
    %57 = vector.load %arg9[%c2_52, %c1_53, %c0_54] : memref<3x3x384xf32, #tpu.memory_space<vmem>>, vector<1x1x384xf32>
    %c7 = arith.constant 7 : index
    %c0_55 = arith.constant 0 : index
    %c0_56 = arith.constant 0 : index
    %58 = vector.load %arg4[%c7, %c0_55, %c0_56] : memref<9x1x384xf32, #tpu.memory_space<vmem>>, vector<1x1x384xf32>
    %59 = vector.shape_cast %58 : vector<1x1x384xf32> to vector<1x384xf32>
    %60 = vector.shape_cast %59 : vector<1x384xf32> to vector<1x1x384xf32>
    %61 = arith.mulf %57, %60 : vector<1x1x384xf32>
    %62 = arith.addf %56, %61 : vector<1x1x384xf32>
    %c2_57 = arith.constant 2 : index
    %c2_58 = arith.constant 2 : index
    %c0_59 = arith.constant 0 : index
    %63 = vector.load %arg9[%c2_57, %c2_58, %c0_59] : memref<3x3x384xf32, #tpu.memory_space<vmem>>, vector<1x1x384xf32>
    %c8 = arith.constant 8 : index
    %c0_60 = arith.constant 0 : index
    %c0_61 = arith.constant 0 : index
    %64 = vector.load %arg4[%c8, %c0_60, %c0_61] : memref<9x1x384xf32, #tpu.memory_space<vmem>>, vector<1x1x384xf32>
    %65 = vector.shape_cast %64 : vector<1x1x384xf32> to vector<1x384xf32>
    %66 = vector.shape_cast %65 : vector<1x384xf32> to vector<1x1x384xf32>
    %67 = arith.mulf %63, %66 : vector<1x1x384xf32>
    %68 = arith.addf %62, %67 : vector<1x1x384xf32>
    %c0_62 = arith.constant 0 : index
    %c0_63 = arith.constant 0 : index
    %69 = vector.load %arg5[%c0_62, %c0_63] : memref<1x384xf32, #tpu.memory_space<vmem>>, vector<1x384xf32>
    %70 = vector.shape_cast %69 : vector<1x384xf32> to vector<1x1x384xf32>
    %71 = arith.addf %68, %70 : vector<1x1x384xf32>
    %cst_64 = arith.constant 0.000000e+00 : f32
    %cst_65 = arith.constant 6.000000e+00 : f32
    %72 = vector.broadcast %cst_64 : f32 to vector<1x1x384xf32>
    %73 = arith.maximumf %72, %71 : vector<1x1x384xf32>
    %74 = vector.broadcast %cst_65 : f32 to vector<1x1x384xf32>
    %75 = arith.minimumf %74, %73 : vector<1x1x384xf32>
    %76 = vector.shape_cast %75 : vector<1x1x384xf32> to vector<1x384xf32>
    %77 = arith.truncf %76 : vector<1x384xf32> to vector<1x384xbf16>
    %c0_66 = arith.constant 0 : index
    %c0_67 = arith.constant 0 : index
    %78 = vector.load %arg6[%c0_66, %c0_67] : memref<384x96xbf16, #tpu.memory_space<vmem>>, vector<384x96xbf16>
    %cst_68 = arith.constant dense<0.000000e+00> : vector<1x96xf32>
    %79 = tpu.matmul %77, %78, %cst_68 {dimension_numbers = #tpu.dot_dimension_numbers<[1], [0], [0], [1], [0, 0, 1, 1], [], []>} : vector<1x384xbf16>, vector<384x96xbf16>, vector<1x96xf32> -> vector<1x96xf32>
    %c0_69 = arith.constant 0 : index
    %c0_70 = arith.constant 0 : index
    %80 = vector.load %arg7[%c0_69, %c0_70] : memref<1x96xf32, #tpu.memory_space<vmem>>, vector<1x96xf32>
    %81 = arith.addf %79, %80 : vector<1x96xf32>
    %82 = arith.truncf %81 : vector<1x96xf32> to vector<1x96xbf16>
    %c0_71 = arith.constant 0 : index
    %c0_72 = arith.constant 0 : index
    %c0_73 = arith.constant 0 : index
    %83 = vector.load %arg8[%c0_71, %c0_72, %c0_73] : memref<1x1x96xbf16, #tpu.memory_space<vmem>>, vector<1x1x96xbf16>
    %84 = vector.shape_cast %83 : vector<1x1x96xbf16> to vector<1x96xbf16>
    %85 = vector.shape_cast %82 : vector<1x96xbf16> to vector<1x1x96xbf16>
    tpu.vector_store %arg8[%c0_71, %c0_72, %c0_73], %85 {strides = array<i32>} : memref<1x1x96xbf16, #tpu.memory_space<vmem>>, vector<1x1x96xbf16>,
    return
  }
  func.func @transform_0(%arg0: i32) -> (i32, i32, i32) {
    %c0_i32 = arith.constant 0 : i32
    %c0_i32_0 = arith.constant 0 : i32
    %c0_i32_1 = arith.constant 0 : i32
    return %arg0, %c0_i32, %c0_i32_0 : i32, i32, i32
  }
  func.func @transform_1(%arg0: i32) -> (i32, i32) {
    %c0_i32 = arith.constant 0 : i32
    %c0_i32_0 = arith.constant 0 : i32
    %c0_i32_1 = arith.constant 0 : i32
    return %c0_i32, %c0_i32_0 : i32, i32
  }
  func.func @transform_2(%arg0: i32) -> (i32, i32) {
    %c0_i32 = arith.constant 0 : i32
    %c0_i32_0 = arith.constant 0 : i32
    %c0_i32_1 = arith.constant 0 : i32
    return %c0_i32, %c0_i32_0 : i32, i32
  }
  func.func @transform_3(%arg0: i32) -> (i32, i32, i32) {
    %c0_i32 = arith.constant 0 : i32
    %c0_i32_0 = arith.constant 0 : i32
    %c0_i32_1 = arith.constant 0 : i32
    %c0_i32_2 = arith.constant 0 : i32
    return %c0_i32, %c0_i32_0, %c0_i32_1 : i32, i32, i32
  }
  func.func @transform_4(%arg0: i32) -> (i32, i32) {
    %c0_i32 = arith.constant 0 : i32
    %c0_i32_0 = arith.constant 0 : i32
    %c0_i32_1 = arith.constant 0 : i32
    return %c0_i32, %c0_i32_0 : i32, i32
  }
  func.func @transform_5(%arg0: i32) -> (i32, i32) {
    %c0_i32 = arith.constant 0 : i32
    %c0_i32_0 = arith.constant 0 : i32
    %c0_i32_1 = arith.constant 0 : i32
    return %c0_i32, %c0_i32_0 : i32, i32
  }
  func.func @transform_6(%arg0: i32) -> (i32, i32) {
    %c0_i32 = arith.constant 0 : i32
    %c0_i32_0 = arith.constant 0 : i32
    %c0_i32_1 = arith.constant 0 : i32
    return %c0_i32, %c0_i32_0 : i32, i32
  }
  func.func @transform_7(%arg0: i32) -> (i32, i32, i32) {
    %c0_i32 = arith.constant 0 : i32
    %c0_i32_0 = arith.constant 0 : i32
    %c0_i32_1 = arith.constant 0 : i32
    return %arg0, %c0_i32, %c0_i32_0 : i32, i32, i32
  }
}

module attributes {stable_mosaic.version = 11 : i64} {
  func.func @_fused_block_kernel(%arg0: i32, %arg1: memref<1x1x96xbf16, #tpu.memory_space<vmem>>, %arg2: memref<96x576xbf16, #tpu.memory_space<vmem>>, %arg3: memref<1x576xf32, #tpu.memory_space<vmem>>, %arg4: memref<9x1x576xf32, #tpu.memory_space<vmem>>, %arg5: memref<1x576xf32, #tpu.memory_space<vmem>>, %arg6: memref<576x96xbf16, #tpu.memory_space<vmem>>, %arg7: memref<1x96xf32, #tpu.memory_space<vmem>>, %arg8: memref<1x1x96xbf16, #tpu.memory_space<vmem>>, %arg9: memref<3x3x576xf32, #tpu.memory_space<vmem>>) attributes {dimension_semantics = [#tpu.dimension_semantics<parallel>], iteration_bounds = array<i64: 2>, scalar_prefetch = 0 : i64, scratch_operands = 1 : i64, tpu.core_type = #tpu.core_type<tc>, window_params = [{transform_indices = @transform_0, window_bounds = array<i64: 1, 1, 96>}, {pipeline_mode = #tpu.pipeline_mode<synchronous>, transform_indices = @transform_1, window_bounds = array<i64: 96, 576>}, {pipeline_mode = #tpu.pipeline_mode<synchronous>, transform_indices = @transform_2, window_bounds = array<i64: 1, 576>}, {pipeline_mode = #tpu.pipeline_mode<synchronous>, transform_indices = @transform_3, window_bounds = array<i64: 9, 1, 576>}, {pipeline_mode = #tpu.pipeline_mode<synchronous>, transform_indices = @transform_4, window_bounds = array<i64: 1, 576>}, {pipeline_mode = #tpu.pipeline_mode<synchronous>, transform_indices = @transform_5, window_bounds = array<i64: 576, 96>}, {pipeline_mode = #tpu.pipeline_mode<synchronous>, transform_indices = @transform_6, window_bounds = array<i64: 1, 96>}, {transform_indices = @transform_7, window_bounds = array<i64: 1, 1, 96>}]} {
    %c0 = arith.constant 0 : index
    %c0_0 = arith.constant 0 : index
    %c0_1 = arith.constant 0 : index
    %0 = vector.load %arg1[%c0, %c0_0, %c0_1] : memref<1x1x96xbf16, #tpu.memory_space<vmem>>, vector<1x1x96xbf16>
    %1 = vector.shape_cast %0 : vector<1x1x96xbf16> to vector<1x96xbf16>
    %c0_2 = arith.constant 0 : index
    %c0_3 = arith.constant 0 : index
    %2 = vector.load %arg2[%c0_2, %c0_3] : memref<96x576xbf16, #tpu.memory_space<vmem>>, vector<96x576xbf16>
    %cst = arith.constant dense<0.000000e+00> : vector<1x576xf32>
    %3 = tpu.matmul %1, %2, %cst {dimension_numbers = #tpu.dot_dimension_numbers<[1], [0], [0], [1], [0, 0, 1, 1], [], []>} : vector<1x96xbf16>, vector<96x576xbf16>, vector<1x576xf32> -> vector<1x576xf32>
    %c0_4 = arith.constant 0 : index
    %c0_5 = arith.constant 0 : index
    %4 = vector.load %arg3[%c0_4, %c0_5] : memref<1x576xf32, #tpu.memory_space<vmem>>, vector<1x576xf32>
    %5 = arith.addf %3, %4 : vector<1x576xf32>
    %cst_6 = arith.constant 0.000000e+00 : f32
    %cst_7 = arith.constant 6.000000e+00 : f32
    %6 = vector.broadcast %cst_6 : f32 to vector<1x576xf32>
    %7 = arith.maximumf %6, %5 : vector<1x576xf32>
    %8 = vector.broadcast %cst_7 : f32 to vector<1x576xf32>
    %9 = arith.minimumf %8, %7 : vector<1x576xf32>
    %cst_8 = arith.constant 0.000000e+00 : f32
    %10 = vector.broadcast %cst_8 : f32 to vector<3x3x576xf32>
    %c0_9 = arith.constant 0 : index
    %c0_10 = arith.constant 0 : index
    %c0_11 = arith.constant 0 : index
    %11 = vector.load %arg9[%c0_9, %c0_10, %c0_11] : memref<3x3x576xf32, #tpu.memory_space<vmem>>, vector<3x3x576xf32>
    tpu.vector_store %arg9[%c0_9, %c0_10, %c0_11], %10 {strides = array<i32>} : memref<3x3x576xf32, #tpu.memory_space<vmem>>, vector<3x3x576xf32>,
    %12 = vector.shape_cast %9 : vector<1x576xf32> to vector<1x1x576xf32>
    %c1 = arith.constant 1 : index
    %c1_12 = arith.constant 1 : index
    %c0_13 = arith.constant 0 : index
    %13 = vector.load %arg9[%c1, %c1_12, %c0_13] : memref<3x3x576xf32, #tpu.memory_space<vmem>>, vector<1x1x576xf32>
    tpu.vector_store %arg9[%c1, %c1_12, %c0_13], %12 {strides = array<i32>} : memref<3x3x576xf32, #tpu.memory_space<vmem>>, vector<1x1x576xf32>,
    %cst_14 = arith.constant 0.000000e+00 : f32
    %14 = vector.broadcast %cst_14 : f32 to vector<1x1x576xf32>
    %c0_15 = arith.constant 0 : index
    %c0_16 = arith.constant 0 : index
    %c0_17 = arith.constant 0 : index
    %15 = vector.load %arg9[%c0_15, %c0_16, %c0_17] : memref<3x3x576xf32, #tpu.memory_space<vmem>>, vector<1x1x576xf32>
    %c0_18 = arith.constant 0 : index
    %c0_19 = arith.constant 0 : index
    %c0_20 = arith.constant 0 : index
    %16 = vector.load %arg4[%c0_18, %c0_19, %c0_20] : memref<9x1x576xf32, #tpu.memory_space<vmem>>, vector<1x1x576xf32>
    %17 = vector.shape_cast %16 : vector<1x1x576xf32> to vector<1x576xf32>
    %18 = vector.shape_cast %17 : vector<1x576xf32> to vector<1x1x576xf32>
    %19 = arith.mulf %15, %18 : vector<1x1x576xf32>
    %20 = arith.addf %14, %19 : vector<1x1x576xf32>
    %c0_21 = arith.constant 0 : index
    %c1_22 = arith.constant 1 : index
    %c0_23 = arith.constant 0 : index
    %21 = vector.load %arg9[%c0_21, %c1_22, %c0_23] : memref<3x3x576xf32, #tpu.memory_space<vmem>>, vector<1x1x576xf32>
    %c1_24 = arith.constant 1 : index
    %c0_25 = arith.constant 0 : index
    %c0_26 = arith.constant 0 : index
    %22 = vector.load %arg4[%c1_24, %c0_25, %c0_26] : memref<9x1x576xf32, #tpu.memory_space<vmem>>, vector<1x1x576xf32>
    %23 = vector.shape_cast %22 : vector<1x1x576xf32> to vector<1x576xf32>
    %24 = vector.shape_cast %23 : vector<1x576xf32> to vector<1x1x576xf32>
    %25 = arith.mulf %21, %24 : vector<1x1x576xf32>
    %26 = arith.addf %20, %25 : vector<1x1x576xf32>
    %c0_27 = arith.constant 0 : index
    %c2 = arith.constant 2 : index
    %c0_28 = arith.constant 0 : index
    %27 = vector.load %arg9[%c0_27, %c2, %c0_28] : memref<3x3x576xf32, #tpu.memory_space<vmem>>, vector<1x1x576xf32>
    %c2_29 = arith.constant 2 : index
    %c0_30 = arith.constant 0 : index
    %c0_31 = arith.constant 0 : index
    %28 = vector.load %arg4[%c2_29, %c0_30, %c0_31] : memref<9x1x576xf32, #tpu.memory_space<vmem>>, vector<1x1x576xf32>
    %29 = vector.shape_cast %28 : vector<1x1x576xf32> to vector<1x576xf32>
    %30 = vector.shape_cast %29 : vector<1x576xf32> to vector<1x1x576xf32>
    %31 = arith.mulf %27, %30 : vector<1x1x576xf32>
    %32 = arith.addf %26, %31 : vector<1x1x576xf32>
    %c1_32 = arith.constant 1 : index
    %c0_33 = arith.constant 0 : index
    %c0_34 = arith.constant 0 : index
    %33 = vector.load %arg9[%c1_32, %c0_33, %c0_34] : memref<3x3x576xf32, #tpu.memory_space<vmem>>, vector<1x1x576xf32>
    %c3 = arith.constant 3 : index
    %c0_35 = arith.constant 0 : index
    %c0_36 = arith.constant 0 : index
    %34 = vector.load %arg4[%c3, %c0_35, %c0_36] : memref<9x1x576xf32, #tpu.memory_space<vmem>>, vector<1x1x576xf32>
    %35 = vector.shape_cast %34 : vector<1x1x576xf32> to vector<1x576xf32>
    %36 = vector.shape_cast %35 : vector<1x576xf32> to vector<1x1x576xf32>
    %37 = arith.mulf %33, %36 : vector<1x1x576xf32>
    %38 = arith.addf %32, %37 : vector<1x1x576xf32>
    %c1_37 = arith.constant 1 : index
    %c1_38 = arith.constant 1 : index
    %c0_39 = arith.constant 0 : index
    %39 = vector.load %arg9[%c1_37, %c1_38, %c0_39] : memref<3x3x576xf32, #tpu.memory_space<vmem>>, vector<1x1x576xf32>
    %c4 = arith.constant 4 : index
    %c0_40 = arith.constant 0 : index
    %c0_41 = arith.constant 0 : index
    %40 = vector.load %arg4[%c4, %c0_40, %c0_41] : memref<9x1x576xf32, #tpu.memory_space<vmem>>, vector<1x1x576xf32>
    %41 = vector.shape_cast %40 : vector<1x1x576xf32> to vector<1x576xf32>
    %42 = vector.shape_cast %41 : vector<1x576xf32> to vector<1x1x576xf32>
    %43 = arith.mulf %39, %42 : vector<1x1x576xf32>
    %44 = arith.addf %38, %43 : vector<1x1x576xf32>
    %c1_42 = arith.constant 1 : index
    %c2_43 = arith.constant 2 : index
    %c0_44 = arith.constant 0 : index
    %45 = vector.load %arg9[%c1_42, %c2_43, %c0_44] : memref<3x3x576xf32, #tpu.memory_space<vmem>>, vector<1x1x576xf32>
    %c5 = arith.constant 5 : index
    %c0_45 = arith.constant 0 : index
    %c0_46 = arith.constant 0 : index
    %46 = vector.load %arg4[%c5, %c0_45, %c0_46] : memref<9x1x576xf32, #tpu.memory_space<vmem>>, vector<1x1x576xf32>
    %47 = vector.shape_cast %46 : vector<1x1x576xf32> to vector<1x576xf32>
    %48 = vector.shape_cast %47 : vector<1x576xf32> to vector<1x1x576xf32>
    %49 = arith.mulf %45, %48 : vector<1x1x576xf32>
    %50 = arith.addf %44, %49 : vector<1x1x576xf32>
    %c2_47 = arith.constant 2 : index
    %c0_48 = arith.constant 0 : index
    %c0_49 = arith.constant 0 : index
    %51 = vector.load %arg9[%c2_47, %c0_48, %c0_49] : memref<3x3x576xf32, #tpu.memory_space<vmem>>, vector<1x1x576xf32>
    %c6 = arith.constant 6 : index
    %c0_50 = arith.constant 0 : index
    %c0_51 = arith.constant 0 : index
    %52 = vector.load %arg4[%c6, %c0_50, %c0_51] : memref<9x1x576xf32, #tpu.memory_space<vmem>>, vector<1x1x576xf32>
    %53 = vector.shape_cast %52 : vector<1x1x576xf32> to vector<1x576xf32>
    %54 = vector.shape_cast %53 : vector<1x576xf32> to vector<1x1x576xf32>
    %55 = arith.mulf %51, %54 : vector<1x1x576xf32>
    %56 = arith.addf %50, %55 : vector<1x1x576xf32>
    %c2_52 = arith.constant 2 : index
    %c1_53 = arith.constant 1 : index
    %c0_54 = arith.constant 0 : index
    %57 = vector.load %arg9[%c2_52, %c1_53, %c0_54] : memref<3x3x576xf32, #tpu.memory_space<vmem>>, vector<1x1x576xf32>
    %c7 = arith.constant 7 : index
    %c0_55 = arith.constant 0 : index
    %c0_56 = arith.constant 0 : index
    %58 = vector.load %arg4[%c7, %c0_55, %c0_56] : memref<9x1x576xf32, #tpu.memory_space<vmem>>, vector<1x1x576xf32>
    %59 = vector.shape_cast %58 : vector<1x1x576xf32> to vector<1x576xf32>
    %60 = vector.shape_cast %59 : vector<1x576xf32> to vector<1x1x576xf32>
    %61 = arith.mulf %57, %60 : vector<1x1x576xf32>
    %62 = arith.addf %56, %61 : vector<1x1x576xf32>
    %c2_57 = arith.constant 2 : index
    %c2_58 = arith.constant 2 : index
    %c0_59 = arith.constant 0 : index
    %63 = vector.load %arg9[%c2_57, %c2_58, %c0_59] : memref<3x3x576xf32, #tpu.memory_space<vmem>>, vector<1x1x576xf32>
    %c8 = arith.constant 8 : index
    %c0_60 = arith.constant 0 : index
    %c0_61 = arith.constant 0 : index
    %64 = vector.load %arg4[%c8, %c0_60, %c0_61] : memref<9x1x576xf32, #tpu.memory_space<vmem>>, vector<1x1x576xf32>
    %65 = vector.shape_cast %64 : vector<1x1x576xf32> to vector<1x576xf32>
    %66 = vector.shape_cast %65 : vector<1x576xf32> to vector<1x1x576xf32>
    %67 = arith.mulf %63, %66 : vector<1x1x576xf32>
    %68 = arith.addf %62, %67 : vector<1x1x576xf32>
    %c0_62 = arith.constant 0 : index
    %c0_63 = arith.constant 0 : index
    %69 = vector.load %arg5[%c0_62, %c0_63] : memref<1x576xf32, #tpu.memory_space<vmem>>, vector<1x576xf32>
    %70 = vector.shape_cast %69 : vector<1x576xf32> to vector<1x1x576xf32>
    %71 = arith.addf %68, %70 : vector<1x1x576xf32>
    %cst_64 = arith.constant 0.000000e+00 : f32
    %cst_65 = arith.constant 6.000000e+00 : f32
    %72 = vector.broadcast %cst_64 : f32 to vector<1x1x576xf32>
    %73 = arith.maximumf %72, %71 : vector<1x1x576xf32>
    %74 = vector.broadcast %cst_65 : f32 to vector<1x1x576xf32>
    %75 = arith.minimumf %74, %73 : vector<1x1x576xf32>
    %76 = vector.shape_cast %75 : vector<1x1x576xf32> to vector<1x576xf32>
    %77 = arith.truncf %76 : vector<1x576xf32> to vector<1x576xbf16>
    %c0_66 = arith.constant 0 : index
    %c0_67 = arith.constant 0 : index
    %78 = vector.load %arg6[%c0_66, %c0_67] : memref<576x96xbf16, #tpu.memory_space<vmem>>, vector<576x96xbf16>
    %cst_68 = arith.constant dense<0.000000e+00> : vector<1x96xf32>
    %79 = tpu.matmul %77, %78, %cst_68 {dimension_numbers = #tpu.dot_dimension_numbers<[1], [0], [0], [1], [0, 0, 1, 1], [], []>} : vector<1x576xbf16>, vector<576x96xbf16>, vector<1x96xf32> -> vector<1x96xf32>
    %c0_69 = arith.constant 0 : index
    %c0_70 = arith.constant 0 : index
    %80 = vector.load %arg7[%c0_69, %c0_70] : memref<1x96xf32, #tpu.memory_space<vmem>>, vector<1x96xf32>
    %81 = arith.addf %79, %80 : vector<1x96xf32>
    %82 = arith.extf %1 : vector<1x96xbf16> to vector<1x96xf32>
    %83 = arith.addf %81, %82 : vector<1x96xf32>
    %84 = arith.truncf %83 : vector<1x96xf32> to vector<1x96xbf16>
    %c0_71 = arith.constant 0 : index
    %c0_72 = arith.constant 0 : index
    %c0_73 = arith.constant 0 : index
    %85 = vector.load %arg8[%c0_71, %c0_72, %c0_73] : memref<1x1x96xbf16, #tpu.memory_space<vmem>>, vector<1x1x96xbf16>
    %86 = vector.shape_cast %85 : vector<1x1x96xbf16> to vector<1x96xbf16>
    %87 = vector.shape_cast %84 : vector<1x96xbf16> to vector<1x1x96xbf16>
    tpu.vector_store %arg8[%c0_71, %c0_72, %c0_73], %87 {strides = array<i32>} : memref<1x1x96xbf16, #tpu.memory_space<vmem>>, vector<1x1x96xbf16>,
    return
  }
  func.func @transform_0(%arg0: i32) -> (i32, i32, i32) {
    %c0_i32 = arith.constant 0 : i32
    %c0_i32_0 = arith.constant 0 : i32
    %c0_i32_1 = arith.constant 0 : i32
    return %arg0, %c0_i32, %c0_i32_0 : i32, i32, i32
  }
  func.func @transform_1(%arg0: i32) -> (i32, i32) {
    %c0_i32 = arith.constant 0 : i32
    %c0_i32_0 = arith.constant 0 : i32
    %c0_i32_1 = arith.constant 0 : i32
    return %c0_i32, %c0_i32_0 : i32, i32
  }
  func.func @transform_2(%arg0: i32) -> (i32, i32) {
    %c0_i32 = arith.constant 0 : i32
    %c0_i32_0 = arith.constant 0 : i32
    %c0_i32_1 = arith.constant 0 : i32
    return %c0_i32, %c0_i32_0 : i32, i32
  }
  func.func @transform_3(%arg0: i32) -> (i32, i32, i32) {
    %c0_i32 = arith.constant 0 : i32
    %c0_i32_0 = arith.constant 0 : i32
    %c0_i32_1 = arith.constant 0 : i32
    %c0_i32_2 = arith.constant 0 : i32
    return %c0_i32, %c0_i32_0, %c0_i32_1 : i32, i32, i32
  }
  func.func @transform_4(%arg0: i32) -> (i32, i32) {
    %c0_i32 = arith.constant 0 : i32
    %c0_i32_0 = arith.constant 0 : i32
    %c0_i32_1 = arith.constant 0 : i32
    return %c0_i32, %c0_i32_0 : i32, i32
  }
  func.func @transform_5(%arg0: i32) -> (i32, i32) {
    %c0_i32 = arith.constant 0 : i32
    %c0_i32_0 = arith.constant 0 : i32
    %c0_i32_1 = arith.constant 0 : i32
    return %c0_i32, %c0_i32_0 : i32, i32
  }
  func.func @transform_6(%arg0: i32) -> (i32, i32) {
    %c0_i32 = arith.constant 0 : i32
    %c0_i32_0 = arith.constant 0 : i32
    %c0_i32_1 = arith.constant 0 : i32
    return %c0_i32, %c0_i32_0 : i32, i32
  }
  func.func @transform_7(%arg0: i32) -> (i32, i32, i32) {
    %c0_i32 = arith.constant 0 : i32
    %c0_i32_0 = arith.constant 0 : i32
    %c0_i32_1 = arith.constant 0 : i32
    return %arg0, %c0_i32, %c0_i32_0 : i32, i32, i32
  }
}

</mosaic_0001>

<bundles_post_ra>
// kernel: _lambda_.19
= control target key start
LH: loop header
LB: loop body
LE: loop exit
PB: predicated region body
PF: predicated region fallthrough
CT: control target
= control target key end

     0   :  { %vm86_vm0 = vcmask 130048   ;;  %vm304_vm1 = vcmask 781312   ;;  %s553_s1 = inlined_call_operand.vmem [shape: bf16[16,96], index: 1, kind: input, shape index: {}]   ;;  %s554_s0 = inlined_call_operand.vmem [shape: bf16[128,16], index: 0, kind: input, shape index: {}]   ;;  %s555_s2 = inlined_call_operand.vmem [shape: f32[1,96], index: 2, kind: input, shape index: {}]   ;;  %s556_s3 = inlined_call_operand.vmem [shape: bf16[128,96], index: 3, kind: output, shape index: {}]  }
   0x1   :  { %v404_v0 = vld [vmem:[%s553_s1] sm:$0xff]   ;;  %v407_v3 = vld [vmem:[%s554_s0 + $0x8] sm:$0xff]   ;;  %v409_v5 = vld [vmem:[%s554_s0 + $0x10] sm:$0xff]  }
   0x2   :  { %v405_v1 = vld [vmem:[%s554_s0] sm:$0xff]   ;;  %384 = vmatprep.subr.bf16.mxu0 %v404_v0  ;;  %402 = vmatprep.subr.bf16.mxu1 %v404_v0  ;;  %v408_v4 = vld [vmem:[%s554_s0 + $0x28] sm:$0xff]   ;;  %v410_v6 = vld [vmem:[%s554_s0 + $0x30] sm:$0xff]  }
   0x3   :  { %v406_v2 = vld [vmem:[%s554_s0 + $0x20] sm:$0xff]   ;;  %385 = vmatpush3.bf16.msra.mxu0 %v404_v0  ;;  %403 = vmatpush3.bf16.msra.mxu1 %v404_v0  ;;  %v411_v7 = vld [vmem:[%s554_s0 + $0x18] sm:$0xff]  }
   0x4   :  { %386 = vmatprep.mubr.msk.bf16.mxu0 %vm86_vm0, %v405_v1  ;;  %394 = vmatprep.mubr.msk.bf16.mxu1 %vm86_vm0, %v406_v2  ;;  %v412_v8 = vld [vmem:[%s554_s0 + $0x38] sm:$0xff]   ;;  %v471_v9 = vld [vmem:[%s555_s2] ss:$0 sm:$0xff] }
   0x6   :  { %387 = vmatmul.mubr.msk.bf16.vlgmr.msra.gmra.mrb[0].mxu0 %vm86_vm0, %v407_v3  ;;  %395 = vmatmul.mubr.msk.bf16.vlgmr.msra.gmra.mrb[0].mxu1 %vm86_vm0, %v408_v4 }
   0x7   :  { %390 = vmatprep.mubr.msk.bf16.mxu0 %vm86_vm0, %v409_v5  ;;  %398 = vmatprep.mubr.msk.bf16.mxu1 %vm86_vm0, %v410_v6 }
   0xe   :  { %391 = vmatmul.mubr.msk.bf16.gmra.mrb[4].mxu0 %vm86_vm0, %v411_v7  ;;  %399 = vmatmul.mubr.msk.bf16.gmra.mrb[4].mxu1 %vm86_vm0, %v412_v8 }
  0xd9   :  { %v388_v10 = vpop.f32.mrb[0].mxu0  ;;  %v396_v11 = vpop.f32.mrb[0].mxu1 }
  0xda   :  { %v154_v12 = vadd.f32 %v388_v10, %v471_v9  ;;  %v186_v13 = vadd.f32 %v396_v11, %v471_v9  ;;  %v145_v14 = vpop.f32.mrb[1].mxu0  ;;  %v177_v15 = vpop.f32.mrb[1].mxu1 }
  0xdb   :  { %v146_v16 = vadd.f32 %v471_v9, %v145_v14  ;;  %v178_v17 = vadd.f32 %v471_v9, %v177_v15  ;;  %v389_v18 = vpop.f32.mrb[2].mxu0  ;;  %v397_v19 = vpop.f32.mrb[2].mxu1 }
  0xdc   :  { %v210_v20 = vmax.f32 %v154_v12, 0.0  ;;  %v218_v21 = vmax.f32 %v186_v13, 0.0  ;;  %v157_v22 = vadd.f32 %v389_v18, %v471_v9  ;;  %v189_v23 = vadd.f32 %v397_v19, %v471_v9  ;;  %v148_v24 = vpop.f32.mrb[3].mxu0  ;;  %v180_v25 = vpop.f32.mrb[3].mxu1 }
  0xdd   :  { %v208_v26 = vmax.f32 %v146_v16, 0.0  ;;  %v216_v27 = vmax.f32 %v178_v17, 0.0  ;;  %v149_v28 = vadd.f32 %v471_v9, %v148_v24  ;;  %v181_v29 = vadd.f32 %v471_v9, %v180_v25 }
  0xde   :  { %v226_v30 = vmin.f32 %v210_v20, 6.0  ;;  %v234_v31 = vmin.f32 %v218_v21, 6.0  ;;  %v211_v32 = vmax.f32 %v157_v22, 0.0  ;;  %v219_v33 = vmax.f32 %v189_v23, 0.0 }
  0xdf   :  { %v224_v34 = vmin.f32 %v208_v26, 6.0  ;;  %v232_v35 = vmin.f32 %v216_v27, 6.0  ;;  %v209_v36 = vmax.f32 %v149_v28, 0.0  ;;  %v217_v37 = vmax.f32 %v181_v29, 0.0 }
  0xe0   :  { %v361_v38 = vpack.c.bf16 %v226_v30, %v226_v30  ;;  %v369_v39 = vpack.c.bf16 %v234_v31, %v234_v31  ;;  %v227_v40 = vmin.f32 %v211_v32, 6.0  ;;  %v235_v41 = vmin.f32 %v219_v33, 6.0 }
  0xe1   :  { %v359_v42 = vpack.c.bf16 %v224_v34, %v224_v34  ;;  %v367_v43 = vpack.c.bf16 %v232_v35, %v232_v35  ;;  %v225_v44 = vmin.f32 %v209_v36, 6.0  ;;  %v233_v45 = vmin.f32 %v217_v37, 6.0  ;;  %v392_v46 = vpop.f32.mrb[4].mxu0  ;;  %v400_v47 = vpop.f32.mrb[4].mxu1 }
  0xe2   :  { %307 = vst.msk [vmem:[%s556_s3 + $0x8] sm:$0xf] %vm304_vm1, %v361_v38  ;;  %315 = vst.msk [vmem:[%s556_s3 + $0x28] sm:$0xf] %vm304_vm1, %v369_v39  ;;  %v362_v48 = vpack.c.bf16 %v227_v40, %v227_v40  ;;  %v370_v49 = vpack.c.bf16 %v235_v41, %v235_v41  ;;  %v170_v50 = vadd.f32 %v392_v46, %v471_v9  ;;  %v161_v52 = vpop.f32.mrb[5].mxu0  ;;  %v193_v53 = vpop.f32.mrb[5].mxu1 }
  0xe3   :  { %v202_v51 = vadd.f32 %v400_v47, %v471_v9  ;;  %305 = vst.msk [vmem:[%s556_s3] sm:$0xf] %vm304_vm1, %v359_v42  ;;  %313 = vst.msk [vmem:[%s556_s3 + $0x20] sm:$0xf] %vm304_vm1, %v367_v43  ;;  %v360_v54 = vpack.c.bf16 %v225_v44, %v225_v44  ;;  %v368_v55 = vpack.c.bf16 %v233_v45, %v233_v45  ;;  %v393_v58 = vpop.f32.mrb[6].mxu0  ;;  %v401_v59 = vpop.f32.mrb[6].mxu1 }
  0xe4   :  { %v162_v56 = vadd.f32 %v471_v9, %v161_v52  ;;  %v194_v57 = vadd.f32 %v471_v9, %v193_v53  ;;  %308 = vst.msk [vmem:[%s556_s3 + $0xc] sm:$0xf] %vm304_vm1, %v362_v48  ;;  %316 = vst.msk [vmem:[%s556_s3 + $0x2c] sm:$0xf] %vm304_vm1, %v370_v49  ;;  %v214_v60 = vmax.f32 %v170_v50, 0.0  ;;  %v173_v62 = vadd.f32 %v393_v58, %v471_v9  ;;  %v164_v0 = vpop.f32.mrb[7].mxu0 }
  0xe5   :  { %v222_v61 = vmax.f32 %v202_v51, 0.0  ;;  %v205_v63 = vadd.f32 %v401_v59, %v471_v9  ;;  %v196_v1 = vpop.f32.mrb[7].mxu1  ;;  %306 = vst.msk [vmem:[%s556_s3 + $0x4] sm:$0xf] %vm304_vm1, %v360_v54  ;;  %314 = vst.msk [vmem:[%s556_s3 + $0x24] sm:$0xf] %vm304_vm1, %v368_v55  ;;  %v165_v4 = vadd.f32 %v471_v9, %v164_v0 }
  0xe6   :  { %v212_v2 = vmax.f32 %v162_v56, 0.0  ;;  %v220_v3 = vmax.f32 %v194_v57, 0.0  ;;  %v197_v5 = vadd.f32 %v471_v9, %v196_v1  ;;  %v230_v6 = vmin.f32 %v214_v60, 6.0 }
  0xe7   :  { %v238_v7 = vmin.f32 %v222_v61, 6.0  ;;  %v215_v8 = vmax.f32 %v173_v62, 0.0  ;;  %v223_v10 = vmax.f32 %v205_v63, 0.0  ;;  %v213_v13 = vmax.f32 %v165_v4, 0.0 }
  0xe8   :  { %v228_v11 = vmin.f32 %v212_v2, 6.0  ;;  %v236_v12 = vmin.f32 %v220_v3, 6.0  ;;  %v221_v14 = vmax.f32 %v197_v5, 0.0  ;;  %v365_v15 = vpack.c.bf16 %v230_v6, %v230_v6 }
  0xe9   :  { %v373_v16 = vpack.c.bf16 %v238_v7, %v238_v7  ;;  %v231_v17 = vmin.f32 %v215_v8, 6.0  ;;  %v239_v18 = vmin.f32 %v223_v10, 6.0  ;;  %v229_v21 = vmin.f32 %v213_v13, 6.0 }
  0xea   :  { %v363_v19 = vpack.c.bf16 %v228_v11, %v228_v11  ;;  %v371_v20 = vpack.c.bf16 %v236_v12, %v236_v12  ;;  %v237_v22 = vmin.f32 %v221_v14, 6.0  ;;  %311 = vst.msk [vmem:[%s556_s3 + $0x18] sm:$0xf] %vm304_vm1, %v365_v15 }
  0xeb   :  { %319 = vst.msk [vmem:[%s556_s3 + $0x38] sm:$0xf] %vm304_vm1, %v373_v16  ;;  %v366_v9 = vpack.c.bf16 %v231_v17, %v231_v17  ;;  %v374_v23 = vpack.c.bf16 %v239_v18, %v239_v18  ;;  %v364_v24 = vpack.c.bf16 %v229_v21, %v229_v21 }
  0xec   :  { %309 = vst.msk [vmem:[%s556_s3 + $0x10] sm:$0xf] %vm304_vm1, %v363_v19  ;;  %317 = vst.msk [vmem:[%s556_s3 + $0x30] sm:$0xf] %vm304_vm1, %v371_v20  ;;  %v372_v25 = vpack.c.bf16 %v237_v22, %v237_v22 }
  0xed   :  { %312 = vst.msk [vmem:[%s556_s3 + $0x1c] sm:$0xf] %vm304_vm1, %v366_v9  ;;  %320 = vst.msk [vmem:[%s556_s3 + $0x3c] sm:$0xf] %vm304_vm1, %v374_v23 }
  0xee   :  { %310 = vst.msk [vmem:[%s556_s3 + $0x14] sm:$0xf] %vm304_vm1, %v364_v24  ;;  %318 = vst.msk [vmem:[%s556_s3 + $0x34] sm:$0xf] %vm304_vm1, %v372_v25 }

// kernel: _lambda_.18
= control target key start
LH: loop header
LB: loop body
LE: loop exit
PB: predicated region body
PF: predicated region fallthrough
CT: control target
= control target key end

     0   :  { %s937_s18 = smov 0   ;;  %s1230_s0 = inlined_call_operand.vmem [shape: bf16[2,64,32], index: 0, kind: input, shape index: {}]   ;;  %s1231_s1 = inlined_call_operand.vmem [shape: f32[9,1,32], index: 1, kind: input, shape index: {}]   ;;  %s1232_s2 = inlined_call_operand.vmem [shape: f32[1,32], index: 2, kind: input, shape index: {}]   ;;  %s1233_s3 = inlined_call_operand.vmem [shape: bf16[32,16], index: 3, kind: input, shape index: {}]   ;;  %s1234_s4 = inlined_call_operand.vmem [shape: f32[1,16], index: 4, kind: input, shape index: {}]   ;;  %s1235_s5 = inlined_call_operand.vmem [shape: bf16[2,64,16], index: 5, kind: output, shape index: {}]  }
   0x1 LB: > { %s792_s19 = sadd.s32 4294967295, %s904_s18   ;;  %p796_p0 = scmp.ge.s32.totalorder %s904_s18, 1  ;;  %s904_s18 = sphi %s937_s18, %s15_s18  }
   0x2   : > { %p187_p1 = scmp.lt.s32.totalorder %s904_s18, 3 }
   0x4   : > { %p188_p2 = pnand %p796_p0, %p187_p1 }
   0x5   : > { %v896_v0 = vld [vmem:[%s1233_s3] sm:$0xff] (!%p188_p2)   ;;  %p215_p3 = scmp.lt.s32.totalorder (!%p188_p2), %s792_s19, 1  ;;  %v897_v1 = vld [vmem:[%s1233_s3 + $0x8] sm:$0xff] (!%p188_p2)   ;;  %vm242_vm0 = vcmask (!%p188_p2), 261120   ;;  %vm244_vm1 = vcmask (!%p188_p2), 254976   ;;  %v906_v2 = vmov (!%p188_p2), 0.0  }
   0x6   : > { %191 = sbr.rel (%p188_p2) target bundleno = 300 (0x12c), region = 40  ;;  %871 = vmatprep.subr.bf16.mxu0 (!%p188_p2), %v896_v0  ;;  %883 = vmatprep.subr.bf16.mxu1 (!%p188_p2), %v896_v0  ;;  %243 = vst.msk [vmem:[#allocation2] sm:$0xff] (!%p188_p2), %vm242_vm0, %v906_v2  ;;  %246 = vst.msk [vmem:[#allocation2 + $0x10] sm:$0xff] (!%p188_p2), %vm242_vm0, %v906_v2  ;;  %v982_v11 = vld [vmem:[%s1231_s1] ss:$0 sm:$0xff] (!%p188_p2)  ;;  %vm728_vm2 = vcmask (!%p188_p2), 125952  }
   0x7   : > { %872 = vmatpush3.bf16.msra.mxu0 (!%p188_p2), %v896_v0  ;;  %885 = vmatpush3.bf16.msra.mxu1 (!%p188_p2), %v896_v0  ;;  %245 = vst.msk [vmem:[#allocation2 + $0x8] sm:$0x3] (!%p188_p2), %vm244_vm1, %v906_v2  ;;  %247 = vst.msk [vmem:[#allocation2 + $0x18] sm:$0x3] (!%p188_p2), %vm244_vm1, %v906_v2  ;;  %v987_v12 = vld [vmem:[%s1231_s1 + $0x1] ss:$0 sm:$0xff] (!%p188_p2) }
   0x8   : > { %248 = vst.msk [vmem:[#allocation2 + $0x20] sm:$0xff] (!%p188_p2), %vm242_vm0, %v906_v2  ;;  %250 = vst.msk [vmem:[#allocation2 + $0x30] sm:$0xff] (!%p188_p2), %vm242_vm0, %v906_v2  ;;  %873 = vmatprep.subr.bf16.mxu0 (!%p188_p2), %v897_v1  ;;  %884 = vmatprep.subr.bf16.mxu1 (!%p188_p2), %v897_v1  ;;  %v992_v13 = vld [vmem:[%s1231_s1 + $0x2] ss:$0 sm:$0xff] (!%p188_p2)  ;;  %v1008_v25 = vld [vmem:[%s1231_s1 + $0x3] ss:$0 sm:$0xff] (!%p188_p2) }
   0x9   : > { %249 = vst.msk [vmem:[#allocation2 + $0x28] sm:$0x3] (!%p188_p2), %vm244_vm1, %v906_v2  ;;  %251 = vst.msk [vmem:[#allocation2 + $0x38] sm:$0x3] (!%p188_p2), %vm244_vm1, %v906_v2  ;;  %v1013_v26 = vld [vmem:[%s1231_s1 + $0x4] ss:$0 sm:$0xff] (!%p188_p2) }
   0xa   : > { %252 = vst.msk [vmem:[#allocation2 + $0x40] sm:$0xff] (!%p188_p2), %vm242_vm0, %v906_v2  ;;  %254 = vst.msk [vmem:[#allocation2 + $0x50] sm:$0xff] (!%p188_p2), %vm242_vm0, %v906_v2  ;;  %v1018_v27 = vld [vmem:[%s1231_s1 + $0x5] ss:$0 sm:$0xff] (!%p188_p2)  ;;  %v1023_v29 = vld [vmem:[%s1231_s1 + $0x6] ss:$0 sm:$0xff] (!%p188_p2) }
   0xb   : > { %253 = vst.msk [vmem:[#allocation2 + $0x48] sm:$0x3] (!%p188_p2), %vm244_vm1, %v906_v2  ;;  %255 = vst.msk [vmem:[#allocation2 + $0x58] sm:$0x3] (!%p188_p2), %vm244_vm1, %v906_v2  ;;  %874 = vmatpush3.bf16.msra.mxu0 (!%p188_p2), %v897_v1  ;;  %886 = vmatpush3.bf16.msra.mxu1 (!%p188_p2), %v897_v1  ;;  %v1028_v30 = vld [vmem:[%s1231_s1 + $0x7] ss:$0 sm:$0xff] (!%p188_p2) }
   0xc   : > { %256 = vst.msk [vmem:[#allocation2 + $0x60] sm:$0xff] (!%p188_p2), %vm242_vm0, %v906_v2  ;;  %258 = vst.msk [vmem:[#allocation2 + $0x70] sm:$0xff] (!%p188_p2), %vm242_vm0, %v906_v2  ;;  %v1033_v31 = vld [vmem:[%s1231_s1 + $0x8] ss:$0 sm:$0xff] (!%p188_p2) }
   0xd   : > { %s1237_s19 = smov (!%p215_p3, %s792_s19), 1  ;;  %257 = vst.msk [vmem:[#allocation2 + $0x68] sm:$0x3] %vm244_vm1, %v906_v2  ;;  %259 = vst.msk [vmem:[#allocation2 + $0x78] sm:$0x3] %vm244_vm1, %v906_v2  ;;  %v273_v18 = vld [vmem:[#allocation2] sm:$0xff] }
   0xe   : > { %260 = vst.msk [vmem:[#allocation2 + $0x80] sm:$0xff] %vm242_vm0, %v906_v2  ;;  %262 = vst.msk [vmem:[#allocation2 + $0x90] sm:$0xff] %vm242_vm0, %v906_v2  ;;  %s836_s24 = sshll.u32 %s1237_s19, 5  ;;  %v304_v19 = vld [vmem:[#allocation2 + $0x1] sm:$0xff]  ;;  %v288_v21 = vmul.f32 %v982_v11, %v273_v18 }
   0xf   : > { %261 = vst.msk [vmem:[#allocation2 + $0x88] sm:$0x3] %vm244_vm1, %v906_v2  ;;  %263 = vst.msk [vmem:[#allocation2 + $0x98] sm:$0x3] %vm244_vm1, %v906_v2  ;;  %s219_s27 = scalar_lea.vmem %s1230_s0, %s836_s24  ;;  %v336_v20 = vld [vmem:[#allocation2 + $0x2] sm:$0xff]  ;;  %v320_v22 = vmul.f32 %v987_v12, %v304_v19  ;;  %s224_s30 = scalar_lea.vmem %s1235_s5, %s836_s24 }
  0x10   : > { %v847_v3 = vld [vmem:[%s219_s27] sm:$0xff]   ;;  %v862_v4 = vld [vmem:[%s219_s27 + $0x8] sm:$0xff]   ;;  %v863_v9 = vld [vmem:[%s219_s27 + $0x10] sm:$0xff]   ;;  %v352_v23 = vmul.f32 %v992_v13, %v336_v20 }
  0x11   : > { %v848_v5 = vunpack.c.l.bf16 %v847_v3  ;;  %v849_v6 = vunpack.c.h.bf16 %v847_v3  ;;  %v852_v7 = vunpack.c.l.bf16 %v862_v4  ;;  %v853_v8 = vunpack.c.h.bf16 %v862_v4  ;;  %v864_v10 = vld [vmem:[%s219_s27 + $0x18] sm:$0xff]  }
  0x12   : > { %v856_v14 = vunpack.c.l.bf16 %v863_v9  ;;  %v857_v15 = vunpack.c.h.bf16 %v863_v9  ;;  %v860_v16 = vunpack.c.l.bf16 %v864_v10  ;;  %v861_v17 = vunpack.c.h.bf16 %v864_v10 }
  0x13   : > { %265 = vst.msk [vmem:[#allocation2 + $0x11] sm:$0xff] %vm242_vm0, %v848_v5  ;;  %266 = vst.msk [vmem:[#allocation2 + $0x21] sm:$0xff] %vm242_vm0, %v849_v6  ;;  %v328_v24 = vadd.f32 %v320_v22, %v288_v21 }
  0x14   : > { %267 = vst.msk [vmem:[#allocation2 + $0x31] sm:$0xff] %vm242_vm0, %v852_v7  ;;  %268 = vst.msk [vmem:[#allocation2 + $0x41] sm:$0xff] %vm242_vm0, %v853_v8 }
  0x15   : > { %269 = vst.msk [vmem:[#allocation2 + $0x51] sm:$0xff] %vm242_vm0, %v856_v14  ;;  %270 = vst.msk [vmem:[#allocation2 + $0x61] sm:$0xff] %vm242_vm0, %v857_v15  ;;  %v360_v28 = vadd.f32 %v352_v23, %v328_v24 }
  0x16   : > { %271 = vst.msk [vmem:[#allocation2 + $0x71] sm:$0xff] %vm242_vm0, %v860_v16  ;;  %272 = vst.msk [vmem:[#allocation2 + $0x81] sm:$0xff] %vm242_vm0, %v861_v17 }
  0x1a   : > { %v274_v32 = vld [vmem:[#allocation2 + $0x10] sm:$0xff]  ;;  %v1038_v38 = vld [vmem:[#allocation2 + $0x20] sm:$0xff] }
  0x1b   : > { %v305_v33 = vld [vmem:[#allocation2 + $0x11] sm:$0xff]  ;;  %v289_v35 = vmul.f32 %v982_v11, %v274_v32  ;;  %v384_v39 = vmul.f32 %v1008_v25, %v274_v32  ;;  %v1041_v40 = vld [vmem:[#allocation2 + $0x21] sm:$0xff]  ;;  %v385_v42 = vmul.f32 %v1008_v25, %v1038_v38  ;;  %v481_v52 = vmul.f32 %v1023_v29, %v1038_v38 }
  0x1c   : > { %v337_v34 = vld [vmem:[#allocation2 + $0x12] sm:$0xff]  ;;  %v321_v36 = vmul.f32 %v987_v12, %v305_v33  ;;  %v1043_v41 = vld [vmem:[#allocation2 + $0x22] sm:$0xff]  ;;  %v416_v43 = vmul.f32 %v1013_v26, %v305_v33  ;;  %v417_v44 = vmul.f32 %v1013_v26, %v1041_v40  ;;  %v513_v57 = vmul.f32 %v1028_v30, %v1041_v40 }
  0x1d   : > { %v353_v37 = vmul.f32 %v992_v13, %v337_v34  ;;  %v448_v45 = vmul.f32 %v1018_v27, %v337_v34  ;;  %v1051_v46 = vld [vmem:[#allocation2 + $0x30] sm:$0xff]  ;;  %v392_v50 = vadd.f32 %v384_v39, %v360_v28  ;;  %v449_v51 = vmul.f32 %v1018_v27, %v1043_v41  ;;  %v1061_v53 = vld [vmem:[#allocation2 + $0x40] sm:$0xff] }
  0x1e   : > { %v1053_v47 = vld [vmem:[#allocation2 + $0x31] sm:$0xff]  ;;  %v329_v49 = vadd.f32 %v321_v36, %v289_v35  ;;  %v1065_v55 = vld [vmem:[#allocation2 + $0x41] sm:$0xff]  ;;  %v482_v56 = vmul.f32 %v1023_v29, %v1051_v46  ;;  %v545_v59 = vmul.f32 %v1033_v31, %v1043_v41  ;;  %v292_v2 = vmul.f32 %v982_v11, %v1061_v53 }
  0x1f   : > { %v1055_v48 = vld [vmem:[#allocation2 + $0x32] sm:$0xff]  ;;  %v514_v58 = vmul.f32 %v1028_v30, %v1053_v47  ;;  %v1077_v61 = vld [vmem:[#allocation2 + $0x42] sm:$0xff]  ;;  %v424_v0 = vadd.f32 %v416_v43, %v392_v50  ;;  %v324_v4 = vmul.f32 %v987_v12, %v1065_v55 }
  0x20   : > { %v1063_v54 = vld [vmem:[#allocation2 + $0x50] sm:$0xff]  ;;  %v361_v63 = vadd.f32 %v353_v37, %v329_v49  ;;  %v546_v1 = vmul.f32 %v1033_v31, %v1055_v48  ;;  %v356_v6 = vmul.f32 %v992_v13, %v1077_v61  ;;  %v1095_v10 = vld [vmem:[#allocation2 + $0x60] sm:$0xff] }
  0x21   : > { %v1075_v60 = vld [vmem:[#allocation2 + $0x51] sm:$0xff]  ;;  %v293_v3 = vmul.f32 %v982_v11, %v1063_v54  ;;  %v456_v8 = vadd.f32 %v448_v45, %v424_v0  ;;  %v388_v14 = vmul.f32 %v1008_v25, %v1063_v54  ;;  %v332_v15 = vadd.f32 %v324_v4, %v292_v2  ;;  %v1101_v18 = vld [vmem:[#allocation2 + $0x61] sm:$0xff] }
  0x22   : > { %v1079_v62 = vld [vmem:[#allocation2 + $0x52] sm:$0xff]  ;;  %v325_v5 = vmul.f32 %v987_v12, %v1075_v60  ;;  %v393_v7 = vadd.f32 %v385_v42, %v361_v63  ;;  %v389_v17 = vmul.f32 %v1008_v25, %v1095_v10  ;;  %v420_v19 = vmul.f32 %v1013_v26, %v1075_v60  ;;  %v1107_v23 = vld [vmem:[#allocation2 + $0x62] sm:$0xff] }
  0x23   : > { %v357_v9 = vmul.f32 %v992_v13, %v1079_v62  ;;  %v489_v21 = vadd.f32 %v481_v52, %v456_v8  ;;  %v421_v22 = vmul.f32 %v1013_v26, %v1101_v18  ;;  %v452_v24 = vmul.f32 %v1018_v27, %v1079_v62  ;;  %v1113_v34 = vld [vmem:[#allocation2 + $0x70] sm:$0xff] }
  0x24   : > { %v333_v16 = vadd.f32 %v325_v5, %v293_v3  ;;  %v425_v20 = vadd.f32 %v417_v44, %v393_v7  ;;  %v364_v28 = vadd.f32 %v356_v6, %v332_v15  ;;  %v453_v33 = vmul.f32 %v1018_v27, %v1107_v23  ;;  %v1119_v42 = vld [vmem:[#allocation2 + $0x71] sm:$0xff]  ;;  %v1126_v44 = vld [vmem:[%s1232_s2] ss:$0 sm:$0xff] }
  0x25   : > { %v485_v35 = vmul.f32 %v1023_v29, %v1095_v10  ;;  %v521_v37 = vadd.f32 %v513_v57, %v489_v21  ;;  %v486_v39 = vmul.f32 %v1023_v29, %v1113_v34  ;;  %v517_v43 = vmul.f32 %v1028_v30, %v1101_v18 }
  0x26   : > { %v365_v32 = vadd.f32 %v357_v9, %v333_v16  ;;  %v457_v36 = vadd.f32 %v449_v51, %v425_v20  ;;  %v396_v45 = vadd.f32 %v388_v14, %v364_v28  ;;  %v518_v50 = vmul.f32 %v1028_v30, %v1119_v42  ;;  %v1130_v51 = vld [vmem:[#allocation2 + $0x72] sm:$0xff] }
  0x27   : > { %v549_v52 = vmul.f32 %v1033_v31, %v1107_v23  ;;  %v553_v63 = vadd.f32 %v545_v59, %v521_v37  ;;  %v550_v0 = vmul.f32 %v1033_v31, %v1130_v51  ;;  %v290_v2 = vmul.f32 %v982_v11, %v1038_v38 }
  0x28   : > { %v397_v49 = vadd.f32 %v389_v17, %v365_v32  ;;  %v490_v57 = vadd.f32 %v482_v56, %v457_v36  ;;  %v428_v3 = vadd.f32 %v420_v19, %v396_v45  ;;  %v291_v5 = vmul.f32 %v982_v11, %v1051_v46 }
  0x29   : > { %v322_v6 = vmul.f32 %v987_v12, %v1041_v40  ;;  %v568_v8 = vadd.f32 %v1126_v44, %v553_v63  ;;  %v323_v56 = vmul.f32 %v987_v12, %v1053_v47  ;;  %v354_v59 = vmul.f32 %v992_v13, %v1043_v41 }
  0x2a   : > { %v429_v4 = vadd.f32 %v421_v22, %v397_v49  ;;  %v522_v7 = vadd.f32 %v514_v58, %v490_v57  ;;  %v460_v9 = vadd.f32 %v452_v24, %v428_v3  ;;  %v355_v15 = vmul.f32 %v992_v13, %v1055_v48 }
  0x2b   : > { %v330_v38 = vadd.f32 %v322_v6, %v290_v2  ;;  %v576_v17 = vmax.f32 %v568_v8, 0.0  ;;  %v331_v19 = vadd.f32 %v323_v56, %v291_v5  ;;  %v386_v40 = vmul.f32 %v1008_v25, %v1051_v46 }
  0x2c   : > { %v461_v14 = vadd.f32 %v453_v33, %v429_v4  ;;  %v554_v16 = vadd.f32 %v546_v1, %v522_v7  ;;  %v493_v58 = vadd.f32 %v485_v35, %v460_v9  ;;  %v387_v22 = vmul.f32 %v1008_v25, %v1061_v53 }
  0x2d   : > { %v362_v21 = vadd.f32 %v354_v59, %v330_v38  ;;  %v584_v24 = vmin.f32 %v576_v17, 6.0  ;;  %v363_v28 = vadd.f32 %v355_v15, %v331_v19  ;;  %v418_v32 = vmul.f32 %v1013_v26, %v1053_v47 }
  0x2e   : > { %v494_v20 = vadd.f32 %v486_v39, %v461_v14  ;;  %v569_v41 = vadd.f32 %v1126_v44, %v554_v16  ;;  %v525_v33 = vadd.f32 %v517_v43, %v493_v58  ;;  %v419_v37 = vmul.f32 %v1013_v26, %v1065_v55  ;;  %v375_v14 = vld [vmem:[#allocation2 + $0x80] sm:$0xff] }
  0x2f   : > { %v394_v36 = vadd.f32 %v386_v40, %v362_v21  ;;  %v395_v35 = vadd.f32 %v387_v22, %v363_v28  ;;  %v450_v39 = vmul.f32 %v1018_v27, %v1055_v48  ;;  %v451_v45 = vmul.f32 %v1018_v27, %v1077_v61  ;;  %v439_v21 = vld [vmem:[#allocation2 + $0x82] sm:$0xff]  ;;  %v472_v28 = vld [vmem:[#allocation2 + $0x90] sm:$0xff] }
  0x30   : > { %v526_v1 = vadd.f32 %v518_v50, %v494_v20  ;;  %v577_v46 = vmax.f32 %v569_v41, 0.0  ;;  %v557_v49 = vadd.f32 %v549_v52, %v525_v33  ;;  %v483_v47 = vmul.f32 %v1023_v29, %v1061_v53 }
  0x31   : > { %v426_v63 = vadd.f32 %v418_v32, %v394_v36  ;;  %v427_v50 = vadd.f32 %v419_v37, %v395_v35  ;;  %v484_v2 = vmul.f32 %v1023_v29, %v1063_v54  ;;  %v515_v3 = vmul.f32 %v1028_v30, %v1065_v55  ;;  %v504_v37 = vld [vmem:[#allocation2 + $0x91] sm:$0xff] }
  0x32   : > { %v558_v57 = vadd.f32 %v550_v0, %v526_v1  ;;  %v585_v43 = vmin.f32 %v577_v46, 6.0  ;;  %v572_v4 = vadd.f32 %v1126_v44, %v557_v49  ;;  %v516_v52 = vmul.f32 %v1028_v30, %v1075_v60 }
  0x33   : > { %v458_v5 = vadd.f32 %v450_v39, %v426_v63  ;;  %v459_v6 = vadd.f32 %v451_v45, %v427_v50  ;;  %v547_v53 = vmul.f32 %v1033_v31, %v1077_v61  ;;  %v548_v7 = vmul.f32 %v1033_v31, %v1079_v62 }
  0x34   : > { %v573_v48 = vadd.f32 %v1126_v44, %v558_v57  ;;  %v592_v0 = vpack.c.bf16 %v585_v43, %v584_v24  ;;  %v580_v54 = vmax.f32 %v572_v4, 0.0  ;;  %v294_v55 = vmul.f32 %v982_v11, %v1095_v10  ;;  %v536_v57 = vld [vmem:[#allocation2 + $0x92] sm:$0xff] }
  0x35   : > { %v491_v56 = vadd.f32 %v483_v47, %v458_v5  ;;  %v492_v59 = vadd.f32 %v484_v2, %v459_v6  ;;  %v295_v60 = vmul.f32 %v982_v11, %v1113_v34  ;;  %v326_v9 = vmul.f32 %v987_v12, %v1101_v18  ;;  %v407_v11 = vld [vmem:[#allocation2 + $0x81] sm:$0xff] }
  0x36   : > { %v581_v8 = vmax.f32 %v573_v48, 0.0  ;;  %875 = vmatprep.mubr.msk.bf16.mxu0 %vm242_vm0, %v592_v0  ;;  %v327_v61 = vmul.f32 %v987_v12, %v1119_v42  ;;  %v588_v62 = vmin.f32 %v580_v54, 6.0  ;;  %v358_v16 = vmul.f32 %v992_v13, %v1107_v23 }
  0x37   : > { %v523_v15 = vadd.f32 %v515_v3, %v491_v56  ;;  %v524_v10 = vadd.f32 %v516_v52, %v492_v59  ;;  %v334_v17 = vadd.f32 %v326_v9, %v294_v55  ;;  %v359_v40 = vmul.f32 %v992_v13, %v1130_v51 }
  0x38   : > { %v589_v38 = vmin.f32 %v581_v8, 6.0  ;;  %v335_v19 = vadd.f32 %v327_v61, %v295_v60  ;;  %v390_v18 = vmul.f32 %v1008_v25, %v1113_v34  ;;  %v391_v12 = vmul.f32 %v1008_v25, %v375_v14 }
  0x39   : > { %v555_v20 = vadd.f32 %v547_v53, %v523_v15  ;;  %v556_v22 = vadd.f32 %v548_v7, %v524_v10  ;;  %v366_v41 = vadd.f32 %v358_v16, %v334_v17  ;;  %v422_v23 = vmul.f32 %v1013_v26, %v1119_v42 }
  0x3a   : > { %v594_v58 = vpack.c.bf16 %v589_v38, %v588_v62  ;;  %v367_v24 = vadd.f32 %v359_v40, %v335_v19  ;;  %v423_v32 = vmul.f32 %v1013_v26, %v407_v11  ;;  %v454_v33 = vmul.f32 %v1018_v27, %v1130_v51 }
  0x3b   : > { %v570_v13 = vadd.f32 %v1126_v44, %v555_v20  ;;  %v571_v34 = vadd.f32 %v1126_v44, %v556_v22  ;;  %v398_v25 = vadd.f32 %v390_v18, %v366_v41  ;;  %v455_v36 = vmul.f32 %v1018_v27, %v439_v21 }
  0x3c   : > { %879 = vmatprep.mubr.msk.bf16.mxu1 %vm242_vm0, %v594_v58  ;;  %v399_v1 = vadd.f32 %v391_v12, %v367_v24  ;;  %v488_v42 = vmul.f32 %v1023_v29, %v472_v28  ;;  %v487_v49 = vmul.f32 %v1023_v29, %v375_v14  ;;  %v520_v63 = vmul.f32 %v1028_v30, %v504_v37 }
  0x3d   : > { %v578_v46 = vmax.f32 %v570_v13, 0.0  ;;  %v579_v35 = vmax.f32 %v571_v34, 0.0  ;;  %v430_v39 = vadd.f32 %v422_v23, %v398_v25  ;;  %v519_v50 = vmul.f32 %v1028_v30, %v407_v11 }
  0x3e   : > { %v431_v45 = vadd.f32 %v423_v32, %v399_v1  ;;  %v552_v27 = vmul.f32 %v1033_v31, %v536_v57  ;;  %v551_v48 = vmul.f32 %v1033_v31, %v439_v21  ;;  %v819_v31 = vld [vmem:[%s1234_s4] ss:$0 sm:$0xff] }
  0x3f   : > { %v586_v26 = vmin.f32 %v578_v46, 6.0  ;;  %v587_v51 = vmin.f32 %v579_v35, 6.0  ;;  %v462_v47 = vadd.f32 %v454_v33, %v430_v39 }
  0x40   : > { %v463_v43 = vadd.f32 %v455_v36, %v431_v45 }
  0x41   : > { %v593_v2 = vpack.c.bf16 %v587_v51, %v586_v26  ;;  %v495_v3 = vadd.f32 %v487_v49, %v462_v47 }
  0x42   : > { %v496_v4 = vadd.f32 %v488_v42, %v463_v43 }
  0x43   : > { %876 = vmatmul.mubr.msk.bf16.vlgmr.msra.gmra.mrb[0].mxu0 %vm242_vm0, %v593_v2  ;;  %v527_v5 = vadd.f32 %v519_v50, %v495_v3 }
  0x44   : > { %v528_v29 = vadd.f32 %v520_v63, %v496_v4 }
  0x45   : > { %v559_v52 = vadd.f32 %v551_v48, %v527_v5 }
  0x46   : > { %v560_v0 = vadd.f32 %v552_v27, %v528_v29 }
  0x47   : > { %v574_v6 = vadd.f32 %v1126_v44, %v559_v52 }
  0x48   : > { %v575_v53 = vadd.f32 %v1126_v44, %v560_v0 }
  0x49   : > { %v582_v7 = vmax.f32 %v574_v6, 0.0 }
  0x4a   : > { %v583_v30 = vmax.f32 %v575_v53, 0.0 }
  0x4b   : > { %v590_v54 = vmin.f32 %v582_v7, 6.0 }
  0x4c   : > { %v591_v8 = vmin.f32 %v583_v30, 6.0 }
  0x4e   : > { %v595_v56 = vpack.c.bf16 %v591_v8, %v590_v54 }
  0x50   : > { %880 = vmatmul.mubr.msk.bf16.vlgmr.msra.gmra.mrb[0].mxu1 %vm242_vm0, %v595_v56 }
 0x116   : > { %v877_v55 = vpop.f32.mrb[0].mxu0 }
 0x117   : > { %v674_v59 = vadd.f32 %v877_v55, %v819_v31  ;;  %v665_v60 = vpop.f32.mrb[1].mxu0 }
 0x118   : > { %v666_v44 = vadd.f32 %v819_v31, %v665_v60  ;;  %v878_v9 = vpop.f32.mrb[2].mxu0 }
 0x119   : > { %v840_v61 = vpack.c.bf16 %v674_v59, %v674_v59  ;;  %v677_v14 = vadd.f32 %v878_v9, %v819_v31  ;;  %v668_v62 = vpop.f32.mrb[3].mxu0 }
 0x11a   : > { %v838_v38 = vpack.c.bf16 %v666_v44, %v666_v44  ;;  %v669_v15 = vadd.f32 %v819_v31, %v668_v62 }
 0x11b   : > { %731 = vst.msk [vmem:[%s224_s30 + $0x8] sm:$0xf] %vm728_vm2, %v840_v61  ;;  %v841_v16 = vpack.c.bf16 %v677_v14, %v677_v14 }
 0x11c   : > { %729 = vst.msk [vmem:[%s224_s30] sm:$0xf] %vm728_vm2, %v838_v38  ;;  %v839_v10 = vpack.c.bf16 %v669_v15, %v669_v15 }
 0x11d   : > { %732 = vst.msk [vmem:[%s224_s30 + $0xc] sm:$0xf] %vm728_vm2, %v841_v16 }
 0x11e   : > { %730 = vst.msk [vmem:[%s224_s30 + $0x4] sm:$0xf] %vm728_vm2, %v839_v10 }
 0x123   : > { %v881_v17 = vpop.f32.mrb[0].mxu1 }
 0x124   : > { %v690_v19 = vadd.f32 %v881_v17, %v819_v31  ;;  %v681_v40 = vpop.f32.mrb[1].mxu1 }
 0x125   : > { %v682_v11 = vadd.f32 %v819_v31, %v681_v40  ;;  %v882_v58 = vpop.f32.mrb[2].mxu1 }
 0x126   : > { %v844_v20 = vpack.c.bf16 %v690_v19, %v690_v19  ;;  %v693_v18 = vadd.f32 %v882_v58, %v819_v31  ;;  %v684_v12 = vpop.f32.mrb[3].mxu1 }
 0x127   : > { %v842_v21 = vpack.c.bf16 %v682_v11, %v682_v11  ;;  %v685_v22 = vadd.f32 %v819_v31, %v684_v12 }
 0x128   : > { %735 = vst.msk [vmem:[%s224_s30 + $0x18] sm:$0xf] %vm728_vm2, %v844_v20  ;;  %v845_v41 = vpack.c.bf16 %v693_v18, %v693_v18 }
 0x129   : > { %733 = vst.msk [vmem:[%s224_s30 + $0x10] sm:$0xf] %vm728_vm2, %v842_v21  ;;  %v843_v24 = vpack.c.bf16 %v685_v22, %v685_v22 }
 0x12a   : > { %736 = vst.msk [vmem:[%s224_s30 + $0x1c] sm:$0xf] %vm728_vm2, %v845_v41 }
 0x12b   : > { %734 = vst.msk [vmem:[%s224_s30 + $0x14] sm:$0xf] %vm728_vm2, %v843_v24 }
 0x12c PF: > { %s15_s18 = sadd.s32 1, %s904_s18  }
 0x12d   : > { %p12_p4 = scmp.ge.s32.totalorder %s15_s18, 4  }
 0x12f   :  { %14 = sbr.rel (!%p12_p4) target bundleno = 1 (0x1), region = 80 }

// kernel: _lambda_.17
= control target key start
LH: loop header
LB: loop body
LE: loop exit
PB: predicated region body
PF: predicated region fallthrough
CT: control target
= control target key end

     0   :  { %s2142_s12 = smov 0   ;;  %s2421_s0 = inlined_call_operand.vmem [shape: bf16[2,4,9,9,4], index: 0, kind: input, shape index: {}]   ;;  %s2422_s1 = inlined_call_operand.vmem [shape: bf16[3,3,4,32], index: 1, kind: input, shape index: {}]   ;;  %s2423_s2 = inlined_call_operand.vmem [shape: f32[1,32], index: 2, kind: input, shape index: {}]   ;;  %s2424_s3 = inlined_call_operand.vmem [shape: bf16[2,64,32], index: 3, kind: output, shape index: {}]  }
   0x1 LB: > { %s1690_s13 = sadd.s32 4294967295, %s2120_s12   ;;  %p1694_p0 = scmp.ge.s32.totalorder %s2120_s12, 1  ;;  %s2120_s12 = sphi %s2142_s12, %s13_s12  }
   0x2   : > { %p137_p1 = scmp.lt.s32.totalorder %s2120_s12, 3 }
   0x4   : > { %p138_p2 = pnand %p1694_p0, %p137_p1 }
   0x5   : > { %v1706_v0 = vld [vmem:[%s2422_s1 + $0x2] sm:$0x3] (!%p138_p2)  ;;  %vm225_vm0 = vcmask (!%p138_p2), 1041408   ;;  %v2156_v1 = vld [vmem:[%s2422_s1 + $0x8] sm:$0x3] (!%p138_p2)  ;;  %p161_p3 = scmp.lt.s32.totalorder (!%p138_p2), %s1690_s13, 1 }
   0x6   : > { %141 = sbr.rel (%p138_p2) target bundleno = 320 (0x140), region = 32  ;;  %2071 = vmatprep.subr.msk.bf16.mxu1 (!%p138_p2), %vm225_vm0, %v1706_v0  ;;  %2075 = vmatprep.subr.msk.bf16.mxu0 (!%p138_p2), %vm225_vm0, %v2156_v1  ;;  %v227_v2 = vsel (!%p138_p2), %vm225_vm0, %v1706_v0, 0  ;;  %v2164_v3 = vsel (!%p138_p2), %vm225_vm0, %v2156_v1, 0  ;;  %v180_v4 = vld [vmem:[%s2422_s1] sm:$0x3] (!%p138_p2)  ;;  %vm212_vm1 = vcmask (!%p138_p2), 31744  }
   0x7   : > { %1916 = vmatpush3.bf16.msra.mxu1 (!%p138_p2), %v227_v2  ;;  %1956 = vmatpush3.bf16.msra.mxu0 (!%p138_p2), %v2164_v3  ;;  %v1782_v5 = vld [vmem:[%s2422_s1 + $0xa] sm:$0x3] (!%p138_p2)  ;;  %v327_v6 = vsel (!%p138_p2), %vm225_vm0, %v180_v4, 0  ;;  %v1799_v9 = vld [vmem:[%s2422_s1 + $0xc] sm:$0x3] (!%p138_p2)  ;;  %vm1626_vm5 = vcmask (!%p138_p2), 257024  }
   0x8   : > { %2072 = vmatprep.subr.msk.bf16.mxu1 (!%p138_p2), %vm225_vm0, %v180_v4  ;;  %2077 = vmatprep.subr.msk.bf16.mxu0 (!%p138_p2), %vm225_vm0, %v1782_v5  ;;  %v1020_v7 = vsel (!%p138_p2), %vm225_vm0, %v1782_v5, 0  ;;  %v1723_v10 = vld [vmem:[%s2422_s1 + $0x4] sm:$0x3] (!%p138_p2)  ;;  %vm410_vm2 = vsmask.f32 (!%p138_p2), 3328  ;;  %v2201_v15 = vsel (!%p138_p2), %vm225_vm0, %v1799_v9, 0 }
   0x9   : > { %vm411_vm3 = vsmask.f32 (!%p138_p2), 7440  ;;  %v2204_v16 = vsel (!%p138_p2), %vm225_vm0, %v1723_v10, 0 }
   0xa   : > { %vm2221_vm4 = vmor (!%p138_p2), %vm410_vm2, %vm411_vm3 }
   0xd   : > { %s2428_s13 = smov (!%p161_p3, %s1690_s13), 1 }
   0xe   : > { %s2081_s22 = smul.u32 288, %s2428_s13  ;;  %s1861_s11 = sshll.u32 %s2428_s13, 5 }
   0xf   : > { %s2400_s16 = scalar_lea.vmem %s2424_s3, %s1861_s11 }
  0x10   : > { %s2181_s25 = scalar_lea.vmem %s2421_s0, %s2081_s22 }
  0x11   : > { %v2090_v8 = vld [vmem:[%s2181_s25 + $0x48] ss:$8 sps:$4 sm:$0xff]   ;;  %v2091_v11 = vld [vmem:[%s2181_s25 + $0xd8] ss:$8 sps:$4 sm:$0xff]   ;;  %v1767_v19 = vld [vmem:[%s2181_s25 + $0x94] sm:$0x1] }
  0x12   : > { %1917 = vmatprep.mubr.msk.bf16.mxu1 %vm212_vm1, %v2090_v8  ;;  %v2092_v12 = vld [vmem:[%s2181_s25 + $0x58] ss:$8 sps:$4 sm:$0xff]   ;;  %1957 = vmatprep.mubr.msk.bf16.mxu0 %vm212_vm1, %v2091_v11  ;;  %v2093_v13 = vld [vmem:[%s2181_s25 + $0xe8] ss:$8 sps:$4 sm:$0xff]   ;;  %v1769_v21 = vld [vmem:[%s2181_s25 + $0x9c] sm:$0x1] }
  0x13   : > { %1918 = vmatmul.mubr.msk.bf16.vlgmr.msra.gmra.mrb[0].mxu1 %vm212_vm1, %v2092_v12  ;;  %v2094_v14 = vld [vmem:[%s2181_s25 + $0x68] ss:$8 sps:$4 sm:$0xff]   ;;  %1958 = vmatmul.mubr.msk.bf16.vlgmr.msra.gmra.mrb[0].mxu0 %vm212_vm1, %v2093_v13  ;;  %v2095_v17 = vld [vmem:[%s2181_s25 + $0x78] ss:$8 sps:$4 sm:$0xff]   ;;  %v891_v24 = vshll.u32 %v1767_v19, 16  ;;  %v905_v27 = vshll.u32 %v1769_v21, 16 }
  0x14   : > { %1926 = vmatpush3.bf16.msra.mxu1 %v327_v6  ;;  %1966 = vmatpush3.bf16.msra.mxu0 %v1020_v7  ;;  %v1766_v18 = vld [vmem:[%s2181_s25 + $0x90] sm:$0xf]  ;;  %v1768_v20 = vld [vmem:[%s2181_s25 + $0x98] sm:$0xf]  ;;  %v1770_v28 = vld [vmem:[%s2181_s25 + $0xa0] sm:$0xf] }
  0x15   : > { %1921 = vmatprep.mubr.msk.bf16.mxu1 %vm212_vm1, %v2094_v14  ;;  %v882_v22 = vshrl.u32 %v1766_v18, 16  ;;  %v885_v23 = vshll.u32 %v1766_v18, 16  ;;  %v896_v25 = vshrl.u32 %v1768_v20, 16  ;;  %2078 = vmatprep.subr.msk.bf16.mxu0 %vm225_vm0, %v1799_v9  ;;  %v899_v26 = vshll.u32 %v1768_v20, 16  ;;  %v1771_v29 = vld [vmem:[%s2181_s25 + $0xa4] sm:$0x1] }
  0x16   : > { %2073 = vmatprep.subr.msk.bf16.mxu1 %vm225_vm0, %v1723_v10  ;;  %v893_v32 = vrot.slane %v891_v24, 5  ;;  %v1772_v34 = vld [vmem:[%s2181_s25 + $0xa8] sm:$0xf]  ;;  %v907_v36 = vrot.slane %v905_v27, 5  ;;  %v1773_v37 = vld [vmem:[%s2181_s25 + $0xac] sm:$0x1] }
  0x17   : > { %v884_v30 = vrot.slane %v882_v22, 4  ;;  %v887_v31 = vrot.slane %v885_v23, 5  ;;  %v898_v33 = vrot.slane %v896_v25, 4  ;;  %v901_v35 = vrot.slane %v899_v26, 5  ;;  %v2096_v53 = vld [vmem:[%s2181_s25] ss:$8 sps:$4 sm:$0xff]  }
  0x18   : > { %v910_v38 = vshrl.u32 %v1770_v28, 16  ;;  %v913_v39 = vshll.u32 %v1770_v28, 16  ;;  %v919_v41 = vshll.u32 %v1771_v29, 16  ;;  %v924_v42 = vshrl.u32 %v1772_v34, 16  ;;  %v2097_v59 = vld [vmem:[%s2181_s25 + $0x10] ss:$8 sps:$4 sm:$0xff]  }
  0x19   : > { %v888_v40 = vor.u32 %v887_v31, %v884_v30  ;;  %v927_v43 = vshll.u32 %v1772_v34, 16  ;;  %v902_v45 = vor.u32 %v901_v35, %v898_v33  ;;  %v933_v48 = vshll.u32 %v1773_v37, 16  ;;  %v1774_v60 = vld [vmem:[%s2181_s25 + $0xb0] sm:$0xf]  ;;  %v1775_v61 = vld [vmem:[%s2181_s25 + $0xb4] sm:$0x1] }
  0x1a   : > { %v912_v46 = vrot.slane %v910_v38, 4  ;;  %v915_v47 = vrot.slane %v913_v39, 5  ;;  %v921_v50 = vrot.slane %v919_v41, 5  ;;  %v926_v51 = vrot.slane %v924_v42, 4  ;;  %v1776_v0 = vld [vmem:[%s2181_s25 + $0xb8] sm:$0xf] }
  0x1b   : > { %1922 = vmatmul.mubr.msk.bf16.gmra.mrb[4].mxu1 %vm212_vm1, %v2095_v17  ;;  %v889_v49 = vrot.slane %v888_v40, 4  ;;  %v929_v52 = vrot.slane %v927_v43, 5  ;;  %v903_v54 = vrot.slane %v902_v45, 4  ;;  %v935_v56 = vrot.slane %v933_v48, 5  ;;  %v1777_v2 = vld [vmem:[%s2181_s25 + $0xbc] sm:$0x1] }
  0x1c   : > { %v916_v55 = vor.u32 %v915_v47, %v912_v46  ;;  %1927 = vmatprep.mubr.msk.bf16.mxu1 %vm212_vm1, %v2096_v53  ;;  %v938_v4 = vshrl.u32 %v1774_v60, 16  ;;  %v941_v7 = vshll.u32 %v1774_v60, 16  ;;  %v947_v8 = vshll.u32 %v1775_v61, 16  ;;  %v1778_v9 = vld [vmem:[%s2181_s25 + $0xc0] sm:$0xf] }
  0x1d   : > { %v894_v57 = vsel %vm2221_vm4, %v889_v49, %v893_v32  ;;  %v930_v58 = vor.u32 %v929_v52, %v926_v51  ;;  %v908_v62 = vsel %vm2221_vm4, %v903_v54, %v907_v36  ;;  %v2240_v10 = vld [vmem:[%s2422_s1 + $0x6] sm:$0x3]  ;;  %v952_v13 = vshrl.u32 %v1776_v0, 16  ;;  %v1779_v17 = vld [vmem:[%s2181_s25 + $0xc4] sm:$0x1] }
  0x1e   : > { %v917_v63 = vrot.slane %v916_v55, 4  ;;  %v1783_v5 = vcombine.low %v894_v57, %v908_v62  ;;  %v940_v12 = vrot.slane %v938_v4, 4  ;;  %v955_v14 = vshll.u32 %v1776_v0, 16  ;;  %v1780_v22 = vld [vmem:[%s2181_s25 + $0xc8] sm:$0xf] }
  0x1f   : > { %v931_v6 = vrot.slane %v930_v58, 4  ;;  %v943_v19 = vrot.slane %v941_v7, 5  ;;  %v949_v20 = vrot.slane %v947_v8, 5  ;;  %v961_v21 = vshll.u32 %v1777_v2, 16  ;;  %v2252_v23 = vld [vmem:[%s2422_s1 + $0xe] sm:$0x3] }
  0x20   : > { %v922_v11 = vsel %vm2221_vm4, %v917_v63, %v921_v50  ;;  %1967 = vmatprep.mubr.msk.bf16.mxu0 %vm212_vm1, %v1783_v5  ;;  %v954_v25 = vrot.slane %v952_v13, 4  ;;  %v957_v26 = vrot.slane %v955_v14, 5  ;;  %v1781_v27 = vld [vmem:[%s2181_s25 + $0xcc] sm:$0x1]  ;;  %v966_v28 = vshrl.u32 %v1778_v9, 16 }
  0x21   : > { %v936_v18 = vsel %vm2221_vm4, %v931_v6, %v935_v56  ;;  %v944_v29 = vor.u32 %v943_v19, %v940_v12  ;;  %v963_v30 = vrot.slane %v961_v21, 5  ;;  %v969_v31 = vshll.u32 %v1778_v9, 16  ;;  %v2100_v53 = vld [vmem:[%s2181_s25 + $0x8] ss:$8 sps:$4 sm:$0xff]   ;;  %v394_v54 = vld [vmem:[%s2181_s25] sm:$0xf] }
  0x22   : > { %v1784_v24 = vcombine.low %v922_v11, %v936_v18  ;;  %v975_v32 = vshll.u32 %v1779_v17, 16  ;;  %v958_v33 = vor.u32 %v957_v26, %v954_v25  ;;  %v968_v34 = vrot.slane %v966_v28, 4  ;;  %v395_v56 = vld [vmem:[%s2181_s25 + $0x4] sm:$0x1]  ;;  %v396_v57 = vld [vmem:[%s2181_s25 + $0x8] sm:$0xf] }
  0x23   : > { %1928 = vmatmul.mubr.msk.bf16.vlgmr.msra.gmra.mrb[0].mxu1 %vm212_vm1, %v2097_v59  ;;  %v980_v35 = vshrl.u32 %v1780_v22, 16  ;;  %v983_v36 = vshll.u32 %v1780_v22, 16  ;;  %v945_v37 = vrot.slane %v944_v29, 4  ;;  %v971_v38 = vrot.slane %v969_v31, 5  ;;  %v397_v58 = vld [vmem:[%s2181_s25 + $0xc] sm:$0x1] }
  0x24   : > { %1936 = vmatpush3.bf16.msra.mxu1 %v2204_v16  ;;  %1968 = vmatmul.mubr.msk.bf16.vlgmr.msra.gmra.mrb[0].mxu0 %vm212_vm1, %v1784_v24  ;;  %v989_v39 = vshll.u32 %v1781_v27, 16  ;;  %v2098_v16 = vld [vmem:[%s2181_s25 + $0x20] ss:$8 sps:$4 sm:$0xff]   ;;  %v959_v40 = vrot.slane %v958_v33, 4  ;;  %v977_v46 = vrot.slane %v975_v32, 5  ;;  %v414_v60 = vshrl.u32 %v394_v54, 16 }
  0x25   : > { %2074 = vmatprep.subr.msk.bf16.mxu1 %vm225_vm0, %v2240_v10  ;;  %1976 = vmatpush3.bf16.msra.mxu0 %v2201_v15  ;;  %v982_v41 = vrot.slane %v980_v35, 4  ;;  %v985_v42 = vrot.slane %v983_v36, 5  ;;  %v950_v43 = vsel %vm2221_vm4, %v945_v37, %v949_v20  ;;  %v972_v45 = vor.u32 %v971_v38, %v968_v34  ;;  %v2099_v15 = vld [vmem:[%s2181_s25 + $0x30] ss:$8 sps:$4 sm:$0xff]   ;;  %v399_v6 = vld [vmem:[%s2181_s25 + $0x14] sm:$0x1] }
  0x26   : > { %2079 = vmatprep.subr.msk.bf16.mxu0 %vm225_vm0, %v2252_v23  ;;  %1931 = vmatprep.mubr.msk.bf16.mxu1 %vm212_vm1, %v2098_v16  ;;  %v964_v47 = vsel %vm2221_vm4, %v959_v40, %v963_v30  ;;  %v991_v49 = vrot.slane %v989_v39, 5  ;;  %v417_v61 = vshll.u32 %v394_v54, 16  ;;  %v423_v62 = vshll.u32 %v395_v56, 16  ;;  %v398_v63 = vld [vmem:[%s2181_s25 + $0x10] sm:$0xf] }
  0x27   : > { %v986_v48 = vor.u32 %v985_v42, %v982_v41  ;;  %v1785_v50 = vcombine.low %v950_v43, %v964_v47  ;;  %v973_v51 = vrot.slane %v972_v45, 4  ;;  %v428_v2 = vshrl.u32 %v396_v57, 16  ;;  %v400_v11 = vld [vmem:[%s2181_s25 + $0x18] sm:$0xf]  ;;  %v401_v18 = vld [vmem:[%s2181_s25 + $0x1c] sm:$0x1] }
  0x28   : > { %v431_v4 = vshll.u32 %v396_v57, 16  ;;  %v437_v5 = vshll.u32 %v397_v58, 16  ;;  %v416_v7 = vrot.slane %v414_v60, 4  ;;  %v419_v8 = vrot.slane %v417_v61, 5  ;;  %v2101_v29 = vld [vmem:[%s2181_s25 + $0x18] ss:$8 sps:$4 sm:$0xff]  }
  0x29   : > { %v987_v52 = vrot.slane %v986_v48, 4  ;;  %1971 = vmatprep.mubr.msk.bf16.mxu0 %vm212_vm1, %v1785_v50  ;;  %v978_v55 = vsel %vm2221_vm4, %v973_v51, %v977_v46  ;;  %v425_v9 = vrot.slane %v423_v62, 5  ;;  %v442_v12 = vshrl.u32 %v398_v63, 16  ;;  %v2102_v37 = vld [vmem:[%s2181_s25 + $0x28] ss:$8 sps:$4 sm:$0xff]  }
  0x2a   : > { %v430_v13 = vrot.slane %v428_v2, 4  ;;  %v433_v14 = vrot.slane %v431_v4, 5  ;;  %v439_v17 = vrot.slane %v437_v5, 5  ;;  %v445_v19 = vshll.u32 %v398_v63, 16  ;;  %v402_v40 = vld [vmem:[%s2181_s25 + $0x20] sm:$0xf] }
  0x2b   : > { %1932 = vmatmul.mubr.msk.bf16.gmra.mrb[4].mxu1 %vm212_vm1, %v2099_v15  ;;  %v992_v59 = vsel %vm2221_vm4, %v987_v52, %v991_v49  ;;  %v420_v20 = vor.u32 %v419_v8, %v416_v7  ;;  %v444_v21 = vrot.slane %v442_v12, 4  ;;  %v451_v22 = vshll.u32 %v399_v6, 16  ;;  %v403_v45 = vld [vmem:[%s2181_s25 + $0x24] sm:$0x1]  ;;  %v404_v46 = vld [vmem:[%s2181_s25 + $0x28] sm:$0xf] }
  0x2c   : > { %v1786_v0 = vcombine.low %v978_v55, %v992_v59  ;;  %v456_v24 = vshrl.u32 %v400_v11, 16  ;;  %v434_v25 = vor.u32 %v433_v14, %v430_v13  ;;  %v447_v26 = vrot.slane %v445_v19, 5  ;;  %v405_v48 = vld [vmem:[%s2181_s25 + $0x2c] sm:$0x1]  ;;  %v406_v55 = vld [vmem:[%s2181_s25 + $0x30] sm:$0xf] }
  0x2d   : > { %v459_v27 = vshll.u32 %v400_v11, 16  ;;  %v465_v28 = vshll.u32 %v401_v18, 16  ;;  %v1258_v30 = vsel %vm225_vm0, %v2252_v23, 0  ;;  %v421_v31 = vrot.slane %v420_v20, 4  ;;  %v2299_v23 = vld [vmem:[%s2422_s1 + $0x10] sm:$0x3] }
  0x2e   : > { %1972 = vmatmul.mubr.msk.bf16.gmra.mrb[4].mxu0 %vm212_vm1, %v1786_v0  ;;  %v453_v32 = vrot.slane %v451_v22, 5  ;;  %v458_v33 = vrot.slane %v456_v24, 4  ;;  %v435_v34 = vrot.slane %v434_v25, 4  ;;  %v448_v35 = vor.u32 %v447_v26, %v444_v21  ;;  %v407_v60 = vld [vmem:[%s2181_s25 + $0x34] sm:$0x1] }
  0x2f   : > { %1977 = vmatprep.mubr.msk.bf16.mxu0 %vm212_vm1, %v2100_v53  ;;  %v461_v36 = vrot.slane %v459_v27, 5  ;;  %v426_v38 = vsel %vm2221_vm4, %v421_v31, %v425_v9  ;;  %v467_v39 = vrot.slane %v465_v28, 5  ;;  %v671_v16 = vsel %vm225_vm0, %v2240_v10, 0  ;;  %v2103_v62 = vld [vmem:[%s2181_s25 + $0x38] ss:$8 sps:$4 sm:$0xff]  }
  0x30   : > { %v440_v41 = vsel %vm2221_vm4, %v435_v34, %v439_v17  ;;  %v449_v42 = vrot.slane %v448_v35, 4  ;;  %v470_v15 = vshrl.u32 %v402_v40, 16  ;;  %v473_v49 = vshll.u32 %v402_v40, 16  ;;  %v408_v0 = vld [vmem:[%s2181_s25 + $0x38] sm:$0xf] }
  0x31   : > { %v462_v43 = vor.u32 %v461_v36, %v458_v33  ;;  %v1724_v47 = vcombine.low %v426_v38, %v440_v41  ;;  %v479_v10 = vshll.u32 %v403_v45, 16  ;;  %v484_v50 = vshrl.u32 %v404_v46, 16  ;;  %v409_v2 = vld [vmem:[%s2181_s25 + $0x3c] sm:$0x1]  ;;  %v2104_v14 = vld [vmem:[%s2181_s25 + $0x50] ss:$8 sps:$4 sm:$0xff]  }
  0x32   : > { %v454_v51 = vsel %vm2221_vm4, %v449_v42, %v453_v32  ;;  %v472_v53 = vrot.slane %v470_v15, 4  ;;  %v487_v54 = vshll.u32 %v404_v46, 16  ;;  %v475_v56 = vrot.slane %v473_v49, 5  ;;  %v2105_v35 = vld [vmem:[%s2181_s25 + $0x60] ss:$8 sps:$4 sm:$0xff]  }
  0x33   : > { %v463_v52 = vrot.slane %v462_v43, 4  ;;  %1937 = vmatprep.mubr.msk.bf16.mxu1 %vm212_vm1, %v1724_v47  ;;  %v481_v57 = vrot.slane %v479_v10, 5  ;;  %v486_v58 = vrot.slane %v484_v50, 4  ;;  %v493_v59 = vshll.u32 %v405_v48, 16  ;;  %v1826_v40 = vld [vmem:[%s2181_s25 + $0xc] sm:$0x1] }
  0x34   : > { %v489_v63 = vrot.slane %v487_v54, 5  ;;  %v498_v4 = vshrl.u32 %v406_v55, 16  ;;  %v476_v6 = vor.u32 %v475_v56, %v472_v53  ;;  %v501_v8 = vshll.u32 %v406_v55, 16  ;;  %v1827_v41 = vld [vmem:[%s2181_s25 + $0x10] sm:$0xf] }
  0x35   : > { %v468_v61 = vsel %vm2221_vm4, %v463_v52, %v467_v39  ;;  %v495_v7 = vrot.slane %v493_v59, 5  ;;  %v507_v12 = vshll.u32 %v407_v60, 16  ;;  %v512_v13 = vshrl.u32 %v408_v0, 16  ;;  %v2108_v39 = vld [vmem:[%s2181_s25 + $0x70] ss:$8 sps:$4 sm:$0xff]  }
  0x36   : > { %1978 = vmatmul.mubr.msk.bf16.vlgmr.msra.gmra.mrb[0].mxu0 %vm212_vm1, %v2101_v29  ;;  %v1725_v5 = vcombine.low %v454_v51, %v468_v61  ;;  %v490_v9 = vor.u32 %v489_v63, %v486_v58  ;;  %v500_v11 = vrot.slane %v498_v4, 4  ;;  %v477_v17 = vrot.slane %v476_v6, 4  ;;  %v1828_v42 = vld [vmem:[%s2181_s25 + $0x14] sm:$0x1]  ;;  %v1829_v48 = vld [vmem:[%s2181_s25 + $0x18] sm:$0xf] }
  0x37   : > { %1986 = vmatpush3.bf16.msra.mxu0 %v1258_v30  ;;  %1981 = vmatprep.mubr.msk.bf16.mxu0 %vm212_vm1, %v2102_v37  ;;  %v503_v18 = vrot.slane %v501_v8, 5  ;;  %v515_v19 = vshll.u32 %v408_v0, 16  ;;  %v521_v20 = vshll.u32 %v409_v2, 16  ;;  %v514_v22 = vrot.slane %v512_v13, 4  ;;  %v2106_v37 = vld [vmem:[%s2181_s25 + $0x90] ss:$8 sps:$4 sm:$0xff]  }
  0x38   : > { %2080 = vmatprep.subr.msk.bf16.mxu0 %vm225_vm0, %v2299_v23  ;;  %1938 = vmatmul.mubr.msk.bf16.vlgmr.msra.gmra.mrb[0].mxu1 %vm212_vm1, %v1725_v5  ;;  %v491_v21 = vrot.slane %v490_v9, 4  ;;  %v482_v24 = vsel %vm2221_vm4, %v477_v17, %v481_v57  ;;  %v509_v26 = vrot.slane %v507_v12, 5  ;;  %v1488_v34 = vsel %vm225_vm0, %v2299_v23, 0  ;;  %v1830_v50 = vld [vmem:[%s2181_s25 + $0x1c] sm:$0x1] }
  0x39   : > { %1946 = vmatpush3.bf16.msra.mxu1 %v671_v16  ;;  %v504_v25 = vor.u32 %v503_v18, %v500_v11  ;;  %v517_v27 = vrot.slane %v515_v19, 5  ;;  %v523_v32 = vrot.slane %v521_v20, 5  ;;  %v1825_v16 = vld [vmem:[%s2181_s25 + $0x8] sm:$0xf]  ;;  %v1359_v23 = vshll.u32 %v1826_v40, 16 }
  0x3a   : > { %2076 = vmatprep.subr.msk.bf16.mxu1 %vm225_vm0, %v2156_v1  ;;  %v496_v28 = vsel %vm2221_vm4, %v491_v21, %v495_v7  ;;  %v1350_v43 = vshrl.u32 %v1825_v16, 16  ;;  %v1353_v45 = vshll.u32 %v1825_v16, 16  ;;  %v1364_v46 = vshrl.u32 %v1827_v41, 16  ;;  %v1831_v51 = vld [vmem:[%s2181_s25 + $0x20] sm:$0xf] }
  0x3b   : > { %v1726_v29 = vcombine.low %v482_v24, %v496_v28  ;;  %v505_v30 = vrot.slane %v504_v25, 4  ;;  %v518_v31 = vor.u32 %v517_v27, %v514_v22  ;;  %v1367_v15 = vshll.u32 %v1827_v41, 16  ;;  %v2107_v52 = vld [vmem:[%s2181_s25 + $0xa0] ss:$8 sps:$4 sm:$0xff]   ;;  %v1832_v58 = vld [vmem:[%s2181_s25 + $0x24] sm:$0x1] }
  0x3c   : > { %v1373_v47 = vshll.u32 %v1828_v42, 16  ;;  %v1352_v49 = vrot.slane %v1350_v43, 4  ;;  %v1355_v10 = vrot.slane %v1353_v45, 5  ;;  %v2109_v53 = vld [vmem:[%s2181_s25 + $0x80] ss:$8 sps:$4 sm:$0xff]   ;;  %v1361_v54 = vrot.slane %v1359_v23, 5 }
  0x3d   : > { %1941 = vmatprep.mubr.msk.bf16.mxu1 %vm212_vm1, %v1726_v29  ;;  %v510_v1 = vsel %vm2221_vm4, %v505_v30, %v509_v26  ;;  %v519_v33 = vrot.slane %v518_v31, 4  ;;  %v1366_v55 = vrot.slane %v1364_v46, 4  ;;  %v1369_v56 = vrot.slane %v1367_v15, 5  ;;  %v2110_v5 = vld [vmem:[%s2181_s25 + $0xb0] ss:$8 sps:$4 sm:$0xff]  }
  0x3e   : > { %1982 = vmatmul.mubr.msk.bf16.gmra.mrb[4].mxu0 %vm212_vm1, %v2103_v62  ;;  %v1375_v57 = vrot.slane %v1373_v47, 5  ;;  %v1356_v59 = vor.u32 %v1355_v10, %v1352_v49  ;;  %v1378_v60 = vshrl.u32 %v1829_v48, 16  ;;  %v1381_v61 = vshll.u32 %v1829_v48, 16  ;;  %v1833_v17 = vld [vmem:[%s2181_s25 + $0x28] sm:$0xf] }
  0x3f   : > { %1987 = vmatprep.mubr.msk.bf16.mxu0 %vm212_vm1, %v2104_v14  ;;  %v524_v36 = vsel %vm2221_vm4, %v519_v33, %v523_v32  ;;  %v1387_v62 = vshll.u32 %v1830_v50, 16  ;;  %v1370_v63 = vor.u32 %v1369_v56, %v1366_v55  ;;  %v1392_v0 = vshrl.u32 %v1831_v51, 16  ;;  %v1834_v20 = vld [vmem:[%s2181_s25 + $0x2c] sm:$0x1]  ;;  %v1835_v21 = vld [vmem:[%s2181_s25 + $0x30] sm:$0xf] }
  0x40   : > { %v1727_v38 = vcombine.low %v510_v1, %v524_v36  ;;  %v1395_v2 = vshll.u32 %v1831_v51, 16  ;;  %v1401_v4 = vshll.u32 %v1832_v58, 16  ;;  %v1357_v6 = vrot.slane %v1356_v59, 4  ;;  %v1836_v22 = vld [vmem:[%s2181_s25 + $0x34] sm:$0x1] }
  0x41   : > { %v1380_v7 = vrot.slane %v1378_v60, 4  ;;  %v1383_v8 = vrot.slane %v1381_v61, 5  ;;  %v1389_v9 = vrot.slane %v1387_v62, 5  ;;  %v1371_v11 = vrot.slane %v1370_v63, 4  ;;  %v2111_v32 = vld [vmem:[%s2181_s25 + $0xc0] ss:$8 sps:$4 sm:$0xff]  }
  0x42   : > { %1942 = vmatmul.mubr.msk.bf16.gmra.mrb[4].mxu1 %vm212_vm1, %v1727_v38  ;;  %v1394_v12 = vrot.slane %v1392_v0, 4  ;;  %v1397_v13 = vrot.slane %v1395_v2, 5  ;;  %v1403_v14 = vrot.slane %v1401_v4, 5  ;;  %v1362_v18 = vsel %vm2221_vm4, %v1357_v6, %v1361_v54  ;;  %v1837_v36 = vld [vmem:[%s2181_s25 + $0x38] sm:$0xf] }
  0x43   : > { %1947 = vmatprep.mubr.msk.bf16.mxu1 %vm212_vm1, %v2106_v37  ;;  %v1384_v19 = vor.u32 %v1383_v8, %v1380_v7  ;;  %v1376_v24 = vsel %vm2221_vm4, %v1371_v11, %v1375_v57  ;;  %v1406_v26 = vshrl.u32 %v1833_v17, 16  ;;  %v1409_v27 = vshll.u32 %v1833_v17, 16  ;;  %v1838_v16 = vld [vmem:[%s2181_s25 + $0x3c] sm:$0x1]  ;;  %v1839_v43 = vld [vmem:[%s2181_s25 + $0x40] sm:$0xf] }
  0x44   : > { %v1398_v25 = vor.u32 %v1397_v13, %v1394_v12  ;;  %v1842_v28 = vcombine.low %v1362_v18, %v1376_v24  ;;  %v1415_v30 = vshll.u32 %v1834_v20, 16  ;;  %v1420_v31 = vshrl.u32 %v1835_v21, 16  ;;  %v1840_v45 = vld [vmem:[%s2181_s25 + $0x44] sm:$0x1]  ;;  %v2112_v15 = vld [vmem:[%s2181_s25 + $0xf8] ss:$8 sps:$4 sm:$0xff]  }
  0x45   : > { %v1385_v29 = vrot.slane %v1384_v19, 4  ;;  %v1408_v33 = vrot.slane %v1406_v26, 4  ;;  %v1434_v23 = vshrl.u32 %v1837_v36, 16  ;;  %v1437_v48 = vshll.u32 %v1837_v36, 16  ;;  %v2113_v8 = vld [vmem:[%s2181_s25 + $0x108] ss:$8 sps:$4 sm:$0xff]  }
  0x46   : > { %1988 = vmatmul.mubr.msk.bf16.vlgmr.msra.gmra.mrb[0].mxu0 %vm212_vm1, %v2105_v35  ;;  %v1399_v1 = vrot.slane %v1398_v25, 4  ;;  %v1423_v35 = vshll.u32 %v1835_v21, 16  ;;  %v1417_v37 = vrot.slane %v1415_v30, 5  ;;  %v1422_v38 = vrot.slane %v1420_v31, 4  ;;  %v1850_v18 = vld [vmem:[%s2423_s2] ss:$0 sm:$0xff] }
  0x47   : > { %1996 = vmatpush3.bf16.msra.mxu0 %v1488_v34  ;;  %1991 = vmatprep.mubr.msk.bf16.mxu0 %vm212_vm1, %v2108_v39  ;;  %v1411_v34 = vrot.slane %v1409_v27, 5  ;;  %v1429_v39 = vshll.u32 %v1836_v22, 16  ;;  %v1443_v49 = vshll.u32 %v1838_v16, 16  ;;  %v1436_v51 = vrot.slane %v1434_v23, 4 }
  0x48   : > { %v1404_v40 = vsel %vm2221_vm4, %v1399_v1, %v1403_v14  ;;  %v1425_v42 = vrot.slane %v1423_v35, 5  ;;  %v1451_v54 = vshll.u32 %v1839_v43, 16  ;;  %v1457_v55 = vshll.u32 %v1840_v45, 16 }
  0x49   : > { %v1412_v41 = vor.u32 %v1411_v34, %v1408_v33  ;;  %v1431_v47 = vrot.slane %v1429_v39, 5  ;;  %v1445_v60 = vrot.slane %v1443_v49, 5 }
  0x4a   : > { %1948 = vmatmul.mubr.msk.bf16.vlgmr.msra.gmra.mrb[0].mxu1 %vm212_vm1, %v2107_v52  ;;  %v1426_v50 = vor.u32 %v1425_v42, %v1422_v38  ;;  %v1448_v52 = vshrl.u32 %v1839_v43, 16  ;;  %v1453_v61 = vrot.slane %v1451_v54, 5  ;;  %v1459_v4 = vrot.slane %v1457_v55, 5 }
  0x4b   : > { %2006 = vmatpush3.bf16.msra.mxu1 %v2164_v3  ;;  %1951 = vmatprep.mubr.msk.bf16.mxu1 %vm212_vm1, %v2110_v5  ;;  %v1390_v3 = vsel %vm2221_vm4, %v1385_v29, %v1389_v9  ;;  %v1413_v10 = vrot.slane %v1412_v41, 4 }
  0x4c   : > { %v1843_v46 = vcombine.low %v1390_v3, %v1404_v40  ;;  %v1427_v57 = vrot.slane %v1426_v50, 4  ;;  %v1450_v58 = vrot.slane %v1448_v52, 4 }
  0x4d   : > { %v1418_v56 = vsel %vm2221_vm4, %v1413_v10, %v1417_v37 }
  0x4e   : > { %1992 = vmatmul.mubr.msk.bf16.gmra.mrb[4].mxu0 %vm212_vm1, %v2109_v53  ;;  %v1439_v53 = vrot.slane %v1437_v48, 5  ;;  %v1432_v62 = vsel %vm2221_vm4, %v1427_v57, %v1431_v47  ;;  %v1454_v2 = vor.u32 %v1453_v61, %v1450_v58 }
  0x4f   : > { %1997 = vmatprep.mubr.msk.bf16.mxu0 %vm212_vm1, %v1842_v28  ;;  %v1844_v63 = vcombine.low %v1418_v56, %v1432_v62 }
  0x50   : > { %v1440_v59 = vor.u32 %v1439_v53, %v1436_v51  ;;  %v1455_v6 = vrot.slane %v1454_v2, 4 }
  0x52   : > { %1952 = vmatmul.mubr.msk.bf16.gmra.mrb[4].mxu1 %vm212_vm1, %v2111_v32  ;;  %v1441_v0 = vrot.slane %v1440_v59, 4  ;;  %v1460_v7 = vsel %vm2221_vm4, %v1455_v6, %v1459_v4 }
  0x53   : > { %1961 = vmatprep.mubr.msk.bf16.mxu1 %vm212_vm1, %v2112_v15 }
  0x54   : > { %v1446_v5 = vsel %vm2221_vm4, %v1441_v0, %v1445_v60 }
  0x55   : > { %v1845_v9 = vcombine.low %v1446_v5, %v1460_v7 }
  0x56   : > { %1998 = vmatmul.mubr.msk.bf16.vlgmr.msra.gmra.mrb[0].mxu0 %vm212_vm1, %v1843_v46 }
  0x57   : > { %2001 = vmatprep.mubr.msk.bf16.mxu0 %vm212_vm1, %v1844_v63 }
  0x5e   : > { %2002 = vmatmul.mubr.msk.bf16.gmra.mrb[4].mxu0 %vm212_vm1, %v1845_v9  ;;  %1962 = vmatmul.mubr.msk.bf16.vlgmr.msra.gmra.mrb[4].mxu1 %vm212_vm1, %v2113_v8 }
 0x11d   : > { %v1949_v11 = vpop.f32.mrb[0].mxu1 }
 0x11e   : > { %v707_v12 = vpop.f32.mrb[1].mxu1 }
 0x11f   : > { %v1950_v13 = vpop.f32.mrb[2].mxu1 }
 0x120   : > { %v710_v14 = vpop.f32.mrb[3].mxu1 }
 0x129   : > { %v1999_v17 = vpop.f32.mrb[0].mxu0 }
 0x12a   : > { %v2007_v19 = vadd.f32 %v1999_v17, %v1949_v11  ;;  %v1524_v20 = vpop.f32.mrb[1].mxu0 }
 0x12b   : > { %v2008_v44 = vadd.f32 %v1524_v20, %v707_v12  ;;  %v2000_v21 = vpop.f32.mrb[2].mxu0 }
 0x12c   : > { %v1572_v22 = vadd.f32 %v2007_v19, %v1850_v18  ;;  %v2009_v24 = vadd.f32 %v2000_v21, %v1950_v13  ;;  %v1527_v25 = vpop.f32.mrb[3].mxu0 }
 0x12d   : > { %v1570_v26 = vadd.f32 %v2008_v44, %v1850_v18  ;;  %v2010_v27 = vadd.f32 %v1527_v25, %v710_v14 }
 0x12e   : > { %v1580_v28 = vmax.f32 %v1572_v22, 0.0  ;;  %v1573_v29 = vadd.f32 %v2009_v24, %v1850_v18 }
 0x12f   : > { %v1578_v30 = vmax.f32 %v1570_v26, 0.0  ;;  %v1571_v31 = vadd.f32 %v2010_v27, %v1850_v18 }
 0x130   : > { %v1588_v32 = vmin.f32 %v1580_v28, 6.0  ;;  %v1581_v1 = vmax.f32 %v1573_v29, 0.0 }
 0x131   : > { %v1586_v33 = vmin.f32 %v1578_v30, 6.0  ;;  %v1579_v34 = vmax.f32 %v1571_v31, 0.0  ;;  %v2003_v38 = vpop.f32.mrb[4].mxu0  ;;  %v1963_v41 = vpop.f32.mrb[4].mxu1 }
 0x132   : > { %v1864_v35 = vpack.c.bf16 %v1588_v32, %v1588_v32  ;;  %v1589_v36 = vmin.f32 %v1581_v1, 6.0  ;;  %v1540_v16 = vpop.f32.mrb[5].mxu0  ;;  %v2011_v43 = vadd.f32 %v2003_v38, %v1963_v41  ;;  %v842_v45 = vpop.f32.mrb[5].mxu1 }
 0x133   : > { %v1862_v3 = vpack.c.bf16 %v1586_v33, %v1586_v33  ;;  %v1587_v37 = vmin.f32 %v1579_v34, 6.0  ;;  %v2004_v42 = vpop.f32.mrb[6].mxu0  ;;  %v2012_v46 = vadd.f32 %v1540_v16, %v842_v45  ;;  %v1964_v15 = vpop.f32.mrb[6].mxu1 }
 0x134   : > { %1629 = vst.msk [vmem:[%s2400_s16 + $0x8] sm:$0xf] %vm1626_vm5, %v1864_v35  ;;  %v1865_v39 = vpack.c.bf16 %v1589_v36, %v1589_v36  ;;  %v1543_v23 = vpop.f32.mrb[7].mxu0  ;;  %v1576_v47 = vadd.f32 %v2011_v43, %v1850_v18  ;;  %v2013_v48 = vadd.f32 %v2004_v42, %v1964_v15  ;;  %v845_v49 = vpop.f32.mrb[7].mxu1 }
 0x135   : > { %1627 = vst.msk [vmem:[%s2400_s16] sm:$0xf] %vm1626_vm5, %v1862_v3  ;;  %v1863_v40 = vpack.c.bf16 %v1587_v37, %v1587_v37  ;;  %v1574_v10 = vadd.f32 %v2012_v46, %v1850_v18  ;;  %v2014_v50 = vadd.f32 %v1543_v23, %v845_v49 }
 0x136   : > { %1630 = vst.msk [vmem:[%s2400_s16 + $0xc] sm:$0xf] %vm1626_vm5, %v1865_v39  ;;  %v1584_v51 = vmax.f32 %v1576_v47, 0.0  ;;  %v1577_v52 = vadd.f32 %v2013_v48, %v1850_v18 }
 0x137   : > { %1628 = vst.msk [vmem:[%s2400_s16 + $0x4] sm:$0xf] %vm1626_vm5, %v1863_v40  ;;  %v1582_v53 = vmax.f32 %v1574_v10, 0.0  ;;  %v1575_v54 = vadd.f32 %v2014_v50, %v1850_v18 }
 0x138   : > { %v1592_v55 = vmin.f32 %v1584_v51, 6.0  ;;  %v1585_v56 = vmax.f32 %v1577_v52, 0.0 }
 0x139   : > { %v1590_v57 = vmin.f32 %v1582_v53, 6.0  ;;  %v1583_v58 = vmax.f32 %v1575_v54, 0.0 }
 0x13a   : > { %v1868_v59 = vpack.c.bf16 %v1592_v55, %v1592_v55  ;;  %v1593_v60 = vmin.f32 %v1585_v56, 6.0 }
 0x13b   : > { %v1866_v61 = vpack.c.bf16 %v1590_v57, %v1590_v57  ;;  %v1591_v62 = vmin.f32 %v1583_v58, 6.0 }
 0x13c   : > { %1633 = vst.msk [vmem:[%s2400_s16 + $0x18] sm:$0xf] %vm1626_vm5, %v1868_v59  ;;  %v1869_v63 = vpack.c.bf16 %v1593_v60, %v1593_v60 }
 0x13d   : > { %1631 = vst.msk [vmem:[%s2400_s16 + $0x10] sm:$0xf] %vm1626_vm5, %v1866_v61  ;;  %v1867_v0 = vpack.c.bf16 %v1591_v62, %v1591_v62 }
 0x13e   : > { %1634 = vst.msk [vmem:[%s2400_s16 + $0x1c] sm:$0xf] %vm1626_vm5, %v1869_v63 }
 0x13f   : > { %1632 = vst.msk [vmem:[%s2400_s16 + $0x14] sm:$0xf] %vm1626_vm5, %v1867_v0 }
 0x140 PF: > { %s13_s12 = sadd.s32 1, %s2120_s12  }
 0x141   : > { %p10_p4 = scmp.ge.s32.totalorder %s13_s12, 4  }
 0x143   :  { %12 = sbr.rel (!%p10_p4) target bundleno = 1 (0x1), region = 75 }

// kernel: _lambda_.22
= control target key start
LH: loop header
LB: loop body
LE: loop exit
PB: predicated region body
PF: predicated region fallthrough
CT: control target
= control target key end

     0   :  { %v205_v1 = vmov 0   ;;  %vm66_vm0 = vcmask 1043456   ;;  %vm59_vm1 = vcmask 195584   ;;  %v24_v9 = vlaneseq  ;;  %s261_s1 = inlined_call_operand.vmem [shape: bf16[24,144], index: 1, kind: input, shape index: {}]   ;;  %s262_s0 = inlined_call_operand.vmem [shape: bf16[32,24], index: 0, kind: input, shape index: {}]   ;;  %s263_s2 = inlined_call_operand.vmem [shape: f32[1,144], index: 2, kind: input, shape index: {}]   ;;  %s264_s3 = inlined_call_operand.vmem [shape: bf16[32,144], index: 3, kind: output, shape index: {}]  }
   0x1   :  { %v21_v0 = vld [vmem:[%s261_s1 + $0x10] sm:$0xff]  ;;  %105 = vmatprep.mubr.bf16.mxu0 %v205_v1  ;;  %115 = vmatprep.mubr.bf16.mxu1 %v205_v1  ;;  %v198_v2 = vld [vmem:[%s261_s1 + $0x4] ss:$8 sps:$4 sm:$0xff]   ;;  %v200_v3 = vld [vmem:[%s261_s1] ss:$8 sps:$4 sm:$0xff]   ;;  %vm166_vm2 = vcmask 130052  }
   0x2   :  { %v181_v4 = vcombine.high %v21_v0, %v21_v0  ;;  %v180_v5 = vcombine.low %v21_v0, %v21_v0  ;;  %73 = vmatprep.subr.bf16.mxu0 %v198_v2  ;;  %193 = vmatprep.subr.bf16.mxu1 %v198_v2  ;;  %v203_v7 = vld [vmem:[%s262_s0] sm:$0xff]   ;;  %v204_v8 = vld [vmem:[%s262_s0 + $0x8] sm:$0xff]   ;;  %v25_v10 = vshrl.u32 %v24_v9, 7  ;;  %vm167_vm3 = vmor %vm166_vm2, %vm66_vm0 }
   0x3   :  { %74 = vmatpush1.bf16.msra.mxu0 %v200_v3  ;;  %195 = vmatpush1.bf16.msra.mxu1 %v200_v3  ;;  %v22_v12 = vld [vmem:[%s263_s2] sm:$0x3] }
   0x4   :  { %182 = vmatprep.subr.msk.bf16.mxu0 %vm66_vm0, %v181_v4  ;;  %194 = vmatprep.subr.msk.bf16.mxu1 %vm66_vm0, %v181_v4  ;;  %v68_v6 = vsel %vm66_vm0, %v180_v5, 0  ;;  %v26_v11 = vsub.s32 0, %v25_v10  ;;  %v30_v13 = vsub.s32 1, %v25_v10 }
   0x6   :  { %v27_v14 = vrot.slane %v22_v12, %v26_v11  ;;  %v31_v15 = vrot.slane %v22_v12, %v30_v13 }
   0x7   :  { %76 = vmatpush1.bf16.msra.mxu0 %v68_v6  ;;  %196 = vmatpush1.bf16.msra.mxu1 %v68_v6 }
   0xa   :  { %183 = vmatmul.mubr.msk.bf16.vlgmr.msra.gmra.mrb[0].mxu0 %vm59_vm1, %v203_v7  ;;  %184 = vmatmul.mubr.msk.bf16.vlgmr.msra.gmra.mrb[0].mxu1 %vm59_vm1, %v204_v8 }
  0xdd   :  { %v107_v16 = vpop.f32.mrb[0].mxu0  ;;  %v117_v17 = vpop.f32.mrb[0].mxu1 }
  0xde   :  { %v108_v18 = vadd.f32 %v107_v16, %v27_v14  ;;  %v118_v19 = vadd.f32 %v117_v17, %v27_v14  ;;  %v109_v20 = vpop.f32.mrb[1].mxu0  ;;  %v119_v21 = vpop.f32.mrb[1].mxu1 }
  0xdf   :  { %v110_v22 = vadd.f32 %v109_v20, %v31_v15  ;;  %v120_v23 = vadd.f32 %v119_v21, %v31_v15  ;;  %v111_v24 = vpop.f32.mrb[2].mxu0  ;;  %v121_v25 = vpop.f32.mrb[2].mxu1 }
  0xe0   :  { %v126_v26 = vmax.f32 %v108_v18, 0.0  ;;  %v130_v27 = vmax.f32 %v118_v19, 0.0  ;;  %v112_v28 = vadd.f32 %v111_v24, %v27_v14  ;;  %v122_v29 = vadd.f32 %v121_v25, %v27_v14  ;;  %v113_v30 = vpop.f32.mrb[3].mxu0  ;;  %v123_v31 = vpop.f32.mrb[3].mxu1 }
  0xe1   :  { %v127_v32 = vmax.f32 %v110_v22, 0.0  ;;  %v131_v33 = vmax.f32 %v120_v23, 0.0  ;;  %v114_v34 = vadd.f32 %v113_v30, %v31_v15  ;;  %v124_v35 = vadd.f32 %v123_v31, %v31_v15 }
  0xe2   :  { %v134_v36 = vmin.f32 %v126_v26, 6.0  ;;  %v138_v37 = vmin.f32 %v130_v27, 6.0  ;;  %v128_v38 = vmax.f32 %v112_v28, 0.0  ;;  %v132_v39 = vmax.f32 %v122_v29, 0.0 }
  0xe3   :  { %v135_v40 = vmin.f32 %v127_v32, 6.0  ;;  %v139_v41 = vmin.f32 %v131_v33, 6.0  ;;  %v129_v42 = vmax.f32 %v114_v34, 0.0  ;;  %v133_v43 = vmax.f32 %v124_v35, 0.0 }
  0xe4   :  { %v136_v44 = vmin.f32 %v128_v38, 6.0  ;;  %v140_v45 = vmin.f32 %v132_v39, 6.0 }
  0xe5   :  { %v189_v46 = vpack.c.bf16 %v135_v40, %v134_v36  ;;  %v191_v47 = vpack.c.bf16 %v139_v41, %v138_v37  ;;  %v137_v48 = vmin.f32 %v129_v42, 6.0  ;;  %v141_v49 = vmin.f32 %v133_v43, 6.0 }
  0xe7   :  { %168 = vst.msk [vmem:[%s264_s3] sm:$0xff] %vm167_vm3, %v189_v46  ;;  %170 = vst.msk [vmem:[%s264_s3 + $0x10] sm:$0xff] %vm167_vm3, %v191_v47  ;;  %v190_v50 = vpack.c.bf16 %v137_v48, %v136_v44  ;;  %v192_v51 = vpack.c.bf16 %v141_v49, %v140_v45 }
  0xe9   :  { %169 = vst.msk [vmem:[%s264_s3 + $0x8] sm:$0xff] %vm167_vm3, %v190_v50  ;;  %171 = vst.msk [vmem:[%s264_s3 + $0x18] sm:$0xff] %vm167_vm3, %v192_v51 }

// kernel: _lambda_.20
= control target key start
LH: loop header
LB: loop body
LE: loop exit
PB: predicated region body
PF: predicated region fallthrough
CT: control target
= control target key end

     0   :  { %s825_s18 = smov 0   ;;  %s942_s0 = inlined_call_operand.vmem [shape: bf16[2,4,5,5,96], index: 0, kind: input, shape index: {}]   ;;  %s943_s1 = inlined_call_operand.vmem [shape: f32[9,1,96], index: 1, kind: input, shape index: {}]   ;;  %s944_s2 = inlined_call_operand.vmem [shape: f32[1,96], index: 2, kind: input, shape index: {}]   ;;  %s945_s3 = inlined_call_operand.vmem [shape: bf16[96,24], index: 3, kind: input, shape index: {}]   ;;  %s946_s4 = inlined_call_operand.vmem [shape: f32[1,24], index: 4, kind: input, shape index: {}]   ;;  %s947_s5 = inlined_call_operand.vmem [shape: bf16[2,16,24], index: 5, kind: output, shape index: {}]  }
   0x1 LB: > { %s676_s19 = sadd.s32 4294967295, %s791_s18   ;;  %p680_p0 = scmp.ge.s32.totalorder %s791_s18, 1  ;;  %s791_s18 = sphi %s825_s18, %s15_s18  }
   0x2   : > { %p187_p1 = scmp.lt.s32.totalorder %s791_s18, 3 }
   0x4   : > { %p188_p2 = pnand %p680_p0, %p187_p1 }
   0x5   : > { %v779_v0 = vld [vmem:[%s945_s3] sm:$0xff] (!%p188_p2)   ;;  %v793_v1 = vmov (!%p188_p2), 0.0   ;;  %v780_v2 = vld [vmem:[%s945_s3 + $0x8] sm:$0xff] (!%p188_p2)   ;;  %vm794_vm0 = vmmov (!%p188_p2), 0   ;;  %p215_p3 = scmp.lt.s32.totalorder (!%p188_p2), %s676_s19, 1  ;;  %v781_v3 = vld [vmem:[%s945_s3 + $0x10] sm:$0xff] (!%p188_p2)  }
   0x6   : > { %191 = sbr.rel (%p188_p2) target bundleno = 280 (0x118), region = 40  ;;  %752 = vmatprep.subr.bf16.mxu0 (!%p188_p2), %v793_v1  ;;  %764 = vmatprep.mubr.msk.bf16.mxu0 (!%p188_p2), %vm794_vm0, %v793_v1  ;;  %v782_v4 = vld [vmem:[%s945_s3 + $0x18] sm:$0xff] (!%p188_p2)   ;;  %v684_v5 = vld [vmem:[%s943_s1] ss:$0 sm:$0xff] (!%p188_p2)  ;;  %v690_v6 = vld [vmem:[%s943_s1 + $0x1] ss:$0 sm:$0xff] (!%p188_p2) }
   0x7   : > { %753 = vmatpush3.bf16.msra.mxu0 (!%p188_p2), %v779_v0  ;;  %v692_v33 = vld [vmem:[%s943_s1 + $0x2] ss:$0 sm:$0xff] (!%p188_p2)  ;;  %v698_v51 = vld [vmem:[%s943_s1 + $0x3] ss:$0 sm:$0xff] (!%p188_p2)  ;;  %v784_v57 = vld [vmem:[%s945_s3 + $0x28] sm:$0xff] (!%p188_p2)   ;;  %vm565_vm1 = vcmask (!%p188_p2), 785408  }
   0x8   : > { %754 = vmatprep.subr.bf16.mxu0 (!%p188_p2), %v793_v1  ;;  %v783_v34 = vld [vmem:[%s945_s3 + $0x20] sm:$0xff] (!%p188_p2)   ;;  %vm618_vm2 = vcmask (!%p188_p2), 191488  }
   0xb   : > { %755 = vmatpush3.bf16.msra.mxu0 (!%p188_p2), %v780_v2 }
   0xc   : > { %756 = vmatprep.subr.bf16.mxu0 (!%p188_p2), %v793_v1 }
   0xd   : > { %s949_s19 = smov (!%p215_p3, %s676_s19), 1 }
   0xe   : > { %s768_s26 = smul.u32 80, %s949_s19  ;;  %s742_s10 = sshll.u32 %s949_s19, 3 }
   0xf   : > { %757 = vmatpush3.bf16.msra.mxu0 %v781_v3  ;;  %s224_s13 = scalar_lea.vmem %s947_s5, %s742_s10 }
  0x10   : > { %s855_s6 = scalar_lea.vmem %s942_s0, %s768_s26  ;;  %758 = vmatprep.subr.bf16.mxu0 %v793_v1 }
  0x11   : > { %v226_v7 = vld [vmem:[%s855_s6] sm:$0x3]  ;;  %v227_v8 = vld [vmem:[%s855_s6 + $0x4] sm:$0x3]  ;;  %v228_v9 = vld [vmem:[%s855_s6 + $0x8] sm:$0x3] }
  0x12   : > { %v229_v10 = vld [vmem:[%s855_s6 + $0xc] sm:$0x3]  ;;  %v230_v11 = vunpack.c.l.bf16 %v226_v7  ;;  %v231_v12 = vunpack.c.l.bf16 %v227_v8  ;;  %v232_v13 = vunpack.c.l.bf16 %v228_v9  ;;  %v685_v14 = vld [vmem:[%s855_s6 + $0x14] sm:$0x3]  ;;  %v686_v15 = vld [vmem:[%s855_s6 + $0x18] sm:$0x3] }
  0x13   : > { %v233_v16 = vunpack.c.l.bf16 %v229_v10  ;;  %v687_v17 = vld [vmem:[%s855_s6 + $0x1c] sm:$0x3]  ;;  %v688_v18 = vld [vmem:[%s855_s6 + $0x20] sm:$0x3]  ;;  %v254_v19 = vunpack.c.l.bf16 %v685_v14  ;;  %v255_v20 = vunpack.c.l.bf16 %v686_v15  ;;  %v275_v26 = vld [vmem:[%s855_s6 + $0x4] sm:$0x7]  ;;  %759 = vmatpush3.bf16.msra.mxu0 %v782_v4 }
  0x14   : > { %v274_v21 = vld [vmem:[%s855_s6] sm:$0x7]  ;;  %v241_v22 = vmul.f32 %v684_v5, %v230_v11  ;;  %v242_v23 = vmul.f32 %v684_v5, %v231_v12  ;;  %v243_v24 = vmul.f32 %v684_v5, %v232_v13  ;;  %v256_v25 = vunpack.c.l.bf16 %v687_v17  ;;  %v276_v27 = vld [vmem:[%s855_s6 + $0x8] sm:$0x7]  ;;  %v277_v28 = vld [vmem:[%s855_s6 + $0xc] sm:$0x7]  ;;  %760 = vmatprep.subr.bf16.mxu0 %v793_v1 }
  0x15   : > { %v244_v29 = vmul.f32 %v684_v5, %v233_v16  ;;  %v257_v30 = vunpack.c.l.bf16 %v688_v18  ;;  %v266_v31 = vmul.f32 %v690_v6, %v254_v19  ;;  %v267_v32 = vmul.f32 %v690_v6, %v255_v20  ;;  %v693_v39 = vld [vmem:[%s855_s6 + $0x28] sm:$0x3]  ;;  %v694_v40 = vld [vmem:[%s855_s6 + $0x2c] sm:$0x3]  ;;  %v695_v45 = vld [vmem:[%s855_s6 + $0x30] sm:$0x3] }
  0x16   : > { %v268_v35 = vmul.f32 %v690_v6, %v256_v25  ;;  %v278_v36 = vunpack.c.l.bf16 %v274_v21  ;;  %v279_v37 = vunpack.c.l.bf16 %v275_v26  ;;  %v280_v38 = vunpack.c.l.bf16 %v276_v27  ;;  %v696_v50 = vld [vmem:[%s855_s6 + $0x34] sm:$0x3]  ;;  %v699_v56 = vld [vmem:[%s855_s6 + $0x3c] sm:$0x3]  ;;  %v700_v62 = vld [vmem:[%s855_s6 + $0x40] sm:$0x3] }
  0x17   : > { %v269_v41 = vmul.f32 %v690_v6, %v257_v30  ;;  %v270_v42 = vadd.f32 %v266_v31, %v241_v22  ;;  %v271_v43 = vadd.f32 %v267_v32, %v242_v23  ;;  %v281_v44 = vunpack.c.l.bf16 %v277_v28  ;;  %761 = vmatpush3.bf16.msra.mxu0 %v783_v34  ;;  %v701_v4 = vld [vmem:[%s855_s6 + $0x44] sm:$0x3]  ;;  %v702_v9 = vld [vmem:[%s855_s6 + $0x48] sm:$0x3]  ;;  %v706_v15 = vld [vmem:[%s855_s6 + $0x2c] sm:$0x7] }
  0x18   : > { %v272_v46 = vadd.f32 %v268_v35, %v243_v24  ;;  %v290_v47 = vmul.f32 %v692_v33, %v278_v36  ;;  %v291_v48 = vmul.f32 %v692_v33, %v279_v37  ;;  %v292_v49 = vmul.f32 %v692_v33, %v280_v38  ;;  %762 = vmatprep.subr.bf16.mxu0 %v793_v1  ;;  %v704_v10 = vld [vmem:[%s943_s1 + $0x4] ss:$0 sm:$0xff]  ;;  %v705_v14 = vld [vmem:[%s855_s6 + $0x28] sm:$0x7]  ;;  %v707_v16 = vld [vmem:[%s855_s6 + $0x30] sm:$0x7] }
  0x19   : > { %v273_v52 = vadd.f32 %v269_v41, %v244_v29  ;;  %v293_v53 = vmul.f32 %v692_v33, %v281_v44  ;;  %v315_v54 = vunpack.c.l.bf16 %v693_v39  ;;  %v316_v55 = vunpack.c.l.bf16 %v694_v40  ;;  %v708_v21 = vld [vmem:[%s855_s6 + $0x34] sm:$0x7]  ;;  %v710_v26 = vld [vmem:[%s943_s1 + $0x5] ss:$0 sm:$0xff]  ;;  %v712_v32 = vld [vmem:[%s855_s6 + $0x8] sm:$0x3] }
  0x1a   : > { %v298_v58 = vrot.slane %v290_v47, 1  ;;  %v299_v59 = vrot.slane %v291_v48, 1  ;;  %v300_v60 = vrot.slane %v292_v49, 1  ;;  %v317_v61 = vunpack.c.l.bf16 %v695_v45  ;;  %v711_v31 = vld [vmem:[%s855_s6 + $0x4] sm:$0x3] }
  0x1b   : > { %v301_v63 = vrot.slane %v293_v53, 1  ;;  %v318_v0 = vunpack.c.l.bf16 %v696_v50  ;;  %v327_v2 = vmul.f32 %v698_v51, %v315_v54  ;;  %v328_v3 = vmul.f32 %v698_v51, %v316_v55  ;;  %763 = vmatpush3.bf16.msra.mxu0 %v784_v57  ;;  %v713_v37 = vld [vmem:[%s855_s6 + $0xc] sm:$0x3]  ;;  %v717_v48 = vld [vmem:[%s855_s6 + $0x18] sm:$0x3] }
  0x1c   : > { %v306_v5 = vadd.f32 %v298_v58, %v270_v42  ;;  %v307_v6 = vadd.f32 %v299_v59, %v271_v43  ;;  %v308_v7 = vadd.f32 %v300_v60, %v272_v46  ;;  %v329_v8 = vmul.f32 %v698_v51, %v317_v61  ;;  %v714_v42 = vld [vmem:[%s855_s6 + $0x10] sm:$0x3]  ;;  %v716_v43 = vld [vmem:[%s943_s1 + $0x6] ss:$0 sm:$0xff]  ;;  %v718_v53 = vld [vmem:[%s855_s6 + $0x1c] sm:$0x3] }
  0x1d   : > { %v309_v11 = vadd.f32 %v301_v63, %v273_v52  ;;  %v330_v1 = vmul.f32 %v698_v51, %v318_v0  ;;  %v340_v12 = vunpack.c.l.bf16 %v699_v56  ;;  %v341_v13 = vunpack.c.l.bf16 %v700_v62  ;;  %v719_v58 = vld [vmem:[%s855_s6 + $0x20] sm:$0x3]  ;;  %v720_v63 = vld [vmem:[%s855_s6 + $0x24] sm:$0x3]  ;;  %v722_v0 = vld [vmem:[%s943_s1 + $0x7] ss:$0 sm:$0xff] }
  0x1e   : > { %v331_v17 = vadd.f32 %v327_v2, %v306_v5  ;;  %v332_v18 = vadd.f32 %v328_v3, %v307_v6  ;;  %v333_v19 = vadd.f32 %v329_v8, %v308_v7  ;;  %v342_v20 = vunpack.c.l.bf16 %v701_v4  ;;  %v723_v6 = vld [vmem:[%s855_s6 + $0x4] sm:$0x7]  ;;  %v724_v7 = vld [vmem:[%s855_s6 + $0x8] sm:$0x7]  ;;  %v725_v8 = vld [vmem:[%s855_s6 + $0xc] sm:$0x7] }
  0x1f   : > { %v334_v22 = vadd.f32 %v330_v1, %v309_v11  ;;  %v343_v23 = vunpack.c.l.bf16 %v702_v9  ;;  %v352_v24 = vmul.f32 %v704_v10, %v340_v12  ;;  %v353_v25 = vmul.f32 %v704_v10, %v341_v13  ;;  %v726_v12 = vld [vmem:[%s855_s6 + $0x10] sm:$0x7] }
  0x20   : > { %v354_v27 = vmul.f32 %v704_v10, %v342_v20  ;;  %v364_v28 = vunpack.c.l.bf16 %v705_v14  ;;  %v365_v29 = vunpack.c.l.bf16 %v706_v15  ;;  %v366_v30 = vunpack.c.l.bf16 %v707_v16 }
  0x21   : > { %v355_v33 = vmul.f32 %v704_v10, %v343_v23  ;;  %v356_v34 = vadd.f32 %v352_v24, %v331_v17  ;;  %v357_v35 = vadd.f32 %v353_v25, %v332_v18  ;;  %v367_v36 = vunpack.c.l.bf16 %v708_v21  ;;  %v728_v17 = vld [vmem:[%s943_s1 + $0x8] ss:$0 sm:$0xff] }
  0x22   : > { %v358_v38 = vadd.f32 %v354_v27, %v333_v19  ;;  %v376_v39 = vmul.f32 %v710_v26, %v364_v28  ;;  %v377_v40 = vmul.f32 %v710_v26, %v365_v29  ;;  %v378_v41 = vmul.f32 %v710_v26, %v366_v30 }
  0x23   : > { %v359_v44 = vadd.f32 %v355_v33, %v334_v22  ;;  %v379_v45 = vmul.f32 %v710_v26, %v367_v36  ;;  %v401_v46 = vunpack.c.l.bf16 %v711_v31  ;;  %v402_v47 = vunpack.c.l.bf16 %v712_v32  ;;  %v729_v36 = vld [vmem:[%s944_s2] ss:$0 sm:$0xff] }
  0x24   : > { %v384_v49 = vrot.slane %v376_v39, 1  ;;  %v385_v50 = vrot.slane %v377_v40, 1  ;;  %v386_v51 = vrot.slane %v378_v41, 1  ;;  %v403_v52 = vunpack.c.l.bf16 %v713_v37 }
  0x25   : > { %v387_v54 = vrot.slane %v379_v45, 1  ;;  %v404_v55 = vunpack.c.l.bf16 %v714_v42  ;;  %v413_v56 = vmul.f32 %v716_v43, %v401_v46  ;;  %v414_v57 = vmul.f32 %v716_v43, %v402_v47 }
  0x26   : > { %v392_v59 = vadd.f32 %v384_v49, %v356_v34  ;;  %v393_v60 = vadd.f32 %v385_v50, %v357_v35  ;;  %v394_v61 = vadd.f32 %v386_v51, %v358_v38  ;;  %v415_v62 = vmul.f32 %v716_v43, %v403_v52 }
  0x27   : > { %v395_v2 = vadd.f32 %v387_v54, %v359_v44  ;;  %v416_v3 = vmul.f32 %v716_v43, %v404_v55  ;;  %v426_v4 = vunpack.c.l.bf16 %v717_v48  ;;  %v427_v5 = vunpack.c.l.bf16 %v718_v53 }
  0x28   : > { %v417_v9 = vadd.f32 %v413_v56, %v392_v59  ;;  %v418_v10 = vadd.f32 %v414_v57, %v393_v60  ;;  %v419_v11 = vadd.f32 %v415_v62, %v394_v61  ;;  %v428_v1 = vunpack.c.l.bf16 %v719_v58  ;;  %v730_v56 = vld [vmem:[%s946_s4] ss:$0 sm:$0xff] }
  0x29   : > { %v420_v13 = vadd.f32 %v416_v3, %v395_v2  ;;  %v429_v14 = vunpack.c.l.bf16 %v720_v63  ;;  %v438_v15 = vmul.f32 %v722_v0, %v426_v4  ;;  %v439_v16 = vmul.f32 %v722_v0, %v427_v5 }
  0x2a   : > { %v440_v18 = vmul.f32 %v722_v0, %v428_v1  ;;  %v450_v19 = vunpack.c.l.bf16 %v723_v6  ;;  %v451_v20 = vunpack.c.l.bf16 %v724_v7  ;;  %v452_v21 = vunpack.c.l.bf16 %v725_v8 }
  0x2b   : > { %v441_v22 = vmul.f32 %v722_v0, %v429_v14  ;;  %v442_v23 = vadd.f32 %v438_v15, %v417_v9  ;;  %v443_v24 = vadd.f32 %v439_v16, %v418_v10  ;;  %v453_v25 = vunpack.c.l.bf16 %v726_v12 }
  0x2c   : > { %v444_v26 = vadd.f32 %v440_v18, %v419_v11  ;;  %v462_v27 = vmul.f32 %v728_v17, %v450_v19  ;;  %v463_v28 = vmul.f32 %v728_v17, %v451_v20  ;;  %v464_v29 = vmul.f32 %v728_v17, %v452_v21 }
  0x2d   : > { %v445_v30 = vadd.f32 %v441_v22, %v420_v13  ;;  %v465_v31 = vmul.f32 %v728_v17, %v453_v25 }
  0x2e   : > { %v470_v32 = vrot.slane %v462_v27, 1  ;;  %v471_v33 = vrot.slane %v463_v28, 1  ;;  %v472_v34 = vrot.slane %v464_v29, 1 }
  0x2f   : > { %v473_v35 = vrot.slane %v465_v31, 1 }
  0x30   : > { %v478_v37 = vadd.f32 %v470_v32, %v442_v23  ;;  %v479_v38 = vadd.f32 %v471_v33, %v443_v24  ;;  %v480_v39 = vadd.f32 %v472_v34, %v444_v26 }
  0x31   : > { %v481_v40 = vadd.f32 %v473_v35, %v445_v30 }
  0x32   : > { %v489_v41 = vadd.f32 %v729_v36, %v478_v37  ;;  %v490_v42 = vadd.f32 %v729_v36, %v479_v38  ;;  %v491_v43 = vadd.f32 %v729_v36, %v480_v39 }
  0x33   : > { %v492_v44 = vadd.f32 %v729_v36, %v481_v40 }
  0x34   : > { %v493_v45 = vmax.f32 %v489_v41, 0.0  ;;  %v494_v46 = vmax.f32 %v490_v42, 0.0  ;;  %v495_v47 = vmax.f32 %v491_v43, 0.0 }
  0x35   : > { %v496_v48 = vmax.f32 %v492_v44, 0.0 }
  0x36   : > { %v497_v49 = vmin.f32 %v493_v45, 6.0  ;;  %v498_v50 = vmin.f32 %v494_v46, 6.0  ;;  %v499_v51 = vmin.f32 %v495_v47, 6.0 }
  0x37   : > { %v500_v52 = vmin.f32 %v496_v48, 6.0 }
  0x38   : > { %v505_v53 = vcombine.low %v497_v49, %v498_v50 }
  0x39   : > { %v506_v54 = vcombine.low %v499_v51, %v500_v52 }
  0x3b   : > { %v509_v55 = vpack.c.bf16 %v506_v54, %v505_v53 }
  0x3d   : > { %765 = vmatmul.mubr.msk.bf16.vlgmr.msra.gmra.mrb[0].mxu0 %vm565_vm1, %v509_v55 }
 0x110   : > { %v603_v57 = vpop.f32.mrb[0].mxu0 }
 0x111   : > { %v604_v58 = vadd.f32 %v730_v56, %v603_v57  ;;  %v766_v59 = vpop.f32.mrb[1].mxu0 }
 0x112   : > { %v606_v60 = vpop.f32.mrb[2].mxu0 }
 0x113   : > { %v743_v61 = vpack.c.bf16 %v604_v58, %v604_v58  ;;  %v607_v62 = vadd.f32 %v730_v56, %v606_v60  ;;  %v767_v63 = vpop.f32.mrb[3].mxu0 }
 0x115   : > { %619 = vst.msk [vmem:[%s224_s13] sm:$0xf] %vm618_vm2, %v743_v61  ;;  %v744_v0 = vpack.c.bf16 %v607_v62, %v607_v62 }
 0x117   : > { %620 = vst.msk [vmem:[%s224_s13 + $0x4] sm:$0xf] %vm618_vm2, %v744_v0 }
 0x118 PF: > { %s15_s18 = sadd.s32 1, %s791_s18  }
 0x119   : > { %p12_p4 = scmp.ge.s32.totalorder %s15_s18, 4  }
 0x11b   :  { %14 = sbr.rel (!%p12_p4) target bundleno = 1 (0x1), region = 83 }

// kernel: _lambda_.21
= control target key start
LH: loop header
LB: loop body
LE: loop exit
PB: predicated region body
PF: predicated region fallthrough
CT: control target
= control target key end

     0   :  { %s1286_s24 = smov 0   ;;  %s1556_s0 = inlined_call_operand.vmem [shape: bf16[2,16,24], index: 0, kind: input, shape index: {}]   ;;  %s1557_s1 = inlined_call_operand.vmem [shape: bf16[24,144], index: 1, kind: input, shape index: {}]   ;;  %s1558_s2 = inlined_call_operand.vmem [shape: f32[1,144], index: 2, kind: input, shape index: {}]   ;;  %s1559_s3 = inlined_call_operand.vmem [shape: f32[9,1,144], index: 3, kind: input, shape index: {}]   ;;  %s1560_s4 = inlined_call_operand.vmem [shape: f32[1,144], index: 4, kind: input, shape index: {}]   ;;  %s1561_s5 = inlined_call_operand.vmem [shape: bf16[144,24], index: 5, kind: input, shape index: {}]   ;;  %s1562_s6 = inlined_call_operand.vmem [shape: f32[1,24], index: 6, kind: input, shape index: {}]   ;;  %s1563_s7 = inlined_call_operand.vmem [shape: bf16[2,16,24], index: 7, kind: output, shape index: {}]  }
   0x1 LB: > { %s1159_s25 = sadd.s32 4294967295, %s1242_s24   ;;  %p1163_p0 = scmp.ge.s32.totalorder %s1242_s24, 1  ;;  %s1242_s24 = sphi %s1286_s24, %s17_s24  }
   0x2   : > { %p237_p1 = scmp.lt.s32.totalorder %s1242_s24, 3 }
   0x4   : > { %p238_p2 = pnand %p1163_p0, %p237_p1 }
   0x5   : > { %v1220_v0 = vld [vmem:[%s1557_s1 + $0x4] ss:$8 sps:$4 sm:$0xff] (!%p238_p2)   ;;  %v1222_v1 = vld [vmem:[%s1557_s1] ss:$8 sps:$4 sm:$0xff] (!%p238_p2)   ;;  %v284_v2 = vld [vmem:[%s1557_s1 + $0x10] sm:$0xff] (!%p238_p2)  ;;  %vm321_vm0 = vcmask (!%p238_p2), 1043456   ;;  %v287_v18 = vlaneseq (!%p238_p2) }
   0x6   : > { %241 = sbr.rel (%p238_p2) target bundleno = 528 (0x210), region = 48  ;;  %v1244_v3 = vmov (!%p238_p2), 0   ;;  %p269_p3 = scmp.lt.s32.totalorder (!%p238_p2), %s1159_s25, 1  ;;  %328 = vmatprep.subr.bf16.mxu0 (!%p238_p2), %v1220_v0  ;;  %v1172_v4 = vcombine.high (!%p238_p2), %v284_v2, %v284_v2  ;;  %v1171_v5 = vcombine.low (!%p238_p2), %v284_v2, %v284_v2  ;;  %vm317_vm1 = vcmask (!%p238_p2), 195584   ;;  %v1226_v9 = vld [vmem:[%s1561_s5] sm:$0xff] (!%p238_p2)   ;;  %v1227_v10 = vld [vmem:[%s1561_s5 + $0x8] sm:$0xff] (!%p238_p2)  }
   0x7   : > { %360 = vmatprep.mubr.bf16.mxu0 (!%p238_p2), %v1244_v3  ;;  %1048 = vmatprep.subr.bf16.mxu1 (!%p238_p2), %v1244_v3  ;;  %vm380_vm2 = vcmask (!%p238_p2), 128000   ;;  %v1245_v8 = vmov (!%p238_p2), 0.0   ;;  %v1228_v11 = vld [vmem:[%s1561_s5 + $0x10] sm:$0xff] (!%p238_p2)   ;;  %v1229_v12 = vld [vmem:[%s1561_s5 + $0x18] sm:$0xff] (!%p238_p2)   ;;  %v1230_v13 = vld [vmem:[%s1561_s5 + $0x20] sm:$0xff] (!%p238_p2)   ;;  %v288_v19 = vshrl.u32 (!%p238_p2), %v287_v18, 7 }
   0x8   : > { %329 = vmatpush1.bf16.msra.mxu0 (!%p238_p2), %v1222_v1  ;;  %v323_v6 = vsel (!%p238_p2), %vm321_vm0, %v1171_v5, 0  ;;  %381 = vst.msk [vmem:[#allocation2 + $0x8] sm:$0x3f] (!%p238_p2), %vm380_vm2, %v1245_v8  ;;  %382 = vst [vmem:[#allocation2 + $0x10] sm:$0x3f] (!%p238_p2), %v1245_v8  ;;  %1049 = vmatpush1.bf16.msra.mxu1 (!%p238_p2), %v1226_v9  ;;  %v1231_v14 = vld [vmem:[%s1561_s5 + $0x28] sm:$0xff] (!%p238_p2)  }
   0x9   : > { %1173 = vmatprep.subr.msk.bf16.mxu0 (!%p238_p2), %vm321_vm0, %v1172_v4  ;;  %383 = vst.msk [vmem:[#allocation2 + $0x18] sm:$0x3f] (!%p238_p2), %vm380_vm2, %v1245_v8  ;;  %384 = vst [vmem:[#allocation2 + $0x20] sm:$0x3f] (!%p238_p2), %v1245_v8  ;;  %1050 = vmatprep.subr.bf16.mxu1 (!%p238_p2), %v1244_v3  ;;  %v1232_v15 = vld [vmem:[%s1561_s5 + $0x30] sm:$0xff] (!%p238_p2)   ;;  %v1233_v16 = vld [vmem:[%s1561_s5 + $0x38] sm:$0xff] (!%p238_p2)  }
   0xa   : > { %385 = vst.msk [vmem:[#allocation2 + $0x28] sm:$0x3f] (!%p238_p2), %vm380_vm2, %v1245_v8  ;;  %391 = vst.msk [vmem:[#allocation2 + $0x58] sm:$0x3f] (!%p238_p2), %vm380_vm2, %v1245_v8  ;;  %v1234_v17 = vld [vmem:[%s1561_s5 + $0x40] sm:$0xff] (!%p238_p2)   ;;  %v1344_v21 = vsub.s32 (!%p238_p2), 1, %v288_v19 }
   0xb   : > { %379 = vst [vmem:[#allocation2] sm:$0x3f] (!%p238_p2), %v1245_v8  ;;  %386 = vst [vmem:[#allocation2 + $0x30] sm:$0x3f] (!%p238_p2), %v1245_v8  ;;  %v1179_v20 = vld [vmem:[%s1559_s3 + $0x2] sm:$0x3] (!%p238_p2) }
   0xc   : > { %331 = vmatpush1.bf16.msra.mxu0 (!%p238_p2), %v323_v6  ;;  %387 = vst.msk [vmem:[#allocation2 + $0x38] sm:$0x3f] (!%p238_p2), %vm380_vm2, %v1245_v8  ;;  %388 = vst [vmem:[#allocation2 + $0x40] sm:$0x3f] (!%p238_p2), %v1245_v8  ;;  %1051 = vmatpush1.bf16.msra.mxu1 (!%p238_p2), %v1227_v10  ;;  %v1346_v22 = vsub.s32 (!%p238_p2), 0, %v288_v19  ;;  %v1352_v24 = vrot.slane (!%p238_p2), %v1179_v20, %v1344_v21  ;;  %vm422_vm3 = vcmask (!%p238_p2), 126977  }
   0xd   : > { %s1566_s25 = smov (!%p269_p3, %s1159_s25), 1  ;;  %389 = vst.msk [vmem:[#allocation2 + $0x48] sm:$0x3f] %vm380_vm2, %v1245_v8  ;;  %390 = vst [vmem:[#allocation2 + $0x50] sm:$0x3f] %v1245_v8  ;;  %1052 = vmatprep.subr.bf16.mxu1 %v1244_v3  ;;  %vm1044_vm4 = vcmask 130048  }
   0xe   : > { %s1206_s9 = sshll.u32 %s1566_s25, 3  ;;  %v285_v23 = vld [vmem:[%s1558_s2] sm:$0x3]  ;;  %v1180_v27 = vld [vmem:[%s1559_s3 + $0x4] sm:$0x3]  ;;  %v1370_v40 = vrot.slane %v1179_v20, %v1346_v22  ;;  %vm1101_vm5 = vcmask 191488  }
   0xf   : > { %s273_s12 = scalar_lea.vmem %s1556_s0, %s1206_s9  ;;  %v467_v25 = vld [vmem:[#allocation2 + $0x8] sm:$0x1e]  ;;  %v438_v26 = vld [vmem:[%s1559_s3] sm:$0x3]  ;;  %v290_v28 = vrot.slane %v285_v23, %v1346_v22  ;;  %v294_v29 = vrot.slane %v285_v23, %v1344_v21  ;;  %v1367_v32 = vrot.slane %v1180_v27, %v1344_v21  ;;  %v1380_v55 = vrot.slane %v1180_v27, %v1346_v22  ;;  %v1185_v56 = vld [vmem:[%s1559_s3 + $0xe] sm:$0x3]  ;;  %s278_s17 = scalar_lea.vmem %s1563_s7, %s1206_s9 }
  0x10   : > { %v1311_v7 = vld [vmem:[%s273_s12] sm:$0xff]   ;;  %1053 = vmatpush1.bf16.msra.mxu1 %v1228_v11  ;;  %v488_v30 = vmul.f32 %v1352_v24, %v467_v25  ;;  %v1364_v31 = vrot.slane %v438_v26, %v1344_v21  ;;  %v431_v34 = vld [vmem:[#allocation2 + $0x8] sm:$0xf]  ;;  %v1377_v54 = vrot.slane %v438_v26, %v1346_v22  ;;  %v1186_v57 = vld [vmem:[%s1559_s3 + $0x10] sm:$0x3]  ;;  %v1394_v4 = vrot.slane %v1185_v56, %v1344_v21 }
  0x11   : > { %1174 = vmatmul.mubr.msk.bf16.vlgmr.msra.gmra.mrb[0].mxu0 %vm317_vm1, %v1311_v7  ;;  %1054 = vmatprep.subr.bf16.mxu1 %v1244_v3  ;;  %v528_v35 = vld [vmem:[#allocation2 + $0x8] sm:$0x3c]  ;;  %v1397_v5 = vrot.slane %v1186_v57, %v1346_v22  ;;  %v853_v18 = vld [vmem:[#allocation2 + $0x58] sm:$0x3c]  ;;  %v1181_v23 = vld [vmem:[%s1559_s3 + $0x6] sm:$0x3]  ;;  %v1405_v25 = vrot.slane %v1186_v57, %v1344_v21 }
  0x12   : > { %v504_v41 = vrot.slane %v488_v30, 1  ;;  %v451_v45 = vmul.f32 %v1364_v31, %v431_v34  ;;  %v1374_v46 = vmul.f32 %v1367_v32, %v528_v35  ;;  %v466_v49 = vld [vmem:[#allocation2] sm:$0x1e]  ;;  %v1182_v35 = vld [vmem:[%s1559_s3 + $0x8] sm:$0x3] }
  0x13   : > { %v487_v61 = vmul.f32 %v1370_v40, %v466_v49  ;;  %v430_v6 = vld [vmem:[#allocation2] sm:$0xf] }
  0x14   : > { %1055 = vmatpush1.bf16.msra.mxu1 %v1229_v12  ;;  %v520_v59 = vadd.f32 %v504_v41, %v451_v45  ;;  %v565_v60 = vrot.slane %v1374_v46, 2  ;;  %v527_v8 = vld [vmem:[#allocation2] sm:$0x3c]  ;;  %v791_v19 = vld [vmem:[#allocation2 + $0x50] sm:$0x1e]  ;;  %v450_v26 = vmul.f32 %v1377_v54, %v430_v6  ;;  %v1437_v45 = vrot.slane %v1182_v35, %v1346_v22 }
  0x15   : > { %1056 = vmatprep.subr.bf16.mxu1 %v1244_v3  ;;  %v852_v20 = vld [vmem:[#allocation2 + $0x50] sm:$0x3c]  ;;  %v503_v27 = vrot.slane %v487_v61, 1  ;;  %v755_v46 = vld [vmem:[#allocation2 + $0x58] sm:$0xf] }
  0x16   : > { %v1425_v41 = vmul.f32 %v1397_v5, %v852_v20 }
  0x18   : > { %1057 = vmatpush1.bf16.msra.mxu1 %v1230_v13  ;;  %v792_v13 = vld [vmem:[#allocation2 + $0x58] sm:$0x1e] }
  0x19   : > { %1058 = vmatprep.subr.bf16.mxu1 %v1244_v3 }
  0x1c   : > { %1059 = vmatpush1.bf16.msra.mxu1 %v1231_v14 }
  0x1d   : > { %1060 = vmatprep.subr.bf16.mxu1 %v1244_v3 }
  0x20   : > { %1061 = vmatpush1.bf16.msra.mxu1 %v1232_v15 }
  0x21   : > { %1062 = vmatprep.subr.bf16.mxu1 %v1244_v3 }
  0x24   : > { %1063 = vmatpush1.bf16.msra.mxu1 %v1233_v16 }
  0x25   : > { %1064 = vmatprep.subr.bf16.mxu1 %v1244_v3  ;;  %v1391_v3 = vrot.slane %v1185_v56, %v1346_v22  ;;  %v754_v56 = vld [vmem:[#allocation2 + $0x50] sm:$0xf] }
  0x28   : > { %1065 = vmatpush1.bf16.msra.mxu1 %v1234_v17 }
  0xe4   : > { %v362_v33 = vpop.f32.mrb[0].mxu0 }
  0xe5   : > { %v363_v36 = vadd.f32 %v362_v33, %v290_v28  ;;  %v364_v37 = vpop.f32.mrb[1].mxu0 }
  0xe6   : > { %v365_v38 = vadd.f32 %v364_v37, %v294_v29  ;;  %v366_v39 = vpop.f32.mrb[2].mxu0  ;;  %v1416_v37 = vmul.f32 %v1394_v4, %v792_v13 }
  0xe7   : > { %v371_v42 = vmax.f32 %v363_v36, 0.0  ;;  %v367_v43 = vadd.f32 %v366_v39, %v290_v28  ;;  %v368_v44 = vpop.f32.mrb[3].mxu0  ;;  %v548_v28 = vmul.f32 %v1380_v55, %v527_v8  ;;  %v1184_v36 = vld [vmem:[%s1559_s3 + $0xc] sm:$0x3]  ;;  %v1422_v39 = vmul.f32 %v1391_v3, %v791_v19 }
  0xe8   : > { %v372_v47 = vmax.f32 %v365_v38, 0.0  ;;  %v369_v48 = vadd.f32 %v368_v44, %v294_v29  ;;  %v1419_v38 = vmul.f32 %v1405_v25, %v853_v18  ;;  %v606_v44 = vrot.slane %v1181_v23, %v1344_v21 }
  0xe9   : > { %v375_v50 = vmin.f32 %v371_v42, 6.0  ;;  %v373_v51 = vmax.f32 %v367_v43, 0.0  ;;  %v1430_v42 = vrot.slane %v1181_v23, %v1346_v22  ;;  %v1183_v43 = vld [vmem:[%s1559_s3 + $0xa] sm:$0x3]  ;;  %v564_v49 = vrot.slane %v548_v28, 2 }
  0xea   : > { %v376_v52 = vmin.f32 %v372_v47, 6.0  ;;  %v374_v53 = vmax.f32 %v369_v48, 0.0  ;;  %v1442_v47 = vld [vmem:[%s1560_s4] sm:$0x3]  ;;  %v519_v48 = vadd.f32 %v503_v27, %v450_v26  ;;  %v829_v57 = vrot.slane %v1416_v37, 1 }
  0xeb   : > { %v377_v58 = vmin.f32 %v373_v51, 6.0  ;;  %v643_v51 = vrot.slane %v1182_v35, %v1344_v21  ;;  %v828_v61 = vrot.slane %v1422_v39, 1  ;;  %v1466_v6 = vrot.slane %v1442_v47, %v1344_v21 }
  0xec   : > { %v396_v62 = vcombine.low %v375_v50, %v376_v52  ;;  %v397_v63 = vcombine.high %v375_v50, %v376_v52  ;;  %v1175_v0 = vcombine.low %v376_v52, %v376_v52  ;;  %v1176_v1 = vcombine.high %v376_v52, %v376_v52 }
  0xed   : > { %v378_v2 = vmin.f32 %v374_v53, 6.0  ;;  %v581_v50 = vadd.f32 %v565_v60, %v520_v59  ;;  %v1446_v52 = vrot.slane %v1184_v36, %v1346_v22  ;;  %v1449_v53 = vrot.slane %v1184_v36, %v1344_v21 }
  0xee   : > { %v404_v9 = vrot.slane %v396_v62, 7  ;;  %v405_v10 = vrot.slane %v1175_v0, 7  ;;  %v406_v11 = vrot.slane %v397_v63, 7  ;;  %v407_v12 = vrot.slane %v1176_v1, 7 }
  0xef   : > { %v398_v14 = vcombine.low %v377_v58, %v378_v2  ;;  %v399_v15 = vcombine.high %v377_v58, %v378_v2  ;;  %v1177_v16 = vcombine.low %v378_v2, %v378_v2  ;;  %v1178_v17 = vcombine.high %v378_v2, %v378_v2 }
  0xf0   : > { %421 = vst [vmem:[#allocation2 + $0x10] sm:$0x1e] %v404_v9  ;;  %423 = vst.msk [vmem:[#allocation2 + $0x18] sm:$0x1e] %vm422_vm3, %v405_v10  ;;  %v890_v58 = vrot.slane %v1419_v38, 2  ;;  %v1456_v60 = vrot.slane %v1183_v43, %v1346_v22  ;;  %v1459_v1 = vrot.slane %v1183_v43, %v1344_v21  ;;  %v1462_v2 = vmul.f32 %v1449_v53, %v755_v46 }
  0xf1   : > { %424 = vst [vmem:[#allocation2 + $0x20] sm:$0x1e] %v406_v11  ;;  %425 = vst.msk [vmem:[#allocation2 + $0x28] sm:$0x1e] %vm422_vm3, %v407_v12  ;;  %v408_v29 = vrot.slane %v398_v14, 7  ;;  %v409_v30 = vrot.slane %v1177_v16, 7  ;;  %v1470_v13 = vadd.f32 %v564_v49, %v519_v48  ;;  %v1473_v14 = vmul.f32 %v1446_v52, %v754_v56 }
  0xf2   : > { %v410_v33 = vrot.slane %v399_v15, 7  ;;  %v411_v34 = vrot.slane %v1178_v17, 7 }
  0xf3   : > { %426 = vst [vmem:[#allocation2 + $0x30] sm:$0x1e] %v408_v29  ;;  %427 = vst.msk [vmem:[#allocation2 + $0x38] sm:$0x1e] %vm422_vm3, %v409_v30 }
  0xf4   : > { %428 = vst [vmem:[#allocation2 + $0x40] sm:$0x1e] %v410_v33  ;;  %429 = vst.msk [vmem:[#allocation2 + $0x48] sm:$0x1e] %vm422_vm3, %v411_v34 }
  0xf7   : > { %v433_v63 = vld [vmem:[#allocation2 + $0x18] sm:$0xf] }
  0xf8   : > { %v435_v0 = vld [vmem:[#allocation2 + $0x28] sm:$0xf]  ;;  %v469_v59 = vld [vmem:[#allocation2 + $0x18] sm:$0x1e]  ;;  %v453_v8 = vmul.f32 %v1364_v31, %v433_v63 }
  0xf9   : > { %v471_v9 = vld [vmem:[#allocation2 + $0x28] sm:$0x1e]  ;;  %v490_v10 = vmul.f32 %v1352_v24, %v469_v59  ;;  %v530_v11 = vld [vmem:[#allocation2 + $0x18] sm:$0x3c]  ;;  %v455_v15 = vmul.f32 %v1364_v31, %v435_v0 }
  0xfa   : > { %v532_v12 = vld [vmem:[#allocation2 + $0x28] sm:$0x3c]  ;;  %v492_v16 = vmul.f32 %v1352_v24, %v471_v9  ;;  %v551_v17 = vmul.f32 %v1367_v32, %v530_v11  ;;  %v589_v18 = vld [vmem:[#allocation2 + $0x18] sm:$0xf] }
  0xfb   : > { %v553_v21 = vmul.f32 %v1367_v32, %v532_v12  ;;  %v591_v19 = vld [vmem:[#allocation2 + $0x28] sm:$0xf]  ;;  %v626_v20 = vld [vmem:[#allocation2 + $0x18] sm:$0x1e]  ;;  %v506_v27 = vrot.slane %v490_v10, 1  ;;  %v610_v28 = vmul.f32 %v606_v44, %v589_v18 }
  0xfc   : > { %v437_v23 = vld [vmem:[#allocation2 + $0x38] sm:$0xf]  ;;  %v612_v29 = vmul.f32 %v606_v44, %v591_v19  ;;  %v647_v30 = vmul.f32 %v643_v51, %v626_v20  ;;  %v508_v35 = vrot.slane %v492_v16, 1  ;;  %v567_v43 = vrot.slane %v551_v17, 2  ;;  %v595_v63 = vld [vmem:[#allocation2 + $0x48] sm:$0xf] }
  0xfd   : > { %v473_v26 = vld [vmem:[#allocation2 + $0x38] sm:$0x1e]  ;;  %v457_v33 = vmul.f32 %v1364_v31, %v437_v23  ;;  %v522_v48 = vadd.f32 %v506_v27, %v453_v8  ;;  %v569_v56 = vrot.slane %v553_v21, 2  ;;  %v628_v59 = vld [vmem:[#allocation2 + $0x28] sm:$0x1e]  ;;  %v616_v11 = vmul.f32 %v606_v44, %v595_v63 }
  0xfe   : > { %v494_v34 = vmul.f32 %v1352_v24, %v473_v26  ;;  %v534_v36 = vld [vmem:[#allocation2 + $0x38] sm:$0x3c]  ;;  %v524_v10 = vadd.f32 %v508_v35, %v455_v15  ;;  %v618_v12 = vadd.f32 %v610_v28, %v581_v50  ;;  %v632_v19 = vld [vmem:[#allocation2 + $0x48] sm:$0x1e]  ;;  %v649_v24 = vmul.f32 %v643_v51, %v628_v59 }
  0xff   : > { %v593_v46 = vld [vmem:[#allocation2 + $0x38] sm:$0xf]  ;;  %v555_v49 = vmul.f32 %v1367_v32, %v534_v36  ;;  %v583_v20 = vadd.f32 %v567_v43, %v522_v48  ;;  %v689_v17 = vld [vmem:[#allocation2 + $0x28] sm:$0x3c]  ;;  %v653_v27 = vmul.f32 %v643_v51, %v632_v19  ;;  %v663_v32 = vrot.slane %v647_v30, 1 }
 0x100   : > { %v614_v0 = vmul.f32 %v606_v44, %v593_v46  ;;  %v510_v9 = vrot.slane %v494_v34, 1  ;;  %v630_v18 = vld [vmem:[#allocation2 + $0x38] sm:$0x1e]  ;;  %v585_v8 = vadd.f32 %v569_v56, %v524_v10  ;;  %v693_v36 = vld [vmem:[#allocation2 + $0x48] sm:$0x3c]  ;;  %v665_v62 = vrot.slane %v649_v24, 1 }
 0x101   : > { %v571_v31 = vrot.slane %v555_v49, 2  ;;  %v651_v16 = vmul.f32 %v643_v51, %v630_v18  ;;  %v687_v23 = vld [vmem:[#allocation2 + $0x18] sm:$0x3c]  ;;  %v620_v46 = vadd.f32 %v612_v29, %v583_v20  ;;  %v749_v50 = vld [vmem:[#allocation2 + $0x28] sm:$0xf]  ;;  %v669_v35 = vrot.slane %v653_v27, 1 }
 0x102   : > { %v526_v26 = vadd.f32 %v510_v9, %v457_v33  ;;  %v691_v21 = vld [vmem:[#allocation2 + $0x38] sm:$0x3c]  ;;  %v708_v44 = vmul.f32 %v1459_v1, %v687_v23  ;;  %v622_v28 = vadd.f32 %v614_v0, %v585_v8  ;;  %v679_v43 = vadd.f32 %v663_v32, %v618_v12  ;;  %v753_v30 = vld [vmem:[#allocation2 + $0x48] sm:$0xf] }
 0x103   : > { %v667_v34 = vrot.slane %v651_v16, 1  ;;  %v751_v48 = vld [vmem:[#allocation2 + $0x38] sm:$0xf]  ;;  %v681_v49 = vadd.f32 %v665_v62, %v620_v46  ;;  %v710_v63 = vmul.f32 %v1459_v1, %v689_v17  ;;  %v712_v33 = vmul.f32 %v1459_v1, %v691_v21  ;;  %v786_v56 = vld [vmem:[#allocation2 + $0x28] sm:$0x1e] }
 0x104   : > { %v587_v15 = vadd.f32 %v571_v31, %v526_v26  ;;  %v714_v51 = vmul.f32 %v1459_v1, %v693_v36  ;;  %v724_v9 = vrot.slane %v708_v44, 2  ;;  %v770_v10 = vmul.f32 %v1449_v53, %v749_v50  ;;  %v788_v18 = vld [vmem:[#allocation2 + $0x38] sm:$0x1e]  ;;  %v790_v19 = vld [vmem:[#allocation2 + $0x48] sm:$0x1e] }
 0x105   : > { %v683_v59 = vadd.f32 %v667_v34, %v622_v28  ;;  %v726_v0 = vrot.slane %v710_v63, 2  ;;  %v728_v31 = vrot.slane %v712_v33, 2  ;;  %v772_v62 = vmul.f32 %v1449_v53, %v751_v48  ;;  %v847_v20 = vld [vmem:[#allocation2 + $0x28] sm:$0x3c]  ;;  %v849_v27 = vld [vmem:[#allocation2 + $0x38] sm:$0x3c] }
 0x106   : > { %v624_v29 = vadd.f32 %v616_v11, %v587_v15  ;;  %v730_v12 = vrot.slane %v714_v51, 2  ;;  %v740_v16 = vadd.f32 %v724_v9, %v679_v43  ;;  %v774_v23 = vmul.f32 %v1449_v53, %v753_v30  ;;  %v851_v32 = vld [vmem:[#allocation2 + $0x48] sm:$0x3c]  ;;  %v432_v44 = vld [vmem:[#allocation2 + $0x10] sm:$0xf] }
 0x107   : > { %v807_v1 = vmul.f32 %v1394_v4, %v786_v56  ;;  %v742_v17 = vadd.f32 %v726_v0, %v681_v49  ;;  %v744_v11 = vadd.f32 %v728_v31, %v683_v59  ;;  %v809_v26 = vmul.f32 %v1394_v4, %v788_v18  ;;  %v436_v63 = vld [vmem:[#allocation2 + $0x30] sm:$0xf]  ;;  %v470_v51 = vld [vmem:[#allocation2 + $0x20] sm:$0x1e] }
 0x108   : > { %v685_v24 = vadd.f32 %v669_v35, %v624_v29  ;;  %v811_v8 = vmul.f32 %v1394_v4, %v790_v19  ;;  %v778_v36 = vadd.f32 %v770_v10, %v740_v16  ;;  %v868_v34 = vmul.f32 %v1405_v25, %v847_v20  ;;  %v434_v35 = vld [vmem:[#allocation2 + $0x20] sm:$0xf]  ;;  %v468_v33 = vld [vmem:[#allocation2 + $0x10] sm:$0x1e] }
 0x109   : > { %v823_v46 = vrot.slane %v807_v1, 1  ;;  %v780_v50 = vadd.f32 %v772_v62, %v742_v17  ;;  %v782_v15 = vadd.f32 %v774_v23, %v744_v11  ;;  %v825_v28 = vrot.slane %v809_v26, 1  ;;  %v472_v9 = vld [vmem:[#allocation2 + $0x30] sm:$0x1e] }
 0x10a   : > { %v746_v21 = vadd.f32 %v730_v12, %v685_v24  ;;  %v827_v53 = vrot.slane %v811_v8, 1  ;;  %v870_v49 = vmul.f32 %v1405_v25, %v849_v27  ;;  %v872_v4 = vmul.f32 %v1405_v25, %v851_v32  ;;  %v529_v0 = vld [vmem:[#allocation2 + $0x10] sm:$0x3c] }
 0x10b   : > { %v839_v48 = vadd.f32 %v823_v46, %v778_v36  ;;  %v841_v30 = vadd.f32 %v825_v28, %v780_v50  ;;  %v884_v29 = vrot.slane %v868_v34, 2  ;;  %v452_v59 = vmul.f32 %v1377_v54, %v432_v44  ;;  %v533_v32 = vld [vmem:[#allocation2 + $0x30] sm:$0x3c]  ;;  %v590_v46 = vld [vmem:[#allocation2 + $0x20] sm:$0xf] }
 0x10c   : > { %v784_v43 = vadd.f32 %v1462_v2, %v746_v21  ;;  %v843_v56 = vadd.f32 %v827_v53, %v782_v15  ;;  %v886_v18 = vrot.slane %v870_v49, 2  ;;  %v888_v19 = vrot.slane %v872_v4, 2  ;;  %v588_v36 = vld [vmem:[#allocation2 + $0x10] sm:$0xf] }
 0x10d   : > { %v454_v2 = vmul.f32 %v1377_v54, %v434_v35  ;;  %v900_v31 = vadd.f32 %v884_v29, %v839_v48  ;;  %v456_v25 = vmul.f32 %v1377_v54, %v436_v63  ;;  %v489_v12 = vmul.f32 %v1370_v40, %v468_v33  ;;  %v592_v28 = vld [vmem:[#allocation2 + $0x30] sm:$0xf] }
 0x10e   : > { %v845_v10 = vadd.f32 %v829_v57, %v784_v43  ;;  %v491_v62 = vmul.f32 %v1370_v40, %v470_v51  ;;  %v902_v20 = vadd.f32 %v886_v18, %v841_v30  ;;  %v904_v24 = vadd.f32 %v888_v19, %v843_v56  ;;  %v531_v57 = vld [vmem:[#allocation2 + $0x20] sm:$0x3c]  ;;  %v625_v51 = vld [vmem:[#allocation2 + $0x10] sm:$0x1e] }
 0x10f   : > { %v493_v37 = vmul.f32 %v1370_v40, %v472_v9  ;;  %v920_v23 = vadd.f32 %v1466_v6, %v900_v31  ;;  %v505_v1 = vrot.slane %v489_v12, 1  ;;  %v550_v11 = vmul.f32 %v1380_v55, %v529_v0  ;;  %v627_v9 = vld [vmem:[#allocation2 + $0x20] sm:$0x1e]  ;;  %v686_v31 = vld [vmem:[#allocation2 + $0x10] sm:$0x3c] }
 0x110   : > { %v906_v16 = vadd.f32 %v890_v58, %v845_v10  ;;  %v507_v17 = vrot.slane %v491_v62, 1  ;;  %v922_v54 = vadd.f32 %v1466_v6, %v902_v20  ;;  %v924_v26 = vadd.f32 %v1466_v6, %v904_v24  ;;  %v629_v10 = vld [vmem:[#allocation2 + $0x30] sm:$0x1e]  ;;  %v631_v0 = vld [vmem:[#allocation2 + $0x40] sm:$0x1e] }
 0x111   : > { %v509_v27 = vrot.slane %v493_v37, 1  ;;  %v928_v38 = vmax.f32 %v920_v23, 0.0  ;;  %v521_v58 = vadd.f32 %v505_v1, %v452_v59  ;;  %v552_v40 = vmul.f32 %v1380_v55, %v531_v57  ;;  %v688_v24 = vld [vmem:[#allocation2 + $0x20] sm:$0x3c] }
 0x112   : > { %v926_v8 = vadd.f32 %v1466_v6, %v906_v16  ;;  %v523_v21 = vadd.f32 %v507_v17, %v454_v2  ;;  %v930_v34 = vmax.f32 %v922_v54, 0.0  ;;  %v932_v44 = vmax.f32 %v924_v26, 0.0  ;;  %v594_v6 = vld [vmem:[#allocation2 + $0x40] sm:$0xf]  ;;  %v690_v16 = vld [vmem:[#allocation2 + $0x30] sm:$0x3c] }
 0x113   : > { %v525_v15 = vadd.f32 %v509_v27, %v456_v25  ;;  %v936_v53 = vmin.f32 %v928_v38, 6.0  ;;  %v554_v35 = vmul.f32 %v1380_v55, %v533_v32  ;;  %v566_v43 = vrot.slane %v550_v11, 2  ;;  %v692_v17 = vld [vmem:[#allocation2 + $0x40] sm:$0x3c] }
 0x114   : > { %v934_v50 = vmax.f32 %v926_v8, 0.0  ;;  %v568_v48 = vrot.slane %v552_v40, 2  ;;  %v938_v49 = vmin.f32 %v930_v34, 6.0  ;;  %v940_v4 = vmin.f32 %v932_v44, 6.0  ;;  %v748_v38 = vld [vmem:[#allocation2 + $0x20] sm:$0xf] }
 0x115   : > { %v609_v33 = vmul.f32 %v1430_v42, %v588_v36  ;;  %v570_v30 = vrot.slane %v554_v35, 2  ;;  %v582_v56 = vadd.f32 %v566_v43, %v521_v58  ;;  %v611_v59 = vmul.f32 %v1430_v42, %v590_v46  ;;  %v750_v46 = vld [vmem:[#allocation2 + $0x30] sm:$0xf]  ;;  %v752_v34 = vld [vmem:[#allocation2 + $0x40] sm:$0xf] }
 0x116   : > { %v942_v63 = vmin.f32 %v934_v50, 6.0  ;;  %v584_v29 = vadd.f32 %v568_v48, %v523_v21  ;;  %v1188_v18 = vcombine.low %v936_v53, %v938_v49  ;;  %v613_v55 = vmul.f32 %v1430_v42, %v592_v28  ;;  %v785_v28 = vld [vmem:[#allocation2 + $0x20] sm:$0x1e]  ;;  %v787_v53 = vld [vmem:[#allocation2 + $0x30] sm:$0x1e] }
 0x117   : > { %v615_v2 = vmul.f32 %v1430_v42, %v594_v6  ;;  %v586_v25 = vadd.f32 %v570_v30, %v525_v15  ;;  %v617_v12 = vadd.f32 %v609_v33, %v1470_v13  ;;  %v619_v62 = vadd.f32 %v611_v59, %v582_v56  ;;  %v789_v49 = vld [vmem:[#allocation2 + $0x40] sm:$0x1e]  ;;  %v848_v30 = vld [vmem:[#allocation2 + $0x30] sm:$0x3c] }
 0x118   : > { %v1190_v19 = vcombine.low %v940_v4, %v942_v63  ;;  %v646_v20 = vmul.f32 %v1437_v45, %v625_v51  ;;  %v621_v57 = vadd.f32 %v613_v55, %v584_v29  ;;  %v648_v23 = vmul.f32 %v1437_v45, %v627_v9  ;;  %v846_v4 = vld [vmem:[#allocation2 + $0x20] sm:$0x3c] }
 0x119   : > { %v650_v1 = vmul.f32 %v1437_v45, %v629_v10  ;;  %v623_v11 = vadd.f32 %v615_v2, %v586_v25  ;;  %v652_v42 = vmul.f32 %v1437_v45, %v631_v0  ;;  %v707_v26 = vmul.f32 %v1456_v60, %v686_v31  ;;  %v850_v10 = vld [vmem:[#allocation2 + $0x40] sm:$0x3c] }
 0x11a   : > { %v964_v37 = vpack.c.bf16 %v1190_v19, %v1188_v18  ;;  %v662_v54 = vrot.slane %v646_v20, 1  ;;  %v664_v13 = vrot.slane %v648_v23, 1  ;;  %v709_v27 = vmul.f32 %v1456_v60, %v688_v24 }
 0x11b   : > { %v666_v8 = vrot.slane %v650_v1, 1  ;;  %v711_v32 = vmul.f32 %v1456_v60, %v690_v16  ;;  %v668_v58 = vrot.slane %v652_v42, 1  ;;  %v713_v40 = vmul.f32 %v1456_v60, %v692_v17 }
 0x11c   : > { %1201 = vmatprep.mubr.msk.bf16.mxu1 %vm1044_vm4, %v964_v37  ;;  %v678_v21 = vadd.f32 %v662_v54, %v617_v12  ;;  %v723_v36 = vrot.slane %v707_v26, 2  ;;  %v680_v45 = vadd.f32 %v664_v13, %v619_v62  ;;  %v725_v50 = vrot.slane %v709_v27, 2 }
 0x11d   : > { %v682_v44 = vadd.f32 %v666_v8, %v621_v57  ;;  %v727_v15 = vrot.slane %v711_v32, 2  ;;  %v684_v35 = vadd.f32 %v668_v58, %v623_v11  ;;  %v729_v43 = vrot.slane %v713_v40, 2 }
 0x11e   : > { %v739_v48 = vadd.f32 %v723_v36, %v678_v21  ;;  %v769_v6 = vmul.f32 %v1446_v52, %v748_v38  ;;  %v741_v63 = vadd.f32 %v725_v50, %v680_v45  ;;  %v771_v60 = vmul.f32 %v1446_v52, %v750_v46 }
 0x11f   : > { %v743_v33 = vadd.f32 %v727_v15, %v682_v44  ;;  %v773_v51 = vmul.f32 %v1446_v52, %v752_v34  ;;  %v745_v56 = vadd.f32 %v729_v43, %v684_v35  ;;  %v806_v59 = vmul.f32 %v1391_v3, %v785_v28 }
 0x120   : > { %v777_v29 = vadd.f32 %v769_v6, %v739_v48  ;;  %v808_v9 = vmul.f32 %v1391_v3, %v787_v53  ;;  %v779_v18 = vadd.f32 %v771_v60, %v741_v63  ;;  %v810_v55 = vmul.f32 %v1391_v3, %v789_v49 }
 0x121   : > { %v781_v19 = vadd.f32 %v773_v51, %v743_v33  ;;  %v867_v2 = vmul.f32 %v1397_v5, %v846_v4  ;;  %v783_v0 = vadd.f32 %v1473_v14, %v745_v56  ;;  %v822_v31 = vrot.slane %v806_v59, 1 }
 0x122   : > { %v824_v25 = vrot.slane %v808_v9, 1  ;;  %v869_v52 = vmul.f32 %v1397_v5, %v848_v30  ;;  %v912_v12 = vrot.slane %v1442_v47, %v1346_v22  ;;  %v826_v62 = vrot.slane %v810_v55, 1 }
 0x123   : > { %v871_v20 = vmul.f32 %v1397_v5, %v850_v10  ;;  %v883_v24 = vrot.slane %v867_v2, 2  ;;  %v838_v16 = vadd.f32 %v822_v31, %v777_v29  ;;  %v844_v3 = vadd.f32 %v828_v61, %v783_v0 }
 0x124   : > { %v840_v37 = vadd.f32 %v824_v25, %v779_v18  ;;  %v885_v57 = vrot.slane %v869_v52, 2  ;;  %v842_v23 = vadd.f32 %v826_v62, %v781_v19  ;;  %v1564_v11 = vrot.slane %v1425_v41, 2  ;;  %v1191_v41 = vld [vmem:[%s1562_s6] ss:$0 sm:$0xff] }
 0x125   : > { %v887_v1 = vrot.slane %v871_v20, 2  ;;  %v899_v14 = vadd.f32 %v883_v24, %v838_v16  ;;  %v1089_v46 = vunpack.c.l.bf16 %v1311_v7  ;;  %v1090_v50 = vunpack.c.h.bf16 %v1311_v7 }
 0x126   : > { %v901_v17 = vadd.f32 %v885_v57, %v840_v37  ;;  %v905_v42 = vadd.f32 %v1564_v11, %v844_v3 }
 0x127   : > { %v903_v54 = vadd.f32 %v887_v1, %v842_v23  ;;  %v919_v26 = vadd.f32 %v912_v12, %v899_v14 }
 0x128   : > { %v921_v22 = vadd.f32 %v912_v12, %v901_v17  ;;  %v925_v47 = vadd.f32 %v912_v12, %v905_v42 }
 0x129   : > { %v923_v13 = vadd.f32 %v912_v12, %v903_v54  ;;  %v927_v5 = vmax.f32 %v919_v26, 0.0 }
 0x12a   : > { %v929_v8 = vmax.f32 %v921_v22, 0.0  ;;  %v933_v27 = vmax.f32 %v925_v47, 0.0 }
 0x12b   : > { %v931_v32 = vmax.f32 %v923_v13, 0.0  ;;  %v935_v61 = vmin.f32 %v927_v5, 6.0 }
 0x12c   : > { %v937_v38 = vmin.f32 %v929_v8, 6.0  ;;  %v941_v39 = vmin.f32 %v933_v27, 6.0 }
 0x12d   : > { %v939_v58 = vmin.f32 %v931_v32, 6.0 }
 0x12e   : > { %v1187_v21 = vcombine.low %v935_v61, %v937_v38 }
 0x12f   : > { %v1189_v40 = vcombine.low %v939_v58, %v941_v39 }
 0x131   : > { %v963_v36 = vpack.c.bf16 %v1189_v40, %v1187_v21 }
 0x133   : > { %1081 = vmatmul.mubr.bf16.vlgmr.msra.gmra.mrb[0].mxu1 %v963_v36 }
 0x206   : > { %v1082_v34 = vpop.f32.mrb[0].mxu1 }
 0x207   : > { %v1083_v45 = vadd.f32 %v1191_v41, %v1082_v34  ;;  %v1084_v44 = vpop.f32.mrb[1].mxu1 }
 0x208   : > { %v1085_v15 = vpop.f32.mrb[2].mxu1 }
 0x209   : > { %v1091_v28 = vadd.f32 %v1089_v46, %v1083_v45  ;;  %v1086_v53 = vadd.f32 %v1191_v41, %v1085_v15  ;;  %v1087_v35 = vpop.f32.mrb[3].mxu1 }
 0x20b   : > { %v1208_v43 = vpack.c.bf16 %v1091_v28, %v1091_v28  ;;  %v1092_v48 = vadd.f32 %v1090_v50, %v1086_v53 }
 0x20d   : > { %1102 = vst.msk [vmem:[%s278_s17] sm:$0xf] %vm1101_vm5, %v1208_v43  ;;  %v1209_v6 = vpack.c.bf16 %v1092_v48, %v1092_v48 }
 0x20f   : > { %1103 = vst.msk [vmem:[%s278_s17 + $0x4] sm:$0xf] %vm1101_vm5, %v1209_v6 }
 0x210 PF: > { %s17_s24 = sadd.s32 1, %s1242_s24  }
 0x211   : > { %p14_p4 = scmp.ge.s32.totalorder %s17_s24, 4  }
 0x213   :  { %16 = sbr.rel (!%p14_p4) target bundleno = 1 (0x1), region = 88 }

// kernel: _lambda_.23
= control target key start
LH: loop header
LB: loop body
LE: loop exit
PB: predicated region body
PF: predicated region fallthrough
CT: control target
= control target key end

     0   :  { %s787_s18 = smov 0   ;;  %s923_s0 = inlined_call_operand.vmem [shape: bf16[2,4,3,3,144], index: 0, kind: input, shape index: {}]   ;;  %s924_s1 = inlined_call_operand.vmem [shape: f32[9,1,144], index: 1, kind: input, shape index: {}]   ;;  %s925_s2 = inlined_call_operand.vmem [shape: f32[1,144], index: 2, kind: input, shape index: {}]   ;;  %s926_s3 = inlined_call_operand.vmem [shape: bf16[144,32], index: 3, kind: input, shape index: {}]   ;;  %s927_s4 = inlined_call_operand.vmem [shape: f32[1,32], index: 4, kind: input, shape index: {}]   ;;  %s928_s5 = inlined_call_operand.vmem [shape: bf16[2,4,32], index: 5, kind: output, shape index: {}]  }
   0x1 LB: > { %s670_s19 = sadd.s32 4294967295, %s753_s18   ;;  %p674_p0 = scmp.ge.s32.totalorder %s753_s18, 1  ;;  %s753_s18 = sphi %s787_s18, %s15_s18  }
   0x2   : > { %p187_p1 = scmp.lt.s32.totalorder %s753_s18, 3 }
   0x4   : > { %p188_p2 = pnand %p674_p0, %p187_p1 }
   0x5   : > { %v738_v0 = vld [vmem:[%s926_s3] sm:$0xff] (!%p188_p2)   ;;  %v230_v1 = vlaneseq (!%p188_p2)  ;;  %v755_v2 = vmov (!%p188_p2), 0   ;;  %p214_p3 = scmp.lt.s32.totalorder (!%p188_p2), %s670_s19, 1  ;;  %v739_v3 = vld [vmem:[%s926_s3 + $0x8] sm:$0xff] (!%p188_p2)   ;;  %v740_v5 = vld [vmem:[%s926_s3 + $0x10] sm:$0xff] (!%p188_p2)   ;;  %vm570_vm0 = vcmask (!%p188_p2), 130048  }
   0x6   : > { %191 = sbr.rel (%p188_p2) target bundleno = 275 (0x113), region = 40  ;;  %574 = vmatprep.subr.bf16.mxu0 (!%p188_p2), %v755_v2  ;;  %v741_v6 = vld [vmem:[%s926_s3 + $0x18] sm:$0xff] (!%p188_p2)   ;;  %v228_v11 = vld [vmem:[%s924_s1] sm:$0x3] (!%p188_p2)  ;;  %v679_v18 = vld [vmem:[%s924_s1 + $0x2] sm:$0x3] (!%p188_p2) }
   0x7   : > { %575 = vmatpush1.bf16.msra.mxu0 (!%p188_p2), %v738_v0  ;;  %v805_v4 = vshrl.u32 (!%p188_p2), %v230_v1, 7  ;;  %v680_v24 = vld [vmem:[%s924_s1 + $0x4] sm:$0x3] (!%p188_p2)  ;;  %v685_v31 = vld [vmem:[%s924_s1 + $0x6] sm:$0x3] (!%p188_p2)  ;;  %v743_v56 = vld [vmem:[%s926_s3 + $0x28] sm:$0xff] (!%p188_p2)  }
   0x8   : > { %576 = vmatprep.subr.bf16.mxu0 (!%p188_p2), %v755_v2  ;;  %v688_v38 = vld [vmem:[%s924_s1 + $0x8] sm:$0x3] (!%p188_p2)  ;;  %v742_v39 = vld [vmem:[%s926_s3 + $0x20] sm:$0xff] (!%p188_p2)   ;;  %v691_v53 = vld [vmem:[%s924_s1 + $0xa] sm:$0x3] (!%p188_p2)  ;;  %vm615_vm1 = vcmask (!%p188_p2), 254976  }
   0x9   : > { %v821_v7 = vsub.s32 (!%p188_p2), 0, %v805_v4  ;;  %v824_v8 = vsub.s32 (!%p188_p2), 1, %v805_v4  ;;  %v696_v61 = vld [vmem:[%s924_s1 + $0xc] sm:$0x3] (!%p188_p2) }
   0xb   : > { %577 = vmatpush1.bf16.msra.mxu0 (!%p188_p2), %v739_v3  ;;  %v233_v14 = vrot.slane (!%p188_p2), %v228_v11, %v821_v7  ;;  %v237_v15 = vrot.slane (!%p188_p2), %v228_v11, %v824_v8  ;;  %v255_v21 = vrot.slane (!%p188_p2), %v679_v18, %v821_v7  ;;  %v259_v22 = vrot.slane (!%p188_p2), %v679_v18, %v824_v8 }
   0xc   : > { %578 = vmatprep.subr.bf16.mxu0 (!%p188_p2), %v755_v2  ;;  %v276_v29 = vrot.slane (!%p188_p2), %v680_v24, %v821_v7  ;;  %v280_v34 = vrot.slane (!%p188_p2), %v680_v24, %v824_v8  ;;  %v307_v42 = vrot.slane (!%p188_p2), %v685_v31, %v821_v7  ;;  %v311_v43 = vrot.slane (!%p188_p2), %v685_v31, %v824_v8 }
   0xd   : > { %s930_s19 = smov (!%p214_p3, %s670_s19), 1  ;;  %v238_v26 = vcombine.low %v233_v14, %v237_v15  ;;  %v260_v33 = vcombine.low %v255_v21, %v259_v22  ;;  %v329_v51 = vrot.slane %v688_v38, %v821_v7  ;;  %v333_v52 = vrot.slane %v688_v38, %v824_v8  ;;  %v745_v38 = vld [vmem:[%s926_s3 + $0x38] sm:$0xff]  }
   0xe   : > { %s727_s24 = smul.u32 48, %s930_s19  ;;  %v281_v46 = vcombine.low %v276_v29, %v280_v34  ;;  %v312_v49 = vcombine.low %v307_v42, %v311_v43  ;;  %v350_v0 = vrot.slane %v691_v53, %v821_v7  ;;  %v354_v1 = vrot.slane %v691_v53, %v824_v8  ;;  %s676_s16 = sshll.u32 %s930_s19, 1 }
   0xf   : > { %579 = vmatpush1.bf16.msra.mxu0 %v740_v5  ;;  %v334_v59 = vcombine.low %v329_v51, %v333_v52  ;;  %s222_s21 = scalar_lea.vmem %s928_s5, %s676_s16 }
  0x10   : > { %s815_s29 = scalar_lea.vmem %s923_s0, %s727_s24  ;;  %580 = vmatprep.subr.bf16.mxu0 %v755_v2  ;;  %v282_v55 = vrot.slane %v281_v46, 7 }
  0x11   : > { %v224_v9 = vld [vmem:[%s815_s29] sm:$0x5]  ;;  %v225_v10 = vld [vmem:[%s815_s29 + $0x4] sm:$0x5]  ;;  %v677_v16 = vld [vmem:[%s815_s29 + $0xc] sm:$0x5] }
  0x12   : > { %v226_v12 = vunpack.c.l.bf16 %v224_v9  ;;  %v227_v13 = vunpack.c.l.bf16 %v225_v10  ;;  %v678_v17 = vld [vmem:[%s815_s29 + $0x10] sm:$0x5]  ;;  %v247_v19 = vunpack.c.l.bf16 %v677_v16  ;;  %v719_v23 = vld [vmem:[%s815_s29] sm:$0xff]   ;;  %v683_v25 = vld [vmem:[%s815_s29 + $0x18] sm:$0x5]  ;;  %v355_v16 = vcombine.low %v350_v0, %v354_v1 }
  0x13   : > { %v248_v20 = vunpack.c.l.bf16 %v678_v17  ;;  %v720_v27 = vunpack.c.l.bf16 %v719_v23  ;;  %v721_v28 = vunpack.c.h.bf16 %v719_v23  ;;  %v684_v30 = vld [vmem:[%s815_s29 + $0x1c] sm:$0x5]  ;;  %v686_v32 = vld [vmem:[%s815_s29 + $0x24] sm:$0x5]  ;;  %v299_v35 = vunpack.c.l.bf16 %v683_v25  ;;  %v687_v37 = vld [vmem:[%s815_s29 + $0x28] sm:$0x5]  ;;  %581 = vmatpush1.bf16.msra.mxu0 %v741_v6 }
  0x14   : > { %v300_v36 = vunpack.c.l.bf16 %v684_v30  ;;  %v240_v40 = vmul.f32 %v238_v26, %v226_v12  ;;  %v241_v41 = vmul.f32 %v238_v26, %v227_v13  ;;  %582 = vmatprep.subr.bf16.mxu0 %v755_v2  ;;  %v262_v44 = vmul.f32 %v260_v33, %v247_v19  ;;  %v726_v48 = vld [vmem:[%s815_s29 + $0x18] sm:$0xff]   ;;  %v694_v3 = vld [vmem:[%s815_s29 + $0x4] sm:$0x5]  ;;  %v695_v5 = vld [vmem:[%s815_s29 + $0x8] sm:$0x5] }
  0x15   : > { %v263_v45 = vmul.f32 %v260_v33, %v248_v20  ;;  %v321_v47 = vunpack.c.l.bf16 %v686_v32  ;;  %v322_v50 = vunpack.c.l.bf16 %v687_v37  ;;  %v314_v58 = vmul.f32 %v312_v49, %v299_v35  ;;  %v699_v6 = vld [vmem:[%s924_s1 + $0xe] sm:$0x3]  ;;  %v697_v13 = vld [vmem:[%s815_s29 + $0x10] sm:$0x5]  ;;  %v698_v18 = vld [vmem:[%s815_s29 + $0x14] sm:$0x5] }
  0x16   : > { %v264_v54 = vadd.f32 %v262_v44, %v240_v40  ;;  %v724_v60 = vunpack.c.l.bf16 %v726_v48  ;;  %v284_v62 = vmul.f32 %v720_v27, %v282_v55  ;;  %v285_v63 = vmul.f32 %v721_v28, %v282_v55  ;;  %v702_v19 = vld [vmem:[%s924_s1 + $0x10] sm:$0x3]  ;;  %v700_v37 = vld [vmem:[%s815_s29 + $0x4] sm:$0xff]  }
  0x17   : > { %583 = vmatpush1.bf16.msra.mxu0 %v742_v39  ;;  %v265_v57 = vadd.f32 %v263_v45, %v241_v41  ;;  %v315_v9 = vmul.f32 %v312_v49, %v300_v36  ;;  %v336_v10 = vmul.f32 %v334_v59, %v321_v47  ;;  %v337_v11 = vmul.f32 %v334_v59, %v322_v50  ;;  %v744_v20 = vld [vmem:[%s926_s3 + $0x30] sm:$0xff]   ;;  %v444_v47 = vld [vmem:[%s925_s2] sm:$0x3] }
  0x18   : > { %584 = vmatprep.subr.bf16.mxu0 %v755_v2  ;;  %v725_v12 = vunpack.c.h.bf16 %v726_v48  ;;  %v681_v14 = vrot.slane %v284_v62, 9  ;;  %v682_v15 = vrot.slane %v285_v63, 9  ;;  %v381_v17 = vrot.slane %v696_v61, %v821_v7  ;;  %v746_v55 = vld [vmem:[%s926_s3 + $0x40] sm:$0xff]  }
  0x19   : > { %v373_v21 = vunpack.c.l.bf16 %v694_v3  ;;  %v374_v22 = vunpack.c.l.bf16 %v695_v5  ;;  %v385_v23 = vrot.slane %v696_v61, %v824_v8  ;;  %v403_v24 = vrot.slane %v699_v6, %v821_v7 }
  0x1a   : > { %v294_v25 = vadd.f32 %v681_v14, %v264_v54  ;;  %v295_v26 = vadd.f32 %v682_v15, %v265_v57  ;;  %v356_v27 = vrot.slane %v355_v16, 7  ;;  %v407_v28 = vrot.slane %v699_v6, %v824_v8 }
  0x1b   : > { %585 = vmatpush1.bf16.msra.mxu0 %v743_v56  ;;  %v386_v29 = vcombine.low %v381_v17, %v385_v23  ;;  %v395_v30 = vunpack.c.l.bf16 %v697_v13  ;;  %v396_v31 = vunpack.c.l.bf16 %v698_v18  ;;  %v424_v32 = vrot.slane %v702_v19, %v821_v7 }
  0x1c   : > { %586 = vmatprep.subr.bf16.mxu0 %v755_v2  ;;  %v316_v33 = vadd.f32 %v314_v58, %v294_v25  ;;  %v317_v34 = vadd.f32 %v315_v9, %v295_v26  ;;  %v358_v35 = vmul.f32 %v724_v60, %v356_v27  ;;  %v359_v36 = vmul.f32 %v725_v12, %v356_v27 }
  0x1d   : > { %v388_v39 = vmul.f32 %v386_v29, %v373_v21  ;;  %v389_v40 = vmul.f32 %v386_v29, %v374_v22  ;;  %v408_v41 = vcombine.low %v403_v24, %v407_v28  ;;  %v428_v42 = vrot.slane %v702_v19, %v824_v8  ;;  %v705_v24 = vld [vmem:[%s927_s4] ss:$0 sm:$0xff] }
  0x1e   : > { %v338_v43 = vadd.f32 %v336_v10, %v316_v33  ;;  %v339_v44 = vadd.f32 %v337_v11, %v317_v34  ;;  %v692_v45 = vrot.slane %v358_v35, 9  ;;  %v693_v46 = vrot.slane %v359_v36, 9 }
  0x1f   : > { %587 = vmatpush1.bf16.msra.mxu0 %v744_v20  ;;  %v410_v48 = vmul.f32 %v408_v41, %v395_v30  ;;  %v416_v49 = vunpack.c.l.bf16 %v700_v37  ;;  %v417_v50 = vunpack.c.h.bf16 %v700_v37  ;;  %v429_v51 = vcombine.low %v424_v32, %v428_v42 }
  0x20   : > { %588 = vmatprep.subr.bf16.mxu0 %v755_v2  ;;  %v368_v52 = vadd.f32 %v692_v45, %v338_v43  ;;  %v369_v53 = vadd.f32 %v693_v46, %v339_v44  ;;  %v411_v54 = vmul.f32 %v408_v41, %v396_v31  ;;  %v449_v57 = vrot.slane %v444_v47, %v821_v7 }
  0x21   : > { %v430_v56 = vrot.slane %v429_v51, 7  ;;  %v453_v58 = vrot.slane %v444_v47, %v824_v8  ;;  %v756_v63 = vmov 1983009808  }
  0x22   : > { %v390_v59 = vadd.f32 %v388_v39, %v368_v52  ;;  %v391_v60 = vadd.f32 %v389_v40, %v369_v53  ;;  %v465_v0 = vunpack.c.l.s4 %v756_v63 }
  0x23   : > { %589 = vmatpush1.bf16.msra.mxu0 %v745_v38  ;;  %v432_v61 = vmul.f32 %v430_v56, %v416_v49  ;;  %v433_v62 = vmul.f32 %v430_v56, %v417_v50  ;;  %v454_v9 = vcombine.low %v449_v57, %v453_v58 }
  0x24   : > { %590 = vmatprep.subr.bf16.mxu0 %v755_v2  ;;  %v412_v1 = vadd.f32 %v410_v48, %v390_v59  ;;  %v413_v3 = vadd.f32 %v411_v54, %v391_v60  ;;  %v466_v12 = vunpack.c.0.s8 %v465_v0 }
  0x25   : > { %v703_v5 = vrot.slane %v432_v61, 9  ;;  %v704_v6 = vrot.slane %v433_v62, 9 }
  0x26   : > { %v469_v14 = vsub.s32 %v466_v12, %v805_v4 }
  0x27   : > { %591 = vmatpush1.bf16.msra.mxu0 %v746_v55  ;;  %v442_v10 = vadd.f32 %v703_v5, %v412_v1  ;;  %v443_v11 = vadd.f32 %v704_v6, %v413_v3 }
  0x29   : > { %v456_v7 = vadd.f32 %v454_v9, %v442_v10  ;;  %v457_v13 = vadd.f32 %v454_v9, %v443_v11 }
  0x2b   : > { %v458_v8 = vmax.f32 %v456_v7, 0.0  ;;  %v459_v2 = vmax.f32 %v457_v13, 0.0 }
  0x2d   : > { %v460_v15 = vmin.f32 %v458_v8, 6.0  ;;  %v461_v16 = vmin.f32 %v459_v2, 6.0 }
  0x2f   : > { %v470_v17 = vrot.slane %v460_v15, %v469_v14  ;;  %v477_v18 = vrot.slane %v461_v16, %v469_v14 }
  0x31   : > { %v478_v19 = vcombine.low %v470_v17, %v477_v18 }
  0x33   : > { %v485_v20 = vrot.slane %v478_v19, %v469_v14 }
  0x35   : > { %v486_v21 = vcombine.high %v485_v20, %v485_v20  ;;  %v489_v22 = vpack.c.bf16 %v485_v20, %v485_v20 }
  0x37   : > { %v490_v23 = vpack.c.bf16 %v486_v21, %v486_v21 }
  0x39   : > { %715 = vmatprep.mubr.msk.bf16.mxu0 %vm570_vm0, %v490_v23 }
  0x3a   : > { %607 = vmatmul.mubr.bf16.vlgmr.msra.gmra.mrb[0].mxu0 %v489_v22 }
 0x10d   : > { %v608_v25 = vpop.f32.mrb[0].mxu0 }
 0x10e   : > { %v609_v26 = vadd.f32 %v705_v24, %v608_v25  ;;  %v610_v4 = vpop.f32.mrb[1].mxu0 }
 0x10f   : > { %v611_v27 = vpop.f32.mrb[2].mxu0 }
 0x110   : > { %v614_v28 = vpack.c.bf16 %v609_v26, %v609_v26  ;;  %v612_v29 = vpop.f32.mrb[3].mxu0 }
 0x112   : > { %616 = vst.msk [vmem:[%s222_s21] sm:$0x3] %vm615_vm1, %v614_v28 }
 0x113 PF: > { %s15_s18 = sadd.s32 1, %s753_s18  }
 0x114   : > { %p12_p4 = scmp.ge.s32.totalorder %s15_s18, 4  }
 0x116   :  { %14 = sbr.rel (!%p12_p4) target bundleno = 1 (0x1), region = 83 }

// kernel: _lambda_.26
= control target key start
LH: loop header
LB: loop body
LE: loop exit
PB: predicated region body
PF: predicated region fallthrough
CT: control target
= control target key end

     0   :  { %v131_v1 = vmov 0   ;;  %vm52_vm0 = vcmask 261120   ;;  %v22_v6 = vlaneseq  ;;  %vm109_vm1 = vcmask 1043456   ;;  %s173_s1 = inlined_call_operand.vmem [shape: bf16[32,192], index: 1, kind: input, shape index: {}]   ;;  %s174_s0 = inlined_call_operand.vmem [shape: bf16[8,32], index: 0, kind: input, shape index: {}]   ;;  %s175_s2 = inlined_call_operand.vmem [shape: f32[1,192], index: 2, kind: input, shape index: {}]   ;;  %s176_s3 = inlined_call_operand.vmem [shape: bf16[8,192], index: 3, kind: output, shape index: {}]  }
   0x1   :  { %v125_v0 = vld [vmem:[%s173_s1 + $0x4] ss:$8 sps:$4 sm:$0xff]   ;;  %88 = vmatprep.mubr.bf16.mxu0 %v131_v1  ;;  %v127_v2 = vld [vmem:[%s173_s1] ss:$8 sps:$4 sm:$0xff]   ;;  %v128_v3 = vld [vmem:[%s173_s1 + $0x14] ss:$8 sps:$4 sm:$0xff]  }
   0x2   :  { %56 = vmatprep.subr.bf16.mxu0 %v125_v0  ;;  %v130_v4 = vld [vmem:[%s173_s1 + $0x10] ss:$8 sps:$4 sm:$0xff]   ;;  %v15_v5 = vld [vmem:[%s174_s0] sm:$0xf]  ;;  %v23_v7 = vshrl.u32 %v22_v6, 7  ;;  %vm110_vm2 = vcmask 523268  }
   0x3   :  { %57 = vmatpush1.bf16.msra.mxu0 %v127_v2  ;;  %v20_v9 = vld [vmem:[%s175_s2] sm:$0x3]  ;;  %vm111_vm3 = vmor %vm110_vm2, %vm109_vm1 }
   0x4   :  { %58 = vmatprep.subr.bf16.mxu0 %v128_v3  ;;  %v24_v8 = vsub.s32 0, %v23_v7  ;;  %v28_v10 = vsub.s32 1, %v23_v7 }
   0x6   :  { %v25_v11 = vrot.slane %v20_v9, %v24_v8  ;;  %v29_v12 = vrot.slane %v20_v9, %v28_v10 }
   0x7   :  { %59 = vmatpush1.bf16.msra.mxu0 %v130_v4 }
   0xa   :  { %121 = vmatmul.mubr.msk.bf16.vlgmr.msra.gmra.mrb[0].mxu0 %vm52_vm0, %v15_v5 }
  0xdd   :  { %v90_v13 = vpop.f32.mrb[0].mxu0 }
  0xde   :  { %v91_v14 = vadd.f32 %v90_v13, %v25_v11  ;;  %v92_v15 = vpop.f32.mrb[1].mxu0 }
  0xdf   :  { %v93_v16 = vadd.f32 %v92_v15, %v29_v12  ;;  %v94_v17 = vpop.f32.mrb[2].mxu0 }
  0xe0   :  { %v97_v18 = vmax.f32 %v91_v14, 0.0  ;;  %v95_v19 = vpop.f32.mrb[3].mxu0 }
  0xe1   :  { %v98_v20 = vmax.f32 %v93_v16, 0.0 }
  0xe2   :  { %v99_v21 = vmin.f32 %v97_v18, 6.0 }
  0xe3   :  { %v100_v22 = vmin.f32 %v98_v20, 6.0 }
  0xe5   :  { %v123_v23 = vpack.c.bf16 %v100_v22, %v99_v21 }
  0xe7   :  { %112 = vst.msk [vmem:[%s176_s3] sm:$0xff] %vm111_vm3, %v123_v23 }

// kernel: _lambda_.24
= control target key start
LH: loop header
LB: loop body
LE: loop exit
PB: predicated region body
PF: predicated region fallthrough
CT: control target
= control target key end

     0   :  { %s1008_s24 = smov 0   ;;  %s1165_s0 = inlined_call_operand.vmem [shape: bf16[2,4,32], index: 0, kind: input, shape index: {}]   ;;  %s1166_s1 = inlined_call_operand.vmem [shape: bf16[32,192], index: 1, kind: input, shape index: {}]   ;;  %s1167_s2 = inlined_call_operand.vmem [shape: f32[1,192], index: 2, kind: input, shape index: {}]   ;;  %s1168_s3 = inlined_call_operand.vmem [shape: f32[9,1,192], index: 3, kind: input, shape index: {}]   ;;  %s1169_s4 = inlined_call_operand.vmem [shape: f32[1,192], index: 4, kind: input, shape index: {}]   ;;  %s1170_s5 = inlined_call_operand.vmem [shape: bf16[192,32], index: 5, kind: input, shape index: {}]   ;;  %s1171_s6 = inlined_call_operand.vmem [shape: f32[1,32], index: 6, kind: input, shape index: {}]   ;;  %s1172_s7 = inlined_call_operand.vmem [shape: bf16[2,4,32], index: 7, kind: output, shape index: {}]  }
   0x1 LB: > { %s880_s25 = sadd.s32 4294967295, %s963_s24   ;;  %p884_p0 = scmp.ge.s32.totalorder %s963_s24, 1  ;;  %s963_s24 = sphi %s1008_s24, %s17_s24  }
   0x2   : > { %p236_p1 = scmp.lt.s32.totalorder %s963_s24, 3 }
   0x4   : > { %p237_p2 = pnand %p884_p0, %p236_p1 }
   0x5   : > { %v939_v0 = vld [vmem:[%s1166_s1 + $0x4] ss:$8 sps:$4 sm:$0xff] (!%p237_p2)   ;;  %p266_p3 = scmp.lt.s32.totalorder (!%p237_p2), %s880_s25, 1  ;;  %v941_v1 = vld [vmem:[%s1166_s1] ss:$8 sps:$4 sm:$0xff] (!%p237_p2)   ;;  %v965_v2 = vmov (!%p237_p2), 0   ;;  %v282_v19 = vlaneseq (!%p237_p2) }
   0x6   : > { %240 = sbr.rel (%p237_p2) target bundleno = 509 (0x1fd), region = 48  ;;  %348 = vmatprep.mubr.bf16.mxu0 (!%p237_p2), %v965_v2  ;;  %782 = vmatprep.subr.bf16.mxu1 (!%p237_p2), %v965_v2  ;;  %v942_v3 = vld [vmem:[%s1166_s1 + $0x14] ss:$8 sps:$4 sm:$0xff] (!%p237_p2)   ;;  %v944_v4 = vld [vmem:[%s1166_s1 + $0x10] ss:$8 sps:$4 sm:$0xff] (!%p237_p2)   ;;  %vm312_vm0 = vcmask (!%p237_p2), 261120  }
   0x7   : > { %316 = vmatprep.subr.bf16.mxu0 (!%p237_p2), %v939_v0  ;;  %vm361_vm1 = vcmask (!%p237_p2), 1043456   ;;  %vm362_vm2 = vcmask (!%p237_p2), 523268   ;;  %v966_v6 = vmov (!%p237_p2), 0.0   ;;  %v945_v7 = vld [vmem:[%s1170_s5] sm:$0xff] (!%p237_p2)   ;;  %v946_v8 = vld [vmem:[%s1170_s5 + $0x8] sm:$0xff] (!%p237_p2)   ;;  %v947_v9 = vld [vmem:[%s1170_s5 + $0x10] sm:$0xff] (!%p237_p2)  }
   0x8   : > { %317 = vmatpush1.bf16.msra.mxu0 (!%p237_p2), %v941_v1  ;;  %vm363_vm3 = vmor (!%p237_p2), %vm362_vm2, %vm361_vm1  ;;  %783 = vmatpush1.bf16.msra.mxu1 (!%p237_p2), %v945_v7  ;;  %v948_v10 = vld [vmem:[%s1170_s5 + $0x18] sm:$0xff] (!%p237_p2)   ;;  %v949_v11 = vld [vmem:[%s1170_s5 + $0x20] sm:$0xff] (!%p237_p2)   ;;  %v283_v20 = vshrl.u32 (!%p237_p2), %v282_v19, 7  ;;  %v967_v27 = vmov (!%p237_p2), 1983009808   ;;  %vm398_vm4 = vcmask (!%p237_p2), 1042433  }
   0x9   : > { %318 = vmatprep.subr.bf16.mxu0 (!%p237_p2), %v942_v3  ;;  %364 = vst.msk [vmem:[#allocation2] sm:$0xff] (!%p237_p2), %vm363_vm3, %v966_v6  ;;  %365 = vst.msk [vmem:[#allocation2 + $0x8] sm:$0xff] (!%p237_p2), %vm363_vm3, %v966_v6  ;;  %784 = vmatprep.subr.bf16.mxu1 (!%p237_p2), %v965_v2  ;;  %v950_v12 = vld [vmem:[%s1170_s5 + $0x28] sm:$0xff] (!%p237_p2)   ;;  %v951_v13 = vld [vmem:[%s1170_s5 + $0x30] sm:$0xff] (!%p237_p2)   ;;  %v372_v28 = vunpack.c.l.s4 (!%p237_p2), %v967_v27  ;;  %vm399_vm5 = vcmask (!%p237_p2), 522245   ;;  %vm778_vm7 = vcmask (!%p237_p2), 523264  }
   0xa   : > { %366 = vst.msk [vmem:[#allocation2 + $0x10] sm:$0xff] (!%p237_p2), %vm363_vm3, %v966_v6  ;;  %367 = vst.msk [vmem:[#allocation2 + $0x18] sm:$0xff] (!%p237_p2), %vm363_vm3, %v966_v6  ;;  %v952_v14 = vld [vmem:[%s1170_s5 + $0x38] sm:$0xff] (!%p237_p2)   ;;  %v953_v15 = vld [vmem:[%s1170_s5 + $0x40] sm:$0xff] (!%p237_p2)   ;;  %v1075_v21 = vsub.s32 (!%p237_p2), 0, %v283_v20  ;;  %v1080_v23 = vsub.s32 (!%p237_p2), 1, %v283_v20 }
   0xb   : > { %v954_v16 = vld [vmem:[%s1170_s5 + $0x48] sm:$0xff] (!%p237_p2)   ;;  %v955_v17 = vld [vmem:[%s1170_s5 + $0x50] sm:$0xff] (!%p237_p2)   ;;  %v956_v18 = vld [vmem:[%s1170_s5 + $0x58] sm:$0xff] (!%p237_p2)   ;;  %v373_v36 = vunpack.c.0.s8 (!%p237_p2), %v372_v28  ;;  %vm825_vm8 = vcmask (!%p237_p2), 254976  }
   0xc   : > { %319 = vmatpush1.bf16.msra.mxu0 (!%p237_p2), %v944_v4  ;;  %785 = vmatpush1.bf16.msra.mxu1 (!%p237_p2), %v946_v8  ;;  %v280_v22 = vld [vmem:[%s1167_s2] sm:$0x3] (!%p237_p2)  ;;  %v892_v24 = vld [vmem:[%s1168_s3 + $0x2] sm:$0x3] (!%p237_p2)  ;;  %v895_v32 = vld [vmem:[%s1168_s3 + $0x4] sm:$0x3] (!%p237_p2) }
   0xd   : > { %s1176_s25 = smov (!%p266_p3, %s880_s25), 1  ;;  %786 = vmatprep.subr.bf16.mxu1 %v965_v2  ;;  %v285_v25 = vrot.slane %v280_v22, %v1075_v21  ;;  %v289_v26 = vrot.slane %v280_v22, %v1080_v23  ;;  %v429_v29 = vrot.slane %v892_v24, %v1075_v21  ;;  %v433_v30 = vrot.slane %v892_v24, %v1080_v23  ;;  %v405_v44 = vld [vmem:[%s1168_s3] sm:$0x3]  ;;  %v899_v55 = vld [vmem:[%s1168_s3 + $0x8] sm:$0x3]  ;;  %vm1112_vm6 = vmor %vm399_vm5, %vm398_vm4 }
   0xe   : > { %s885_s11 = sshll.u32 %s1176_s25, 1  ;;  %v457_v41 = vrot.slane %v895_v32, %v1075_v21  ;;  %v461_v42 = vrot.slane %v895_v32, %v1080_v23  ;;  %v1099_v47 = vsub.s32 %v373_v36, %v283_v20  ;;  %v410_v48 = vrot.slane %v405_v44, %v1075_v21  ;;  %v902_v56 = vld [vmem:[%s1168_s3 + $0xa] sm:$0x3]  ;;  %v898_v1 = vld [vmem:[%s1168_s3 + $0x6] sm:$0x3] }
   0xf   : > { %s269_s14 = scalar_lea.vmem %s1165_s0, %s885_s11  ;;  %v1092_v40 = vcombine.low %v429_v29, %v433_v30  ;;  %v414_v49 = vrot.slane %v405_v44, %v1080_v23  ;;  %v508_v3 = vrot.slane %v899_v55, %v1080_v23  ;;  %v532_v4 = vrot.slane %v902_v56, %v1075_v21  ;;  %v905_v27 = vld [vmem:[%s1168_s3 + $0xc] sm:$0x3]  ;;  %s273_s27 = scalar_lea.vmem %s1172_s7, %s885_s11 }
  0x10   : > { %v1036_v5 = vld [vmem:[%s269_s14] sm:$0x3]  ;;  %787 = vmatpush1.bf16.msra.mxu1 %v947_v9  ;;  %v462_v51 = vcombine.low %v457_v41, %v461_v42  ;;  %v421_v53 = vld [vmem:[#allocation2] sm:$0x66]  ;;  %v536_v6 = vrot.slane %v902_v56, %v1080_v23  ;;  %v906_v9 = vld [vmem:[%s1168_s3 + $0xe] sm:$0x3]  ;;  %v561_v36 = vrot.slane %v905_v27, %v1075_v21 }
  0x11   : > { %891 = vmatmul.mubr.msk.bf16.vlgmr.msra.gmra.mrb[0].mxu0 %vm312_vm0, %v1036_v5  ;;  %788 = vmatprep.subr.bf16.mxu1 %v965_v2  ;;  %v435_v50 = vrot.slane %v1092_v40, 7  ;;  %v415_v57 = vcombine.low %v410_v48, %v414_v49  ;;  %v403_v62 = vld [vmem:[#allocation2] sm:$0x33]  ;;  %v449_v63 = vld [vmem:[#allocation2] sm:$0xcc]  ;;  %v580_v19 = vrot.slane %v906_v9, %v1075_v21  ;;  %v584_v20 = vrot.slane %v906_v9, %v1080_v23 }
  0x12   : > { %v463_v59 = vrot.slane %v462_v51, 6 }
  0x13   : > { %v437_v58 = vmul.f32 %v435_v50, %v421_v53 }
  0x14   : > { %789 = vmatpush1.bf16.msra.mxu1 %v948_v10  ;;  %v417_v10 = vmul.f32 %v415_v57, %v403_v62 }
  0x15   : > { %790 = vmatprep.subr.bf16.mxu1 %v965_v2 }
  0x18   : > { %791 = vmatpush1.bf16.msra.mxu1 %v949_v11  ;;  %v893_v11 = vrot.slane %v437_v58, 9 }
  0x19   : > { %792 = vmatprep.subr.bf16.mxu1 %v965_v2 }
  0x1a   : > { %v447_v22 = vadd.f32 %v893_v11, %v417_v10  ;;  %v554_v11 = vld [vmem:[#allocation2 + $0x18] sm:$0x33] }
  0x1c   : > { %793 = vmatpush1.bf16.msra.mxu1 %v950_v12  ;;  %v465_v12 = vmul.f32 %v463_v59, %v449_v63 }
  0x1d   : > { %794 = vmatprep.subr.bf16.mxu1 %v965_v2 }
  0x1e   : > { %v896_v24 = vrot.slane %v465_v12, 10 }
  0x20   : > { %795 = vmatpush1.bf16.msra.mxu1 %v951_v13 }
  0x21   : > { %796 = vmatprep.subr.bf16.mxu1 %v965_v2 }
  0x24   : > { %797 = vmatpush1.bf16.msra.mxu1 %v952_v14  ;;  %v485_v14 = vrot.slane %v898_v1, %v1075_v21 }
  0x25   : > { %798 = vmatprep.subr.bf16.mxu1 %v965_v2 }
  0x28   : > { %799 = vmatpush1.bf16.msra.mxu1 %v953_v15  ;;  %v489_v15 = vrot.slane %v898_v1, %v1080_v23 }
  0x29   : > { %800 = vmatprep.subr.bf16.mxu1 %v965_v2 }
  0x2a   : > { %v490_v28 = vcombine.low %v485_v14, %v489_v15 }
  0x2c   : > { %801 = vmatpush1.bf16.msra.mxu1 %v954_v16  ;;  %v909_v16 = vld [vmem:[%s1168_s3 + $0x10] sm:$0x3] }
  0x2d   : > { %802 = vmatprep.subr.bf16.mxu1 %v965_v2 }
  0x30   : > { %803 = vmatpush1.bf16.msra.mxu1 %v955_v17 }
  0x31   : > { %804 = vmatprep.subr.bf16.mxu1 %v965_v2  ;;  %v504_v2 = vrot.slane %v899_v55, %v1075_v21 }
  0x33   : > { %v509_v17 = vcombine.low %v504_v2, %v508_v3 }
  0x34   : > { %805 = vmatpush1.bf16.msra.mxu1 %v956_v18  ;;  %v537_v18 = vcombine.low %v532_v4, %v536_v6 }
  0x35   : > { %v510_v29 = vrot.slane %v509_v17, 7 }
  0x36   : > { %v538_v30 = vrot.slane %v537_v18, 6 }
  0xe4   : > { %v350_v31 = vpop.f32.mrb[0].mxu0 }
  0xe5   : > { %v351_v33 = vadd.f32 %v350_v31, %v285_v25  ;;  %v352_v34 = vpop.f32.mrb[1].mxu0  ;;  %v608_v25 = vrot.slane %v909_v16, %v1075_v21  ;;  %v585_v31 = vcombine.low %v580_v19, %v584_v20 }
  0xe6   : > { %v353_v35 = vadd.f32 %v352_v34, %v289_v26  ;;  %v354_v37 = vpop.f32.mrb[2].mxu0  ;;  %v612_v26 = vrot.slane %v909_v16, %v1080_v23 }
  0xe7   : > { %v357_v38 = vmax.f32 %v351_v33, 0.0  ;;  %v355_v39 = vpop.f32.mrb[3].mxu0  ;;  %v565_v37 = vrot.slane %v905_v27, %v1080_v23  ;;  %v586_v49 = vrot.slane %v585_v31, 7 }
  0xe8   : > { %v358_v43 = vmax.f32 %v353_v35, 0.0  ;;  %v475_v35 = vadd.f32 %v896_v24, %v447_v22 }
  0xe9   : > { %v359_v45 = vmin.f32 %v357_v38, 6.0  ;;  %v613_v38 = vcombine.low %v608_v25, %v612_v26 }
  0xea   : > { %v360_v46 = vmin.f32 %v358_v43, 6.0 }
  0xec   : > { %v370_v52 = vcombine.low %v359_v45, %v360_v46 }
  0xee   : > { %v377_v54 = vrot.slane %v370_v52, %v1099_v47 }
  0xf0   : > { %v378_v60 = vcombine.high %v377_v54, %v377_v54  ;;  %v385_v61 = vrot.slane %v377_v54, %v1099_v47  ;;  %v628_v54 = vld [vmem:[%s1169_s4] sm:$0x3] }
  0xf1   : > { %v633_v9 = vrot.slane %v628_v54, %v1075_v21  ;;  %v637_v15 = vrot.slane %v628_v54, %v1080_v23 }
  0xf2   : > { %v392_v7 = vrot.slane %v378_v60, %v1099_v47  ;;  %v393_v8 = vrot.slane %v385_v61, 7  ;;  %v614_v60 = vrot.slane %v613_v38, 6 }
  0xf4   : > { %v394_v13 = vrot.slane %v392_v7, 7  ;;  %401 = vst.msk [vmem:[#allocation2 + $0x8] sm:$0x66] %vm1112_vm6, %v393_v8 }
  0xf6   : > { %402 = vst.msk [vmem:[#allocation2 + $0x10] sm:$0x66] %vm1112_vm6, %v394_v13  ;;  %v601_v13 = vld [vmem:[#allocation2 + $0x18] sm:$0xcc] }
  0xf7   : > { %v617_v26 = vmul.f32 %v614_v60, %v601_v13 }
  0xfb   : > { %v404_v32 = vld [vmem:[#allocation2 + $0x8] sm:$0x33]  ;;  %v450_v34 = vld [vmem:[#allocation2 + $0x8] sm:$0xcc] }
  0xfc   : > { %v422_v33 = vld [vmem:[#allocation2 + $0x8] sm:$0x66]  ;;  %v466_v40 = vmul.f32 %v463_v59, %v450_v34  ;;  %v418_v51 = vmul.f32 %v415_v57, %v404_v32  ;;  %v566_v59 = vcombine.low %v561_v36, %v565_v37  ;;  %v573_v57 = vld [vmem:[#allocation2 + $0x18] sm:$0x66] }
  0xfd   : > { %v438_v39 = vmul.f32 %v435_v50, %v422_v33  ;;  %v477_v41 = vld [vmem:[#allocation2 + $0x8] sm:$0x33]  ;;  %v524_v43 = vld [vmem:[#allocation2 + $0x8] sm:$0xcc]  ;;  %v497_v45 = vld [vmem:[#allocation2 + $0x10] sm:$0x66]  ;;  %v589_v18 = vmul.f32 %v586_v49, %v573_v57 }
  0xfe   : > { %v496_v42 = vld [vmem:[#allocation2 + $0x8] sm:$0x66]  ;;  %v492_v44 = vmul.f32 %v490_v28, %v477_v41  ;;  %v540_v48 = vmul.f32 %v538_v30, %v524_v43  ;;  %v572_v53 = vld [vmem:[#allocation2 + $0x10] sm:$0x66]  ;;  %v897_v62 = vrot.slane %v466_v40, 10  ;;  %v513_v63 = vmul.f32 %v510_v29, %v497_v45 }
  0xff   : > { %v512_v46 = vmul.f32 %v510_v29, %v496_v42  ;;  %v894_v52 = vrot.slane %v438_v39, 9  ;;  %v478_v55 = vld [vmem:[#allocation2 + $0x10] sm:$0x33]  ;;  %v525_v50 = vld [vmem:[#allocation2 + $0x10] sm:$0xcc]  ;;  %v588_v4 = vmul.f32 %v586_v49, %v572_v53  ;;  %v569_v25 = vmul.f32 %v566_v59, %v554_v11 }
 0x100   : > { %v494_v56 = vadd.f32 %v492_v44, %v475_v35  ;;  %v553_v0 = vld [vmem:[#allocation2 + $0x10] sm:$0x33]  ;;  %v600_v1 = vld [vmem:[#allocation2 + $0x10] sm:$0xcc]  ;;  %v903_v3 = vrot.slane %v540_v48, 10  ;;  %v493_v7 = vmul.f32 %v490_v28, %v478_v55  ;;  %v541_v8 = vmul.f32 %v538_v30, %v525_v50 }
 0x101   : > { %v900_v58 = vrot.slane %v512_v46, 9  ;;  %v448_v61 = vadd.f32 %v894_v52, %v418_v51  ;;  %v568_v12 = vmul.f32 %v566_v59, %v553_v0  ;;  %v616_v14 = vmul.f32 %v614_v60, %v600_v1  ;;  %v912_v49 = vld [vmem:[%s1171_s6] ss:$0 sm:$0xff] }
 0x102   : > { %v901_v17 = vrot.slane %v513_v63, 9  ;;  %v907_v20 = vrot.slane %v588_v4, 9  ;;  %v904_v24 = vrot.slane %v541_v8, 10  ;;  %v638_v29 = vcombine.low %v633_v9, %v637_v15 }
 0x103   : > { %v522_v2 = vadd.f32 %v900_v58, %v494_v56  ;;  %v476_v6 = vadd.f32 %v897_v62, %v448_v61  ;;  %v910_v28 = vrot.slane %v616_v14, 10  ;;  %v908_v30 = vrot.slane %v589_v18, 9 }
 0x104   : > { %v911_v33 = vrot.slane %v617_v26, 10  ;;  %v822_v51 = vunpack.c.l.bf16 %v1036_v5 }
 0x105   : > { %v550_v10 = vadd.f32 %v903_v3, %v522_v2  ;;  %v495_v16 = vadd.f32 %v493_v7, %v476_v6 }
 0x107   : > { %v570_v19 = vadd.f32 %v568_v12, %v550_v10  ;;  %v523_v22 = vadd.f32 %v901_v17, %v495_v16 }
 0x109   : > { %v598_v27 = vadd.f32 %v907_v20, %v570_v19  ;;  %v551_v21 = vadd.f32 %v904_v24, %v523_v22 }
 0x10b   : > { %v626_v31 = vadd.f32 %v910_v28, %v598_v27  ;;  %v571_v32 = vadd.f32 %v569_v25, %v551_v21 }
 0x10d   : > { %v640_v34 = vadd.f32 %v638_v29, %v626_v31  ;;  %v599_v35 = vadd.f32 %v908_v30, %v571_v32 }
 0x10f   : > { %v627_v23 = vadd.f32 %v911_v33, %v599_v35  ;;  %v642_v36 = vmax.f32 %v640_v34, 0.0 }
 0x111   : > { %v641_v37 = vadd.f32 %v638_v29, %v627_v23  ;;  %v644_v39 = vmin.f32 %v642_v36, 6.0 }
 0x113   : > { %v643_v38 = vmax.f32 %v641_v37, 0.0  ;;  %v654_v41 = vrot.slane %v644_v39, %v1099_v47 }
 0x115   : > { %v645_v40 = vmin.f32 %v643_v38, 6.0 }
 0x117   : > { %v661_v42 = vrot.slane %v645_v40, %v1099_v47 }
 0x119   : > { %v662_v43 = vcombine.low %v654_v41, %v661_v42 }
 0x11b   : > { %v669_v44 = vrot.slane %v662_v43, %v1099_v47 }
 0x11d   : > { %v670_v45 = vcombine.high %v669_v44, %v669_v44  ;;  %v673_v48 = vpack.c.bf16 %v669_v44, %v669_v44 }
 0x11f   : > { %v674_v46 = vpack.c.bf16 %v670_v45, %v670_v45 }
 0x121   : > { %925 = vmatprep.mubr.msk.bf16.mxu1 %vm778_vm7, %v674_v46 }
 0x122   : > { %815 = vmatmul.mubr.bf16.vlgmr.msra.gmra.mrb[0].mxu1 %v673_v48 }
 0x1f5   : > { %v816_v52 = vpop.f32.mrb[0].mxu1 }
 0x1f6   : > { %v817_v53 = vadd.f32 %v912_v49, %v816_v52  ;;  %v818_v54 = vpop.f32.mrb[1].mxu1 }
 0x1f7   : > { %v819_v55 = vpop.f32.mrb[2].mxu1 }
 0x1f8   : > { %v823_v56 = vadd.f32 %v822_v51, %v817_v53  ;;  %v820_v58 = vpop.f32.mrb[3].mxu1 }
 0x1fa   : > { %v824_v47 = vpack.c.bf16 %v823_v56, %v823_v56 }
 0x1fc   : > { %826 = vst.msk [vmem:[%s273_s27] sm:$0x3] %vm825_vm8, %v824_v47 }
 0x1fd PF: > { %s17_s24 = sadd.s32 1, %s963_s24  }
 0x1fe   : > { %p14_p4 = scmp.ge.s32.totalorder %s17_s24, 4  }
 0x200   :  { %16 = sbr.rel (!%p14_p4) target bundleno = 1 (0x1), region = 88 }

// kernel: _lambda_.27
= control target key start
LH: loop header
LB: loop body
LE: loop exit
PB: predicated region body
PF: predicated region fallthrough
CT: control target
= control target key end

     0   :  { %s684_s18 = smov 0   ;;  %s811_s0 = inlined_call_operand.vmem [shape: bf16[2,4,2,2,192], index: 0, kind: input, shape index: {}]   ;;  %s812_s1 = inlined_call_operand.vmem [shape: f32[9,1,192], index: 1, kind: input, shape index: {}]   ;;  %s813_s2 = inlined_call_operand.vmem [shape: f32[1,192], index: 2, kind: input, shape index: {}]   ;;  %s814_s3 = inlined_call_operand.vmem [shape: bf16[192,64], index: 3, kind: input, shape index: {}]   ;;  %s815_s4 = inlined_call_operand.vmem [shape: f32[1,64], index: 4, kind: input, shape index: {}]   ;;  %s816_s5 = inlined_call_operand.vmem [shape: bf16[2,1,64], index: 5, kind: output, shape index: {}]  }
   0x1 LB: > { %s585_s19 = sadd.s32 4294967295, %s650_s18   ;;  %p589_p0 = scmp.ge.s32.totalorder %s650_s18, 1  ;;  %s650_s18 = sphi %s684_s18, %s15_s18  }
   0x2   : > { %p186_p1 = scmp.lt.s32.totalorder %s650_s18, 3 }
   0x4   : > { %p187_p2 = pnand %p589_p0, %p186_p1 }
   0x5   : > { %v632_v0 = vld [vmem:[%s814_s3] sm:$0xff] (!%p187_p2)   ;;  %v652_v1 = vmov (!%p187_p2), 0   ;;  %p211_p3 = scmp.lt.s32.totalorder (!%p187_p2), %s585_s19, 1  ;;  %v633_v2 = vld [vmem:[%s814_s3 + $0x8] sm:$0xff] (!%p187_p2)   ;;  %v634_v3 = vld [vmem:[%s814_s3 + $0x10] sm:$0xff] (!%p187_p2)   ;;  %v226_v4 = vlaneseq (!%p187_p2)  ;;  %vm487_vm0 = vcmask (!%p187_p2), 523264  }
   0x6   : > { %190 = sbr.rel (%p187_p2) target bundleno = 272 (0x110), region = 40  ;;  %491 = vmatprep.subr.bf16.mxu0 (!%p187_p2), %v652_v1  ;;  %v635_v5 = vld [vmem:[%s814_s3 + $0x18] sm:$0xff] (!%p187_p2)   ;;  %v653_v6 = vmov (!%p187_p2), 857870592   ;;  %v636_v9 = vld [vmem:[%s814_s3 + $0x20] sm:$0xff] (!%p187_p2)   ;;  %v637_v23 = vld [vmem:[%s814_s3 + $0x28] sm:$0xff] (!%p187_p2)  }
   0x7   : > { %492 = vmatpush1.bf16.msra.mxu0 (!%p187_p2), %v632_v0  ;;  %v224_v7 = vunpack.c.l.s4 (!%p187_p2), %v653_v6  ;;  %v716_v8 = vshrl.u32 (!%p187_p2), %v226_v4, 7  ;;  %v221_v12 = vld [vmem:[%s812_s1] sm:$0x3] (!%p187_p2)  ;;  %v592_v15 = vld [vmem:[%s812_s1 + $0x2] sm:$0x3] (!%p187_p2)  ;;  %v638_v37 = vld [vmem:[%s814_s3 + $0x30] sm:$0xff] (!%p187_p2)  }
   0x8   : > { %493 = vmatprep.subr.bf16.mxu0 (!%p187_p2), %v652_v1  ;;  %v593_v16 = vld [vmem:[%s812_s1 + $0x4] sm:$0x3] (!%p187_p2)  ;;  %v596_v17 = vld [vmem:[%s812_s1 + $0x6] sm:$0x3] (!%p187_p2)  ;;  %v599_v22 = vld [vmem:[%s812_s1 + $0xa] sm:$0x3] (!%p187_p2) }
   0x9   : > { %v225_v13 = vunpack.c.0.s8 (!%p187_p2), %v224_v7  ;;  %v598_v25 = vld [vmem:[%s812_s1 + $0x8] sm:$0x3] (!%p187_p2)  ;;  %v602_v38 = vld [vmem:[%s812_s1 + $0xc] sm:$0x3] (!%p187_p2)  ;;  %v605_v39 = vld [vmem:[%s812_s1 + $0x10] sm:$0x3] (!%p187_p2) }
   0xa   : > { %v604_v46 = vld [vmem:[%s812_s1 + $0xe] sm:$0x3] (!%p187_p2)  ;;  %v639_v51 = vld [vmem:[%s814_s3 + $0x38] sm:$0xff] (!%p187_p2)   ;;  %v640_v59 = vld [vmem:[%s814_s3 + $0x40] sm:$0xff] (!%p187_p2)   ;;  %vm532_vm1 = vcmask (!%p187_p2), 516096  }
   0xb   : > { %494 = vmatpush1.bf16.msra.mxu0 (!%p187_p2), %v633_v2  ;;  %v738_v19 = vsub.s32 (!%p187_p2), %v225_v13, %v716_v8  ;;  %v364_v62 = vld [vmem:[%s813_s2] sm:$0x3] (!%p187_p2)  ;;  %v641_v2 = vld [vmem:[%s814_s3 + $0x48] sm:$0xff] (!%p187_p2)   ;;  %v642_v6 = vld [vmem:[%s814_s3 + $0x50] sm:$0xff] (!%p187_p2)   ;;  %vm533_vm2 = vsmask.f32 (!%p187_p2), 256 }
   0xc   : > { %495 = vmatprep.subr.bf16.mxu0 (!%p187_p2), %v652_v1  ;;  %vm534_vm3 = vmand (!%p187_p2), %vm532_vm1, %vm533_vm2 }
   0xd   : > { %s818_s19 = smov (!%p211_p3, %s585_s19), 1  ;;  %v229_v26 = vrot.slane %v221_v12, %v738_v19  ;;  %v245_v27 = vrot.slane %v592_v15, %v738_v19  ;;  %v258_v28 = vrot.slane %v593_v16, %v738_v19  ;;  %v278_v29 = vrot.slane %v596_v17, %v738_v19  ;;  %v643_v12 = vld [vmem:[%s814_s3 + $0x58] sm:$0xff]  }
   0xe   : > { %s590_s26 = sshll.u32 %s818_s19, 4  ;;  %v307_v31 = vrot.slane %v599_v22, %v738_v19  ;;  %v294_v35 = vrot.slane %v598_v25, %v738_v19  ;;  %v327_v49 = vrot.slane %v602_v38, %v738_v19  ;;  %v356_v50 = vrot.slane %v605_v39, %v738_v19 }
   0xf   : > { %496 = vmatpush1.bf16.msra.mxu0 %v634_v3  ;;  %s714_s6 = scalar_lea.vmem %s811_s0, %s590_s26  ;;  %v343_v55 = vrot.slane %v604_v46, %v738_v19  ;;  %v372_v4 = vrot.slane %v364_v62, %v738_v19  ;;  %s217_s26 = scalar_lea.vmem %s816_s5, %s818_s19 }
  0x10   : > { %497 = vmatprep.subr.bf16.mxu0 %v652_v1  ;;  %v219_v10 = vld [vmem:[%s714_s6] sm:$0x3]  ;;  %v591_v11 = vld [vmem:[%s714_s6 + $0x4] sm:$0x3]  ;;  %v595_v14 = vld [vmem:[%s714_s6 + $0x8] sm:$0x3] }
  0x11   : > { %v220_v18 = vunpack.c.l.bf16 %v219_v10  ;;  %v235_v20 = vunpack.c.l.bf16 %v591_v11  ;;  %v597_v21 = vld [vmem:[%s714_s6 + $0xc] sm:$0x3]  ;;  %v268_v24 = vunpack.c.l.bf16 %v595_v14  ;;  %v601_v36 = vld [vmem:[%s714_s6 + $0x2] sm:$0x3]  ;;  %v603_v45 = vld [vmem:[%s714_s6 + $0x6] sm:$0x3] }
  0x12   : > { %v284_v30 = vunpack.c.l.bf16 %v597_v21  ;;  %v317_v44 = vunpack.c.l.bf16 %v601_v36  ;;  %v333_v54 = vunpack.c.l.bf16 %v603_v45  ;;  %v384_v10 = vsub.s32 2, %v716_v8 }
  0x13   : > { %498 = vmatpush1.bf16.msra.mxu0 %v635_v5  ;;  %v231_v32 = vmul.f32 %v229_v26, %v220_v18  ;;  %v247_v33 = vmul.f32 %v245_v27, %v235_v20  ;;  %v260_v34 = vmul.f32 %v258_v28, %v220_v18  ;;  %v280_v42 = vmul.f32 %v278_v29, %v268_v24  ;;  %v535_v20 = vld [vmem:[%s217_s26] sm:$0x1] }
  0x14   : > { %499 = vmatprep.subr.bf16.mxu0 %v652_v1  ;;  %v309_v43 = vmul.f32 %v307_v31, %v268_v24  ;;  %v296_v48 = vmul.f32 %v294_v35, %v284_v30  ;;  %v329_v57 = vmul.f32 %v327_v49, %v317_v44  ;;  %v358_v58 = vmul.f32 %v356_v50, %v317_v44 }
  0x15   : > { %v248_v40 = vadd.f32 %v247_v33, %v231_v32  ;;  %v594_v41 = vrot.slane %v260_v34, 9  ;;  %v345_v61 = vmul.f32 %v343_v55, %v333_v54  ;;  %v380_v11 = vsub.s32 0, %v716_v8  ;;  %v414_v8 = vld [vmem:[%s815_s4] sm:$0x1] }
  0x16   : > { %v600_v53 = vrot.slane %v309_v43, 9  ;;  %v606_v0 = vrot.slane %v358_v58, 9 }
  0x17   : > { %500 = vmatpush1.bf16.msra.mxu0 %v636_v9  ;;  %v265_v47 = vadd.f32 %v594_v41, %v248_v40 }
  0x18   : > { %501 = vmatprep.subr.bf16.mxu0 %v652_v1 }
  0x19   : > { %v281_v52 = vadd.f32 %v280_v42, %v265_v47 }
  0x1b   : > { %502 = vmatpush1.bf16.msra.mxu0 %v637_v23  ;;  %v297_v56 = vadd.f32 %v296_v48, %v281_v52 }
  0x1c   : > { %503 = vmatprep.subr.bf16.mxu0 %v652_v1 }
  0x1d   : > { %v314_v60 = vadd.f32 %v600_v53, %v297_v56 }
  0x1f   : > { %504 = vmatpush1.bf16.msra.mxu0 %v638_v37  ;;  %v330_v63 = vadd.f32 %v329_v57, %v314_v60 }
  0x20   : > { %505 = vmatprep.subr.bf16.mxu0 %v652_v1 }
  0x21   : > { %v346_v3 = vadd.f32 %v345_v61, %v330_v63 }
  0x23   : > { %506 = vmatpush1.bf16.msra.mxu0 %v639_v51  ;;  %v363_v5 = vadd.f32 %v606_v0, %v346_v3 }
  0x24   : > { %507 = vmatprep.subr.bf16.mxu0 %v652_v1 }
  0x25   : > { %v374_v7 = vadd.f32 %v372_v4, %v363_v5 }
  0x27   : > { %508 = vmatpush1.bf16.msra.mxu0 %v640_v59  ;;  %v375_v9 = vmax.f32 %v374_v7, 0.0 }
  0x28   : > { %509 = vmatprep.subr.bf16.mxu0 %v652_v1 }
  0x29   : > { %v376_v13 = vmin.f32 %v375_v9, 6.0 }
  0x2b   : > { %510 = vmatpush1.bf16.msra.mxu0 %v641_v2  ;;  %v385_v14 = vrot.slane %v376_v13, %v384_v10  ;;  %v381_v15 = vrot.slane %v376_v13, %v380_v11 }
  0x2c   : > { %511 = vmatprep.subr.bf16.mxu0 %v652_v1 }
  0x2d   : > { %v389_v16 = vpack.c.bf16 %v385_v14, %v385_v14  ;;  %v388_v17 = vpack.c.bf16 %v381_v15, %v381_v15 }
  0x2f   : > { %512 = vmatpush1.bf16.msra.mxu0 %v642_v6  ;;  %619 = vmatprep.mubr.msk.bf16.mxu0 %vm487_vm0, %v389_v16 }
  0x30   : > { %513 = vmatprep.subr.bf16.mxu0 %v652_v1 }
  0x33   : > { %514 = vmatpush1.bf16.msra.mxu0 %v643_v12 }
  0x36   : > { %524 = vmatmul.mubr.bf16.vlgmr.msra.gmra.mrb[0].mxu0 %v388_v17 }
 0x109   : > { %v525_v1 = vpop.f32.mrb[0].mxu0 }
 0x10a   : > { %v526_v18 = vadd.f32 %v525_v1, %v414_v8  ;;  %v527_v19 = vpop.f32.mrb[1].mxu0 }
 0x10b   : > { %v528_v21 = vpop.f32.mrb[2].mxu0 }
 0x10c   : > { %v531_v22 = vpack.c.bf16 %v526_v18, %v526_v18  ;;  %v529_v23 = vpop.f32.mrb[3].mxu0 }
 0x10e   : > { %v536_v24 = vsel %vm534_vm3, %v531_v22, %v535_v20 }
 0x10f   : > { %537 = vst [vmem:[%s217_s26] sm:$0x1] %v536_v24 }
 0x110 PF: > { %s15_s18 = sadd.s32 1, %s650_s18  }
 0x111   : > { %p12_p4 = scmp.ge.s32.totalorder %s15_s18, 4  }
 0x113   :  { %14 = sbr.rel (!%p12_p4) target bundleno = 1 (0x1), region = 83 }

// kernel: _lambda_.28
= control target key start
LH: loop header
LB: loop body
LE: loop exit
PB: predicated region body
PF: predicated region fallthrough
CT: control target
= control target key end

     0   :  { %s1127_s24 = smov 0   ;;  %s1341_s0 = inlined_call_operand.vmem [shape: bf16[2,1,64], index: 0, kind: input, shape index: {}]   ;;  %s1342_s1 = inlined_call_operand.vmem [shape: bf16[64,384], index: 1, kind: input, shape index: {}]   ;;  %s1343_s2 = inlined_call_operand.vmem [shape: f32[1,384], index: 2, kind: input, shape index: {}]   ;;  %s1344_s3 = inlined_call_operand.vmem [shape: f32[9,1,384], index: 3, kind: input, shape index: {}]   ;;  %s1345_s4 = inlined_call_operand.vmem [shape: f32[1,384], index: 4, kind: input, shape index: {}]   ;;  %s1346_s5 = inlined_call_operand.vmem [shape: bf16[384,64], index: 5, kind: input, shape index: {}]   ;;  %s1347_s6 = inlined_call_operand.vmem [shape: f32[1,64], index: 6, kind: input, shape index: {}]   ;;  %s1348_s7 = inlined_call_operand.vmem [shape: bf16[2,1,64], index: 7, kind: output, shape index: {}]  }
   0x1 LB: > { %s902_s25 = sadd.s32 4294967295, %s1081_s24   ;;  %p906_p0 = scmp.ge.s32.totalorder %s1081_s24, 1  ;;  %s1081_s24 = sphi %s1127_s24, %s17_s24  }
   0x2   : > { %p235_p1 = scmp.lt.s32.totalorder %s1081_s24, 3 }
   0x4   : > { %p236_p2 = pnand %p906_p0, %p235_p1 }
   0x5   : > { %v1035_v0 = vld [vmem:[%s1342_s1 + $0x4] ss:$12 sps:$4 sm:$0xff] (!%p236_p2)   ;;  %v1083_v1 = vmov (!%p236_p2), 0.0   ;;  %v1037_v2 = vld [vmem:[%s1342_s1] ss:$12 sps:$4 sm:$0xff] (!%p236_p2)   ;;  %v1084_v3 = vmov (!%p236_p2), 0   ;;  %v353_v39 = vlaneseq (!%p236_p2) }
   0x6   : > { %239 = sbr.rel (%p236_p2) target bundleno = 506 (0x1fa), region = 48  ;;  %991 = vmatprep.subr.bf16.mxu1 (!%p236_p2), %v1083_v1  ;;  %459 = vst [vmem:[#allocation2] sm:$0x77] (!%p236_p2), %v1083_v1  ;;  %460 = vst [vmem:[#allocation2 + $0x8] sm:$0x7] (!%p236_p2), %v1083_v1  ;;  %404 = vmatprep.mubr.bf16.mxu0 (!%p236_p2), %v1084_v3  ;;  %p263_p3 = scmp.lt.s32.totalorder (!%p236_p2), %s902_s25, 1 }
   0x7   : > { %461 = vst [vmem:[#allocation2 + $0xc] sm:$0x77] (!%p236_p2), %v1083_v1  ;;  %462 = vst [vmem:[#allocation2 + $0x14] sm:$0x7] (!%p236_p2), %v1083_v1  ;;  %372 = vmatprep.subr.bf16.mxu0 (!%p236_p2), %v1035_v0  ;;  %v1038_v4 = vld [vmem:[%s1342_s1 + $0x8] ss:$12 sps:$4 sm:$0xff] (!%p236_p2)  }
   0x8   : > { %463 = vst [vmem:[#allocation2 + $0x18] sm:$0x77] (!%p236_p2), %v1083_v1  ;;  %464 = vst [vmem:[#allocation2 + $0x20] sm:$0x7] (!%p236_p2), %v1083_v1  ;;  %373 = vmatpush1.bf16.msra.mxu0 (!%p236_p2), %v1037_v2  ;;  %v1039_v5 = vld [vmem:[%s1342_s1 + $0x1c] ss:$12 sps:$4 sm:$0xff] (!%p236_p2)   ;;  %992 = vmatpush3.bf16.msra.mxu1 (!%p236_p2), %v1038_v4 }
   0x9   : > { %v1041_v6 = vld [vmem:[%s1342_s1 + $0x18] ss:$12 sps:$4 sm:$0xff] (!%p236_p2)   ;;  %vm1085_vm0 = vmmov (!%p236_p2), 0   ;;  %v1042_v7 = vld [vmem:[%s1342_s1 + $0x20] ss:$12 sps:$4 sm:$0xff] (!%p236_p2)   ;;  %374 = vmatprep.subr.bf16.mxu0 (!%p236_p2), %v1039_v5  ;;  %993 = vmatprep.subr.bf16.mxu1 (!%p236_p2), %v1083_v1  ;;  %vm368_vm1 = vcmask (!%p236_p2), 523264  }
   0xa   : > { %999 = vmatprep.mubr.msk.bf16.mxu1 (!%p236_p2), %vm1085_vm0, %v1083_v1  ;;  %v1043_v8 = vld [vmem:[%s1342_s1 + $0x34] ss:$12 sps:$4 sm:$0xff] (!%p236_p2)   ;;  %v1045_v9 = vld [vmem:[%s1342_s1 + $0x30] ss:$12 sps:$4 sm:$0xff] (!%p236_p2)   ;;  %v1046_v10 = vld [vmem:[%s1342_s1 + $0x38] ss:$12 sps:$4 sm:$0xff] (!%p236_p2)  }
   0xb   : > { %v1047_v11 = vld [vmem:[%s1342_s1 + $0x4c] ss:$12 sps:$4 sm:$0xff] (!%p236_p2)   ;;  %v1049_v12 = vld [vmem:[%s1342_s1 + $0x48] ss:$12 sps:$4 sm:$0xff] (!%p236_p2)   ;;  %v1050_v13 = vld [vmem:[%s1342_s1 + $0x50] ss:$12 sps:$4 sm:$0xff] (!%p236_p2)  }
   0xc   : > { %375 = vmatpush1.bf16.msra.mxu0 (!%p236_p2), %v1041_v6  ;;  %994 = vmatpush3.bf16.msra.mxu1 (!%p236_p2), %v1042_v7  ;;  %v1051_v15 = vld [vmem:[%s1346_s5 + $0x40] sm:$0xff] (!%p236_p2)   ;;  %v1054_v18 = vld [vmem:[%s1346_s5 + $0x48] sm:$0xff] (!%p236_p2)   ;;  %v1057_v21 = vld [vmem:[%s1346_s5 + $0x50] sm:$0xff] (!%p236_p2)   ;;  %v1279_v40 = vshrl.u32 (!%p236_p2), %v353_v39, 7  ;;  %v1086_v45 = vmov (!%p236_p2), 1966171168  }
   0xd   : > { %s1350_s25 = smov (!%p263_p3, %s902_s25), 1  ;;  %376 = vmatprep.subr.bf16.mxu0 %v1043_v8  ;;  %995 = vmatprep.subr.bf16.mxu1 %v1083_v1  ;;  %v1052_v16 = vld [vmem:[%s1346_s5 + $0x80] sm:$0xff]   ;;  %v1055_v19 = vld [vmem:[%s1346_s5 + $0x88] sm:$0xff]   ;;  %v1058_v22 = vld [vmem:[%s1346_s5 + $0x90] sm:$0xff]   ;;  %v470_v46 = vunpack.c.l.s4 %v1086_v45  ;;  %vm495_vm2 = vcmp.lt.s32.totalorder %v353_v39, 384  ;;  %vm848_vm3 = vcmask 516096  }
   0xe   : > { %s265_s8 = scalar_lea.vmem %s1341_s0, %s1350_s25  ;;  %v1053_v17 = vld [vmem:[%s1346_s5] sm:$0xff]   ;;  %v1056_v20 = vld [vmem:[%s1346_s5 + $0x8] sm:$0xff]   ;;  %v1059_v23 = vld [vmem:[%s1346_s5 + $0x10] sm:$0xff]   ;;  %v355_v41 = vsub.s32 0, %v1279_v40  ;;  %v363_v43 = vsub.s32 2, %v1279_v40  ;;  %v359_v44 = vsub.s32 1, %v1279_v40  ;;  %s268_s20 = scalar_lea.vmem %s1348_s7, %s1350_s25 }
   0xf   : > { %v1193_v14 = vld [vmem:[%s265_s8] sm:$0x1]  ;;  %v1060_v24 = vld [vmem:[%s1346_s5 + $0x58] sm:$0xff]   ;;  %v1066_v30 = vld [vmem:[%s1346_s5 + $0x68] sm:$0xff]   ;;  %v471_v51 = vunpack.c.0.s8 %v470_v46  ;;  %vm849_vm4 = vsmask.f32 256 }
  0x10   : > { %377 = vmatpush1.bf16.msra.mxu0 %v1045_v9  ;;  %996 = vmatpush3.bf16.msra.mxu1 %v1046_v10  ;;  %v1061_v25 = vld [vmem:[%s1346_s5 + $0x98] sm:$0xff]   ;;  %v1063_v27 = vld [vmem:[%s1346_s5 + $0x60] sm:$0xff]   ;;  %v1067_v31 = vld [vmem:[%s1346_s5 + $0xa8] sm:$0xff]  }
  0x11   : > { %378 = vmatprep.subr.bf16.mxu0 %v1047_v11  ;;  %997 = vmatprep.subr.bf16.mxu1 %v1083_v1  ;;  %v1062_v26 = vld [vmem:[%s1346_s5 + $0x18] sm:$0xff]   ;;  %v1064_v28 = vld [vmem:[%s1346_s5 + $0xa0] sm:$0xff]   ;;  %v1068_v32 = vld [vmem:[%s1346_s5 + $0x28] sm:$0xff]   ;;  %v474_v63 = vsub.s32 %v471_v51, %v1279_v40 }
  0x12   : > { %v1065_v29 = vld [vmem:[%s1346_s5 + $0x20] sm:$0xff]   ;;  %v1069_v33 = vld [vmem:[%s1346_s5 + $0x70] sm:$0xff]   ;;  %v1072_v36 = vld [vmem:[%s1346_s5 + $0x78] sm:$0xff]  }
  0x13   : > { %v1070_v34 = vld [vmem:[%s1346_s5 + $0xb0] sm:$0xff]   ;;  %v1073_v37 = vld [vmem:[%s1346_s5 + $0xb8] sm:$0xff]   ;;  %v287_v42 = vld [vmem:[%s1343_s2] sm:$0x7] }
  0x14   : > { %379 = vmatpush1.bf16.msra.mxu0 %v1049_v12  ;;  %998 = vmatpush3.bf16.msra.mxu1 %v1050_v13  ;;  %v1071_v35 = vld [vmem:[%s1346_s5 + $0x30] sm:$0xff]   ;;  %v1074_v38 = vld [vmem:[%s1346_s5 + $0x38] sm:$0xff]   ;;  %v356_v47 = vrot.slane %v287_v42, %v355_v41  ;;  %v364_v48 = vrot.slane %v287_v42, %v363_v43  ;;  %v360_v49 = vrot.slane %v287_v42, %v359_v44  ;;  %v500_v6 = vld [vmem:[%s1344_s3] sm:$0x7] }
  0x15   : > { %1003 = vmatprep.subr.bf16.mxu1 %v1083_v1  ;;  %960 = vmatprep.subr.bf16.mxu0 %v1051_v15  ;;  %v499_v3 = vld [vmem:[#allocation2] ss:$4 sm:$0x7]  ;;  %v504_v7 = vld [vmem:[#allocation2 + $0x1] ss:$4 sm:$0x7]  ;;  %vm850_vm5 = vmand %vm848_vm3, %vm849_vm4 }
  0x16   : > { %v921_v8 = vld [vmem:[%s1344_s3 + $0x3] sm:$0x7]  ;;  %v501_v12 = vmul.f32 %v500_v6, %v499_v3  ;;  %v510_v15 = vld [vmem:[#allocation2 + $0x2] ss:$4 sm:$0x7] }
  0x17   : > { %919 = vmatmul.mubr.msk.bf16.vlgmr.msra.gmra.mrb[0].mxu0 %vm368_vm1, %v1193_v14  ;;  %1000 = vmatmul.mubr.msk.bf16.vlgmr.msra.gmra.mrb[0].mxu1 %vm368_vm1, %v1193_v14  ;;  %v507_v13 = vmul.f32 %v921_v8, %v504_v7  ;;  %v928_v39 = vld [vmem:[%s1344_s3 + $0x18] sm:$0x7]  ;;  %v851_v6 = vld [vmem:[%s268_s20] sm:$0x1] }
  0x18   : > { %1019 = vmatprep.mubr.msk.bf16.mxu1 %vm1085_vm0, %v1083_v1  ;;  %1004 = vmatpush3.bf16.msra.mxu1 %v1052_v16  ;;  %v922_v16 = vld [vmem:[%s1344_s3 + $0x6] sm:$0x7] }
  0x19   : > { %961 = vmatpush3.bf16.msra.mxu0 %v1053_v17  ;;  %1005 = vmatprep.subr.bf16.mxu1 %v1083_v1 }
  0x1a   : > { %962 = vmatprep.subr.bf16.mxu0 %v1054_v18 }
  0x1c   : > { %1006 = vmatpush3.bf16.msra.mxu1 %v1055_v19  ;;  %v508_v19 = vadd.f32 %v507_v13, %v501_v12 }
  0x1d   : > { %963 = vmatpush3.bf16.msra.mxu0 %v1056_v20  ;;  %1007 = vmatprep.subr.bf16.mxu1 %v1083_v1  ;;  %v513_v20 = vmul.f32 %v922_v16, %v510_v15 }
  0x1e   : > { %964 = vmatprep.subr.bf16.mxu0 %v1057_v21  ;;  %v515_v21 = vld [vmem:[#allocation2 + $0xc] ss:$4 sm:$0x7] }
  0x20   : > { %1008 = vmatpush3.bf16.msra.mxu1 %v1058_v22  ;;  %v923_v22 = vld [vmem:[%s1344_s3 + $0x9] sm:$0x7] }
  0x21   : > { %965 = vmatpush3.bf16.msra.mxu0 %v1059_v23  ;;  %1009 = vmatprep.subr.bf16.mxu1 %v1083_v1  ;;  %v514_v23 = vadd.f32 %v513_v20, %v508_v19 }
  0x22   : > { %966 = vmatprep.subr.bf16.mxu0 %v1060_v24  ;;  %v518_v24 = vmul.f32 %v923_v22, %v515_v21 }
  0x24   : > { %1010 = vmatpush3.bf16.msra.mxu1 %v1061_v25  ;;  %v924_v25 = vld [vmem:[%s1344_s3 + $0xc] sm:$0x7] }
  0x25   : > { %967 = vmatpush3.bf16.msra.mxu0 %v1062_v26  ;;  %1011 = vmatprep.subr.bf16.mxu1 %v1083_v1  ;;  %v526_v26 = vld [vmem:[#allocation2 + $0xe] ss:$4 sm:$0x7] }
  0x26   : > { %968 = vmatprep.subr.bf16.mxu0 %v1063_v27  ;;  %v925_v27 = vld [vmem:[%s1344_s3 + $0xf] sm:$0x7] }
  0x28   : > { %1012 = vmatpush3.bf16.msra.mxu1 %v1064_v28  ;;  %v519_v28 = vadd.f32 %v518_v24, %v514_v23 }
  0x29   : > { %969 = vmatpush3.bf16.msra.mxu0 %v1065_v29  ;;  %1013 = vmatprep.subr.bf16.mxu1 %v1083_v1  ;;  %v532_v29 = vld [vmem:[#allocation2 + $0x18] ss:$4 sm:$0x7] }
  0x2a   : > { %970 = vmatprep.subr.bf16.mxu0 %v1066_v30 }
  0x2c   : > { %1014 = vmatpush3.bf16.msra.mxu1 %v1067_v31  ;;  %v926_v31 = vld [vmem:[%s1344_s3 + $0x12] sm:$0x7] }
  0x2d   : > { %971 = vmatpush3.bf16.msra.mxu0 %v1068_v32  ;;  %1015 = vmatprep.subr.bf16.mxu1 %v1083_v1 }
  0x2e   : > { %972 = vmatprep.subr.bf16.mxu0 %v1069_v33  ;;  %v529_v33 = vmul.f32 %v925_v27, %v526_v26 }
  0x30   : > { %1016 = vmatpush3.bf16.msra.mxu1 %v1070_v34  ;;  %v538_v34 = vld [vmem:[#allocation2 + $0x19] ss:$4 sm:$0x7] }
  0x31   : > { %973 = vmatpush3.bf16.msra.mxu0 %v1071_v35  ;;  %1017 = vmatprep.subr.bf16.mxu1 %v1083_v1  ;;  %v927_v35 = vld [vmem:[%s1344_s3 + $0x15] sm:$0x7] }
  0x32   : > { %974 = vmatprep.subr.bf16.mxu0 %v1072_v36  ;;  %v541_v45 = vmul.f32 %v927_v35, %v538_v34 }
  0x34   : > { %1018 = vmatpush3.bf16.msra.mxu1 %v1073_v37  ;;  %v535_v37 = vmul.f32 %v926_v31, %v532_v29 }
  0x35   : > { %975 = vmatpush3.bf16.msra.mxu0 %v1074_v38  ;;  %v544_v38 = vld [vmem:[#allocation2 + $0x1a] ss:$4 sm:$0x7] }
  0xea   : > { %v406_v50 = vpop.f32.mrb[0].mxu0  ;;  %v447_v53 = vpop.f32.mrb[0].mxu1 }
  0xeb   : > { %v407_v52 = vadd.f32 %v406_v50, %v356_v47  ;;  %v408_v54 = vpop.f32.mrb[1].mxu0  ;;  %v448_v55 = vadd.f32 %v447_v53, %v364_v48  ;;  %v1001_v57 = vpop.f32.mrb[1].mxu1  ;;  %v547_v47 = vmul.f32 %v928_v39, %v544_v38 }
  0xec   : > { %v409_v56 = vadd.f32 %v408_v54, %v360_v49  ;;  %v410_v58 = vpop.f32.mrb[2].mxu0  ;;  %v450_v60 = vpop.f32.mrb[2].mxu1  ;;  %v549_v49 = vld [vmem:[%s1345_s4] sm:$0x7] }
  0xed   : > { %v453_v59 = vmax.f32 %v407_v52, 0.0  ;;  %v411_v61 = vpop.f32.mrb[3].mxu0  ;;  %v455_v62 = vmax.f32 %v448_v55, 0.0  ;;  %v1002_v1 = vpop.f32.mrb[3].mxu1 }
  0xee   : > { %v454_v0 = vmax.f32 %v409_v56, 0.0 }
  0xef   : > { %v456_v2 = vmin.f32 %v453_v59, 6.0  ;;  %v458_v4 = vmin.f32 %v455_v62, 6.0 }
  0xf0   : > { %v457_v5 = vmin.f32 %v454_v0, 6.0 }
  0xf1   : > { %v482_v9 = vrot.slane %v458_v4, %v474_v63 }
  0xf2   : > { %v468_v10 = vcombine.low %v456_v2, %v457_v5  ;;  %v845_v2 = vunpack.c.l.bf16 %v1193_v14 }
  0xf4   : > { %v475_v11 = vrot.slane %v468_v10, %v474_v63 }
  0xf6   : > { %v483_v17 = vcombine.low %v475_v11, %v482_v9 }
  0xf8   : > { %v490_v18 = vrot.slane %v483_v17, %v474_v63 }
  0xfa   : > { %498 = vst.msk [vmem:[#allocation2 + $0xd] ss:$4 sm:$0x7] %vm495_vm2, %v490_v18 }
 0x101   : > { %v520_v30 = vld [vmem:[#allocation2 + $0xd] ss:$4 sm:$0x7] }
 0x102   : > { %v523_v32 = vmul.f32 %v924_v25, %v520_v30 }
 0x104   : > { %v524_v36 = vadd.f32 %v523_v32, %v519_v28 }
 0x106   : > { %v530_v42 = vadd.f32 %v529_v33, %v524_v36 }
 0x108   : > { %v536_v46 = vadd.f32 %v535_v37, %v530_v42 }
 0x10a   : > { %v542_v48 = vadd.f32 %v541_v45, %v536_v46 }
 0x10c   : > { %v548_v50 = vadd.f32 %v547_v47, %v542_v48 }
 0x10e   : > { %v550_v51 = vadd.f32 %v549_v49, %v548_v50 }
 0x110   : > { %v551_v52 = vmax.f32 %v550_v51, 0.0 }
 0x112   : > { %v552_v53 = vmin.f32 %v551_v52, 6.0 }
 0x114   : > { %v561_v54 = vrot.slane %v552_v53, %v359_v44  ;;  %v565_v55 = vrot.slane %v552_v53, %v363_v43  ;;  %v557_v56 = vrot.slane %v552_v53, %v355_v41  ;;  %v620_v44 = vld [vmem:[%s1347_s6] sm:$0x1] }
 0x116   : > { %v570_v57 = vpack.c.bf16 %v561_v54, %v561_v54  ;;  %v571_v58 = vpack.c.bf16 %v565_v55, %v565_v55  ;;  %v569_v59 = vpack.c.bf16 %v557_v56, %v557_v56 }
 0x118   : > { %797 = vmatprep.mubr.bf16.mxu0 %v570_v57  ;;  %1020 = vmatmul.mubr.bf16.vlgmr.msra.gmra.mrb[4].mxu1 %v571_v58 }
 0x119   : > { %798 = vmatmul.mubr.bf16.vlgmr.msra.gmra.mrb[4].mxu0 %v569_v59 }
 0x1eb   : > { %v839_v60 = vpop.f32.mrb[4].mxu1 }
 0x1ec   : > { %v976_v61 = vpop.f32.mrb[4].mxu0  ;;  %v1021_v62 = vpop.f32.mrb[5].mxu1 }
 0x1ed   : > { %v977_v63 = vpop.f32.mrb[5].mxu0  ;;  %v842_v0 = vpop.f32.mrb[6].mxu1 }
 0x1ee   : > { %v978_v43 = vadd.f32 %v977_v63, %v976_v61  ;;  %v979_v1 = vpop.f32.mrb[6].mxu0  ;;  %v1022_v40 = vpop.f32.mrb[7].mxu1 }
 0x1ef   : > { %v980_v41 = vpop.f32.mrb[7].mxu0 }
 0x1f0   : > { %v800_v3 = vadd.f32 %v978_v43, %v620_v44 }
 0x1f2   : > { %v840_v4 = vadd.f32 %v839_v60, %v800_v3 }
 0x1f4   : > { %v846_v5 = vadd.f32 %v845_v2, %v840_v4 }
 0x1f6   : > { %v847_v7 = vpack.c.bf16 %v846_v5, %v846_v5 }
 0x1f8   : > { %v852_v8 = vsel %vm850_vm5, %v847_v7, %v851_v6 }
 0x1f9   : > { %853 = vst [vmem:[%s268_s20] sm:$0x1] %v852_v8 }
 0x1fa PF: > { %s17_s24 = sadd.s32 1, %s1081_s24  }
 0x1fb   : > { %p14_p4 = scmp.ge.s32.totalorder %s17_s24, 4  }
 0x1fd   :  { %16 = sbr.rel (!%p14_p4) target bundleno = 1 (0x1), region = 94 }

// kernel: _lambda_.31
= control target key start
LH: loop header
LB: loop body
LE: loop exit
PB: predicated region body
PF: predicated region fallthrough
CT: control target
= control target key end

     0   :  { %s1125_s24 = smov 0   ;;  %s1334_s0 = inlined_call_operand.vmem [shape: bf16[2,1,64], index: 0, kind: input, shape index: {}]   ;;  %s1335_s1 = inlined_call_operand.vmem [shape: bf16[64,384], index: 1, kind: input, shape index: {}]   ;;  %s1336_s2 = inlined_call_operand.vmem [shape: f32[1,384], index: 2, kind: input, shape index: {}]   ;;  %s1337_s3 = inlined_call_operand.vmem [shape: f32[9,1,384], index: 3, kind: input, shape index: {}]   ;;  %s1338_s4 = inlined_call_operand.vmem [shape: f32[1,384], index: 4, kind: input, shape index: {}]   ;;  %s1339_s5 = inlined_call_operand.vmem [shape: bf16[384,96], index: 5, kind: input, shape index: {}]   ;;  %s1340_s6 = inlined_call_operand.vmem [shape: f32[1,96], index: 6, kind: input, shape index: {}]   ;;  %s1341_s7 = inlined_call_operand.vmem [shape: bf16[2,1,96], index: 7, kind: output, shape index: {}]  }
   0x1 LB: > { %s900_s25 = sadd.s32 4294967295, %s1079_s24   ;;  %p904_p0 = scmp.ge.s32.totalorder %s1079_s24, 1  ;;  %s1079_s24 = sphi %s1125_s24, %s17_s24  }
   0x2   : > { %p235_p1 = scmp.lt.s32.totalorder %s1079_s24, 3 }
   0x4   : > { %p236_p2 = pnand %p904_p0, %p235_p1 }
   0x5   : > { %v1033_v0 = vld [vmem:[%s1335_s1 + $0x4] ss:$12 sps:$4 sm:$0xff] (!%p236_p2)   ;;  %v1081_v1 = vmov (!%p236_p2), 0.0   ;;  %v1035_v2 = vld [vmem:[%s1335_s1] ss:$12 sps:$4 sm:$0xff] (!%p236_p2)   ;;  %v1082_v3 = vmov (!%p236_p2), 0   ;;  %v353_v39 = vlaneseq (!%p236_p2) }
   0x6   : > { %239 = sbr.rel (%p236_p2) target bundleno = 504 (0x1f8), region = 48  ;;  %989 = vmatprep.subr.bf16.mxu1 (!%p236_p2), %v1081_v1  ;;  %459 = vst [vmem:[#allocation2] sm:$0x77] (!%p236_p2), %v1081_v1  ;;  %460 = vst [vmem:[#allocation2 + $0x8] sm:$0x7] (!%p236_p2), %v1081_v1  ;;  %404 = vmatprep.mubr.bf16.mxu0 (!%p236_p2), %v1082_v3  ;;  %p263_p3 = scmp.lt.s32.totalorder (!%p236_p2), %s900_s25, 1 }
   0x7   : > { %461 = vst [vmem:[#allocation2 + $0xc] sm:$0x77] (!%p236_p2), %v1081_v1  ;;  %462 = vst [vmem:[#allocation2 + $0x14] sm:$0x7] (!%p236_p2), %v1081_v1  ;;  %372 = vmatprep.subr.bf16.mxu0 (!%p236_p2), %v1033_v0  ;;  %v1036_v4 = vld [vmem:[%s1335_s1 + $0x8] ss:$12 sps:$4 sm:$0xff] (!%p236_p2)  }
   0x8   : > { %463 = vst [vmem:[#allocation2 + $0x18] sm:$0x77] (!%p236_p2), %v1081_v1  ;;  %464 = vst [vmem:[#allocation2 + $0x20] sm:$0x7] (!%p236_p2), %v1081_v1  ;;  %373 = vmatpush1.bf16.msra.mxu0 (!%p236_p2), %v1035_v2  ;;  %v1037_v5 = vld [vmem:[%s1335_s1 + $0x1c] ss:$12 sps:$4 sm:$0xff] (!%p236_p2)   ;;  %990 = vmatpush3.bf16.msra.mxu1 (!%p236_p2), %v1036_v4 }
   0x9   : > { %v1039_v6 = vld [vmem:[%s1335_s1 + $0x18] ss:$12 sps:$4 sm:$0xff] (!%p236_p2)   ;;  %vm1083_vm0 = vmmov (!%p236_p2), 0   ;;  %v1040_v7 = vld [vmem:[%s1335_s1 + $0x20] ss:$12 sps:$4 sm:$0xff] (!%p236_p2)   ;;  %374 = vmatprep.subr.bf16.mxu0 (!%p236_p2), %v1037_v5  ;;  %991 = vmatprep.subr.bf16.mxu1 (!%p236_p2), %v1081_v1  ;;  %vm368_vm1 = vcmask (!%p236_p2), 523264  }
   0xa   : > { %997 = vmatprep.mubr.msk.bf16.mxu1 (!%p236_p2), %vm1083_vm0, %v1081_v1  ;;  %v1041_v8 = vld [vmem:[%s1335_s1 + $0x34] ss:$12 sps:$4 sm:$0xff] (!%p236_p2)   ;;  %v1043_v9 = vld [vmem:[%s1335_s1 + $0x30] ss:$12 sps:$4 sm:$0xff] (!%p236_p2)   ;;  %v1044_v10 = vld [vmem:[%s1335_s1 + $0x38] ss:$12 sps:$4 sm:$0xff] (!%p236_p2)  }
   0xb   : > { %v1045_v11 = vld [vmem:[%s1335_s1 + $0x4c] ss:$12 sps:$4 sm:$0xff] (!%p236_p2)   ;;  %v1047_v12 = vld [vmem:[%s1335_s1 + $0x48] ss:$12 sps:$4 sm:$0xff] (!%p236_p2)   ;;  %v1048_v13 = vld [vmem:[%s1335_s1 + $0x50] ss:$12 sps:$4 sm:$0xff] (!%p236_p2)  }
   0xc   : > { %375 = vmatpush1.bf16.msra.mxu0 (!%p236_p2), %v1039_v6  ;;  %992 = vmatpush3.bf16.msra.mxu1 (!%p236_p2), %v1040_v7  ;;  %v1049_v15 = vld [vmem:[%s1339_s5 + $0x40] sm:$0xff] (!%p236_p2)   ;;  %v1052_v18 = vld [vmem:[%s1339_s5 + $0x48] sm:$0xff] (!%p236_p2)   ;;  %v1055_v21 = vld [vmem:[%s1339_s5 + $0x50] sm:$0xff] (!%p236_p2)   ;;  %v1273_v40 = vshrl.u32 (!%p236_p2), %v353_v39, 7  ;;  %v1084_v45 = vmov (!%p236_p2), 1966171168  }
   0xd   : > { %s1343_s25 = smov (!%p263_p3, %s900_s25), 1  ;;  %376 = vmatprep.subr.bf16.mxu0 %v1041_v8  ;;  %993 = vmatprep.subr.bf16.mxu1 %v1081_v1  ;;  %v1050_v16 = vld [vmem:[%s1339_s5 + $0x80] sm:$0xff]   ;;  %v1053_v19 = vld [vmem:[%s1339_s5 + $0x88] sm:$0xff]   ;;  %v1056_v22 = vld [vmem:[%s1339_s5 + $0x90] sm:$0xff]   ;;  %v470_v46 = vunpack.c.l.s4 %v1084_v45  ;;  %vm495_vm2 = vcmp.lt.s32.totalorder %v353_v39, 384  ;;  %vm846_vm3 = vcmask 778240  }
   0xe   : > { %s265_s8 = scalar_lea.vmem %s1334_s0, %s1343_s25  ;;  %v1051_v17 = vld [vmem:[%s1339_s5] sm:$0xff]   ;;  %v1054_v20 = vld [vmem:[%s1339_s5 + $0x8] sm:$0xff]   ;;  %v1057_v23 = vld [vmem:[%s1339_s5 + $0x10] sm:$0xff]   ;;  %v355_v41 = vsub.s32 0, %v1273_v40  ;;  %v363_v43 = vsub.s32 2, %v1273_v40  ;;  %v359_v44 = vsub.s32 1, %v1273_v40  ;;  %s268_s20 = scalar_lea.vmem %s1341_s7, %s1343_s25 }
   0xf   : > { %v270_v14 = vld [vmem:[%s265_s8] sm:$0x1]  ;;  %v1058_v24 = vld [vmem:[%s1339_s5 + $0x58] sm:$0xff]   ;;  %v1064_v30 = vld [vmem:[%s1339_s5 + $0x68] sm:$0xff]   ;;  %v471_v51 = vunpack.c.0.s8 %v470_v46  ;;  %vm847_vm4 = vsmask.f32 256 }
  0x10   : > { %377 = vmatpush1.bf16.msra.mxu0 %v1043_v9  ;;  %994 = vmatpush3.bf16.msra.mxu1 %v1044_v10  ;;  %v1059_v25 = vld [vmem:[%s1339_s5 + $0x98] sm:$0xff]   ;;  %v1061_v27 = vld [vmem:[%s1339_s5 + $0x60] sm:$0xff]   ;;  %v1065_v31 = vld [vmem:[%s1339_s5 + $0xa8] sm:$0xff]  }
  0x11   : > { %378 = vmatprep.subr.bf16.mxu0 %v1045_v11  ;;  %995 = vmatprep.subr.bf16.mxu1 %v1081_v1  ;;  %v1060_v26 = vld [vmem:[%s1339_s5 + $0x18] sm:$0xff]   ;;  %v1062_v28 = vld [vmem:[%s1339_s5 + $0xa0] sm:$0xff]   ;;  %v1066_v32 = vld [vmem:[%s1339_s5 + $0x28] sm:$0xff]   ;;  %v474_v63 = vsub.s32 %v471_v51, %v1273_v40 }
  0x12   : > { %v1063_v29 = vld [vmem:[%s1339_s5 + $0x20] sm:$0xff]   ;;  %v1067_v33 = vld [vmem:[%s1339_s5 + $0x70] sm:$0xff]   ;;  %v1070_v36 = vld [vmem:[%s1339_s5 + $0x78] sm:$0xff]  }
  0x13   : > { %v1068_v34 = vld [vmem:[%s1339_s5 + $0xb0] sm:$0xff]   ;;  %v1071_v37 = vld [vmem:[%s1339_s5 + $0xb8] sm:$0xff]   ;;  %v287_v42 = vld [vmem:[%s1336_s2] sm:$0x7] }
  0x14   : > { %379 = vmatpush1.bf16.msra.mxu0 %v1047_v12  ;;  %996 = vmatpush3.bf16.msra.mxu1 %v1048_v13  ;;  %v1069_v35 = vld [vmem:[%s1339_s5 + $0x30] sm:$0xff]   ;;  %v1072_v38 = vld [vmem:[%s1339_s5 + $0x38] sm:$0xff]   ;;  %v356_v47 = vrot.slane %v287_v42, %v355_v41  ;;  %v364_v48 = vrot.slane %v287_v42, %v363_v43  ;;  %v360_v49 = vrot.slane %v287_v42, %v359_v44  ;;  %v500_v6 = vld [vmem:[%s1337_s3] sm:$0x7] }
  0x15   : > { %1001 = vmatprep.subr.bf16.mxu1 %v1081_v1  ;;  %958 = vmatprep.subr.bf16.mxu0 %v1049_v15  ;;  %v499_v3 = vld [vmem:[#allocation2] ss:$4 sm:$0x7]  ;;  %v504_v7 = vld [vmem:[#allocation2 + $0x1] ss:$4 sm:$0x7]  ;;  %vm848_vm5 = vmand %vm846_vm3, %vm847_vm4 }
  0x16   : > { %v919_v8 = vld [vmem:[%s1337_s3 + $0x3] sm:$0x7]  ;;  %v501_v12 = vmul.f32 %v500_v6, %v499_v3  ;;  %v920_v15 = vld [vmem:[%s1337_s3 + $0x6] sm:$0x7]  ;;  %v849_v3 = vld [vmem:[%s268_s20] sm:$0x1] }
  0x17   : > { %917 = vmatmul.mubr.msk.bf16.vlgmr.msra.gmra.mrb[0].mxu0 %vm368_vm1, %v270_v14  ;;  %998 = vmatmul.mubr.msk.bf16.vlgmr.msra.gmra.mrb[0].mxu1 %vm368_vm1, %v270_v14  ;;  %v507_v13 = vmul.f32 %v919_v8, %v504_v7  ;;  %v510_v14 = vld [vmem:[#allocation2 + $0x2] ss:$4 sm:$0x7] }
  0x18   : > { %1017 = vmatprep.mubr.msk.bf16.mxu1 %vm1083_vm0, %v1081_v1  ;;  %1002 = vmatpush3.bf16.msra.mxu1 %v1050_v16 }
  0x19   : > { %959 = vmatpush3.bf16.msra.mxu0 %v1051_v17  ;;  %1003 = vmatprep.subr.bf16.mxu1 %v1081_v1 }
  0x1a   : > { %960 = vmatprep.subr.bf16.mxu0 %v1052_v18  ;;  %v508_v18 = vadd.f32 %v507_v13, %v501_v12 }
  0x1c   : > { %1004 = vmatpush3.bf16.msra.mxu1 %v1053_v19  ;;  %v513_v19 = vmul.f32 %v920_v15, %v510_v14 }
  0x1d   : > { %961 = vmatpush3.bf16.msra.mxu0 %v1054_v20  ;;  %1005 = vmatprep.subr.bf16.mxu1 %v1081_v1  ;;  %v515_v20 = vld [vmem:[#allocation2 + $0xc] ss:$4 sm:$0x7] }
  0x1e   : > { %962 = vmatprep.subr.bf16.mxu0 %v1055_v21  ;;  %v921_v21 = vld [vmem:[%s1337_s3 + $0x9] sm:$0x7] }
  0x20   : > { %1006 = vmatpush3.bf16.msra.mxu1 %v1056_v22  ;;  %v514_v22 = vadd.f32 %v513_v19, %v508_v18 }
  0x21   : > { %963 = vmatpush3.bf16.msra.mxu0 %v1057_v23  ;;  %1007 = vmatprep.subr.bf16.mxu1 %v1081_v1  ;;  %v518_v23 = vmul.f32 %v921_v21, %v515_v20 }
  0x22   : > { %964 = vmatprep.subr.bf16.mxu0 %v1058_v24  ;;  %v922_v24 = vld [vmem:[%s1337_s3 + $0xc] sm:$0x7] }
  0x24   : > { %1008 = vmatpush3.bf16.msra.mxu1 %v1059_v25  ;;  %v526_v25 = vld [vmem:[#allocation2 + $0xe] ss:$4 sm:$0x7] }
  0x25   : > { %965 = vmatpush3.bf16.msra.mxu0 %v1060_v26  ;;  %1009 = vmatprep.subr.bf16.mxu1 %v1081_v1  ;;  %v923_v26 = vld [vmem:[%s1337_s3 + $0xf] sm:$0x7] }
  0x26   : > { %966 = vmatprep.subr.bf16.mxu0 %v1061_v27  ;;  %v519_v27 = vadd.f32 %v518_v23, %v514_v22 }
  0x28   : > { %1010 = vmatpush3.bf16.msra.mxu1 %v1062_v28  ;;  %v532_v28 = vld [vmem:[#allocation2 + $0x18] ss:$4 sm:$0x7] }
  0x29   : > { %967 = vmatpush3.bf16.msra.mxu0 %v1063_v29  ;;  %1011 = vmatprep.subr.bf16.mxu1 %v1081_v1 }
  0x2a   : > { %968 = vmatprep.subr.bf16.mxu0 %v1064_v30  ;;  %v924_v30 = vld [vmem:[%s1337_s3 + $0x12] sm:$0x7] }
  0x2c   : > { %1012 = vmatpush3.bf16.msra.mxu1 %v1065_v31 }
  0x2d   : > { %969 = vmatpush3.bf16.msra.mxu0 %v1066_v32  ;;  %1013 = vmatprep.subr.bf16.mxu1 %v1081_v1  ;;  %v529_v32 = vmul.f32 %v923_v26, %v526_v25 }
  0x2e   : > { %970 = vmatprep.subr.bf16.mxu0 %v1067_v33  ;;  %v538_v33 = vld [vmem:[#allocation2 + $0x19] ss:$4 sm:$0x7] }
  0x30   : > { %1014 = vmatpush3.bf16.msra.mxu1 %v1068_v34  ;;  %v925_v34 = vld [vmem:[%s1337_s3 + $0x15] sm:$0x7] }
  0x31   : > { %971 = vmatpush3.bf16.msra.mxu0 %v1069_v35  ;;  %1015 = vmatprep.subr.bf16.mxu1 %v1081_v1  ;;  %v541_v42 = vmul.f32 %v925_v34, %v538_v33 }
  0x32   : > { %972 = vmatprep.subr.bf16.mxu0 %v1070_v36  ;;  %v535_v36 = vmul.f32 %v924_v30, %v532_v28 }
  0x34   : > { %1016 = vmatpush3.bf16.msra.mxu1 %v1071_v37  ;;  %v544_v37 = vld [vmem:[#allocation2 + $0x1a] ss:$4 sm:$0x7] }
  0x35   : > { %973 = vmatpush3.bf16.msra.mxu0 %v1072_v38  ;;  %v926_v38 = vld [vmem:[%s1337_s3 + $0x18] sm:$0x7] }
  0x36   : > { %v547_v46 = vmul.f32 %v926_v38, %v544_v37 }
  0xea   : > { %v406_v50 = vpop.f32.mrb[0].mxu0  ;;  %v447_v53 = vpop.f32.mrb[0].mxu1 }
  0xeb   : > { %v407_v52 = vadd.f32 %v406_v50, %v356_v47  ;;  %v408_v54 = vpop.f32.mrb[1].mxu0  ;;  %v448_v55 = vadd.f32 %v447_v53, %v364_v48  ;;  %v999_v57 = vpop.f32.mrb[1].mxu1  ;;  %v549_v48 = vld [vmem:[%s1338_s4] sm:$0x7] }
  0xec   : > { %v409_v56 = vadd.f32 %v408_v54, %v360_v49  ;;  %v410_v58 = vpop.f32.mrb[2].mxu0  ;;  %v450_v60 = vpop.f32.mrb[2].mxu1 }
  0xed   : > { %v453_v59 = vmax.f32 %v407_v52, 0.0  ;;  %v411_v61 = vpop.f32.mrb[3].mxu0  ;;  %v455_v62 = vmax.f32 %v448_v55, 0.0  ;;  %v1000_v1 = vpop.f32.mrb[3].mxu1 }
  0xee   : > { %v454_v0 = vmax.f32 %v409_v56, 0.0 }
  0xef   : > { %v456_v2 = vmin.f32 %v453_v59, 6.0  ;;  %v458_v4 = vmin.f32 %v455_v62, 6.0 }
  0xf0   : > { %v457_v5 = vmin.f32 %v454_v0, 6.0 }
  0xf1   : > { %v482_v9 = vrot.slane %v458_v4, %v474_v63 }
  0xf2   : > { %v468_v10 = vcombine.low %v456_v2, %v457_v5 }
  0xf4   : > { %v475_v11 = vrot.slane %v468_v10, %v474_v63 }
  0xf6   : > { %v483_v16 = vcombine.low %v475_v11, %v482_v9 }
  0xf8   : > { %v490_v17 = vrot.slane %v483_v16, %v474_v63 }
  0xfa   : > { %498 = vst.msk [vmem:[#allocation2 + $0xd] ss:$4 sm:$0x7] %vm495_vm2, %v490_v17 }
 0x101   : > { %v520_v29 = vld [vmem:[#allocation2 + $0xd] ss:$4 sm:$0x7] }
 0x102   : > { %v523_v31 = vmul.f32 %v922_v24, %v520_v29 }
 0x104   : > { %v524_v35 = vadd.f32 %v523_v31, %v519_v27 }
 0x106   : > { %v530_v39 = vadd.f32 %v529_v32, %v524_v35 }
 0x108   : > { %v536_v45 = vadd.f32 %v535_v36, %v530_v39 }
 0x10a   : > { %v542_v47 = vadd.f32 %v541_v42, %v536_v45 }
 0x10c   : > { %v548_v49 = vadd.f32 %v547_v46, %v542_v47 }
 0x10e   : > { %v550_v50 = vadd.f32 %v549_v48, %v548_v49 }
 0x110   : > { %v551_v51 = vmax.f32 %v550_v50, 0.0 }
 0x112   : > { %v552_v52 = vmin.f32 %v551_v51, 6.0 }
 0x114   : > { %v561_v53 = vrot.slane %v552_v52, %v359_v44  ;;  %v565_v54 = vrot.slane %v552_v52, %v363_v43  ;;  %v557_v55 = vrot.slane %v552_v52, %v355_v41  ;;  %v620_v44 = vld [vmem:[%s1340_s6] sm:$0x1] }
 0x116   : > { %v570_v56 = vpack.c.bf16 %v561_v53, %v561_v53  ;;  %v571_v57 = vpack.c.bf16 %v565_v54, %v565_v54  ;;  %v569_v58 = vpack.c.bf16 %v557_v55, %v557_v55 }
 0x118   : > { %797 = vmatprep.mubr.bf16.mxu0 %v570_v56  ;;  %1018 = vmatmul.mubr.bf16.vlgmr.msra.gmra.mrb[4].mxu1 %v571_v57 }
 0x119   : > { %798 = vmatmul.mubr.bf16.vlgmr.msra.gmra.mrb[4].mxu0 %v569_v58 }
 0x1eb   : > { %v839_v59 = vpop.f32.mrb[4].mxu1 }
 0x1ec   : > { %v974_v60 = vpop.f32.mrb[4].mxu0  ;;  %v1019_v61 = vpop.f32.mrb[5].mxu1 }
 0x1ed   : > { %v975_v62 = vpop.f32.mrb[5].mxu0  ;;  %v842_v63 = vpop.f32.mrb[6].mxu1 }
 0x1ee   : > { %v976_v43 = vadd.f32 %v975_v62, %v974_v60  ;;  %v977_v0 = vpop.f32.mrb[6].mxu0  ;;  %v1020_v40 = vpop.f32.mrb[7].mxu1 }
 0x1ef   : > { %v978_v41 = vpop.f32.mrb[7].mxu0 }
 0x1f0   : > { %v800_v1 = vadd.f32 %v976_v43, %v620_v44 }
 0x1f2   : > { %v840_v2 = vadd.f32 %v839_v59, %v800_v1 }
 0x1f4   : > { %v845_v4 = vpack.c.bf16 %v840_v2, %v840_v2 }
 0x1f6   : > { %v850_v5 = vsel %vm848_vm5, %v845_v4, %v849_v3 }
 0x1f7   : > { %851 = vst [vmem:[%s268_s20] sm:$0x1] %v850_v5 }
 0x1f8 PF: > { %s17_s24 = sadd.s32 1, %s1079_s24  }
 0x1f9   : > { %p14_p4 = scmp.ge.s32.totalorder %s17_s24, 4  }
 0x1fb   :  { %16 = sbr.rel (!%p14_p4) target bundleno = 1 (0x1), region = 94 }

// kernel: _lambda_.32
= control target key start
LH: loop header
LB: loop body
LE: loop exit
PB: predicated region body
PF: predicated region fallthrough
CT: control target
= control target key end

     0   :  { %s1554_s24 = smov 0   ;;  %s1873_s0 = inlined_call_operand.vmem [shape: bf16[2,1,96], index: 0, kind: input, shape index: {}]   ;;  %s1874_s1 = inlined_call_operand.vmem [shape: bf16[96,576], index: 1, kind: input, shape index: {}]   ;;  %s1875_s2 = inlined_call_operand.vmem [shape: f32[1,576], index: 2, kind: input, shape index: {}]   ;;  %s1876_s3 = inlined_call_operand.vmem [shape: f32[9,1,576], index: 3, kind: input, shape index: {}]   ;;  %s1877_s4 = inlined_call_operand.vmem [shape: f32[1,576], index: 4, kind: input, shape index: {}]   ;;  %s1878_s5 = inlined_call_operand.vmem [shape: bf16[576,96], index: 5, kind: input, shape index: {}]   ;;  %s1879_s6 = inlined_call_operand.vmem [shape: f32[1,96], index: 6, kind: input, shape index: {}]   ;;  %s1880_s7 = inlined_call_operand.vmem [shape: bf16[2,1,96], index: 7, kind: output, shape index: {}]  }
   0x1 LB: > { %s1243_s25 = sadd.s32 4294967295, %s1508_s24   ;;  %p1247_p0 = scmp.ge.s32.totalorder %s1508_s24, 1  ;;  %s1508_s24 = sphi %s1554_s24, %s17_s24  }
   0x2   : > { %p235_p1 = scmp.lt.s32.totalorder %s1508_s24, 3 }
   0x4   : > { %p236_p2 = pnand %p1247_p0, %p235_p1 }
   0x5   : > { %v1424_v0 = vld [vmem:[%s1874_s1 + $0x4] ss:$20 sps:$4 sm:$0xff] (!%p236_p2)   ;;  %v1426_v1 = vld [vmem:[%s1874_s1 + $0xc] ss:$20 sps:$4 sm:$0xff] (!%p236_p2)   ;;  %v1510_v2 = vmov (!%p236_p2), 0   ;;  %v1511_v5 = vmov (!%p236_p2), 0.0  }
   0x6   : > { %239 = sbr.rel (%p236_p2) target bundleno = 546 (0x222), region = 48  ;;  %526 = vmatprep.mubr.bf16.mxu0 (!%p236_p2), %v1510_v2  ;;  %567 = vmatprep.mubr.bf16.mxu1 (!%p236_p2), %v1510_v2  ;;  %v1428_v3 = vld [vmem:[%s1874_s1] ss:$20 sps:$4 sm:$0xff] (!%p236_p2)   ;;  %v1429_v4 = vld [vmem:[%s1874_s1 + $0x8] ss:$20 sps:$4 sm:$0xff] (!%p236_p2)   ;;  %p263_p3 = scmp.lt.s32.totalorder (!%p236_p2), %s1243_s25, 1 }
   0x7   : > { %494 = vmatprep.subr.bf16.mxu0 (!%p236_p2), %v1424_v0  ;;  %626 = vst [vmem:[#allocation2] sm:$0x77] (!%p236_p2), %v1511_v5  ;;  %627 = vst [vmem:[#allocation2 + $0x8] sm:$0x77] (!%p236_p2), %v1511_v5  ;;  %535 = vmatprep.subr.bf16.mxu1 (!%p236_p2), %v1426_v1  ;;  %v1430_v6 = vld [vmem:[%s1874_s1 + $0x2c] ss:$20 sps:$4 sm:$0xff] (!%p236_p2)   ;;  %v465_v1 = vlaneseq (!%p236_p2) }
   0x8   : > { %630 = vst [vmem:[#allocation2 + $0x14] sm:$0x77] (!%p236_p2), %v1511_v5  ;;  %631 = vst [vmem:[#allocation2 + $0x1c] sm:$0x77] (!%p236_p2), %v1511_v5  ;;  %495 = vmatpush1.bf16.msra.mxu0 (!%p236_p2), %v1428_v3  ;;  %536 = vmatpush1.bf16.msra.mxu1 (!%p236_p2), %v1429_v4  ;;  %v1432_v7 = vld [vmem:[%s1874_s1 + $0x34] ss:$20 sps:$4 sm:$0xff] (!%p236_p2)  }
   0x9   : > { %633 = vst [vmem:[#allocation2 + $0x28] sm:$0x77] (!%p236_p2), %v1511_v5  ;;  %634 = vst [vmem:[#allocation2 + $0x30] sm:$0x77] (!%p236_p2), %v1511_v5  ;;  %v1434_v8 = vld [vmem:[%s1874_s1 + $0x28] ss:$20 sps:$4 sm:$0xff] (!%p236_p2)   ;;  %496 = vmatprep.subr.bf16.mxu0 (!%p236_p2), %v1430_v6  ;;  %537 = vmatprep.subr.bf16.mxu1 (!%p236_p2), %v1432_v7 }
   0xa   : > { %v1435_v9 = vld [vmem:[%s1874_s1 + $0x30] ss:$20 sps:$4 sm:$0xff] (!%p236_p2)   ;;  %v1436_v10 = vld [vmem:[%s1874_s1 + $0x54] ss:$20 sps:$4 sm:$0xff] (!%p236_p2)   ;;  %v1441_v13 = vld [vmem:[%s1874_s1 + $0x58] ss:$20 sps:$4 sm:$0xff] (!%p236_p2)  }
   0xb   : > { %v1438_v11 = vld [vmem:[%s1874_s1 + $0x5c] ss:$20 sps:$4 sm:$0xff] (!%p236_p2)   ;;  %v1444_v15 = vld [vmem:[%s1874_s1 + $0x84] ss:$20 sps:$4 sm:$0xff] (!%p236_p2)   ;;  %v1447_v17 = vld [vmem:[%s1874_s1 + $0x80] ss:$20 sps:$4 sm:$0xff] (!%p236_p2)  }
   0xc   : > { %v1440_v12 = vld [vmem:[%s1874_s1 + $0x50] ss:$20 sps:$4 sm:$0xff] (!%p236_p2)   ;;  %497 = vmatpush1.bf16.msra.mxu0 (!%p236_p2), %v1434_v8  ;;  %538 = vmatpush1.bf16.msra.mxu1 (!%p236_p2), %v1435_v9  ;;  %v1446_v16 = vld [vmem:[%s1874_s1 + $0x78] ss:$20 sps:$4 sm:$0xff] (!%p236_p2)   ;;  %v1452_v20 = vld [vmem:[%s1874_s1 + $0xa0] ss:$20 sps:$4 sm:$0xff] (!%p236_p2)  }
   0xd   : > { %v1442_v14 = vld [vmem:[%s1874_s1 + $0x7c] ss:$20 sps:$4 sm:$0xff]   ;;  %498 = vmatprep.subr.bf16.mxu0 %v1436_v10  ;;  %539 = vmatprep.subr.bf16.mxu1 %v1438_v11  ;;  %v1448_v18 = vld [vmem:[%s1874_s1 + $0xa4] ss:$20 sps:$4 sm:$0xff]   ;;  %v1450_v19 = vld [vmem:[%s1874_s1 + $0xac] ss:$20 sps:$4 sm:$0xff]  }
   0xe   : > { %s1882_s25 = smov (!%p263_p3, %s1243_s25), 1  ;;  %v1453_v21 = vld [vmem:[%s1874_s1 + $0xa8] ss:$20 sps:$4 sm:$0xff]   ;;  %v1454_v22 = vld [vmem:[%s1874_s1 + $0xcc] ss:$20 sps:$4 sm:$0xff]   ;;  %vm490_vm0 = vcmask 785408  }
   0xf   : > { %v1456_v23 = vld [vmem:[%s1874_s1 + $0xd4] ss:$20 sps:$4 sm:$0xff]   ;;  %s265_s9 = scalar_lea.vmem %s1873_s0, %s1882_s25  ;;  %v1459_v25 = vld [vmem:[%s1874_s1 + $0xd0] ss:$20 sps:$4 sm:$0xff]   ;;  %v1461_v28 = vld [vmem:[%s1874_s1 + $0x38] ss:$20 sps:$4 sm:$0xff]   ;;  %s268_s17 = scalar_lea.vmem %s1880_s7, %s1882_s25 }
  0x10   : > { %499 = vmatpush1.bf16.msra.mxu0 %v1440_v12  ;;  %540 = vmatpush1.bf16.msra.mxu1 %v1441_v13  ;;  %v1458_v24 = vld [vmem:[%s1874_s1 + $0xc8] ss:$20 sps:$4 sm:$0xff]   ;;  %v1650_v26 = vld [vmem:[%s265_s9] sm:$0x1]  ;;  %v1460_v27 = vld [vmem:[%s1874_s1 + $0x10] ss:$20 sps:$4 sm:$0xff]  }
  0x11   : > { %500 = vmatprep.subr.bf16.mxu0 %v1442_v14  ;;  %541 = vmatprep.subr.bf16.mxu1 %v1444_v15  ;;  %vm1512_vm1 = vmmov 0   ;;  %v1462_v29 = vld [vmem:[%s1874_s1 + $0x60] ss:$20 sps:$4 sm:$0xff]   ;;  %v1463_v30 = vld [vmem:[%s1874_s1 + $0x88] ss:$20 sps:$4 sm:$0xff]   ;;  %vm628_vm2 = vcmask 518144  }
  0x12   : > { %v1464_v31 = vld [vmem:[%s1874_s1 + $0xb0] ss:$20 sps:$4 sm:$0xff]   ;;  %v1465_v32 = vld [vmem:[%s1874_s1 + $0xd8] ss:$20 sps:$4 sm:$0xff]   ;;  %629 = vst.msk [vmem:[#allocation2 + $0x10] sm:$0x7] %vm628_vm2, %v1511_v5 }
  0x13   : > { %632 = vst.msk [vmem:[#allocation2 + $0x24] sm:$0x7] %vm628_vm2, %v1511_v5  ;;  %635 = vst.msk [vmem:[#allocation2 + $0x38] sm:$0x7] %vm628_vm2, %v1511_v5  ;;  %v1466_v33 = vld [vmem:[%s1878_s5 + $0x40] sm:$0xff]   ;;  %v1470_v37 = vld [vmem:[%s1878_s5 + $0x48] sm:$0xff]  }
  0x14   : > { %501 = vmatpush1.bf16.msra.mxu0 %v1446_v16  ;;  %542 = vmatpush1.bf16.msra.mxu1 %v1447_v17  ;;  %v1467_v34 = vld [vmem:[%s1878_s5] sm:$0xff]   ;;  %v1471_v38 = vld [vmem:[%s1878_s5 + $0x8] sm:$0xff]   ;;  %v1474_v41 = vld [vmem:[%s1878_s5 + $0x50] sm:$0xff]   ;;  %v1784_v2 = vshrl.u32 %v465_v1, 7  ;;  %v1513_v12 = vmov 1966171168  }
  0x15   : > { %502 = vmatprep.subr.bf16.mxu0 %v1448_v18  ;;  %543 = vmatprep.subr.bf16.mxu1 %v1450_v19  ;;  %v1468_v35 = vld [vmem:[%s1878_s5 + $0xc0] sm:$0xff]   ;;  %v1472_v39 = vld [vmem:[%s1878_s5 + $0xc8] sm:$0xff]   ;;  %v1475_v42 = vld [vmem:[%s1878_s5 + $0x10] sm:$0xff]   ;;  %v644_v13 = vunpack.c.l.s4 %v1513_v12  ;;  %vm684_vm3 = vcmp.lt.s32.totalorder %v465_v1, 576  ;;  %vm1062_vm4 = vcmask 523264   ;;  %vm1189_vm5 = vcmask 778240  }
  0x16   : > { %v1469_v36 = vld [vmem:[%s1878_s5 + $0x80] sm:$0xff]   ;;  %v1473_v40 = vld [vmem:[%s1878_s5 + $0x88] sm:$0xff]   ;;  %v1476_v43 = vld [vmem:[%s1878_s5 + $0xd0] sm:$0xff]   ;;  %v467_v3 = vsub.s32 0, %v1784_v2  ;;  %v475_v4 = vsub.s32 2, %v1784_v2  ;;  %v471_v7 = vsub.s32 1, %v1784_v2 }
  0x17   : > { %v1477_v44 = vld [vmem:[%s1878_s5 + $0x90] sm:$0xff]   ;;  %v1478_v45 = vld [vmem:[%s1878_s5 + $0x58] sm:$0xff]   ;;  %v1482_v49 = vld [vmem:[%s1878_s5 + $0x60] sm:$0xff]   ;;  %v479_v8 = vsub.s32 3, %v1784_v2  ;;  %vm1190_vm6 = vsmask.f32 256 }
  0x18   : > { %503 = vmatpush1.bf16.msra.mxu0 %v1452_v20  ;;  %544 = vmatpush1.bf16.msra.mxu1 %v1453_v21  ;;  %v1479_v46 = vld [vmem:[%s1878_s5 + $0x18] sm:$0xff]   ;;  %v1483_v50 = vld [vmem:[%s1878_s5 + $0x20] sm:$0xff]   ;;  %v1486_v53 = vld [vmem:[%s1878_s5 + $0x68] sm:$0xff]  }
  0x19   : > { %504 = vmatprep.subr.bf16.mxu0 %v1454_v22  ;;  %545 = vmatprep.subr.bf16.mxu1 %v1456_v23  ;;  %v1480_v47 = vld [vmem:[%s1878_s5 + $0xd8] sm:$0xff]   ;;  %v1484_v51 = vld [vmem:[%s1878_s5 + $0xe0] sm:$0xff]   ;;  %v1487_v54 = vld [vmem:[%s1878_s5 + $0x28] sm:$0xff]   ;;  %v645_v22 = vunpack.c.0.s8 %v644_v13 }
  0x1a   : > { %v1481_v48 = vld [vmem:[%s1878_s5 + $0x98] sm:$0xff]   ;;  %v1485_v52 = vld [vmem:[%s1878_s5 + $0xa0] sm:$0xff]   ;;  %v1488_v55 = vld [vmem:[%s1878_s5 + $0xe8] sm:$0xff]  }
  0x1b   : > { %v1489_v56 = vld [vmem:[%s1878_s5 + $0xa8] sm:$0xff]   ;;  %v1490_v57 = vld [vmem:[%s1878_s5 + $0x70] sm:$0xff]   ;;  %v1494_v61 = vld [vmem:[%s1878_s5 + $0x78] sm:$0xff]  }
  0x1c   : > { %505 = vmatpush1.bf16.msra.mxu0 %v1458_v24  ;;  %546 = vmatpush1.bf16.msra.mxu1 %v1459_v25  ;;  %v1491_v58 = vld [vmem:[%s1878_s5 + $0x30] sm:$0xff]   ;;  %v1495_v62 = vld [vmem:[%s1878_s5 + $0x38] sm:$0xff]   ;;  %v307_v6 = vld [vmem:[%s1875_s2] sm:$0x1f] }
  0x1d   : > { %1384 = vmatprep.subr.bf16.mxu0 %v1511_v5  ;;  %1335 = vmatprep.subr.bf16.mxu1 %v1466_v33  ;;  %v1492_v59 = vld [vmem:[%s1878_s5 + $0xf0] sm:$0xff]   ;;  %v1496_v63 = vld [vmem:[%s1878_s5 + $0xf8] sm:$0xff]   ;;  %v468_v9 = vrot.slane %v307_v6, %v467_v3  ;;  %v476_v10 = vrot.slane %v307_v6, %v475_v4  ;;  %v472_v11 = vrot.slane %v307_v6, %v471_v7  ;;  %vm1191_vm7 = vmand %vm1189_vm5, %vm1190_vm6 }
  0x1e   : > { %v1493_v60 = vld [vmem:[%s1878_s5 + $0xb0] sm:$0xff]   ;;  %v1497_v0 = vld [vmem:[%s1878_s5 + $0xb8] sm:$0xff]   ;;  %v480_v14 = vrot.slane %v307_v6, %v479_v8 }
  0x1f   : > { %1278 = vmatmul.mubr.msk.bf16.vlgmr.msra.gmra.mrb[0].mxu0 %vm490_vm0, %v1650_v26  ;;  %1279 = vmatmul.mubr.msk.bf16.vlgmr.msra.gmra.mrb[0].mxu1 %vm490_vm0, %v1650_v26  ;;  %v1284_v13 = vld [vmem:[%s1876_s3 + $0x14] sm:$0x1f]  ;;  %v1285_v1 = vld [vmem:[%s1876_s3 + $0x19] sm:$0x1f] }
  0x20   : > { %1385 = vmatpush3.bf16.msra.mxu0 %v1460_v27  ;;  %1396 = vmatprep.mubr.msk.bf16.mxu0 %vm1512_vm1, %v1511_v5 }
  0x21   : > { %1386 = vmatprep.subr.bf16.mxu0 %v1511_v5  ;;  %1336 = vmatpush3.bf16.msra.mxu1 %v1467_v34 }
  0x22   : > { %1337 = vmatprep.subr.bf16.mxu1 %v1470_v37 }
  0x24   : > { %1387 = vmatpush3.bf16.msra.mxu0 %v1461_v28 }
  0x25   : > { %1388 = vmatprep.subr.bf16.mxu0 %v1511_v5  ;;  %1338 = vmatpush3.bf16.msra.mxu1 %v1471_v38 }
  0x26   : > { %1339 = vmatprep.subr.bf16.mxu1 %v1474_v41 }
  0x28   : > { %1389 = vmatpush3.bf16.msra.mxu0 %v1462_v29 }
  0x29   : > { %1390 = vmatprep.subr.bf16.mxu0 %v1511_v5  ;;  %1340 = vmatpush3.bf16.msra.mxu1 %v1475_v42 }
  0x2a   : > { %1341 = vmatprep.subr.bf16.mxu1 %v1478_v45 }
  0x2c   : > { %1391 = vmatpush3.bf16.msra.mxu0 %v1463_v30 }
  0x2d   : > { %1392 = vmatprep.subr.bf16.mxu0 %v1511_v5  ;;  %1342 = vmatpush3.bf16.msra.mxu1 %v1479_v46 }
  0x2e   : > { %1343 = vmatprep.subr.bf16.mxu1 %v1482_v49 }
  0x30   : > { %1393 = vmatpush3.bf16.msra.mxu0 %v1464_v31 }
  0x31   : > { %1394 = vmatprep.subr.bf16.mxu0 %v1511_v5  ;;  %1344 = vmatpush3.bf16.msra.mxu1 %v1483_v50 }
  0x32   : > { %1345 = vmatprep.subr.bf16.mxu1 %v1486_v53  ;;  %v693_v53 = vld [vmem:[#allocation2 + $0x1] ss:$4 sm:$0x1f] }
  0x34   : > { %1395 = vmatpush3.bf16.msra.mxu0 %v1465_v32 }
  0x35   : > { %1357 = vmatprep.subr.bf16.mxu0 %v1468_v35  ;;  %1346 = vmatpush3.bf16.msra.mxu1 %v1487_v54  ;;  %v1281_v54 = vld [vmem:[%s1876_s3 + $0x5] sm:$0x1f] }
  0x36   : > { %1347 = vmatprep.subr.bf16.mxu1 %v1490_v57 }
  0x37   : > { %1397 = vmatmul.mubr.msk.bf16.vlgmr.msra.gmra.mrb[4].mxu0 %vm490_vm0, %v1650_v26 }
  0x38   : > { %1358 = vmatpush3.bf16.msra.mxu0 %v1469_v36  ;;  %v648_v36 = vsub.s32 %v645_v22, %v1784_v2  ;;  %v1287_v22 = vld [vmem:[%s1876_s3 + $0x23] sm:$0x1f] }
  0x39   : > { %1359 = vmatprep.subr.bf16.mxu0 %v1472_v39  ;;  %1348 = vmatpush3.bf16.msra.mxu1 %v1491_v58  ;;  %v696_v58 = vmul.f32 %v1281_v54, %v693_v53 }
  0x3a   : > { %1349 = vmatprep.subr.bf16.mxu1 %v1494_v61 }
  0x3c   : > { %1360 = vmatpush3.bf16.msra.mxu0 %v1473_v40 }
  0x3d   : > { %1361 = vmatprep.subr.bf16.mxu0 %v1476_v43  ;;  %1350 = vmatpush3.bf16.msra.mxu1 %v1495_v62  ;;  %v483_v43 = vsub.s32 4, %v1784_v2 }
  0x3e   : > { %1400 = vmatprep.subr.bf16.mxu1 %v1511_v5 }
  0x40   : > { %1362 = vmatpush3.bf16.msra.mxu0 %v1477_v44  ;;  %v484_v44 = vrot.slane %v307_v6, %v483_v43 }
  0x41   : > { %1363 = vmatprep.subr.bf16.mxu0 %v1480_v47 }
  0x44   : > { %1364 = vmatpush3.bf16.msra.mxu0 %v1481_v48  ;;  %v688_v48 = vld [vmem:[#allocation2] ss:$4 sm:$0x1f] }
  0x45   : > { %1365 = vmatprep.subr.bf16.mxu0 %v1484_v51  ;;  %v689_v51 = vld [vmem:[%s1876_s3] sm:$0x1f] }
  0x46   : > { %v690_v57 = vmul.f32 %v689_v51, %v688_v48  ;;  %v845_v51 = vld [vmem:[%s1879_s6] sm:$0x1] }
  0x48   : > { %1366 = vmatpush3.bf16.msra.mxu0 %v1485_v52 }
  0x49   : > { %1367 = vmatprep.subr.bf16.mxu0 %v1488_v55 }
  0x4c   : > { %1368 = vmatpush3.bf16.msra.mxu0 %v1489_v56 }
  0x4d   : > { %1369 = vmatprep.subr.bf16.mxu0 %v1492_v59  ;;  %v699_v59 = vld [vmem:[#allocation2 + $0x2] ss:$4 sm:$0x1f] }
  0x50   : > { %1370 = vmatpush3.bf16.msra.mxu0 %v1493_v60  ;;  %v1282_v60 = vld [vmem:[%s1876_s3 + $0xa] sm:$0x1f] }
  0x51   : > { %1371 = vmatprep.subr.bf16.mxu0 %v1496_v63  ;;  %v702_v6 = vmul.f32 %v1282_v60, %v699_v59  ;;  %v1186_v59 = vunpack.c.l.bf16 %v1650_v26 }
  0x54   : > { %1372 = vmatpush3.bf16.msra.mxu0 %v1497_v0  ;;  %v697_v0 = vadd.f32 %v696_v58, %v690_v57 }
  0xf2   : > { %v528_v15 = vpop.f32.mrb[0].mxu0  ;;  %v569_v16 = vpop.f32.mrb[0].mxu1 }
  0xf3   : > { %v529_v17 = vadd.f32 %v528_v15, %v468_v9  ;;  %v570_v18 = vadd.f32 %v569_v16, %v476_v10  ;;  %v530_v19 = vpop.f32.mrb[1].mxu0  ;;  %v571_v20 = vpop.f32.mrb[1].mxu1  ;;  %v704_v9 = vld [vmem:[#allocation2 + $0x14] ss:$4 sm:$0x1f] }
  0xf4   : > { %v531_v21 = vadd.f32 %v530_v19, %v472_v11  ;;  %v572_v23 = vadd.f32 %v571_v20, %v480_v14  ;;  %v532_v24 = vpop.f32.mrb[2].mxu0  ;;  %v573_v25 = vpop.f32.mrb[2].mxu1  ;;  %v1283_v10 = vld [vmem:[%s1876_s3 + $0xf] sm:$0x1f]  ;;  %v703_v11 = vadd.f32 %v702_v6, %v697_v0 }
  0xf5   : > { %v616_v27 = vmax.f32 %v529_v17, 0.0  ;;  %v618_v28 = vmax.f32 %v570_v18, 0.0  ;;  %v533_v29 = vpop.f32.mrb[3].mxu0  ;;  %v574_v30 = vpop.f32.mrb[3].mxu1  ;;  %v707_v12 = vmul.f32 %v1283_v10, %v704_v9  ;;  %v1286_v18 = vld [vmem:[%s1876_s3 + $0x1e] sm:$0x1f] }
  0xf6   : > { %v617_v31 = vmax.f32 %v531_v21, 0.0  ;;  %v619_v32 = vmax.f32 %v572_v23, 0.0  ;;  %v715_v14 = vld [vmem:[#allocation2 + $0x16] ss:$4 sm:$0x1f] }
  0xf7   : > { %v621_v33 = vmin.f32 %v616_v27, 6.0  ;;  %v623_v34 = vmin.f32 %v618_v28, 6.0  ;;  %v708_v15 = vadd.f32 %v707_v12, %v703_v11  ;;  %v721_v16 = vld [vmem:[#allocation2 + $0x28] ss:$4 sm:$0x1f]  ;;  %v718_v20 = vmul.f32 %v1285_v1, %v715_v14 }
  0xf8   : > { %v622_v35 = vmin.f32 %v617_v31, 6.0  ;;  %v624_v37 = vmin.f32 %v619_v32, 6.0  ;;  %v727_v21 = vld [vmem:[#allocation2 + $0x29] ss:$4 sm:$0x1f]  ;;  %v724_v24 = vmul.f32 %v1286_v18, %v721_v16 }
  0xf9   : > { %v733_v25 = vld [vmem:[#allocation2 + $0x2a] ss:$4 sm:$0x1f]  ;;  %v730_v29 = vmul.f32 %v1287_v22, %v727_v21  ;;  %v1192_v9 = vld [vmem:[%s268_s17] sm:$0x1] }
  0xfa   : > { %v641_v38 = vcombine.low %v621_v33, %v622_v35  ;;  %v642_v39 = vcombine.low %v623_v34, %v624_v37  ;;  %v1288_v27 = vld [vmem:[%s1876_s3 + $0x28] sm:$0x1f]  ;;  %v738_v33 = vld [vmem:[%s1877_s4] sm:$0x1f] }
  0xfb   : > { %v736_v31 = vmul.f32 %v1288_v27, %v733_v25 }
  0xfc   : > { %v649_v40 = vrot.slane %v641_v38, %v648_v36  ;;  %v656_v41 = vrot.slane %v642_v39, %v648_v36 }
  0xfe   : > { %v664_v42 = vcombine.low %v649_v40, %v656_v41 }
 0x100   : > { %v671_v61 = vrot.slane %v664_v42, %v648_v36 }
 0x10a   : > { %v610_v45 = vpop.f32.mrb[4].mxu0 }
 0x10b   : > { %v611_v46 = vadd.f32 %v610_v45, %v484_v44  ;;  %v1398_v47 = vpop.f32.mrb[5].mxu0 }
 0x10c   : > { %v613_v49 = vpop.f32.mrb[6].mxu0 }
 0x10d   : > { %v620_v50 = vmax.f32 %v611_v46, 0.0  ;;  %v1399_v52 = vpop.f32.mrb[7].mxu0  ;;  %v1498_v46 = vld [vmem:[%s1878_s5 + $0x100] sm:$0xff]  }
 0x10f   : > { %v625_v55 = vmin.f32 %v620_v50, 6.0 }
 0x111   : > { %v663_v56 = vrot.slane %v625_v55, %v648_v36 }
 0x113   : > { %v678_v62 = vrot.slane %v663_v56, %v648_v36 }
 0x115   : > { %v679_v63 = vcombine.low %v671_v61, %v678_v62 }
 0x117   : > { %687 = vst.msk [vmem:[#allocation2 + $0x15] ss:$4 sm:$0x1f] %vm684_vm3, %v679_v63 }
 0x11e   : > { %v709_v17 = vld [vmem:[#allocation2 + $0x15] ss:$4 sm:$0x1f] }
 0x11f   : > { %v712_v19 = vmul.f32 %v1284_v13, %v709_v17 }
 0x121   : > { %v713_v23 = vadd.f32 %v712_v19, %v708_v15 }
 0x123   : > { %v719_v28 = vadd.f32 %v718_v20, %v713_v23 }
 0x125   : > { %v725_v30 = vadd.f32 %v724_v24, %v719_v28 }
 0x127   : > { %v731_v32 = vadd.f32 %v730_v29, %v725_v30 }
 0x129   : > { %v737_v34 = vadd.f32 %v736_v31, %v731_v32 }
 0x12b   : > { %v739_v35 = vadd.f32 %v738_v33, %v737_v34 }
 0x12d   : > { %v740_v36 = vmax.f32 %v739_v35, 0.0 }
 0x12f   : > { %v741_v37 = vmin.f32 %v740_v36, 6.0 }
 0x131   : > { %v750_v38 = vrot.slane %v741_v37, %v471_v7  ;;  %v758_v39 = vrot.slane %v741_v37, %v479_v8  ;;  %v746_v40 = vrot.slane %v741_v37, %v467_v3  ;;  %v754_v41 = vrot.slane %v741_v37, %v475_v4  ;;  %v1499_v3 = vld [vmem:[%s1878_s5 + $0x108] sm:$0xff]   ;;  %v1500_v4 = vld [vmem:[%s1878_s5 + $0x110] sm:$0xff]   ;;  %v1501_v7 = vld [vmem:[%s1878_s5 + $0x118] sm:$0xff]  }
 0x132   : > { %v762_v8 = vrot.slane %v741_v37, %v483_v43 }
 0x133   : > { %v769_v42 = vpack.c.bf16 %v750_v38, %v750_v38  ;;  %v771_v44 = vpack.c.bf16 %v758_v39, %v758_v39  ;;  %v768_v45 = vpack.c.bf16 %v746_v40, %v746_v40  ;;  %v770_v47 = vpack.c.bf16 %v754_v41, %v754_v41 }
 0x134   : > { %v772_v48 = vpack.c.bf16 %v762_v8, %v762_v8 }
 0x135   : > { %1098 = vmatprep.mubr.bf16.mxu1 %v769_v42  ;;  %1138 = vmatprep.mubr.bf16.mxu0 %v771_v44 }
 0x136   : > { %1099 = vmatmul.mubr.bf16.vlgmr.msra.gmra.mrb[4].mxu1 %v768_v45  ;;  %1139 = vmatmul.mubr.bf16.vlgmr.msra.gmra.mrb[8].mxu0 %v770_v47 }
 0x137   : > { %1401 = vmatpush3.bf16.msra.mxu1 %v1498_v46  ;;  %1408 = vmatprep.mubr.msk.bf16.mxu1 %vm1512_vm1, %v1511_v5 }
 0x138   : > { %1402 = vmatprep.subr.bf16.mxu1 %v1511_v5 }
 0x13b   : > { %1403 = vmatpush3.bf16.msra.mxu1 %v1499_v3 }
 0x13c   : > { %1404 = vmatprep.subr.bf16.mxu1 %v1511_v5 }
 0x13f   : > { %1405 = vmatpush3.bf16.msra.mxu1 %v1500_v4 }
 0x140   : > { %1406 = vmatprep.subr.bf16.mxu1 %v1511_v5 }
 0x143   : > { %1407 = vmatpush3.bf16.msra.mxu1 %v1501_v7 }
 0x146   : > { %1409 = vmatmul.mubr.msk.bf16.vlgmr.msra.gmra.mrb[8].mxu1 %vm1062_vm4, %v772_v48 }
 0x209   : > { %v1351_v49 = vpop.f32.mrb[4].mxu1  ;;  %v1373_v50 = vpop.f32.mrb[8].mxu0 }
 0x20a   : > { %v1352_v52 = vpop.f32.mrb[5].mxu1  ;;  %v1374_v53 = vpop.f32.mrb[9].mxu0 }
 0x20b   : > { %v1353_v54 = vadd.f32 %v1352_v52, %v1351_v49  ;;  %v1375_v55 = vadd.f32 %v1374_v53, %v1373_v50  ;;  %v1354_v56 = vpop.f32.mrb[6].mxu1  ;;  %v1376_v2 = vpop.f32.mrb[10].mxu0 }
 0x20c   : > { %v1355_v43 = vpop.f32.mrb[7].mxu1  ;;  %v1377_v57 = vpop.f32.mrb[11].mxu0 }
 0x20d   : > { %v1101_v5 = vadd.f32 %v1353_v54, %v845_v51 }
 0x20f   : > { %v1141_v58 = vadd.f32 %v1375_v55, %v1101_v5 }
 0x219   : > { %v1180_v60 = vpop.f32.mrb[8].mxu1 }
 0x21a   : > { %v1181_v61 = vadd.f32 %v1180_v60, %v1141_v58  ;;  %v1410_v62 = vpop.f32.mrb[9].mxu1 }
 0x21b   : > { %v1183_v63 = vpop.f32.mrb[10].mxu1 }
 0x21c   : > { %v1187_v0 = vadd.f32 %v1186_v59, %v1181_v61  ;;  %v1411_v6 = vpop.f32.mrb[11].mxu1 }
 0x21e   : > { %v1188_v10 = vpack.c.bf16 %v1187_v0, %v1187_v0 }
 0x220   : > { %v1193_v11 = vsel %vm1191_vm7, %v1188_v10, %v1192_v9 }
 0x221   : > { %1194 = vst [vmem:[%s268_s17] sm:$0x1] %v1193_v11 }
 0x222 PF: > { %s17_s24 = sadd.s32 1, %s1508_s24  }
 0x223   : > { %p14_p4 = scmp.ge.s32.totalorder %s17_s24, 4  }
 0x225   :  { %16 = sbr.rel (!%p14_p4) target bundleno = 1 (0x1), region = 94 }

</bundles_post_ra>
